<compile_context>
chip_gen: v6e
topology: v6e:2x2x1
jax: 0.10.0
libtpu: 0.0.40
codegen_flags: <defaults>
</compile_context>

<pallas_src>
import functools

import jax
import jax.numpy as jnp
from jax import lax
from jax.experimental import pallas as pl
from jax.experimental.pallas import tpu as pltpu

LANE = 128


def _round_up(v, m):
    return (v + m - 1) // m * m


def _context_kernel(x_ref, s1_ref, b1_ref, w1_ref, bias1_ref, w2_ref, cb2_ref,
                    o_ref, pad_ref, col_ref, *, H, W, C):
    """One image per grid step. All channel dims are padded to C (= lane width)."""
    f32 = jnp.float32

    # Zero only the 1-pixel halo of the shared padded buffer (the interior is fully
    # overwritten below).  Done every step so it is correct even when the parallel
    # grid axis is split across TensorCores (scratch is per-core, not zero-initialized).
    pad_ref[0:1, :, :] = jnp.zeros((1, W + 2, C), f32)
    pad_ref[H + 1:H + 2, :, :] = jnp.zeros((1, W + 2, C), f32)
    pad_ref[1:H + 1, 0:1, :] = jnp.zeros((H, 1, C), f32)
    pad_ref[1:H + 1, W + 1:W + 2, :] = jnp.zeros((H, 1, C), f32)

    # ---- BatchNorm2d(in) + ReLU (folded affine, f32 VPU math) ----
    x = x_ref[0].astype(f32)                                  # (H, W, C)
    pad_ref[1:H + 1, 1:W + 1, :] = jnp.maximum(x * s1_ref[0] + b1_ref[0], 0.0)

    def im2col():
        # col[:, :, k*C:(k+1)*C] = window of tap k=(dh,dw), cast to bf16.
        # Target is an aligned 128-lane slice; source is a static window of pad_ref.
        for dh in range(3):
            for dw in range(3):
                k = dh * 3 + dw
                col_ref[:, :, k * C:(k + 1) * C] = (
                    pad_ref[dh:dh + H, dw:dw + W, :].astype(col_ref.dtype))

    # ---- Conv1 (3x3, pad=1) with BN2 scale and both biases pre-folded into w1/bias1:
    #      a single MXU matmul, f32 accumulation. ----
    im2col()
    z = jnp.dot(col_ref[...].reshape(H * W, 9 * C), w1_ref[...],
                preferred_element_type=f32) + bias1_ref[0]    # (H*W, C) f32

    # ---- Dropout2d(p=0.3): identity in eval mode ----
    # TODO(synk): training-mode channel dropout (Bernoulli mask per (N, C)) not implemented.

    # ---- Conv2 (3x3, pad=1): reuse the same padded / im2col scratch buffers ----
    pad_ref[1:H + 1, 1:W + 1, :] = z.reshape(H, W, C)
    im2col()
    out = jnp.dot(col_ref[...].reshape(H * W, 9 * C), w2_ref[...],
                  preferred_element_type=f32) + cb2_ref[0]
    o_ref[0] = out.reshape(H, W, C).astype(o_ref.dtype)


def context_module_forward(x, prep, out_channels):
    """x: (N, H, W, Cin) float32, NHWC. Returns (N, H, W, out_channels)."""
    N, H, W, Cin = x.shape
    C = prep["s1"].shape[-1]                                  # lane-padded channel width
    xp = jnp.pad(x, ((0, 0), (0, 0), (0, 0), (0, C - Cin)))

    full2d = lambda a: pl.BlockSpec(a.shape, lambda n: (0, 0))
    in_specs = [pl.BlockSpec((1, H, W, C), lambda n: (n, 0, 0, 0))]
    in_specs += [full2d(prep[k]) for k in ("s1", "b1", "w1", "bias1", "w2", "cb2")]

    kernel = functools.partial(_context_kernel, H=H, W=W, C=C)

    # Advisory cost hint for XLA scheduling around the custom call.
    flops = 2 * (2 * H * W * (9 * C) * C) * N                 # two convs per image
    bytes_accessed = (2 * N * H * W * C) * 4 + 2 * (9 * C * C) * 2 + 4 * C * 4

    out = pl.pallas_call(
        kernel,
        out_shape=jax.ShapeDtypeStruct((N, H, W, C), x.dtype),
        grid_spec=pltpu.PrefetchScalarGridSpec(
            num_scalar_prefetch=0,
            grid=(N,),
            in_specs=in_specs,
            out_specs=pl.BlockSpec((1, H, W, C), lambda n: (n, 0, 0, 0)),
            scratch_shapes=[
                pltpu.VMEM((H + 2, W + 2, C), jnp.float32),   # shared zero-padded buffer
                pltpu.VMEM((H, W, 9 * C), jnp.bfloat16),      # shared 3-D im2col tile
            ],
        ),
        compiler_params=pltpu.CompilerParams(
            dimension_semantics=("parallel",),    # N>=2 (even) keeps both v7x TCs busy
            vmem_limit_bytes=32 * 1024 * 1024,
        ),
        cost_estimate=pl.CostEstimate(flops=flops, transcendentals=0,
                                      bytes_accessed=bytes_accessed),
    )(xp, prep["s1"], prep["b1"], prep["w1"], prep["bias1"], prep["w2"], prep["cb2"])
    return out[..., :out_channels]


def make_raw_params(key, in_size, out_size):
    ks = jax.random.split(key, 12)
    p = {}
    p["bn1_gamma"] = 1.0 + 0.1 * jax.random.normal(ks[0], (in_size,), jnp.float32)
    p["bn1_beta"] = 0.1 * jax.random.normal(ks[1], (in_size,), jnp.float32)
    p["bn1_mean"] = 0.1 * jax.random.normal(ks[2], (in_size,), jnp.float32)
    p["bn1_var"] = jnp.abs(1.0 + 0.1 * jax.random.normal(ks[3], (in_size,), jnp.float32))
    p["conv1_w"] = 0.1 * jax.random.normal(ks[4], (3, 3, in_size, out_size), jnp.float32)  # HWIO
    p["conv1_b"] = 0.05 * jax.random.normal(ks[5], (out_size,), jnp.float32)
    p["bn2_gamma"] = 1.0 + 0.1 * jax.random.normal(ks[6], (out_size,), jnp.float32)
    p["bn2_beta"] = 0.1 * jax.random.normal(ks[7], (out_size,), jnp.float32)
    p["bn2_mean"] = 0.1 * jax.random.normal(ks[8], (out_size,), jnp.float32)
    p["bn2_var"] = jnp.abs(1.0 + 0.1 * jax.random.normal(ks[9], (out_size,), jnp.float32))
    p["conv2_w"] = 0.1 * jax.random.normal(ks[10], (3, 3, out_size, out_size), jnp.float32)
    p["conv2_b"] = 0.05 * jax.random.normal(ks[11], (out_size,), jnp.float32)
    return p


def prepare_params(raw, eps=1e-5, compute_dtype=jnp.bfloat16):
    """Fold BN (inference running stats) into per-channel scale/bias, fold BN2 and the
    conv1 bias into the conv1 weights (exact algebra), pad channels to the 128-lane
    width, and reshape conv weights to (9*C, C) for a single im2col matmul."""
    cin = raw["conv1_w"].shape[2]
    cout = raw["conv1_w"].shape[3]
    C = max(_round_up(cin, LANE), _round_up(cout, LANE))

    s1 = raw["bn1_gamma"] / jnp.sqrt(raw["bn1_var"] + eps)
    b1 = raw["bn1_beta"] - raw["bn1_mean"] * s1
    s2 = raw["bn2_gamma"] / jnp.sqrt(raw["bn2_var"] + eps)
    b2 = raw["bn2_beta"] - raw["bn2_mean"] * s2

    # BN2(conv(y, w1) + cb1) == conv(y, w1 * s2) + (b2 + s2 * cb1)
    w1f = raw["conv1_w"] * s2[None, None, None, :]
    bias1 = b2 + s2 * raw["conv1_b"]

    padc = lambda v: jnp.pad(v, (0, C - v.shape[0])).reshape(1, C)
    w1p = jnp.zeros((3, 3, C, C), jnp.float32).at[:, :, :cin, :cout].set(w1f)
    w2p = jnp.zeros((3, 3, C, C), jnp.float32).at[:, :, :cout, :cout].set(raw["conv2_w"])

    return {
        "s1": padc(s1), "b1": padc(b1),
        "w1": w1p.reshape(9 * C, C).astype(compute_dtype),
        "bias1": padc(bias1),
        "w2": w2p.reshape(9 * C, C).astype(compute_dtype),
        "cb2": padc(raw["conv2_b"]),
    }


def reference_forward(x, prep, out_channels):
    """Plain-JAX (lax.conv) reference using the same folded/bf16 weights as the kernel,
    so the comparison is exact up to f32 summation order."""
    N, H, W, Cin = x.shape
    C = prep["s1"].shape[-1]
    xp = jnp.pad(x, ((0, 0), (0, 0), (0, 0), (0, C - Cin)))
    y = jnp.maximum(xp * prep["s1"][0] + prep["b1"][0], 0.0)

    w1 = prep["w1"].reshape(3, 3, C, C)
    w2 = prep["w2"].reshape(3, 3, C, C)
    dn = lax.conv_dimension_numbers(y.shape, w1.shape, ("NHWC", "HWIO", "NHWC"))
    z = lax.conv_general_dilated(y.astype(w1.dtype), w1, (1, 1), "SAME",
                                 dimension_numbers=dn,
                                 preferred_element_type=jnp.float32)
    z = z + prep["bias1"][0]
    out = lax.conv_general_dilated(z.astype(w2.dtype), w2, (1, 1), "SAME",
                                   dimension_numbers=dn,
                                   preferred_element_type=jnp.float32)
    out = out + prep["cb2"][0]
    return out[..., :out_channels]


if __name__ == "__main__":
    N, H, W = 2, 16, 16
    in_size, out_size = 4, 8

    key = jax.random.PRNGKey(0)
    kx, kp = jax.random.split(key)
    x = jax.random.normal(kx, (N, H, W, in_size), jnp.float32)

    raw = make_raw_params(kp, in_size, out_size)
    prep = prepare_params(raw)

    out = context_module_forward(x, prep, out_size)
    out = jax.block_until_ready(out)
    assert out.shape == (N, H, W, out_size)

    ref = jax.block_until_ready(reference_forward(x, prep, out_size))
    max_err = jnp.max(jnp.abs(out - ref))
    assert jnp.allclose(out, ref, atol=1e-3, rtol=1e-3), f"max abs err {max_err}"

    print("KERNEL_OK")
</pallas_src>

<mosaic_0001>
module attributes {stable_mosaic.version = 11 : i64} {
  func.func @_context_kernel(%arg0: i32, %arg1: memref<1x16x16x128xf32, #tpu.memory_space<vmem>>, %arg2: memref<1x128xf32, #tpu.memory_space<vmem>>, %arg3: memref<1x128xf32, #tpu.memory_space<vmem>>, %arg4: memref<1152x128xbf16, #tpu.memory_space<vmem>>, %arg5: memref<1x128xf32, #tpu.memory_space<vmem>>, %arg6: memref<1152x128xbf16, #tpu.memory_space<vmem>>, %arg7: memref<1x128xf32, #tpu.memory_space<vmem>>, %arg8: memref<1x16x16x128xf32, #tpu.memory_space<vmem>>, %arg9: memref<18x18x128xf32, #tpu.memory_space<vmem>>, %arg10: memref<16x16x1152xbf16, #tpu.memory_space<vmem>>) attributes {dimension_semantics = [#tpu.dimension_semantics<parallel>], iteration_bounds = array<i64: 2>, scalar_prefetch = 0 : i64, scratch_operands = 2 : i64, tpu.core_type = #tpu.core_type<tc>, window_params = [{transform_indices = @transform_0, window_bounds = array<i64: 1, 16, 16, 128>}, {pipeline_mode = #tpu.pipeline_mode<synchronous>, transform_indices = @transform_1, window_bounds = array<i64: 1, 128>}, {pipeline_mode = #tpu.pipeline_mode<synchronous>, transform_indices = @transform_2, window_bounds = array<i64: 1, 128>}, {pipeline_mode = #tpu.pipeline_mode<synchronous>, transform_indices = @transform_3, window_bounds = array<i64: 1152, 128>}, {pipeline_mode = #tpu.pipeline_mode<synchronous>, transform_indices = @transform_4, window_bounds = array<i64: 1, 128>}, {pipeline_mode = #tpu.pipeline_mode<synchronous>, transform_indices = @transform_5, window_bounds = array<i64: 1152, 128>}, {pipeline_mode = #tpu.pipeline_mode<synchronous>, transform_indices = @transform_6, window_bounds = array<i64: 1, 128>}, {transform_indices = @transform_7, window_bounds = array<i64: 1, 16, 16, 128>}]} {
    %cst = arith.constant 0.000000e+00 : f32
    %0 = vector.broadcast %cst : f32 to vector<1x18x128xf32>
    %c0 = arith.constant 0 : index
    %c0_0 = arith.constant 0 : index
    %c0_1 = arith.constant 0 : index
    %1 = vector.load %arg9[%c0, %c0_0, %c0_1] : memref<18x18x128xf32, #tpu.memory_space<vmem>>, vector<1x18x128xf32>
    tpu.vector_store %arg9[%c0, %c0_0, %c0_1], %0 {strides = array<i32>} : memref<18x18x128xf32, #tpu.memory_space<vmem>>, vector<1x18x128xf32>,
    %cst_2 = arith.constant 0.000000e+00 : f32
    %2 = vector.broadcast %cst_2 : f32 to vector<1x18x128xf32>
    %c17 = arith.constant 17 : index
    %c0_3 = arith.constant 0 : index
    %c0_4 = arith.constant 0 : index
    %3 = vector.load %arg9[%c17, %c0_3, %c0_4] : memref<18x18x128xf32, #tpu.memory_space<vmem>>, vector<1x18x128xf32>
    tpu.vector_store %arg9[%c17, %c0_3, %c0_4], %2 {strides = array<i32>} : memref<18x18x128xf32, #tpu.memory_space<vmem>>, vector<1x18x128xf32>,
    %cst_5 = arith.constant 0.000000e+00 : f32
    %4 = vector.broadcast %cst_5 : f32 to vector<16x1x128xf32>
    %c1 = arith.constant 1 : index
    %c0_6 = arith.constant 0 : index
    %c0_7 = arith.constant 0 : index
    %5 = vector.load %arg9[%c1, %c0_6, %c0_7] : memref<18x18x128xf32, #tpu.memory_space<vmem>>, vector<16x1x128xf32>
    tpu.vector_store %arg9[%c1, %c0_6, %c0_7], %4 {strides = array<i32>} : memref<18x18x128xf32, #tpu.memory_space<vmem>>, vector<16x1x128xf32>,
    %cst_8 = arith.constant 0.000000e+00 : f32
    %6 = vector.broadcast %cst_8 : f32 to vector<16x1x128xf32>
    %c1_9 = arith.constant 1 : index
    %c17_10 = arith.constant 17 : index
    %c0_11 = arith.constant 0 : index
    %7 = vector.load %arg9[%c1_9, %c17_10, %c0_11] : memref<18x18x128xf32, #tpu.memory_space<vmem>>, vector<16x1x128xf32>
    tpu.vector_store %arg9[%c1_9, %c17_10, %c0_11], %6 {strides = array<i32>} : memref<18x18x128xf32, #tpu.memory_space<vmem>>, vector<16x1x128xf32>,
    %c0_12 = arith.constant 0 : index
    %c0_13 = arith.constant 0 : index
    %c0_14 = arith.constant 0 : index
    %c0_15 = arith.constant 0 : index
    %8 = vector.load %arg1[%c0_12, %c0_13, %c0_14, %c0_15] : memref<1x16x16x128xf32, #tpu.memory_space<vmem>>, vector<1x16x16x128xf32>
    %9 = vector.shape_cast %8 : vector<1x16x16x128xf32> to vector<16x16x128xf32>
    %c0_16 = arith.constant 0 : index
    %c0_17 = arith.constant 0 : index
    %10 = vector.load %arg2[%c0_16, %c0_17] : memref<1x128xf32, #tpu.memory_space<vmem>>, vector<1x128xf32>
    %11 = vector.shape_cast %10 : vector<1x128xf32> to vector<128xf32>
    %12 = vector.shape_cast %11 : vector<128xf32> to vector<1x1x128xf32>
    %13 = vector.broadcast %12 : vector<1x1x128xf32> to vector<16x16x128xf32>
    %14 = arith.mulf %9, %13 : vector<16x16x128xf32>
    %c0_18 = arith.constant 0 : index
    %c0_19 = arith.constant 0 : index
    %15 = vector.load %arg3[%c0_18, %c0_19] : memref<1x128xf32, #tpu.memory_space<vmem>>, vector<1x128xf32>
    %16 = vector.shape_cast %15 : vector<1x128xf32> to vector<128xf32>
    %17 = vector.shape_cast %16 : vector<128xf32> to vector<1x1x128xf32>
    %18 = vector.broadcast %17 : vector<1x1x128xf32> to vector<16x16x128xf32>
    %19 = arith.addf %14, %18 : vector<16x16x128xf32>
    %cst_20 = arith.constant 0.000000e+00 : f32
    %20 = vector.broadcast %cst_20 : f32 to vector<16x16x128xf32>
    %21 = arith.maximumf %19, %20 : vector<16x16x128xf32>
    %c1_21 = arith.constant 1 : index
    %c1_22 = arith.constant 1 : index
    %c0_23 = arith.constant 0 : index
    %22 = vector.load %arg9[%c1_21, %c1_22, %c0_23] : memref<18x18x128xf32, #tpu.memory_space<vmem>>, vector<16x16x128xf32>
    tpu.vector_store %arg9[%c1_21, %c1_22, %c0_23], %21 {strides = array<i32>} : memref<18x18x128xf32, #tpu.memory_space<vmem>>, vector<16x16x128xf32>,
    %c0_24 = arith.constant 0 : index
    %c0_25 = arith.constant 0 : index
    %c0_26 = arith.constant 0 : index
    %23 = vector.load %arg9[%c0_24, %c0_25, %c0_26] : memref<18x18x128xf32, #tpu.memory_space<vmem>>, vector<16x16x128xf32>
    %24 = arith.truncf %23 : vector<16x16x128xf32> to vector<16x16x128xbf16>
    %c0_27 = arith.constant 0 : index
    %c0_28 = arith.constant 0 : index
    %c0_29 = arith.constant 0 : index
    %25 = vector.load %arg10[%c0_27, %c0_28, %c0_29] : memref<16x16x1152xbf16, #tpu.memory_space<vmem>>, vector<16x16x128xbf16>
    tpu.vector_store %arg10[%c0_27, %c0_28, %c0_29], %24 {strides = array<i32>} : memref<16x16x1152xbf16, #tpu.memory_space<vmem>>, vector<16x16x128xbf16>,
    %c0_30 = arith.constant 0 : index
    %c1_31 = arith.constant 1 : index
    %c0_32 = arith.constant 0 : index
    %26 = vector.load %arg9[%c0_30, %c1_31, %c0_32] : memref<18x18x128xf32, #tpu.memory_space<vmem>>, vector<16x16x128xf32>
    %27 = arith.truncf %26 : vector<16x16x128xf32> to vector<16x16x128xbf16>
    %c0_33 = arith.constant 0 : index
    %c0_34 = arith.constant 0 : index
    %c128 = arith.constant 128 : index
    %28 = vector.load %arg10[%c0_33, %c0_34, %c128] : memref<16x16x1152xbf16, #tpu.memory_space<vmem>>, vector<16x16x128xbf16>
    tpu.vector_store %arg10[%c0_33, %c0_34, %c128], %27 {strides = array<i32>} : memref<16x16x1152xbf16, #tpu.memory_space<vmem>>, vector<16x16x128xbf16>,
    %c0_35 = arith.constant 0 : index
    %c2 = arith.constant 2 : index
    %c0_36 = arith.constant 0 : index
    %29 = vector.load %arg9[%c0_35, %c2, %c0_36] : memref<18x18x128xf32, #tpu.memory_space<vmem>>, vector<16x16x128xf32>
    %30 = arith.truncf %29 : vector<16x16x128xf32> to vector<16x16x128xbf16>
    %c0_37 = arith.constant 0 : index
    %c0_38 = arith.constant 0 : index
    %c256 = arith.constant 256 : index
    %31 = vector.load %arg10[%c0_37, %c0_38, %c256] : memref<16x16x1152xbf16, #tpu.memory_space<vmem>>, vector<16x16x128xbf16>
    tpu.vector_store %arg10[%c0_37, %c0_38, %c256], %30 {strides = array<i32>} : memref<16x16x1152xbf16, #tpu.memory_space<vmem>>, vector<16x16x128xbf16>,
    %c1_39 = arith.constant 1 : index
    %c0_40 = arith.constant 0 : index
    %c0_41 = arith.constant 0 : index
    %32 = vector.load %arg9[%c1_39, %c0_40, %c0_41] : memref<18x18x128xf32, #tpu.memory_space<vmem>>, vector<16x16x128xf32>
    %33 = arith.truncf %32 : vector<16x16x128xf32> to vector<16x16x128xbf16>
    %c0_42 = arith.constant 0 : index
    %c0_43 = arith.constant 0 : index
    %c384 = arith.constant 384 : index
    %34 = vector.load %arg10[%c0_42, %c0_43, %c384] : memref<16x16x1152xbf16, #tpu.memory_space<vmem>>, vector<16x16x128xbf16>
    tpu.vector_store %arg10[%c0_42, %c0_43, %c384], %33 {strides = array<i32>} : memref<16x16x1152xbf16, #tpu.memory_space<vmem>>, vector<16x16x128xbf16>,
    %c1_44 = arith.constant 1 : index
    %c1_45 = arith.constant 1 : index
    %c0_46 = arith.constant 0 : index
    %35 = vector.load %arg9[%c1_44, %c1_45, %c0_46] : memref<18x18x128xf32, #tpu.memory_space<vmem>>, vector<16x16x128xf32>
    %36 = arith.truncf %35 : vector<16x16x128xf32> to vector<16x16x128xbf16>
    %c0_47 = arith.constant 0 : index
    %c0_48 = arith.constant 0 : index
    %c512 = arith.constant 512 : index
    %37 = vector.load %arg10[%c0_47, %c0_48, %c512] : memref<16x16x1152xbf16, #tpu.memory_space<vmem>>, vector<16x16x128xbf16>
    tpu.vector_store %arg10[%c0_47, %c0_48, %c512], %36 {strides = array<i32>} : memref<16x16x1152xbf16, #tpu.memory_space<vmem>>, vector<16x16x128xbf16>,
    %c1_49 = arith.constant 1 : index
    %c2_50 = arith.constant 2 : index
    %c0_51 = arith.constant 0 : index
    %38 = vector.load %arg9[%c1_49, %c2_50, %c0_51] : memref<18x18x128xf32, #tpu.memory_space<vmem>>, vector<16x16x128xf32>
    %39 = arith.truncf %38 : vector<16x16x128xf32> to vector<16x16x128xbf16>
    %c0_52 = arith.constant 0 : index
    %c0_53 = arith.constant 0 : index
    %c640 = arith.constant 640 : index
    %40 = vector.load %arg10[%c0_52, %c0_53, %c640] : memref<16x16x1152xbf16, #tpu.memory_space<vmem>>, vector<16x16x128xbf16>
    tpu.vector_store %arg10[%c0_52, %c0_53, %c640], %39 {strides = array<i32>} : memref<16x16x1152xbf16, #tpu.memory_space<vmem>>, vector<16x16x128xbf16>,
    %c2_54 = arith.constant 2 : index
    %c0_55 = arith.constant 0 : index
    %c0_56 = arith.constant 0 : index
    %41 = vector.load %arg9[%c2_54, %c0_55, %c0_56] : memref<18x18x128xf32, #tpu.memory_space<vmem>>, vector<16x16x128xf32>
    %42 = arith.truncf %41 : vector<16x16x128xf32> to vector<16x16x128xbf16>
    %c0_57 = arith.constant 0 : index
    %c0_58 = arith.constant 0 : index
    %c768 = arith.constant 768 : index
    %43 = vector.load %arg10[%c0_57, %c0_58, %c768] : memref<16x16x1152xbf16, #tpu.memory_space<vmem>>, vector<16x16x128xbf16>
    tpu.vector_store %arg10[%c0_57, %c0_58, %c768], %42 {strides = array<i32>} : memref<16x16x1152xbf16, #tpu.memory_space<vmem>>, vector<16x16x128xbf16>,
    %c2_59 = arith.constant 2 : index
    %c1_60 = arith.constant 1 : index
    %c0_61 = arith.constant 0 : index
    %44 = vector.load %arg9[%c2_59, %c1_60, %c0_61] : memref<18x18x128xf32, #tpu.memory_space<vmem>>, vector<16x16x128xf32>
    %45 = arith.truncf %44 : vector<16x16x128xf32> to vector<16x16x128xbf16>
    %c0_62 = arith.constant 0 : index
    %c0_63 = arith.constant 0 : index
    %c896 = arith.constant 896 : index
    %46 = vector.load %arg10[%c0_62, %c0_63, %c896] : memref<16x16x1152xbf16, #tpu.memory_space<vmem>>, vector<16x16x128xbf16>
    tpu.vector_store %arg10[%c0_62, %c0_63, %c896], %45 {strides = array<i32>} : memref<16x16x1152xbf16, #tpu.memory_space<vmem>>, vector<16x16x128xbf16>,
    %c2_64 = arith.constant 2 : index
    %c2_65 = arith.constant 2 : index
    %c0_66 = arith.constant 0 : index
    %47 = vector.load %arg9[%c2_64, %c2_65, %c0_66] : memref<18x18x128xf32, #tpu.memory_space<vmem>>, vector<16x16x128xf32>
    %48 = arith.truncf %47 : vector<16x16x128xf32> to vector<16x16x128xbf16>
    %c0_67 = arith.constant 0 : index
    %c0_68 = arith.constant 0 : index
    %c1024 = arith.constant 1024 : index
    %49 = vector.load %arg10[%c0_67, %c0_68, %c1024] : memref<16x16x1152xbf16, #tpu.memory_space<vmem>>, vector<16x16x128xbf16>
    tpu.vector_store %arg10[%c0_67, %c0_68, %c1024], %48 {strides = array<i32>} : memref<16x16x1152xbf16, #tpu.memory_space<vmem>>, vector<16x16x128xbf16>,
    %c0_69 = arith.constant 0 : index
    %c0_70 = arith.constant 0 : index
    %c0_71 = arith.constant 0 : index
    %50 = vector.load %arg10[%c0_69, %c0_70, %c0_71] : memref<16x16x1152xbf16, #tpu.memory_space<vmem>>, vector<16x16x1152xbf16>
    %51 = vector.shape_cast %50 : vector<16x16x1152xbf16> to vector<256x1152xbf16>
    %c0_72 = arith.constant 0 : index
    %c0_73 = arith.constant 0 : index
    %52 = vector.load %arg4[%c0_72, %c0_73] : memref<1152x128xbf16, #tpu.memory_space<vmem>>, vector<1152x128xbf16>
    %cst_74 = arith.constant dense<0.000000e+00> : vector<256x128xf32>
    %53 = tpu.matmul %51, %52, %cst_74 {dimension_numbers = #tpu.dot_dimension_numbers<[1], [0], [0], [1], [0, 0, 1, 1], [], []>} : vector<256x1152xbf16>, vector<1152x128xbf16>, vector<256x128xf32> -> vector<256x128xf32>
    %c0_75 = arith.constant 0 : index
    %c0_76 = arith.constant 0 : index
    %54 = vector.load %arg5[%c0_75, %c0_76] : memref<1x128xf32, #tpu.memory_space<vmem>>, vector<1x128xf32>
    %55 = vector.shape_cast %54 : vector<1x128xf32> to vector<128xf32>
    %56 = vector.shape_cast %55 : vector<128xf32> to vector<1x128xf32>
    %57 = vector.broadcast %56 : vector<1x128xf32> to vector<256x128xf32>
    %58 = arith.addf %53, %57 : vector<256x128xf32>
    %59 = vector.shape_cast %58 : vector<256x128xf32> to vector<16x16x128xf32>
    %c1_77 = arith.constant 1 : index
    %c1_78 = arith.constant 1 : index
    %c0_79 = arith.constant 0 : index
    %60 = vector.load %arg9[%c1_77, %c1_78, %c0_79] : memref<18x18x128xf32, #tpu.memory_space<vmem>>, vector<16x16x128xf32>
    tpu.vector_store %arg9[%c1_77, %c1_78, %c0_79], %59 {strides = array<i32>} : memref<18x18x128xf32, #tpu.memory_space<vmem>>, vector<16x16x128xf32>,
    %c0_80 = arith.constant 0 : index
    %c0_81 = arith.constant 0 : index
    %c0_82 = arith.constant 0 : index
    %61 = vector.load %arg9[%c0_80, %c0_81, %c0_82] : memref<18x18x128xf32, #tpu.memory_space<vmem>>, vector<16x16x128xf32>
    %62 = arith.truncf %61 : vector<16x16x128xf32> to vector<16x16x128xbf16>
    %c0_83 = arith.constant 0 : index
    %c0_84 = arith.constant 0 : index
    %c0_85 = arith.constant 0 : index
    %63 = vector.load %arg10[%c0_83, %c0_84, %c0_85] : memref<16x16x1152xbf16, #tpu.memory_space<vmem>>, vector<16x16x128xbf16>
    tpu.vector_store %arg10[%c0_83, %c0_84, %c0_85], %62 {strides = array<i32>} : memref<16x16x1152xbf16, #tpu.memory_space<vmem>>, vector<16x16x128xbf16>,
    %c0_86 = arith.constant 0 : index
    %c1_87 = arith.constant 1 : index
    %c0_88 = arith.constant 0 : index
    %64 = vector.load %arg9[%c0_86, %c1_87, %c0_88] : memref<18x18x128xf32, #tpu.memory_space<vmem>>, vector<16x16x128xf32>
    %65 = arith.truncf %64 : vector<16x16x128xf32> to vector<16x16x128xbf16>
    %c0_89 = arith.constant 0 : index
    %c0_90 = arith.constant 0 : index
    %c128_91 = arith.constant 128 : index
    %66 = vector.load %arg10[%c0_89, %c0_90, %c128_91] : memref<16x16x1152xbf16, #tpu.memory_space<vmem>>, vector<16x16x128xbf16>
    tpu.vector_store %arg10[%c0_89, %c0_90, %c128_91], %65 {strides = array<i32>} : memref<16x16x1152xbf16, #tpu.memory_space<vmem>>, vector<16x16x128xbf16>,
    %c0_92 = arith.constant 0 : index
    %c2_93 = arith.constant 2 : index
    %c0_94 = arith.constant 0 : index
    %67 = vector.load %arg9[%c0_92, %c2_93, %c0_94] : memref<18x18x128xf32, #tpu.memory_space<vmem>>, vector<16x16x128xf32>
    %68 = arith.truncf %67 : vector<16x16x128xf32> to vector<16x16x128xbf16>
    %c0_95 = arith.constant 0 : index
    %c0_96 = arith.constant 0 : index
    %c256_97 = arith.constant 256 : index
    %69 = vector.load %arg10[%c0_95, %c0_96, %c256_97] : memref<16x16x1152xbf16, #tpu.memory_space<vmem>>, vector<16x16x128xbf16>
    tpu.vector_store %arg10[%c0_95, %c0_96, %c256_97], %68 {strides = array<i32>} : memref<16x16x1152xbf16, #tpu.memory_space<vmem>>, vector<16x16x128xbf16>,
    %c1_98 = arith.constant 1 : index
    %c0_99 = arith.constant 0 : index
    %c0_100 = arith.constant 0 : index
    %70 = vector.load %arg9[%c1_98, %c0_99, %c0_100] : memref<18x18x128xf32, #tpu.memory_space<vmem>>, vector<16x16x128xf32>
    %71 = arith.truncf %70 : vector<16x16x128xf32> to vector<16x16x128xbf16>
    %c0_101 = arith.constant 0 : index
    %c0_102 = arith.constant 0 : index
    %c384_103 = arith.constant 384 : index
    %72 = vector.load %arg10[%c0_101, %c0_102, %c384_103] : memref<16x16x1152xbf16, #tpu.memory_space<vmem>>, vector<16x16x128xbf16>
    tpu.vector_store %arg10[%c0_101, %c0_102, %c384_103], %71 {strides = array<i32>} : memref<16x16x1152xbf16, #tpu.memory_space<vmem>>, vector<16x16x128xbf16>,
    %c1_104 = arith.constant 1 : index
    %c1_105 = arith.constant 1 : index
    %c0_106 = arith.constant 0 : index
    %73 = vector.load %arg9[%c1_104, %c1_105, %c0_106] : memref<18x18x128xf32, #tpu.memory_space<vmem>>, vector<16x16x128xf32>
    %74 = arith.truncf %73 : vector<16x16x128xf32> to vector<16x16x128xbf16>
    %c0_107 = arith.constant 0 : index
    %c0_108 = arith.constant 0 : index
    %c512_109 = arith.constant 512 : index
    %75 = vector.load %arg10[%c0_107, %c0_108, %c512_109] : memref<16x16x1152xbf16, #tpu.memory_space<vmem>>, vector<16x16x128xbf16>
    tpu.vector_store %arg10[%c0_107, %c0_108, %c512_109], %74 {strides = array<i32>} : memref<16x16x1152xbf16, #tpu.memory_space<vmem>>, vector<16x16x128xbf16>,
    %c1_110 = arith.constant 1 : index
    %c2_111 = arith.constant 2 : index
    %c0_112 = arith.constant 0 : index
    %76 = vector.load %arg9[%c1_110, %c2_111, %c0_112] : memref<18x18x128xf32, #tpu.memory_space<vmem>>, vector<16x16x128xf32>
    %77 = arith.truncf %76 : vector<16x16x128xf32> to vector<16x16x128xbf16>
    %c0_113 = arith.constant 0 : index
    %c0_114 = arith.constant 0 : index
    %c640_115 = arith.constant 640 : index
    %78 = vector.load %arg10[%c0_113, %c0_114, %c640_115] : memref<16x16x1152xbf16, #tpu.memory_space<vmem>>, vector<16x16x128xbf16>
    tpu.vector_store %arg10[%c0_113, %c0_114, %c640_115], %77 {strides = array<i32>} : memref<16x16x1152xbf16, #tpu.memory_space<vmem>>, vector<16x16x128xbf16>,
    %c2_116 = arith.constant 2 : index
    %c0_117 = arith.constant 0 : index
    %c0_118 = arith.constant 0 : index
    %79 = vector.load %arg9[%c2_116, %c0_117, %c0_118] : memref<18x18x128xf32, #tpu.memory_space<vmem>>, vector<16x16x128xf32>
    %80 = arith.truncf %79 : vector<16x16x128xf32> to vector<16x16x128xbf16>
    %c0_119 = arith.constant 0 : index
    %c0_120 = arith.constant 0 : index
    %c768_121 = arith.constant 768 : index
    %81 = vector.load %arg10[%c0_119, %c0_120, %c768_121] : memref<16x16x1152xbf16, #tpu.memory_space<vmem>>, vector<16x16x128xbf16>
    tpu.vector_store %arg10[%c0_119, %c0_120, %c768_121], %80 {strides = array<i32>} : memref<16x16x1152xbf16, #tpu.memory_space<vmem>>, vector<16x16x128xbf16>,
    %c2_122 = arith.constant 2 : index
    %c1_123 = arith.constant 1 : index
    %c0_124 = arith.constant 0 : index
    %82 = vector.load %arg9[%c2_122, %c1_123, %c0_124] : memref<18x18x128xf32, #tpu.memory_space<vmem>>, vector<16x16x128xf32>
    %83 = arith.truncf %82 : vector<16x16x128xf32> to vector<16x16x128xbf16>
    %c0_125 = arith.constant 0 : index
    %c0_126 = arith.constant 0 : index
    %c896_127 = arith.constant 896 : index
    %84 = vector.load %arg10[%c0_125, %c0_126, %c896_127] : memref<16x16x1152xbf16, #tpu.memory_space<vmem>>, vector<16x16x128xbf16>
    tpu.vector_store %arg10[%c0_125, %c0_126, %c896_127], %83 {strides = array<i32>} : memref<16x16x1152xbf16, #tpu.memory_space<vmem>>, vector<16x16x128xbf16>,
    %c2_128 = arith.constant 2 : index
    %c2_129 = arith.constant 2 : index
    %c0_130 = arith.constant 0 : index
    %85 = vector.load %arg9[%c2_128, %c2_129, %c0_130] : memref<18x18x128xf32, #tpu.memory_space<vmem>>, vector<16x16x128xf32>
    %86 = arith.truncf %85 : vector<16x16x128xf32> to vector<16x16x128xbf16>
    %c0_131 = arith.constant 0 : index
    %c0_132 = arith.constant 0 : index
    %c1024_133 = arith.constant 1024 : index
    %87 = vector.load %arg10[%c0_131, %c0_132, %c1024_133] : memref<16x16x1152xbf16, #tpu.memory_space<vmem>>, vector<16x16x128xbf16>
    tpu.vector_store %arg10[%c0_131, %c0_132, %c1024_133], %86 {strides = array<i32>} : memref<16x16x1152xbf16, #tpu.memory_space<vmem>>, vector<16x16x128xbf16>,
    %c0_134 = arith.constant 0 : index
    %c0_135 = arith.constant 0 : index
    %c0_136 = arith.constant 0 : index
    %88 = vector.load %arg10[%c0_134, %c0_135, %c0_136] : memref<16x16x1152xbf16, #tpu.memory_space<vmem>>, vector<16x16x1152xbf16>
    %89 = vector.shape_cast %88 : vector<16x16x1152xbf16> to vector<256x1152xbf16>
    %c0_137 = arith.constant 0 : index
    %c0_138 = arith.constant 0 : index
    %90 = vector.load %arg6[%c0_137, %c0_138] : memref<1152x128xbf16, #tpu.memory_space<vmem>>, vector<1152x128xbf16>
    %cst_139 = arith.constant dense<0.000000e+00> : vector<256x128xf32>
    %91 = tpu.matmul %89, %90, %cst_139 {dimension_numbers = #tpu.dot_dimension_numbers<[1], [0], [0], [1], [0, 0, 1, 1], [], []>} : vector<256x1152xbf16>, vector<1152x128xbf16>, vector<256x128xf32> -> vector<256x128xf32>
    %c0_140 = arith.constant 0 : index
    %c0_141 = arith.constant 0 : index
    %92 = vector.load %arg7[%c0_140, %c0_141] : memref<1x128xf32, #tpu.memory_space<vmem>>, vector<1x128xf32>
    %93 = vector.shape_cast %92 : vector<1x128xf32> to vector<128xf32>
    %94 = vector.shape_cast %93 : vector<128xf32> to vector<1x128xf32>
    %95 = vector.broadcast %94 : vector<1x128xf32> to vector<256x128xf32>
    %96 = arith.addf %91, %95 : vector<256x128xf32>
    %97 = vector.shape_cast %96 : vector<256x128xf32> to vector<16x16x128xf32>
    %c0_142 = arith.constant 0 : index
    %c0_143 = arith.constant 0 : index
    %c0_144 = arith.constant 0 : index
    %c0_145 = arith.constant 0 : index
    %98 = vector.load %arg8[%c0_142, %c0_143, %c0_144, %c0_145] : memref<1x16x16x128xf32, #tpu.memory_space<vmem>>, vector<1x16x16x128xf32>
    %99 = vector.shape_cast %98 : vector<1x16x16x128xf32> to vector<16x16x128xf32>
    %100 = vector.shape_cast %97 : vector<16x16x128xf32> to vector<1x16x16x128xf32>
    tpu.vector_store %arg8[%c0_142, %c0_143, %c0_144, %c0_145], %100 {strides = array<i32>} : memref<1x16x16x128xf32, #tpu.memory_space<vmem>>, vector<1x16x16x128xf32>,
    return
  }
  func.func @transform_0(%arg0: i32) -> (i32, i32, i32, i32) {
    %c0_i32 = arith.constant 0 : i32
    %c0_i32_0 = arith.constant 0 : i32
    %c0_i32_1 = arith.constant 0 : i32
    %c0_i32_2 = arith.constant 0 : i32
    return %arg0, %c0_i32, %c0_i32_0, %c0_i32_1 : i32, i32, i32, i32
  }
  func.func @transform_1(%arg0: i32) -> (i32, i32) {
    %c0_i32 = arith.constant 0 : i32
    %c0_i32_0 = arith.constant 0 : i32
    %c0_i32_1 = arith.constant 0 : i32
    return %c0_i32, %c0_i32_0 : i32, i32
  }
  func.func @transform_2(%arg0: i32) -> (i32, i32) {
    %c0_i32 = arith.constant 0 : i32
    %c0_i32_0 = arith.constant 0 : i32
    %c0_i32_1 = arith.constant 0 : i32
    return %c0_i32, %c0_i32_0 : i32, i32
  }
  func.func @transform_3(%arg0: i32) -> (i32, i32) {
    %c0_i32 = arith.constant 0 : i32
    %c0_i32_0 = arith.constant 0 : i32
    %c0_i32_1 = arith.constant 0 : i32
    return %c0_i32, %c0_i32_0 : i32, i32
  }
  func.func @transform_4(%arg0: i32) -> (i32, i32) {
    %c0_i32 = arith.constant 0 : i32
    %c0_i32_0 = arith.constant 0 : i32
    %c0_i32_1 = arith.constant 0 : i32
    return %c0_i32, %c0_i32_0 : i32, i32
  }
  func.func @transform_5(%arg0: i32) -> (i32, i32) {
    %c0_i32 = arith.constant 0 : i32
    %c0_i32_0 = arith.constant 0 : i32
    %c0_i32_1 = arith.constant 0 : i32
    return %c0_i32, %c0_i32_0 : i32, i32
  }
  func.func @transform_6(%arg0: i32) -> (i32, i32) {
    %c0_i32 = arith.constant 0 : i32
    %c0_i32_0 = arith.constant 0 : i32
    %c0_i32_1 = arith.constant 0 : i32
    return %c0_i32, %c0_i32_0 : i32, i32
  }
  func.func @transform_7(%arg0: i32) -> (i32, i32, i32, i32) {
    %c0_i32 = arith.constant 0 : i32
    %c0_i32_0 = arith.constant 0 : i32
    %c0_i32_1 = arith.constant 0 : i32
    %c0_i32_2 = arith.constant 0 : i32
    return %arg0, %c0_i32, %c0_i32_0, %c0_i32_1 : i32, i32, i32, i32
  }
}

</mosaic_0001>

<bundles_post_ra>
// kernel: tpu_custom_call.1
= control target key start
LH: loop header
LB: loop body
LE: loop exit
PB: predicated region body
PF: predicated region fallthrough
CT: control target
= control target key end

     0   :  { %s13423_s0 = inlined_call_operand.hbm [shape: f32[2,16,16,128], index: 0, kind: input, shape index: {}]   ;;  %s13424_s1 = inlined_call_operand.vmem [shape: f32[1,128], index: 1, kind: input, shape index: {}]   ;;  %s13425_s2 = inlined_call_operand.vmem [shape: f32[1,128], index: 2, kind: input, shape index: {}]   ;;  %s13426_s3 = inlined_call_operand.hbm [shape: bf16[1152,128], index: 3, kind: input, shape index: {}]   ;;  %s13427_s4 = inlined_call_operand.vmem [shape: f32[1,128], index: 4, kind: input, shape index: {}]   ;;  %s13428_s5 = inlined_call_operand.hbm [shape: bf16[1152,128], index: 5, kind: input, shape index: {}]   ;;  %s13429_s6 = inlined_call_operand.vmem [shape: f32[1,128], index: 6, kind: input, shape index: {}]   ;;  %s13430_s7 = inlined_call_operand.hbm [shape: f32[2,16,16,128], index: 7, kind: output, shape index: {}]  }
   0x1   :  { %13435 = sst [smem:[#allocation43_spill]] %s13426_s3 }
   0x2   :  { %12 = vsyncpa [#allocation5], 0 }
   0x3   :  { %14 = vsyncpa [#allocation5 + $0x1], 0 }
   0x4   :  { %15 = vsyncpa [#allocation8], 0 }
   0x5   :  { %16 = vsyncpa [#allocation6], 0 }
   0x6   :  { %18 = vsyncpa [#allocation6 + $0x1], 0  ;;  %s12221_s24 = smov 0   ;;  %s12223_s25 = smov 0  }
   0x7   :  { %s12225_s26 = smov 0   ;;  %s12227_s27 = smov 0  }
   0x8 LB: > { %s12242_s28 = sadd.s32 4294967295, %s12167_s27   ;;  %s8736_s29 = sadd.s32 4294967294, %s12167_s27   ;;  %s12167_s27 = sphi %s12227_s27, %s13564_s27   ;;  %s12163_s26 = sphi %s12225_s26, %s13563_s26   ;;  %s12159_s25 = sphi %s12223_s25, %s13562_s25   ;;  %s12155_s24 = sphi %s12221_s24, %s13561_s24  }
   0x9   : > { %p44_p0 = scmp.ne.s32.totalorder %s12159_s25, %s12155_s24  ;;  %p13431_p1 = scmp.eq.s32.totalorder %s12242_s28, 0 }
   0xa   : > { %p200_p3 = scmp.eq.s32.totalorder %s8736_s29, 1  ;;  %p8737_p5 = scmp.ge.s32.totalorder %s12167_s27, 1 }
   0xb   : > { %p12251_p4 = por %p13431_p1, %p44_p0  ;;  %p207_p7 = scmp.lt.s32.totalorder %s12167_s27, 3 }
   0xc   : > { %p12256_p6 = por %p200_p3, %p44_p0  ;;  %s12169_s10 = smov [#allocation7]  }
   0xd   : > { %s13436_s30 = scalar_select %p12251_p4, 1, 0 }
   0xe   : > { %s13437_s8 = scalar_select %p12256_p6, 1, 0 }
   0xf   : > { %p12261_p8 = pnand %p8737_p5, %p207_p7  ;;  %s225_s11 = sshll.u32 %s12169_s10, 4  ;;  %s226_s11 = int_to_ptr.vmem [resolvable:$true] %s225_s11 }
  0x10   : > { %s12170_s13 = smov [#allocation9]   ;;  %s12030_s15 = scalar_lea.vmem %s226_s11, 9216 }
  0x11   : > { %s13438_s9 = scalar_select %p12261_p8, 1, 0 }
  0x12   : > { %p11396_p9 = pneg %p12261_p8  ;;  %s241_s14 = sshll.u32 %s12170_s13, 4  ;;  %s242_s14 = int_to_ptr.vmem [resolvable:$true] %s241_s14 }
  0x13   : > { %p12031_p13 = scmp.ne.s32.totalorder %s226_s11, %s12030_s15  ;;  %p12038_p5 = scmp.lt.s32.totalorder %s226_s11, %s226_s11 }
  0x14   : > { %p12270_p11 = pnand %p11396_p9, %p13431_p1  ;;  %p12039_p7 = scmp.lt.s32.totalorder %s12030_s15, %s12030_s15 }
  0x16   : > { %p12021_p12 = pneg %p12270_p11  ;;  %p12040_p10 = por %p12039_p7, %p12038_p5 }
  0x18   : > { %p12033_p0 = pnand %p12031_p13, %p12021_p12 }
  0x1a   : > { %p12034_p3 = pneg %p12033_p0 }
  0x1c   : > { %p12041_p9 = pnand %p12040_p10, %p12034_p3 }
  0x1e   : > { %12044 = shalt.err (!%p12041_p9)
}
  0x1f   : > { %s12171_s16 = smov 64   ;;  %s12172_s17 = smov 4  }
  0x20   : > { %s13440_s3 = sld [smem:[#allocation43_spill]]  ;;  %s12056_s20 = scalar_lea.vmem %s242_s14, 9216 }
  0x21   : > { %p12057_p1 = scmp.ne.s32.totalorder %s242_s14, %s12056_s20  ;;  %p12064_p2 = scmp.lt.s32.totalorder %s242_s14, %s242_s14 }
  0x22   : > { %p12065_p6 = scmp.lt.s32.totalorder %s12056_s20, %s12056_s20 }
  0x23   : > { %p12059_p13 = pnand %p12057_p1, %p12021_p12 }
  0x24   : > { %p12066_p5 = por %p12065_p6, %p12064_p2 }
  0x25   : > { %p12060_p0 = pneg %p12059_p13 }
  0x26   : > { %11399 = dma.hbm_to_vmem [thread:$0]  (!%p12270_p11), %s13440_s3, 9216, %s226_s11, [#allocation8], %s12171_s16, %s12171_s16, %s12172_s17  }
  0x27   : > { %p12067_p10 = pnand %p12066_p5, %p12060_p0 }
  0x29   : > { %12070 = shalt.err (!%p12067_p10)
}
  0x2a   : > { %11402 = dma.hbm_to_vmem [thread:$0]  (!%p12270_p11), %s13428_s5, 9216, %s242_s14, [#allocation8], %s12171_s16, %s12171_s16, %s12172_s17  }
  0x2b   : > { %s12293_s23 = sadd.s32 1, %s12167_s27   ;;  %s31_s29 = sadd.s32 1, %s12163_s26 }
  0x2c   : > { %s28_s10 = ssub.s32 %s12167_s27, %s12293_s23  ;;  %p38_p1 = scmp.ne.s32.totalorder %s12163_s26, %s12159_s25 }
  0x2d   : > { %p29_p2 = scmp.eq.s32.totalorder %s28_s10, 0  ;;  %p39_p6 = scmp.eq.s32.totalorder %s12167_s27, 0 }
  0x2e   : > { %p13441_p12 = scmp.eq.s32.totalorder %s12242_s28, 1  ;;  %p11413_p7 = scmp.lt.s32.totalorder %s12167_s27, 2 }
  0x2f   : > { %s12309_s12 = scalar_select %p29_p2, %s12163_s26, %s31_s29  }
  0x30   : > { %p12303_p3 = por %p13441_p12, %p38_p1  ;;  %p40_p9 = por %p39_p6, %p38_p1 }
  0x31   : > { %s258_s13 = sand.u32 1, %s12163_s26   ;;  %s9766_s14 = sshll.u32 %s12167_s27, 12 }
  0x32   : > { %s13442_s11 = scalar_select %p12303_p3, 1, 0 }
  0x33   : > { %s8741_s15 = sshll.u32 %s258_s13, 8  ;;  %s12316_s18 = scalar_lea.hbm %s13423_s0, %s9766_s14 }
  0x34   : > { %s262_s19 = scalar_lea.vmem [#allocation4], %s8741_s15  ;;  %p12320_p11 = pnand %p11413_p7, %p40_p9 }
  0x35   : > { %s269_s20 = sshll.u32 %s262_s19, 4  ;;  %s12324_s22 = scalar_lea.sflag [#allocation5], %s258_s13  ;;  %s12318_s20 = int_to_ptr.vmem [resolvable:$true] %s269_s20 }
  0x36   : > { %s12071_s29 = scalar_lea.hbm %s12316_s18, 4096  ;;  %p12073_p0 = pneg %p12320_p11 }
  0x37   : > { %p12072_p13 = scmp.ne.s32.totalorder %s12316_s18, %s12071_s29  ;;  %s12076_s15 = scalar_lea.hbm %s13423_s0, 8192 }
  0x38   : > { %p12077_p1 = scmp.lt.s32.totalorder %s12316_s18, %s13423_s0  ;;  %p12078_p2 = scmp.lt.s32.totalorder %s12076_s15, %s12071_s29 }
  0x39   : > { %p12074_p5 = pnand %p12073_p0, %p12072_p13 }
  0x3a   : > { %p12079_p6 = por %p12078_p2, %p12077_p1 }
  0x3b   : > { %p12075_p10 = pneg %p12074_p5 }
  0x3d   : > { %p12080_p12 = pnand %p12079_p6, %p12075_p10 }
  0x3f   : > { %12083 = shalt.err (!%p12080_p12)
}
  0x40   : > { %s12084_s13 = scalar_lea.vmem %s12318_s20, 4096  ;;  %s12173_s19 = smov [#allocation4]  }
  0x41   : > { %p12085_p7 = scmp.ne.s32.totalorder %s12318_s20, %s12084_s13  ;;  %s12089_s3 = sshll.u32 %s12173_s19, 4  ;;  %s12090_s3 = int_to_ptr.vmem [resolvable:$false] %s12089_s3 }
  0x42   : > { %s12091_s10 = scalar_lea.vmem %s12090_s3, 8192  ;;  %p12092_p5 = scmp.lt.s32.totalorder %s12318_s20, %s12090_s3 }
  0x43   : > { %p12087_p9 = pnand %p12085_p7, %p12073_p0  ;;  %p12093_p3 = scmp.lt.s32.totalorder %s12091_s10, %s12084_s13 }
  0x45   : > { %p12088_p13 = pneg %p12087_p9  ;;  %p12094_p4 = por %p12093_p3, %p12092_p5 }
  0x47   : > { %p12095_p8 = pnand %p12094_p4, %p12088_p13 }
  0x49   : > { %12098 = shalt.err (!%p12095_p8)
}
  0x4a   : > { %s12174_s29 = smov 128   ;;  %s12175_s14 = smov 8  }
  0x4b   : > { %11406 = dma.hbm_to_vmem [thread:$0]  (!%p12320_p11), %s12316_s18, 4096, %s12318_s20, %s12324_s22, %s12174_s29, %s12174_s29, %s12175_s14  }
  0x4c   : > { %p13444_p0 = scmp.ne.s32.totalorder %s13438_s9, 0 }
  0x4e   : > { %281 = sbr.rel (%p13444_p0) target bundleno = 1146 (0x47a), region = 48 }
  0x53   : > { %s12348_s15 = sand.u32 1, %s12159_s25   ;;  %p13445_p4 = scmp.ne.s32.totalorder %s13436_s30, 0 }
  0x54   : > { %s8745_s3 = sshll.u32 %s12348_s15, 8  ;;  %s284_s16 = scalar_lea.sflag [#allocation5], %s12348_s15 }
  0x55   : > { %s12354_s17 = scalar_lea.vmem [#allocation4], %s8745_s3 }
  0x56   : > { %12142 = dma.done.wait (%p13445_p4), %s284_s16, 4096  }
  0x57   : > { %12144 = vsyncadd (%p13445_p4), %s284_s16, 4294963200  ;;  %p13446_p8 = scmp.eq.s32.totalorder %s12242_s28, 0 }
  0x59   : > { %12146 = dma.done.wait (%p13446_p8), [#allocation8], 18432   ;;  %p13447_p3 = pmov %p13446_p8 }
  0x5a   : > { %v12176_v0 = vmov 0.0   ;;  %v12177_v1 = vmov 0.0|0.0   ;;  %v11458_v2 = vld [vmem:[#allocation7 + $0x78] sm:$0xff]   ;;  %v11462_v6 = vld [vmem:[#allocation7 + $0x70] sm:$0xff]   ;;  %v11466_v10 = vld [vmem:[#allocation7 + $0x68] sm:$0xff]   ;;  %p13558_p10 = scmp.ne.s32.totalorder %s13442_s11, 0 }
  0x5b   : > { %12148 = vsyncadd (%p13447_p3), [#allocation8], 4294948864  ;;  %327 = vst [vmem:[#allocation2] sm:$0xff] %v12176_v0  ;;  %v11459_v3 = vld [vmem:[#allocation7 + $0x38] sm:$0xff]   ;;  %10344 = vmatprep.subr.bf16.mxu0 %v11458_v2  ;;  %v11463_v7 = vld [vmem:[#allocation7 + $0x30] sm:$0xff]   ;;  %s12178_s22 = smov [#allocation10]  }
  0x5c   : > { %328 = vst [vmem:[#allocation2 + $0x8] sm:$0xff] %v12176_v0  ;;  %329 = vst [vmem:[#allocation2 + $0x10] sm:$0x3] %v12176_v0  ;;  %v11460_v4 = vld [vmem:[#allocation7 + $0xf8] sm:$0xff]   ;;  %10345 = vmatpush3.bf16.msra.mxu0 %v11459_v3  ;;  %v11464_v8 = vld [vmem:[#allocation7 + $0xf0] sm:$0xff]   ;;  %s12103_s13 = sshll.u32 %s12178_s22, 4  ;;  %s12104_s13 = int_to_ptr.vmem [resolvable:$false] %s12103_s13 }
  0x5d   : > { %331 = vst [vmem:[#allocation2 + $0x198] sm:$0xff] %v12176_v0  ;;  %332 = vst [vmem:[#allocation2 + $0x1a0] sm:$0xff] %v12176_v0  ;;  %v11461_v5 = vld [vmem:[#allocation7 + $0xb8] sm:$0xff]   ;;  %10456 = vmatprep.subr.bf16.mxu1 %v11460_v4  ;;  %10346 = vmatprep.subr.bf16.mxu0 %v11462_v6  ;;  %v11465_v9 = vld [vmem:[#allocation7 + $0xb0] sm:$0xff]   ;;  %s12105_s19 = scalar_lea.vmem %s12104_s13, 8192 }
  0x5e   : > { %333 = vst [vmem:[#allocation2 + $0x1a8] sm:$0x3] %v12176_v0  ;;  %335 = vst [vmem:[#allocation2 + $0x18] sm:$0x1] %v12176_v0  ;;  %10457 = vmatpush3.bf16.msra.mxu1 %v11461_v5  ;;  %v11467_v11 = vld [vmem:[#allocation7 + $0x28] sm:$0xff]   ;;  %v11470_v14 = vld [vmem:[#allocation7 + $0x60] sm:$0xff]  }
  0x5f   : > { %336 = vst [vmem:[#allocation2 + $0x30] sm:$0x1] %v12176_v0  ;;  %337 = vst [vmem:[#allocation2 + $0x48] sm:$0x1] %v12176_v0  ;;  %10458 = vmatprep.subr.bf16.mxu1 %v11464_v8  ;;  %v11468_v12 = vld [vmem:[#allocation7 + $0xe8] sm:$0xff]   ;;  %v11471_v15 = vld [vmem:[#allocation7 + $0x20] sm:$0xff]  }
  0x60   : > { %338 = vst [vmem:[#allocation2 + $0x60] sm:$0x1] %v12176_v0  ;;  %339 = vst [vmem:[#allocation2 + $0x78] sm:$0x1] %v12176_v0  ;;  %10347 = vmatpush3.bf16.msra.mxu0 %v11463_v7  ;;  %v11469_v13 = vld [vmem:[#allocation7 + $0xa8] sm:$0xff]   ;;  %v11472_v16 = vld [vmem:[#allocation7 + $0xe0] sm:$0xff]  }
  0x61   : > { %340 = vst [vmem:[#allocation2 + $0x90] sm:$0x1] %v12176_v0  ;;  %341 = vst [vmem:[#allocation2 + $0xa8] sm:$0x1] %v12176_v0  ;;  %10348 = vmatprep.subr.bf16.mxu0 %v11466_v10  ;;  %v11473_v17 = vld [vmem:[#allocation7 + $0xa0] sm:$0xff]   ;;  %v11474_v18 = vld [vmem:[#allocation7 + $0x58] sm:$0xff]  }
  0x62   : > { %342 = vst [vmem:[#allocation2 + $0xc0] sm:$0x1] %v12176_v0  ;;  %343 = vst [vmem:[#allocation2 + $0xd8] sm:$0x1] %v12176_v0  ;;  %10459 = vmatpush3.bf16.msra.mxu1 %v11465_v9  ;;  %v11475_v19 = vld [vmem:[#allocation7 + $0x18] sm:$0xff]   ;;  %v11478_v22 = vld [vmem:[#allocation7 + $0x50] sm:$0xff]  }
  0x63   : > { %344 = vst [vmem:[#allocation2 + $0xf0] sm:$0x1] %v12176_v0  ;;  %345 = vst [vmem:[#allocation2 + $0x108] sm:$0x1] %v12176_v0  ;;  %10460 = vmatprep.subr.bf16.mxu1 %v11468_v12  ;;  %v11476_v20 = vld [vmem:[#allocation7 + $0xd8] sm:$0xff]   ;;  %v11479_v23 = vld [vmem:[#allocation7 + $0x10] sm:$0xff]  }
  0x64   : > { %346 = vst [vmem:[#allocation2 + $0x120] sm:$0x1] %v12176_v0  ;;  %347 = vst [vmem:[#allocation2 + $0x138] sm:$0x1] %v12176_v0  ;;  %10349 = vmatpush3.bf16.msra.mxu0 %v11467_v11  ;;  %v11477_v21 = vld [vmem:[#allocation7 + $0x98] sm:$0xff]   ;;  %v11480_v24 = vld [vmem:[#allocation7 + $0xd0] sm:$0xff]  }
  0x65   : > { %348 = vst [vmem:[#allocation2 + $0x150] sm:$0x1] %v12176_v0  ;;  %349 = vst [vmem:[#allocation2 + $0x168] sm:$0x1] %v12176_v0  ;;  %10350 = vmatprep.subr.bf16.mxu0 %v11470_v14  ;;  %v11481_v25 = vld [vmem:[#allocation7 + $0x90] sm:$0xff]   ;;  %v11482_v26 = vld [vmem:[#allocation7 + $0x48] sm:$0xff]  }
  0x66   : > { %350 = vst [vmem:[#allocation2 + $0x180] sm:$0x1] %v12176_v0  ;;  %351 = vst [vmem:[#allocation2 + $0x29] sm:$0x1] %v12176_v0  ;;  %10461 = vmatpush3.bf16.msra.mxu1 %v11469_v13  ;;  %v11483_v27 = vld [vmem:[#allocation7 + $0x8] sm:$0xff]   ;;  %v11486_v30 = vld [vmem:[#allocation7 + $0x40] sm:$0xff]  }
  0x67   : > { %352 = vst [vmem:[#allocation2 + $0x41] sm:$0x1] %v12176_v0  ;;  %353 = vst [vmem:[#allocation2 + $0x59] sm:$0x1] %v12176_v0  ;;  %10462 = vmatprep.subr.bf16.mxu1 %v11472_v16  ;;  %v11484_v28 = vld [vmem:[#allocation7 + $0xc8] sm:$0xff]   ;;  %v11487_v31 = vld [vmem:[#allocation7] sm:$0xff]  }
  0x68   : > { %354 = vst [vmem:[#allocation2 + $0x71] sm:$0x1] %v12176_v0  ;;  %355 = vst [vmem:[#allocation2 + $0x89] sm:$0x1] %v12176_v0  ;;  %10351 = vmatpush3.bf16.msra.mxu0 %v11471_v15  ;;  %v11485_v29 = vld [vmem:[#allocation7 + $0x88] sm:$0xff]   ;;  %v11488_v32 = vld [vmem:[#allocation7 + $0xc0] sm:$0xff]  }
  0x69   : > { %356 = vst [vmem:[#allocation2 + $0xa1] sm:$0x1] %v12176_v0  ;;  %357 = vst [vmem:[#allocation2 + $0xb9] sm:$0x1] %v12176_v0  ;;  %10352 = vmatprep.subr.bf16.mxu0 %v11474_v18  ;;  %v733_v33 = vld [vmem:[#allocation2 + $0x1] sm:$0xff]  ;;  %v734_v34 = vld [vmem:[#allocation2 + $0x9] sm:$0xff] }
  0x6a   : > { %358 = vst [vmem:[#allocation2 + $0xd1] sm:$0x1] %v12176_v0  ;;  %359 = vst [vmem:[#allocation2 + $0xe9] sm:$0x1] %v12176_v0  ;;  %10463 = vmatpush3.bf16.msra.mxu1 %v11473_v17  ;;  %v9799_v35 = vpack.c.bf16 %v733_v33, %v733_v33  ;;  %v9800_v36 = vpack.c.bf16 %v734_v34, %v734_v34  ;;  %v11491_v37 = vld [vmem:[#allocation7 + $0x80] sm:$0xff]   ;;  %v11492_v38 = vld [vmem:[#allocation7 + $0x178] sm:$0xff]  }
  0x6b   : > { %360 = vst [vmem:[#allocation2 + $0x101] sm:$0x1] %v12176_v0  ;;  %361 = vst [vmem:[#allocation2 + $0x119] sm:$0x1] %v12176_v0  ;;  %10464 = vmatprep.subr.bf16.mxu1 %v11476_v20  ;;  %v367_v39 = vld [vmem:[%s12354_s17] sm:$0xff]  ;;  %v368_v40 = vld [vmem:[%s12354_s17 + $0x8] sm:$0xff] }
  0x6c   : > { %362 = vst [vmem:[#allocation2 + $0x131] sm:$0x1] %v12176_v0  ;;  %363 = vst [vmem:[#allocation2 + $0x149] sm:$0x1] %v12176_v0  ;;  %10353 = vmatpush3.bf16.msra.mxu0 %v11475_v19  ;;  %v12371_v41 = vld [vmem:[%s13424_s1] ss:$0 sm:$0xff] }
  0x6d   : > { %364 = vst [vmem:[#allocation2 + $0x161] sm:$0x1] %v12176_v0  ;;  %365 = vst [vmem:[#allocation2 + $0x179] sm:$0x1] %v12176_v0  ;;  %10354 = vmatprep.subr.bf16.mxu0 %v11478_v22  ;;  %v12376_v42 = vld [vmem:[%s13425_s2] ss:$0 sm:$0xff]  ;;  %v406_v43 = vmul.f32 %v12371_v41, %v367_v39  ;;  %v407_v44 = vmul.f32 %v12371_v41, %v368_v40 }
  0x6e   : > { %366 = vst [vmem:[#allocation2 + $0x191] sm:$0x1] %v12176_v0  ;;  %701 = vst [vmem:[#allocation3] sm:$0xf] %v12177_v1  ;;  %10465 = vmatpush3.bf16.msra.mxu1 %v11477_v21  ;;  %v925_v45 = vld [vmem:[#allocation2 + $0x2] sm:$0xff]  ;;  %v926_v46 = vld [vmem:[#allocation2 + $0xa] sm:$0xff] }
  0x6f   : > { %702 = vst [vmem:[#allocation3 + $0x24] sm:$0xf] %v12177_v1  ;;  %10466 = vmatprep.subr.bf16.mxu1 %v11480_v24  ;;  %893 = vst [vmem:[#allocation3 + $0x4] sm:$0xf] %v9799_v35  ;;  %v12380_v47 = vpack.c.bf16 %v925_v45, %v925_v45  ;;  %v12382_v48 = vpack.c.bf16 %v926_v46, %v926_v46  ;;  %v369_v49 = vld [vmem:[%s12354_s17 + $0x10] sm:$0xff]  ;;  %v445_v50 = vadd.f32 %v12376_v42, %v406_v43  ;;  %v370_v52 = vld [vmem:[%s12354_s17 + $0x18] sm:$0xff] }
  0x70   : > { %10355 = vmatpush3.bf16.msra.mxu0 %v11479_v23  ;;  %894 = vst [vmem:[#allocation3 + $0x28] sm:$0xf] %v9800_v36  ;;  %v446_v51 = vadd.f32 %v12376_v42, %v407_v44  ;;  %v408_v53 = vmul.f32 %v12371_v41, %v369_v49  ;;  %v409_v54 = vmul.f32 %v12371_v41, %v370_v52  ;;  %v371_v55 = vld [vmem:[%s12354_s17 + $0x20] sm:$0xff]  ;;  %v372_v56 = vld [vmem:[%s12354_s17 + $0x28] sm:$0xff]  ;;  %v11495_v61 = vld [vmem:[#allocation7 + $0x138] sm:$0xff]  }
  0x71   : > { %10356 = vmatprep.subr.bf16.mxu0 %v11482_v26  ;;  %1085 = vst [vmem:[#allocation3 + $0x8] sm:$0xf] %v12380_v47  ;;  %1086 = vst [vmem:[#allocation3 + $0x2c] sm:$0xf] %v12382_v48  ;;  %v477_v57 = vmax.f32 %v445_v50, 0.0  ;;  %v410_v60 = vmul.f32 %v12371_v41, %v371_v55  ;;  %v411_v63 = vmul.f32 %v12371_v41, %v372_v56  ;;  %v373_v0 = vld [vmem:[%s12354_s17 + $0x30] sm:$0xff] }
  0x72   : > { %10467 = vmatpush3.bf16.msra.mxu1 %v11481_v25  ;;  %v478_v58 = vmax.f32 %v446_v51, 0.0  ;;  %v447_v59 = vadd.f32 %v12376_v42, %v408_v53  ;;  %v448_v62 = vadd.f32 %v12376_v42, %v409_v54  ;;  %v374_v2 = vld [vmem:[%s12354_s17 + $0x38] sm:$0xff]  ;;  %v11505_v12 = vld [vmem:[#allocation7 + $0x170] sm:$0xff]   ;;  %v412_v14 = vmul.f32 %v12371_v41, %v373_v0  ;;  %v376_v18 = vld [vmem:[%s12354_s17 + $0x48] sm:$0xff] }
  0x73   : > { %10468 = vmatprep.subr.bf16.mxu1 %v11484_v28  ;;  %509 = vst [vmem:[#allocation2 + $0x19] sm:$0xff] %v477_v57  ;;  %v9801_v6 = vpack.c.bf16 %v477_v57, %v477_v57  ;;  %v449_v9 = vadd.f32 %v12376_v42, %v410_v60  ;;  %v450_v13 = vadd.f32 %v12376_v42, %v411_v63  ;;  %v11508_v21 = vld [vmem:[#allocation7 + $0x130] sm:$0xff]   ;;  %v378_v28 = vld [vmem:[%s12354_s17 + $0x58] sm:$0xff]  ;;  %v11522_v57 = vld [vmem:[#allocation7 + $0x128] sm:$0xff]  }
  0x74   : > { %10357 = vmatpush3.bf16.msra.mxu0 %v11483_v27  ;;  %510 = vst [vmem:[#allocation2 + $0x21] sm:$0xff] %v478_v58  ;;  %v9802_v7 = vpack.c.bf16 %v478_v58, %v478_v58  ;;  %v479_v8 = vmax.f32 %v447_v59, 0.0  ;;  %v480_v11 = vmax.f32 %v448_v62, 0.0  ;;  %v413_v17 = vmul.f32 %v12371_v41, %v374_v2  ;;  %v377_v24 = vld [vmem:[%s12354_s17 + $0x50] sm:$0xff]  ;;  %v11533_v58 = vld [vmem:[#allocation7 + $0x160] sm:$0xff]   ;;  %v382_v2 = vld [vmem:[%s12354_s17 + $0x78] sm:$0xff] }
  0x75   : > { %10358 = vmatprep.subr.bf16.mxu0 %v11486_v30  ;;  %895 = vst [vmem:[#allocation3 + $0x4c] sm:$0xf] %v9801_v6  ;;  %v481_v16 = vmax.f32 %v449_v9, 0.0  ;;  %v482_v20 = vmax.f32 %v450_v13, 0.0  ;;  %v451_v22 = vadd.f32 %v12376_v42, %v412_v14  ;;  %v415_v27 = vmul.f32 %v12371_v41, %v376_v18  ;;  %v381_v0 = vld [vmem:[%s12354_s17 + $0x70] sm:$0xff] }
  0x76   : > { %10469 = vmatpush3.bf16.msra.mxu1 %v11485_v29  ;;  %v2270_v3 = vld [vmem:[#allocation3] sm:$0xff]  ;;  %896 = vst [vmem:[#allocation3 + $0x70] sm:$0xf] %v9802_v7  ;;  %511 = vst [vmem:[#allocation2 + $0x31] sm:$0xff] %v479_v8  ;;  %v9803_v15 = vpack.c.bf16 %v479_v8, %v479_v8  ;;  %v9804_v19 = vpack.c.bf16 %v480_v11, %v480_v11  ;;  %v452_v26 = vadd.f32 %v12376_v42, %v413_v17 }
  0x77   : > { %10470 = vmatprep.subr.bf16.mxu1 %v11488_v32  ;;  %v2275_v4 = vld [vmem:[#allocation3 + $0x24] sm:$0xff]  ;;  %4746 = vst [vmem:[#allocation3] sm:$0xf] %v12177_v1  ;;  %512 = vst [vmem:[#allocation2 + $0x39] sm:$0xff] %v480_v11  ;;  %v9805_v25 = vpack.c.bf16 %v481_v16, %v481_v16  ;;  %v416_v29 = vmul.f32 %v12371_v41, %v377_v24  ;;  %v9806_v30 = vpack.c.bf16 %v482_v20, %v482_v20 }
  0x78   : > { %10359 = vmatpush3.bf16.msra.mxu0 %v11487_v31  ;;  %v11489_v5 = vld [vmem:[#allocation3 + $0x4] ss:$36 sps:$4 sm:$0xff]   ;;  %4747 = vst [vmem:[#allocation3 + $0x24] sm:$0xf] %v12177_v1  ;;  %v9040_v10 = vcombine.low %v2270_v3, %v2275_v4  ;;  %897 = vst [vmem:[#allocation3 + $0x94] sm:$0xf] %v9803_v15  ;;  %v417_v34 = vmul.f32 %v12371_v41, %v378_v28 }
  0x79   : > { %10568 = vmatprep.subr.bf16.mxu0 %v11492_v38  ;;  %4938 = vst [vmem:[#allocation3 + $0x4] sm:$0xf] %v9799_v35  ;;  %4939 = vst [vmem:[#allocation3 + $0x28] sm:$0xf] %v9800_v36  ;;  %3781 = vmatprep.mubr.bf16.mxu0 %v11489_v5  ;;  %v375_v1 = vld [vmem:[%s12354_s17 + $0x40] sm:$0xff]  ;;  %v483_v31 = vmax.f32 %v451_v22, 0.0  ;;  %v454_v38 = vadd.f32 %v12376_v42, %v415_v27  ;;  %v455_v39 = vadd.f32 %v12376_v42, %v416_v29 }
  0x7a   : > { %10471 = vmatpush3.bf16.msra.mxu1 %v11491_v37  ;;  %v414_v23 = vmul.f32 %v12371_v41, %v375_v1  ;;  %513 = vst [vmem:[#allocation2 + $0x49] sm:$0xff] %v481_v16  ;;  %898 = vst [vmem:[#allocation3 + $0xb8] sm:$0xf] %v9804_v19  ;;  %v11519_v32 = vld [vmem:[#allocation7 + $0x168] sm:$0xff]   ;;  %v379_v35 = vld [vmem:[%s12354_s17 + $0x60] sm:$0xff]  ;;  %v484_v37 = vmax.f32 %v452_v26, 0.0  ;;  %v456_v50 = vadd.f32 %v12376_v42, %v417_v34 }
  0x7b   : > { %3782 = vmatmul.mubr.bf16.vlgmr.msra.gmra.mxu0 %v9040_v10  ;;  %514 = vst [vmem:[#allocation2 + $0x51] sm:$0xff] %v482_v20  ;;  %v380_v36 = vld [vmem:[%s12354_s17 + $0x68] sm:$0xff]  ;;  %899 = vst [vmem:[#allocation3 + $0xdc] sm:$0xf] %v9805_v25  ;;  %v418_v40 = vmul.f32 %v12371_v41, %v379_v35  ;;  %v1118_v44 = vld [vmem:[#allocation2 + $0x20] sm:$0xff]  ;;  %v9807_v46 = vpack.c.bf16 %v483_v31, %v483_v31  ;;  %v487_v63 = vmax.f32 %v455_v39, 0.0 }
  0x7c   : > { %10569 = vmatpush3.bf16.msra.mxu0 %v11495_v61  ;;  %v453_v33 = vadd.f32 %v12376_v42, %v414_v23  ;;  %v1117_v43 = vld [vmem:[#allocation2 + $0x18] sm:$0xff]  ;;  %900 = vst [vmem:[#allocation3 + $0x100] sm:$0xf] %v9806_v30  ;;  %515 = vst [vmem:[#allocation2 + $0x61] sm:$0xff] %v483_v31  ;;  %v419_v51 = vmul.f32 %v12371_v41, %v380_v36  ;;  %v9864_v53 = vpack.c.bf16 %v1118_v44, %v1118_v44  ;;  %v928_v54 = vld [vmem:[#allocation2 + $0x22] sm:$0xff] }
  0x7d   : > { %10570 = vmatprep.subr.bf16.mxu0 %v11505_v12  ;;  %v927_v45 = vld [vmem:[#allocation2 + $0x1a] sm:$0xff]  ;;  %v9863_v52 = vpack.c.bf16 %v1117_v43, %v1117_v43  ;;  %516 = vst [vmem:[#allocation2 + $0x69] sm:$0xff] %v484_v37  ;;  %v9808_v56 = vpack.c.bf16 %v484_v37, %v484_v37  ;;  %v9834_v59 = vpack.c.bf16 %v928_v54, %v928_v54  ;;  %v1119_v60 = vld [vmem:[#allocation2 + $0x30] sm:$0xff]  ;;  %901 = vst [vmem:[#allocation3 + $0x124] sm:$0xf] %v9807_v46 }
  0x7e   : > { %v485_v49 = vmax.f32 %v453_v33, 0.0  ;;  %v9833_v55 = vpack.c.bf16 %v927_v45, %v927_v45  ;;  %v486_v61 = vmax.f32 %v454_v38, 0.0  ;;  %1278 = vst [vmem:[#allocation3 + $0x30] sm:$0xf] %v9864_v53  ;;  %704 = vst [vmem:[#allocation3 + $0x6c] sm:$0xf] %v9864_v53  ;;  %v9865_v4 = vpack.c.bf16 %v1119_v60, %v1119_v60 }
  0x7f   : > { %1277 = vst [vmem:[#allocation3 + $0xc] sm:$0xf] %v9863_v52  ;;  %703 = vst [vmem:[#allocation3 + $0x48] sm:$0xf] %v9863_v52  ;;  %v1120_v3 = vld [vmem:[#allocation2 + $0x38] sm:$0xff]  ;;  %v488_v7 = vmax.f32 %v456_v50, 0.0  ;;  %v457_v8 = vadd.f32 %v12376_v42, %v418_v40  ;;  %v458_v9 = vadd.f32 %v12376_v42, %v419_v51  ;;  %v420_v31 = vmul.f32 %v12371_v41, %v381_v0 }
  0x80   : > { %10571 = vmatpush3.bf16.msra.mxu0 %v11508_v21  ;;  %517 = vst [vmem:[#allocation2 + $0x79] sm:$0xff] %v485_v49  ;;  %v9809_v62 = vpack.c.bf16 %v485_v49, %v485_v49  ;;  %1087 = vst [vmem:[#allocation3 + $0x50] sm:$0xf] %v9833_v55  ;;  %v929_v5 = vld [vmem:[#allocation2 + $0x32] sm:$0xff]  ;;  %v930_v6 = vld [vmem:[#allocation2 + $0x3a] sm:$0xff]  ;;  %v9866_v11 = vpack.c.bf16 %v1120_v3, %v1120_v3  ;;  %v9810_v15 = vpack.c.bf16 %v486_v61, %v486_v61 }
  0x81   : > { %10572 = vmatprep.subr.bf16.mxu0 %v11519_v32  ;;  %902 = vst [vmem:[#allocation3 + $0x148] sm:$0xf] %v9808_v56  ;;  %v11536_v10 = vld [vmem:[#allocation7 + $0x120] sm:$0xff]   ;;  %1088 = vst [vmem:[#allocation3 + $0x74] sm:$0xf] %v9834_v59  ;;  %v9835_v12 = vpack.c.bf16 %v929_v5, %v929_v5  ;;  %v9836_v13 = vpack.c.bf16 %v930_v6, %v930_v6  ;;  %v1121_v14 = vld [vmem:[#allocation2 + $0x48] sm:$0xff]  ;;  %v9811_v21 = vpack.c.bf16 %v487_v63, %v487_v63 }
  0x82   : > { %518 = vst [vmem:[#allocation2 + $0x81] sm:$0xff] %v486_v61  ;;  %903 = vst [vmem:[#allocation3 + $0x16c] sm:$0xf] %v9809_v62  ;;  %v12428_v16 = vld [vmem:[#allocation7 + $0x158] sm:$0xff]   ;;  %v383_v17 = vld [vmem:[%s12354_s17 + $0x80] sm:$0xff]  ;;  %v9867_v18 = vpack.c.bf16 %v1121_v14, %v1121_v14  ;;  %v9812_v22 = vpack.c.bf16 %v488_v7, %v488_v7  ;;  %v489_v23 = vmax.f32 %v457_v8, 0.0  ;;  %v421_v32 = vmul.f32 %v12371_v41, %v382_v2 }
  0x83   : > { %519 = vst [vmem:[#allocation2 + $0x91] sm:$0xff] %v487_v63  ;;  %1279 = vst [vmem:[#allocation3 + $0x54] sm:$0xf] %v9865_v4  ;;  %v1122_v1 = vld [vmem:[#allocation2 + $0x50] sm:$0xff]  ;;  %v490_v27 = vmax.f32 %v458_v9, 0.0  ;;  %v384_v28 = vld [vmem:[%s12354_s17 + $0x88] sm:$0xff]  ;;  %v422_v33 = vmul.f32 %v12371_v41, %v383_v17  ;;  %v459_v50 = vadd.f32 %v12376_v42, %v420_v31 }
  0x84   : > { %705 = vst [vmem:[#allocation3 + $0x90] sm:$0xf] %v9865_v4  ;;  %v931_v19 = vld [vmem:[#allocation2 + $0x4a] sm:$0xff]  ;;  %v932_v20 = vld [vmem:[#allocation2 + $0x52] sm:$0xff]  ;;  %10573 = vmatpush3.bf16.msra.mxu0 %v11522_v57  ;;  %520 = vst [vmem:[#allocation2 + $0x99] sm:$0xff] %v488_v7  ;;  %v9868_v24 = vpack.c.bf16 %v1122_v1, %v1122_v1  ;;  %v9813_v30 = vpack.c.bf16 %v489_v23, %v489_v23  ;;  %v423_v40 = vmul.f32 %v12371_v41, %v384_v28 }
  0x85   : > { %1280 = vst [vmem:[#allocation3 + $0x78] sm:$0xf] %v9866_v11  ;;  %706 = vst [vmem:[#allocation3 + $0xb4] sm:$0xf] %v9866_v11  ;;  %v9837_v25 = vpack.c.bf16 %v931_v19, %v931_v19  ;;  %v9838_v26 = vpack.c.bf16 %v932_v20, %v932_v20  ;;  %10574 = vmatprep.subr.bf16.mxu0 %v11533_v58  ;;  %v1123_v29 = vld [vmem:[#allocation2 + $0x60] sm:$0xff]  ;;  %v1124_v35 = vld [vmem:[#allocation2 + $0x68] sm:$0xff]  ;;  %v9814_v39 = vpack.c.bf16 %v490_v27, %v490_v27 }
  0x86   : > { %1089 = vst [vmem:[#allocation3 + $0x98] sm:$0xf] %v9835_v12  ;;  %1090 = vst [vmem:[#allocation3 + $0xbc] sm:$0xf] %v9836_v13  ;;  %v385_v34 = vld [vmem:[%s12354_s17 + $0x90] sm:$0xff]  ;;  %v9869_v36 = vpack.c.bf16 %v1123_v29, %v1123_v29  ;;  %v934_v38 = vld [vmem:[#allocation2 + $0x6a] sm:$0xff]  ;;  %v9870_v44 = vpack.c.bf16 %v1124_v35, %v1124_v35  ;;  %v460_v57 = vadd.f32 %v12376_v42, %v421_v32 }
  0x87   : > { %904 = vst [vmem:[#allocation3 + $0x190] sm:$0xf] %v9810_v15  ;;  %1281 = vst [vmem:[#allocation3 + $0x9c] sm:$0xf] %v9867_v18  ;;  %v933_v37 = vld [vmem:[#allocation2 + $0x62] sm:$0xff]  ;;  %v424_v43 = vmul.f32 %v12371_v41, %v385_v34  ;;  %v9840_v46 = vpack.c.bf16 %v934_v38, %v934_v38  ;;  %v1125_v49 = vld [vmem:[#allocation2 + $0x78] sm:$0xff]  ;;  %v461_v58 = vadd.f32 %v12376_v42, %v422_v33 }
  0x88   : > { %707 = vst [vmem:[#allocation3 + $0xd8] sm:$0xf] %v9867_v18  ;;  %905 = vst [vmem:[#allocation3 + $0x1b4] sm:$0xf] %v9811_v21  ;;  %v9839_v45 = vpack.c.bf16 %v933_v37, %v933_v37  ;;  %10575 = vmatpush3.bf16.msra.mxu0 %v11536_v10  ;;  %v11550_v51 = vld [vmem:[#allocation7 + $0x118] sm:$0xff]   ;;  %v2271_v53 = vld [vmem:[#allocation3 + $0x8] sm:$0xff]  ;;  %v9871_v56 = vpack.c.bf16 %v1125_v49, %v1125_v49  ;;  %v462_v59 = vadd.f32 %v12376_v42, %v423_v40 }
  0x89   : > { %906 = vst [vmem:[#allocation3 + $0x1d8] sm:$0xf] %v9812_v22  ;;  %521 = vst [vmem:[#allocation2 + $0xa9] sm:$0xff] %v489_v23  ;;  %v386_v52 = vld [vmem:[%s12354_s17 + $0x98] sm:$0xff]  ;;  %v2276_v54 = vld [vmem:[#allocation3 + $0x2c] sm:$0xff]  ;;  %10576 = vmatprep.subr.bf16.mxu0 %v12428_v16  ;;  %v491_v62 = vmax.f32 %v459_v50, 0.0  ;;  %v463_v0 = vadd.f32 %v12376_v42, %v424_v43 }
  0x8a   : > { %1282 = vst [vmem:[#allocation3 + $0xc0] sm:$0xf] %v9868_v24  ;;  %708 = vst [vmem:[#allocation3 + $0xfc] sm:$0xf] %v9868_v24  ;;  %v11493_v55 = vld [vmem:[#allocation3 + $0xc] ss:$36 sps:$4 sm:$0xff]   ;;  %v9042_v60 = vcombine.low %v2271_v53, %v2276_v54  ;;  %v425_v63 = vmul.f32 %v12371_v41, %v386_v52 }
  0x8b   : > { %1091 = vst [vmem:[#allocation3 + $0xe0] sm:$0xf] %v9837_v25  ;;  %1092 = vst [vmem:[#allocation3 + $0x104] sm:$0xf] %v9838_v26  ;;  %v11496_v61 = vld [vmem:[#allocation3 + $0x4c] ss:$36 sps:$4 sm:$0xff]   ;;  %3942 = vmatprep.mubr.bf16.mxu1 %v11493_v55 }
  0x8c   : > { %522 = vst [vmem:[#allocation2 + $0xb1] sm:$0xff] %v490_v27  ;;  %907 = vst [vmem:[#allocation3 + $0x1fc] sm:$0xf] %v9813_v30  ;;  %v11498_v2 = vld [vmem:[#allocation3 + $0x48] ss:$36 sps:$4 sm:$0xff]   ;;  %v492_v3 = vmax.f32 %v460_v57, 0.0  ;;  %3943 = vmatmul.mubr.bf16.vlgmr.msra.gmra.mxu1 %v9042_v60  ;;  %3789 = vmatprep.mubr.bf16.mxu0 %v11496_v61  ;;  %v464_v6 = vadd.f32 %v12376_v42, %v425_v63 }
  0x8d   : > { %1283 = vst [vmem:[#allocation3 + $0xe4] sm:$0xf] %v9869_v36  ;;  %709 = vst [vmem:[#allocation3 + $0x120] sm:$0xf] %v9869_v36  ;;  %v493_v4 = vmax.f32 %v461_v58, 0.0  ;;  %v494_v5 = vmax.f32 %v462_v59, 0.0  ;;  %3790 = vmatmul.mubr.bf16.gmra.mxu0 %v11498_v2 }
  0x8e   : > { %908 = vst [vmem:[#allocation3 + $0x220] sm:$0xf] %v9814_v39  ;;  %5130 = vst [vmem:[#allocation3 + $0x8] sm:$0xf] %v12380_v47  ;;  %v11499_v47 = vld [vmem:[#allocation3 + $0x54] ss:$36 sps:$4 sm:$0xff]   ;;  %v9816_v8 = vpack.c.bf16 %v492_v3, %v492_v3  ;;  %10577 = vmatpush3.bf16.msra.mxu0 %v11550_v51 }
  0x8f   : > { %5131 = vst [vmem:[#allocation3 + $0x2c] sm:$0xf] %v12382_v48  ;;  %1284 = vst [vmem:[#allocation3 + $0x108] sm:$0xf] %v9870_v44  ;;  %v9815_v48 = vpack.c.bf16 %v491_v62, %v491_v62  ;;  %v11502_v7 = vld [vmem:[#allocation3 + $0x94] ss:$36 sps:$4 sm:$0xff]   ;;  %v9817_v9 = vpack.c.bf16 %v493_v4, %v493_v4  ;;  %3950 = vmatprep.mubr.bf16.mxu1 %v11499_v47  ;;  %v9818_v11 = vpack.c.bf16 %v494_v5, %v494_v5 }
  0x90   : > { %710 = vst [vmem:[#allocation3 + $0x144] sm:$0xf] %v9870_v44  ;;  %1093 = vst [vmem:[#allocation3 + $0x128] sm:$0xf] %v9839_v45  ;;  %v495_v10 = vmax.f32 %v463_v0, 0.0  ;;  %v496_v12 = vmax.f32 %v464_v6, 0.0  ;;  %3797 = vmatprep.mubr.bf16.mxu0 %v11502_v7 }
  0x91   : > { %1094 = vst [vmem:[#allocation3 + $0x14c] sm:$0xf] %v9840_v46  ;;  %1285 = vst [vmem:[#allocation3 + $0x12c] sm:$0xf] %v9871_v56  ;;  %v11501_v14 = vld [vmem:[#allocation3 + $0x50] ss:$36 sps:$4 sm:$0xff]  }
  0x92   : > { %711 = vst [vmem:[#allocation3 + $0x168] sm:$0xf] %v9871_v56  ;;  %523 = vst [vmem:[#allocation2 + $0xc1] sm:$0xff] %v491_v62  ;;  %v9819_v13 = vpack.c.bf16 %v495_v10, %v495_v10  ;;  %v9820_v15 = vpack.c.bf16 %v496_v12, %v496_v12  ;;  %v11504_v16 = vld [vmem:[#allocation3 + $0x90] ss:$36 sps:$4 sm:$0xff]   ;;  %v1127_v24 = vld [vmem:[#allocation2 + $0x90] sm:$0xff] }
  0x93   : > { %524 = vst [vmem:[#allocation2 + $0xc9] sm:$0xff] %v492_v3  ;;  %525 = vst [vmem:[#allocation2 + $0xd9] sm:$0xff] %v493_v4  ;;  %v11506_v17 = vld [vmem:[#allocation3 + $0x9c] ss:$36 sps:$4 sm:$0xff]   ;;  %v1126_v18 = vld [vmem:[#allocation2 + $0x80] sm:$0xff]  ;;  %v9873_v28 = vpack.c.bf16 %v1127_v24, %v1127_v24 }
  0x94   : > { %909 = vst [vmem:[#allocation3 + $0x244] sm:$0xf] %v9815_v48  ;;  %526 = vst [vmem:[#allocation2 + $0xe1] sm:$0xff] %v494_v5  ;;  %v11510_v1 = vld [vmem:[#allocation3 + $0xdc] ss:$36 sps:$4 sm:$0xff]   ;;  %3951 = vmatmul.mubr.bf16.gmra.mxu1 %v11501_v14  ;;  %v9872_v19 = vpack.c.bf16 %v1126_v18, %v1126_v18  ;;  %v935_v20 = vld [vmem:[#allocation2 + $0x7a] sm:$0xff] }
  0x95   : > { %910 = vst [vmem:[#allocation3 + $0x268] sm:$0xf] %v9816_v8  ;;  %911 = vst [vmem:[#allocation3 + $0x28c] sm:$0xf] %v9817_v9  ;;  %v936_v21 = vld [vmem:[#allocation2 + $0x82] sm:$0xff]  ;;  %3798 = vmatmul.mubr.bf16.gmra.mxu0 %v11504_v16  ;;  %3958 = vmatprep.mubr.bf16.mxu1 %v11506_v17  ;;  %v9841_v22 = vpack.c.bf16 %v935_v20, %v935_v20  ;;  %v1128_v25 = vld [vmem:[#allocation2 + $0x98] sm:$0xff] }
  0x96   : > { %527 = vst [vmem:[#allocation2 + $0xf1] sm:$0xff] %v495_v10  ;;  %912 = vst [vmem:[#allocation3 + $0x2b0] sm:$0xf] %v9818_v11  ;;  %v9842_v23 = vpack.c.bf16 %v936_v21, %v936_v21  ;;  %v937_v26 = vld [vmem:[#allocation2 + $0x92] sm:$0xff]  ;;  %v11509_v27 = vld [vmem:[#allocation3 + $0x98] ss:$36 sps:$4 sm:$0xff]   ;;  %3805 = vmatprep.mubr.bf16.mxu0 %v11510_v1  ;;  %v9874_v29 = vpack.c.bf16 %v1128_v25, %v1128_v25 }
  0x97   : > { %528 = vst [vmem:[#allocation2 + $0xf9] sm:$0xff] %v496_v12  ;;  %913 = vst [vmem:[#allocation3 + $0x2d4] sm:$0xf] %v9819_v13  ;;  %v938_v30 = vld [vmem:[#allocation2 + $0x9a] sm:$0xff]  ;;  %v9843_v31 = vpack.c.bf16 %v937_v26, %v937_v26  ;;  %v1129_v32 = vld [vmem:[#allocation2 + $0xa8] sm:$0xff] }
  0x98   : > { %914 = vst [vmem:[#allocation3 + $0x2f8] sm:$0xf] %v9820_v15  ;;  %1286 = vst [vmem:[#allocation3 + $0x150] sm:$0xf] %v9872_v19  ;;  %v1130_v33 = vld [vmem:[#allocation2 + $0xb0] sm:$0xff]  ;;  %v9844_v36 = vpack.c.bf16 %v938_v30, %v938_v30  ;;  %v9875_v37 = vpack.c.bf16 %v1129_v32, %v1129_v32  ;;  %v11561_v47 = vld [vmem:[#allocation7 + $0x150] sm:$0xff]  }
  0x99   : > { %712 = vst [vmem:[#allocation3 + $0x18c] sm:$0xf] %v9872_v19  ;;  %v11512_v34 = vld [vmem:[#allocation3 + $0xd8] ss:$36 sps:$4 sm:$0xff]   ;;  %v11513_v35 = vld [vmem:[#allocation3 + $0xe4] ss:$36 sps:$4 sm:$0xff]   ;;  %v9876_v38 = vpack.c.bf16 %v1130_v33, %v1130_v33  ;;  %10578 = vmatprep.subr.bf16.mxu0 %v11561_v47 }
  0x9a   : > { %1095 = vst [vmem:[#allocation3 + $0x170] sm:$0xf] %v9841_v22  ;;  %1096 = vst [vmem:[#allocation3 + $0x194] sm:$0xf] %v9842_v23  ;;  %v939_v39 = vld [vmem:[#allocation2 + $0xaa] sm:$0xff]  ;;  %v940_v40 = vld [vmem:[#allocation2 + $0xb2] sm:$0xff] }
  0x9b   : > { %v1131_v43 = vld [vmem:[#allocation2 + $0xc0] sm:$0xff]  ;;  %v11516_v44 = vld [vmem:[#allocation3 + $0x124] ss:$36 sps:$4 sm:$0xff]   ;;  %1287 = vst [vmem:[#allocation3 + $0x174] sm:$0xf] %v9873_v28  ;;  %v9845_v45 = vpack.c.bf16 %v939_v39, %v939_v39  ;;  %v9846_v46 = vpack.c.bf16 %v940_v40, %v940_v40  ;;  %v1132_v49 = vld [vmem:[#allocation2 + $0xc8] sm:$0xff] }
  0x9c   : > { %1288 = vst [vmem:[#allocation3 + $0x198] sm:$0xf] %v9874_v29  ;;  %713 = vst [vmem:[#allocation3 + $0x1b0] sm:$0xf] %v9873_v28  ;;  %v9877_v50 = vpack.c.bf16 %v1131_v43, %v1131_v43  ;;  %v941_v51 = vld [vmem:[#allocation2 + $0xc2] sm:$0xff]  ;;  %v942_v52 = vld [vmem:[#allocation2 + $0xca] sm:$0xff]  ;;  %v9878_v53 = vpack.c.bf16 %v1132_v49, %v1132_v49  ;;  %3959 = vmatmul.mubr.bf16.gmra.mxu1 %v11509_v27 }
  0x9d   : > { %714 = vst [vmem:[#allocation3 + $0x1d4] sm:$0xf] %v9874_v29  ;;  %1097 = vst [vmem:[#allocation3 + $0x1b8] sm:$0xf] %v9843_v31  ;;  %v9847_v54 = vpack.c.bf16 %v941_v51, %v941_v51  ;;  %v9848_v55 = vpack.c.bf16 %v942_v52, %v942_v52  ;;  %v1133_v56 = vld [vmem:[#allocation2 + $0xd8] sm:$0xff]  ;;  %v1134_v57 = vld [vmem:[#allocation2 + $0xe0] sm:$0xff]  ;;  %3806 = vmatmul.mubr.bf16.gmra.mxu0 %v11512_v34  ;;  %3966 = vmatprep.mubr.bf16.mxu1 %v11513_v35 }
  0x9e   : > { %1098 = vst [vmem:[#allocation3 + $0x1dc] sm:$0xf] %v9844_v36  ;;  %1289 = vst [vmem:[#allocation3 + $0x1bc] sm:$0xf] %v9875_v37  ;;  %v943_v58 = vld [vmem:[#allocation2 + $0xda] sm:$0xff]  ;;  %v9879_v59 = vpack.c.bf16 %v1133_v56, %v1133_v56  ;;  %v9880_v60 = vpack.c.bf16 %v1134_v57, %v1134_v57  ;;  %v944_v61 = vld [vmem:[#allocation2 + $0xe2] sm:$0xff]  ;;  %3813 = vmatprep.mubr.bf16.mxu0 %v11516_v44 }
  0x9f   : > { %1290 = vst [vmem:[#allocation3 + $0x1e0] sm:$0xf] %v9876_v38  ;;  %715 = vst [vmem:[#allocation3 + $0x1f8] sm:$0xf] %v9875_v37  ;;  %v9849_v62 = vpack.c.bf16 %v943_v58, %v943_v58  ;;  %v1135_v63 = vld [vmem:[#allocation2 + $0xf0] sm:$0xff]  ;;  %v1136_v0 = vld [vmem:[#allocation2 + $0xf8] sm:$0xff]  ;;  %v9850_v2 = vpack.c.bf16 %v944_v61, %v944_v61 }
  0xa0   : > { %716 = vst [vmem:[#allocation3 + $0x21c] sm:$0xf] %v9876_v38  ;;  %1099 = vst [vmem:[#allocation3 + $0x200] sm:$0xf] %v9845_v45  ;;  %v9881_v3 = vpack.c.bf16 %v1135_v63, %v1135_v63  ;;  %v9882_v4 = vpack.c.bf16 %v1136_v0, %v1136_v0  ;;  %v387_v48 = vld [vmem:[%s12354_s17 + $0xa0] sm:$0xff]  ;;  %v388_v5 = vld [vmem:[%s12354_s17 + $0xa8] sm:$0xff] }
  0xa1   : > { %1100 = vst [vmem:[#allocation3 + $0x224] sm:$0xf] %v9846_v46  ;;  %1291 = vst [vmem:[#allocation3 + $0x204] sm:$0xf] %v9877_v50  ;;  %v426_v6 = vmul.f32 %v12371_v41, %v387_v48  ;;  %v945_v7 = vld [vmem:[#allocation2 + $0xf2] sm:$0xff]  ;;  %v946_v8 = vld [vmem:[#allocation2 + $0xfa] sm:$0xff]  ;;  %v427_v9 = vmul.f32 %v12371_v41, %v388_v5 }
  0xa2   : > { %717 = vst [vmem:[#allocation3 + $0x240] sm:$0xf] %v9877_v50  ;;  %1292 = vst [vmem:[#allocation3 + $0x228] sm:$0xf] %v9878_v53  ;;  %v9851_v10 = vpack.c.bf16 %v945_v7, %v945_v7  ;;  %v9852_v11 = vpack.c.bf16 %v946_v8, %v946_v8  ;;  %v11515_v14 = vld [vmem:[#allocation3 + $0xe0] ss:$36 sps:$4 sm:$0xff]  }
  0xa3   : > { %718 = vst [vmem:[#allocation3 + $0x264] sm:$0xf] %v9878_v53  ;;  %1101 = vst [vmem:[#allocation3 + $0x248] sm:$0xf] %v9847_v54  ;;  %v465_v12 = vadd.f32 %v12376_v42, %v426_v6  ;;  %v466_v13 = vadd.f32 %v12376_v42, %v427_v9  ;;  %v11518_v16 = vld [vmem:[#allocation3 + $0x120] ss:$36 sps:$4 sm:$0xff]  }
  0xa4   : > { %1102 = vst [vmem:[#allocation3 + $0x26c] sm:$0xf] %v9848_v55  ;;  %1293 = vst [vmem:[#allocation3 + $0x24c] sm:$0xf] %v9879_v59  ;;  %v11520_v17 = vld [vmem:[#allocation3 + $0x12c] ss:$36 sps:$4 sm:$0xff]   ;;  %3967 = vmatmul.mubr.bf16.gmra.mxu1 %v11515_v14 }
  0xa5   : > { %1294 = vst [vmem:[#allocation3 + $0x270] sm:$0xf] %v9880_v60  ;;  %719 = vst [vmem:[#allocation3 + $0x288] sm:$0xf] %v9879_v59  ;;  %v497_v15 = vmax.f32 %v465_v12, 0.0  ;;  %v498_v1 = vmax.f32 %v466_v13, 0.0  ;;  %3814 = vmatmul.mubr.bf16.gmra.mxu0 %v11518_v16  ;;  %3974 = vmatprep.mubr.bf16.mxu1 %v11520_v17 }
  0xa6   : > { %720 = vst [vmem:[#allocation3 + $0x2ac] sm:$0xf] %v9880_v60  ;;  %1103 = vst [vmem:[#allocation3 + $0x290] sm:$0xf] %v9849_v62  ;;  %v11524_v18 = vld [vmem:[#allocation3 + $0x16c] ss:$36 sps:$4 sm:$0xff]  }
  0xa7   : > { %1104 = vst [vmem:[#allocation3 + $0x2b4] sm:$0xf] %v9850_v2  ;;  %1295 = vst [vmem:[#allocation3 + $0x294] sm:$0xf] %v9881_v3  ;;  %v9821_v19 = vpack.c.bf16 %v497_v15, %v497_v15  ;;  %v9822_v20 = vpack.c.bf16 %v498_v1, %v498_v1  ;;  %3821 = vmatprep.mubr.bf16.mxu0 %v11524_v18  ;;  %v11523_v21 = vld [vmem:[#allocation3 + $0x128] ss:$36 sps:$4 sm:$0xff]  }
  0xa8   : > { %1296 = vst [vmem:[#allocation3 + $0x2b8] sm:$0xf] %v9882_v4  ;;  %721 = vst [vmem:[#allocation3 + $0x2d0] sm:$0xf] %v9881_v3  ;;  %v11526_v22 = vld [vmem:[#allocation3 + $0x168] ss:$36 sps:$4 sm:$0xff]  }
  0xa9   : > { %722 = vst [vmem:[#allocation3 + $0x2f4] sm:$0xf] %v9882_v4  ;;  %1105 = vst [vmem:[#allocation3 + $0x2d8] sm:$0xf] %v9851_v10  ;;  %v11527_v23 = vld [vmem:[#allocation3 + $0x174] ss:$36 sps:$4 sm:$0xff]  }
  0xaa   : > { %1106 = vst [vmem:[#allocation3 + $0x2fc] sm:$0xf] %v9852_v11  ;;  %529 = vst [vmem:[#allocation2 + $0x109] sm:$0xff] %v497_v15  ;;  %v11530_v24 = vld [vmem:[#allocation3 + $0x1b4] ss:$36 sps:$4 sm:$0xff]   ;;  %v11575_v44 = vld [vmem:[#allocation7 + $0x148] sm:$0xff]  }
  0xab   : > { %530 = vst [vmem:[#allocation2 + $0x111] sm:$0xff] %v498_v1  ;;  %915 = vst [vmem:[#allocation3 + $0x31c] sm:$0xf] %v9821_v19  ;;  %v11564_v29 = vld [vmem:[#allocation7 + $0x110] sm:$0xff]   ;;  %v390_v32 = vld [vmem:[%s12354_s17 + $0xb8] sm:$0xff] }
  0xac   : > { %916 = vst [vmem:[#allocation3 + $0x340] sm:$0xf] %v9822_v20  ;;  %3975 = vmatmul.mubr.bf16.gmra.mxu1 %v11523_v21  ;;  %v11529_v30 = vld [vmem:[#allocation3 + $0x170] ss:$36 sps:$4 sm:$0xff]   ;;  %v11534_v35 = vld [vmem:[#allocation3 + $0x1bc] ss:$36 sps:$4 sm:$0xff]   ;;  %10579 = vmatpush3.bf16.msra.mxu0 %v11564_v29  ;;  %v429_v37 = vmul.f32 %v12371_v41, %v390_v32 }
  0xad   : > { %3822 = vmatmul.mubr.bf16.gmra.mxu0 %v11526_v22  ;;  %3982 = vmatprep.mubr.bf16.mxu1 %v11527_v23  ;;  %v389_v31 = vld [vmem:[%s12354_s17 + $0xb0] sm:$0xff]  ;;  %v11538_v40 = vld [vmem:[#allocation3 + $0x1fc] ss:$36 sps:$4 sm:$0xff]   ;;  %v392_v46 = vld [vmem:[%s12354_s17 + $0xc8] sm:$0xff] }
  0xae   : > { %3829 = vmatprep.mubr.bf16.mxu0 %v11530_v24  ;;  %v11532_v34 = vld [vmem:[#allocation3 + $0x1b0] ss:$36 sps:$4 sm:$0xff]   ;;  %v428_v36 = vmul.f32 %v12371_v41, %v389_v31  ;;  %v391_v45 = vld [vmem:[%s12354_s17 + $0xc0] sm:$0xff]  ;;  %v468_v50 = vadd.f32 %v12376_v42, %v429_v37  ;;  %v431_v52 = vmul.f32 %v12371_v41, %v392_v46  ;;  %v11578_v53 = vld [vmem:[#allocation7 + $0x108] sm:$0xff]   ;;  %10580 = vmatprep.subr.bf16.mxu0 %v11575_v44 }
  0xaf   : > { %v430_v51 = vmul.f32 %v12371_v41, %v391_v45  ;;  %v11580_v54 = vld [vmem:[#allocation7 + $0x1f8] sm:$0xff]   ;;  %v11582_v63 = vld [vmem:[#allocation7 + $0x1f0] sm:$0xff]   ;;  %v11541_v47 = vld [vmem:[#allocation3 + $0x204] ss:$36 sps:$4 sm:$0xff]  }
  0xb0   : > { %v467_v49 = vadd.f32 %v12376_v42, %v428_v36  ;;  %v500_v56 = vmax.f32 %v468_v50, 0.0  ;;  %v470_v58 = vadd.f32 %v12376_v42, %v431_v52  ;;  %10581 = vmatpush3.bf16.msra.mxu0 %v11578_v53  ;;  %10680 = vmatprep.subr.bf16.mxu1 %v11580_v54  ;;  %v11581_v59 = vld [vmem:[#allocation7 + $0x1b8] sm:$0xff]   ;;  %v11585_v2 = vld [vmem:[#allocation7 + $0x1b0] sm:$0xff]   ;;  %v11544_v48 = vld [vmem:[#allocation3 + $0x244] ss:$36 sps:$4 sm:$0xff]  }
  0xb1   : > { %v1137_v25 = vld [vmem:[#allocation2 + $0x108] sm:$0xff]  ;;  %v469_v57 = vadd.f32 %v12376_v42, %v430_v51  ;;  %10681 = vmatpush3.bf16.msra.mxu1 %v11581_v59  ;;  %v393_v5 = vld [vmem:[%s12354_s17 + $0xd0] sm:$0xff]  ;;  %v11590_v10 = vld [vmem:[#allocation7 + $0x1e8] sm:$0xff]  }
  0xb2   : > { %v1138_v26 = vld [vmem:[#allocation2 + $0x110] sm:$0xff]  ;;  %v9883_v27 = vpack.c.bf16 %v1137_v25, %v1137_v25  ;;  %v499_v55 = vmax.f32 %v467_v49, 0.0  ;;  %532 = vst [vmem:[#allocation2 + $0x129] sm:$0xff] %v500_v56  ;;  %v9824_v41 = vpack.c.bf16 %v500_v56, %v500_v56  ;;  %v502_v62 = vmax.f32 %v470_v58, 0.0  ;;  %v11537_v0 = vld [vmem:[#allocation3 + $0x1b8] ss:$36 sps:$4 sm:$0xff]   ;;  %10682 = vmatprep.subr.bf16.mxu1 %v11582_v63 }
  0xb3   : > { %v9884_v28 = vpack.c.bf16 %v1138_v26, %v1138_v26  ;;  %v947_v33 = vld [vmem:[#allocation2 + $0x10a] sm:$0xff]  ;;  %v948_v38 = vld [vmem:[#allocation2 + $0x112] sm:$0xff]  ;;  %v501_v61 = vmax.f32 %v469_v57, 0.0  ;;  %v12472_v7 = vld [vmem:[%s13424_s1] ss:$0 sm:$0xff] }
  0xb4   : > { %1297 = vst [vmem:[#allocation3 + $0x2dc] sm:$0xf] %v9883_v27  ;;  %723 = vst [vmem:[#allocation3 + $0x318] sm:$0xf] %v9883_v27  ;;  %v9853_v39 = vpack.c.bf16 %v947_v33, %v947_v33  ;;  %v9854_v43 = vpack.c.bf16 %v948_v38, %v948_v38  ;;  %3983 = vmatmul.mubr.bf16.gmra.mxu1 %v11529_v30  ;;  %v9823_v60 = vpack.c.bf16 %v499_v55, %v499_v55  ;;  %v11540_v42 = vld [vmem:[#allocation3 + $0x1f8] ss:$36 sps:$4 sm:$0xff]  }
  0xb5   : > { %1298 = vst [vmem:[#allocation3 + $0x300] sm:$0xf] %v9884_v28  ;;  %724 = vst [vmem:[#allocation3 + $0x33c] sm:$0xf] %v9884_v28  ;;  %3830 = vmatmul.mubr.bf16.gmra.mxu0 %v11532_v34  ;;  %3990 = vmatprep.mubr.bf16.mxu1 %v11534_v35  ;;  %v9825_v3 = vpack.c.bf16 %v501_v61, %v501_v61  ;;  %v9826_v4 = vpack.c.bf16 %v502_v62, %v502_v62  ;;  %v394_v6 = vld [vmem:[%s12354_s17 + $0xd8] sm:$0xff]  ;;  %v11591_v11 = vld [vmem:[#allocation7 + $0x1a8] sm:$0xff]  }
  0xb6   : > { %1107 = vst [vmem:[#allocation3 + $0x320] sm:$0xf] %v9853_v39  ;;  %1108 = vst [vmem:[#allocation3 + $0x344] sm:$0xf] %v9854_v43  ;;  %3837 = vmatprep.mubr.bf16.mxu0 %v11538_v40  ;;  %10683 = vmatpush3.bf16.msra.mxu1 %v11585_v2  ;;  %v432_v8 = vmul.f32 %v12472_v7, %v393_v5  ;;  %v433_v9 = vmul.f32 %v12472_v7, %v394_v6  ;;  %v12479_v15 = vld [vmem:[%s13425_s2] ss:$0 sm:$0xff] }
  0xb7   : > { %531 = vst [vmem:[#allocation2 + $0x121] sm:$0xff] %v499_v55  ;;  %917 = vst [vmem:[#allocation3 + $0x364] sm:$0xf] %v9823_v60  ;;  %10684 = vmatprep.subr.bf16.mxu1 %v11590_v10  ;;  %v11592_v21 = vld [vmem:[#allocation7 + $0x1e0] sm:$0xff]   ;;  %v11548_v30 = vld [vmem:[#allocation3 + $0x24c] ss:$36 sps:$4 sm:$0xff]  }
  0xb8   : > { %918 = vst [vmem:[#allocation3 + $0x388] sm:$0xf] %v9824_v41  ;;  %533 = vst [vmem:[#allocation2 + $0x139] sm:$0xff] %v501_v61  ;;  %v471_v16 = vadd.f32 %v12479_v15, %v432_v8  ;;  %v472_v17 = vadd.f32 %v12479_v15, %v433_v9  ;;  %v11543_v22 = vld [vmem:[#allocation3 + $0x200] ss:$36 sps:$4 sm:$0xff]   ;;  %v396_v44 = vld [vmem:[%s12354_s17 + $0xe8] sm:$0xff] }
  0xb9   : > { %534 = vst [vmem:[#allocation2 + $0x141] sm:$0xff] %v502_v62  ;;  %919 = vst [vmem:[#allocation3 + $0x3ac] sm:$0xf] %v9825_v3  ;;  %v950_v19 = vld [vmem:[#allocation2 + $0x12a] sm:$0xff]  ;;  %v11552_v35 = vld [vmem:[#allocation3 + $0x28c] ss:$36 sps:$4 sm:$0xff]   ;;  %v435_v46 = vmul.f32 %v12472_v7, %v396_v44 }
  0xba   : > { %920 = vst [vmem:[#allocation3 + $0x3d0] sm:$0xf] %v9826_v4  ;;  %v9856_v23 = vpack.c.bf16 %v950_v19, %v950_v19  ;;  %v503_v26 = vmax.f32 %v471_v16, 0.0  ;;  %v504_v27 = vmax.f32 %v472_v17, 0.0  ;;  %10685 = vmatpush3.bf16.msra.mxu1 %v11591_v11  ;;  %v11546_v29 = vld [vmem:[#allocation3 + $0x240] ss:$36 sps:$4 sm:$0xff]  }
  0xbb   : > { %10686 = vmatprep.subr.bf16.mxu1 %v11592_v21  ;;  %v11595_v39 = vld [vmem:[#allocation7 + $0x1a0] sm:$0xff]   ;;  %v11602_v50 = vld [vmem:[#allocation7 + $0x1d8] sm:$0xff]   ;;  %v474_v52 = vadd.f32 %v12479_v15, %v435_v46  ;;  %v11604_v54 = vld [vmem:[#allocation7 + $0x1d0] sm:$0xff]  }
  0xbc   : > { %3991 = vmatmul.mubr.bf16.gmra.mxu1 %v11537_v0  ;;  %1110 = vst [vmem:[#allocation3 + $0x38c] sm:$0xf] %v9856_v23  ;;  %535 = vst [vmem:[#allocation2 + $0x151] sm:$0xff] %v503_v26  ;;  %v9827_v37 = vpack.c.bf16 %v503_v26, %v503_v26  ;;  %v9828_v38 = vpack.c.bf16 %v504_v27, %v504_v27  ;;  %v11597_v40 = vld [vmem:[#allocation7 + $0x140] sm:$0xff]   ;;  %v11603_v53 = vld [vmem:[#allocation7 + $0x198] sm:$0xff]  }
  0xbd   : > { %3838 = vmatmul.mubr.bf16.gmra.mxu0 %v11540_v42  ;;  %3998 = vmatprep.mubr.bf16.mxu1 %v11541_v47  ;;  %536 = vst [vmem:[#allocation2 + $0x159] sm:$0xff] %v504_v27  ;;  %v395_v43 = vld [vmem:[%s12354_s17 + $0xe0] sm:$0xff]  ;;  %v506_v56 = vmax.f32 %v474_v52, 0.0  ;;  %v11551_v57 = vld [vmem:[#allocation3 + $0x248] ss:$36 sps:$4 sm:$0xff]   ;;  %v397_v5 = vld [vmem:[%s12354_s17 + $0xf0] sm:$0xff] }
  0xbe   : > { %v1139_v12 = vld [vmem:[#allocation2 + $0x120] sm:$0xff]  ;;  %v1140_v13 = vld [vmem:[#allocation2 + $0x128] sm:$0xff]  ;;  %3845 = vmatprep.mubr.bf16.mxu0 %v11544_v48  ;;  %921 = vst [vmem:[#allocation3 + $0x3f4] sm:$0xf] %v9827_v37  ;;  %922 = vst [vmem:[#allocation3 + $0x418] sm:$0xf] %v9828_v38  ;;  %10687 = vmatpush3.bf16.msra.mxu1 %v11595_v39  ;;  %v434_v45 = vmul.f32 %v12472_v7, %v395_v43  ;;  %v436_v9 = vmul.f32 %v12472_v7, %v397_v5 }
  0xbf   : > { %v949_v14 = vld [vmem:[#allocation2 + $0x122] sm:$0xff]  ;;  %v9885_v1 = vpack.c.bf16 %v1139_v12, %v1139_v12  ;;  %v9886_v18 = vpack.c.bf16 %v1140_v13, %v1140_v13  ;;  %v1141_v24 = vld [vmem:[#allocation2 + $0x138] sm:$0xff]  ;;  %v11600_v49 = vld [vmem:[#allocation7 + $0x100] sm:$0xff]   ;;  %10582 = vmatprep.subr.bf16.mxu0 %v11597_v40  ;;  %10688 = vmatprep.subr.bf16.mxu1 %v11602_v50  ;;  %538 = vst [vmem:[#allocation2 + $0x171] sm:$0xff] %v506_v56 }
  0xc0   : > { %v9855_v20 = vpack.c.bf16 %v949_v14, %v949_v14  ;;  %v1142_v25 = vld [vmem:[#allocation2 + $0x140] sm:$0xff]  ;;  %v9887_v31 = vpack.c.bf16 %v1141_v24, %v1141_v24  ;;  %v473_v51 = vadd.f32 %v12479_v15, %v434_v45  ;;  %10583 = vmatpush3.bf16.msra.mxu0 %v11600_v49  ;;  %v9830_v59 = vpack.c.bf16 %v506_v56, %v506_v56  ;;  %v11554_v60 = vld [vmem:[#allocation3 + $0x288] ss:$36 sps:$4 sm:$0xff]   ;;  %v398_v8 = vld [vmem:[%s12354_s17 + $0xf8] sm:$0xff]  ;;  %s13239_s17 = scalar_lea.vmem [#allocation10], %s8745_s3  ;;  %s10343_s3 = sshll.u32 %s12242_s28, 12 }
  0xc1   : > { %v951_v28 = vld [vmem:[#allocation2 + $0x13a] sm:$0xff]  ;;  %1299 = vst [vmem:[#allocation3 + $0x324] sm:$0xf] %v9885_v1  ;;  %1300 = vst [vmem:[#allocation3 + $0x348] sm:$0xf] %v9886_v18  ;;  %v9888_v32 = vpack.c.bf16 %v1142_v25, %v1142_v25  ;;  %v952_v33 = vld [vmem:[#allocation2 + $0x142] sm:$0xff]  ;;  %v437_v14 = vmul.f32 %v12472_v7, %v398_v8  ;;  %v475_v19 = vadd.f32 %v12479_v15, %v436_v9  ;;  %s13376_s20 = scalar_lea.hbm %s13430_s7, %s10343_s3 }
  0xc2   : > { %725 = vst [vmem:[#allocation3 + $0x360] sm:$0xf] %v9885_v1  ;;  %726 = vst [vmem:[#allocation3 + $0x384] sm:$0xf] %v9886_v18  ;;  %v9857_v34 = vpack.c.bf16 %v951_v28, %v951_v28  ;;  %v9858_v36 = vpack.c.bf16 %v952_v33, %v952_v33  ;;  %v505_v55 = vmax.f32 %v473_v51, 0.0  ;;  %10689 = vmatpush3.bf16.msra.mxu1 %v11603_v53  ;;  %v11607_v48 = vld [vmem:[#allocation7 + $0x190] sm:$0xff]  }
  0xc3   : > { %1109 = vst [vmem:[#allocation3 + $0x368] sm:$0xf] %v9855_v20  ;;  %1301 = vst [vmem:[#allocation3 + $0x36c] sm:$0xf] %v9887_v31  ;;  %10690 = vmatprep.subr.bf16.mxu1 %v11604_v54  ;;  %v11555_v41 = vld [vmem:[#allocation3 + $0x294] ss:$36 sps:$4 sm:$0xff]   ;;  %v476_v23 = vadd.f32 %v12479_v15, %v437_v14 }
  0xc4   : > { %1302 = vst [vmem:[#allocation3 + $0x390] sm:$0xf] %v9888_v32  ;;  %727 = vst [vmem:[#allocation3 + $0x3a8] sm:$0xf] %v9887_v31  ;;  %3999 = vmatmul.mubr.bf16.gmra.mxu1 %v11543_v22  ;;  %v9829_v58 = vpack.c.bf16 %v505_v55, %v505_v55  ;;  %v11558_v61 = vld [vmem:[#allocation3 + $0x2d4] ss:$36 sps:$4 sm:$0xff]  }
  0xc5   : > { %728 = vst [vmem:[#allocation3 + $0x3cc] sm:$0xf] %v9888_v32  ;;  %1111 = vst [vmem:[#allocation3 + $0x3b0] sm:$0xf] %v9857_v34  ;;  %3846 = vmatmul.mubr.bf16.gmra.mxu0 %v11546_v29  ;;  %4006 = vmatprep.mubr.bf16.mxu1 %v11548_v30  ;;  %v1143_v62 = vld [vmem:[#allocation2 + $0x150] sm:$0xff]  ;;  %v1144_v63 = vld [vmem:[#allocation2 + $0x158] sm:$0xff] }
  0xc6   : > { %1112 = vst [vmem:[#allocation3 + $0x3d4] sm:$0xf] %v9858_v36  ;;  %3853 = vmatprep.mubr.bf16.mxu0 %v11552_v35  ;;  %537 = vst [vmem:[#allocation2 + $0x169] sm:$0xff] %v505_v55  ;;  %v9889_v0 = vpack.c.bf16 %v1143_v62, %v1143_v62  ;;  %v9890_v2 = vpack.c.bf16 %v1144_v63, %v1144_v63  ;;  %v953_v42 = vld [vmem:[#allocation2 + $0x152] sm:$0xff]  ;;  %v954_v3 = vld [vmem:[#allocation2 + $0x15a] sm:$0xff]  ;;  %10691 = vmatpush3.bf16.msra.mxu1 %v11607_v48  ;;  %v507_v26 = vmax.f32 %v475_v19, 0.0 }
  0xc7   : > { %923 = vst [vmem:[#allocation3 + $0x43c] sm:$0xf] %v9829_v58  ;;  %924 = vst [vmem:[#allocation3 + $0x460] sm:$0xf] %v9830_v59  ;;  %v9859_v4 = vpack.c.bf16 %v953_v42, %v953_v42  ;;  %v9860_v47 = vpack.c.bf16 %v954_v3, %v954_v3  ;;  %v11557_v6 = vld [vmem:[#allocation3 + $0x290] ss:$36 sps:$4 sm:$0xff]  }
  0xc8   : > { %1303 = vst [vmem:[#allocation3 + $0x3b4] sm:$0xf] %v9889_v0  ;;  %1304 = vst [vmem:[#allocation3 + $0x3d8] sm:$0xf] %v9890_v2  ;;  %v11560_v10 = vld [vmem:[#allocation3 + $0x2d0] ss:$36 sps:$4 sm:$0xff]  }
  0xc9   : > { %729 = vst [vmem:[#allocation3 + $0x3f0] sm:$0xf] %v9889_v0  ;;  %730 = vst [vmem:[#allocation3 + $0x414] sm:$0xf] %v9890_v2  ;;  %v11562_v11 = vld [vmem:[#allocation3 + $0x2dc] ss:$36 sps:$4 sm:$0xff]  }
  0xca   : > { %1113 = vst [vmem:[#allocation3 + $0x3f8] sm:$0xf] %v9859_v4  ;;  %1114 = vst [vmem:[#allocation3 + $0x41c] sm:$0xf] %v9860_v47  ;;  %v11566_v17 = vld [vmem:[#allocation3 + $0x31c] ss:$36 sps:$4 sm:$0xff]  }
  0xcb   : > { %v956_v20 = vld [vmem:[#allocation2 + $0x172] sm:$0xff]  ;;  %v508_v28 = vmax.f32 %v476_v23, 0.0  ;;  %v1310_v29 = vld [vmem:[#allocation2 + $0x21] sm:$0xff]  ;;  %539 = vst [vmem:[#allocation2 + $0x181] sm:$0xff] %v507_v26  ;;  %v1888_v3 = vld [vmem:[#allocation2 + $0x49] sm:$0xff]  ;;  %s8644_s30 = sshll.u32 %s13239_s17, 4  ;;  %s13378_s30 = int_to_ptr.vmem [resolvable:$true] %s8644_s30 }
  0xcc   : > { %4007 = vmatmul.mubr.bf16.gmra.mxu1 %v11551_v57  ;;  %v11612_v22 = vld [vmem:[#allocation7 + $0x1c8] sm:$0xff]   ;;  %v9862_v24 = vpack.c.bf16 %v956_v20, %v956_v20  ;;  %v11614_v7 = vld [vmem:[#allocation7 + $0x1c0] sm:$0xff]   ;;  %v1502_v32 = vld [vmem:[#allocation2 + $0x22] sm:$0xff]  ;;  %v9896_v15 = vpack.c.bf16 %v1310_v29, %v1310_v29  ;;  %v9993_v48 = vpack.c.bf16 %v1888_v3, %v1888_v3  ;;  %s8631_s28 = scalar_lea.sflag [#allocation6], %s12348_s15  ;;  %s12099_s21 = scalar_lea.vmem %s13378_s30, 4096 }
  0xcd   : > { %3854 = vmatmul.mubr.bf16.gmra.mxu0 %v11554_v60  ;;  %4014 = vmatprep.mubr.bf16.mxu1 %v11555_v41  ;;  %v1145_v12 = vld [vmem:[#allocation2 + $0x168] sm:$0xff]  ;;  %v1146_v13 = vld [vmem:[#allocation2 + $0x170] sm:$0xff]  ;;  %v11613_v25 = vld [vmem:[#allocation7 + $0x188] sm:$0xff]   ;;  %v9928_v34 = vpack.c.bf16 %v1502_v32, %v1502_v32  ;;  %540 = vst [vmem:[#allocation2 + $0x189] sm:$0xff] %v508_v28  ;;  %p12100_p11 = scmp.ne.s32.totalorder %s13378_s30, %s12099_s21  ;;  %p12106_p6 = scmp.lt.s32.totalorder %s13378_s30, %s12104_s13 }
  0xce   : > { %3861 = vmatprep.mubr.bf16.mxu0 %v11558_v61  ;;  %v955_v16 = vld [vmem:[#allocation2 + $0x16a] sm:$0xff]  ;;  %v9891_v1 = vpack.c.bf16 %v1145_v12, %v1145_v12  ;;  %v9892_v18 = vpack.c.bf16 %v1146_v13, %v1146_v13  ;;  %10692 = vmatprep.subr.bf16.mxu1 %v11612_v22  ;;  %v1309_v27 = vld [vmem:[#allocation2 + $0x19] sm:$0xff]  ;;  %1116 = vst [vmem:[#allocation3 + $0x464] sm:$0xf] %v9862_v24  ;;  %1470 = vst [vmem:[#allocation3 + $0x34] sm:$0xf] %v9896_v15  ;;  %p12107_p12 = scmp.lt.s32.totalorder %s12105_s19, %s12099_s21 }
  0xcf   : > { %v9861_v21 = vpack.c.bf16 %v955_v16, %v955_v16  ;;  %10693 = vmatpush3.bf16.msra.mxu1 %v11613_v25  ;;  %v9895_v30 = vpack.c.bf16 %v1309_v27, %v1309_v27  ;;  %v1501_v31 = vld [vmem:[#allocation2 + $0x1a] sm:$0xff]  ;;  %v11617_v35 = vld [vmem:[#allocation7 + $0x180] sm:$0xff]   ;;  %1662 = vst [vmem:[#allocation3 + $0x38] sm:$0xf] %v9928_v34  ;;  %v11565_v36 = vld [vmem:[#allocation3 + $0x2d8] ss:$36 sps:$4 sm:$0xff]   ;;  %p12101_p1 = pnand %p12100_p11, %p13558_p10 }
  0xd0   : > { %1305 = vst [vmem:[#allocation3 + $0x3fc] sm:$0xf] %v9891_v1  ;;  %1306 = vst [vmem:[#allocation3 + $0x420] sm:$0xf] %v9892_v18  ;;  %10694 = vmatprep.subr.bf16.mxu1 %v11614_v7  ;;  %v9927_v33 = vpack.c.bf16 %v1501_v31, %v1501_v31  ;;  %v11568_v37 = vld [vmem:[#allocation3 + $0x318] ss:$36 sps:$4 sm:$0xff]   ;;  %p12108_p7 = por %p12107_p12, %p12106_p6 }
  0xd1   : > { %731 = vst [vmem:[#allocation3 + $0x438] sm:$0xf] %v9891_v1  ;;  %732 = vst [vmem:[#allocation3 + $0x45c] sm:$0xf] %v9892_v18  ;;  %v12495_v38 = vld [vmem:[#allocation7 + $0x238] sm:$0xff]   ;;  %v1694_v39 = vld [vmem:[#allocation2 + $0x30] sm:$0xff]  ;;  %p12102_p2 = pneg %p12101_p1 }
  0xd2   : > { %1115 = vst [vmem:[#allocation3 + $0x440] sm:$0xf] %v9861_v21  ;;  %1469 = vst [vmem:[#allocation3 + $0x10] sm:$0xf] %v9895_v30  ;;  %v11569_v40 = vld [vmem:[#allocation3 + $0x324] ss:$36 sps:$4 sm:$0xff]   ;;  %v9959_v43 = vpack.c.bf16 %v1694_v39, %v1694_v39  ;;  %11288 = vmatprep.subr.bf16.mxu0 %v12495_v38 }
  0xd3   : > { %1661 = vst [vmem:[#allocation3 + $0x14] sm:$0xf] %v9927_v33  ;;  %10695 = vmatpush3.bf16.msra.mxu1 %v11617_v35  ;;  %v11572_v44 = vld [vmem:[#allocation3 + $0x364] ss:$36 sps:$4 sm:$0xff]   ;;  %v1147_v45 = vld [vmem:[#allocation2 + $0x180] sm:$0xff]  ;;  %v1696_v62 = vld [vmem:[#allocation2 + $0x48] sm:$0xff]  ;;  %p12109_p9 = pnand %p12108_p7, %p12102_p2 }
  0xd4   : > { %4015 = vmatmul.mubr.bf16.gmra.mxu1 %v11557_v6  ;;  %1854 = vst [vmem:[#allocation3 + $0x18] sm:$0xf] %v9959_v43  ;;  %v1148_v46 = vld [vmem:[#allocation2 + $0x188] sm:$0xff]  ;;  %v9893_v49 = vpack.c.bf16 %v1147_v45, %v1147_v45  ;;  %v1695_v50 = vld [vmem:[#allocation2 + $0x38] sm:$0xff]  ;;  %v11571_v55 = vld [vmem:[#allocation3 + $0x320] ss:$36 sps:$4 sm:$0xff]   ;;  %v9961_v2 = vpack.c.bf16 %v1696_v62, %v1696_v62 }
  0xd5   : > { %3862 = vmatmul.mubr.bf16.gmra.mxu0 %v11560_v10  ;;  %4022 = vmatprep.mubr.bf16.mxu1 %v11562_v11  ;;  %v1886_v51 = vld [vmem:[#allocation2 + $0x31] sm:$0xff]  ;;  %v9894_v52 = vpack.c.bf16 %v1148_v46, %v1148_v46  ;;  %v9960_v53 = vpack.c.bf16 %v1695_v50, %v1695_v50  ;;  %v1887_v56 = vld [vmem:[#allocation2 + $0x39] sm:$0xff]  ;;  %v1699_v12 = vld [vmem:[#allocation2 + $0x68] sm:$0xff]  ;;  %2048 = vst [vmem:[#allocation3 + $0x64] sm:$0xf] %v9993_v48 }
  0xd6   : > { %3869 = vmatprep.mubr.bf16.mxu0 %v11566_v17  ;;  %v9991_v54 = vpack.c.bf16 %v1886_v51, %v1886_v51  ;;  %1307 = vst [vmem:[#allocation3 + $0x444] sm:$0xf] %v9893_v49  ;;  %v1503_v57 = vld [vmem:[#allocation2 + $0x32] sm:$0xff]  ;;  %v11576_v59 = vld [vmem:[#allocation3 + $0x36c] ss:$36 sps:$4 sm:$0xff]   ;;  %v9992_v60 = vpack.c.bf16 %v1887_v56, %v1887_v56  ;;  %v1505_v47 = vld [vmem:[#allocation2 + $0x4a] sm:$0xff]  ;;  %v9964_v14 = vpack.c.bf16 %v1699_v12, %v1699_v12 }
  0xd7   : > { %v11574_v58 = vld [vmem:[#allocation3 + $0x360] ss:$36 sps:$4 sm:$0xff]   ;;  %1308 = vst [vmem:[#allocation3 + $0x468] sm:$0xf] %v9894_v52  ;;  %1855 = vst [vmem:[#allocation3 + $0x3c] sm:$0xf] %v9960_v53  ;;  %v9929_v61 = vpack.c.bf16 %v1503_v57, %v1503_v57  ;;  %v9931_v8 = vpack.c.bf16 %v1505_v47, %v1505_v47 }
  0xd8   : > { %2046 = vst [vmem:[#allocation3 + $0x1c] sm:$0xf] %v9991_v54  ;;  %1471 = vst [vmem:[#allocation3 + $0x58] sm:$0xf] %v9991_v54  ;;  %v1504_v41 = vld [vmem:[#allocation2 + $0x3a] sm:$0xff]  ;;  %v1697_v63 = vld [vmem:[#allocation2 + $0x50] sm:$0xff] }
  0xd9   : > { %v9930_v0 = vpack.c.bf16 %v1504_v41, %v1504_v41  ;;  %v9962_v42 = vpack.c.bf16 %v1697_v63, %v1697_v63  ;;  %v1889_v4 = vld [vmem:[#allocation2 + $0x51] sm:$0xff]  ;;  %2047 = vst [vmem:[#allocation3 + $0x40] sm:$0xf] %v9992_v60  ;;  %1472 = vst [vmem:[#allocation3 + $0x7c] sm:$0xf] %v9992_v60  ;;  %v1698_v11 = vld [vmem:[#allocation2 + $0x60] sm:$0xff] }
  0xda   : > { %1663 = vst [vmem:[#allocation3 + $0x5c] sm:$0xf] %v9929_v61  ;;  %v9994_v5 = vpack.c.bf16 %v1889_v4, %v1889_v4  ;;  %v1506_v6 = vld [vmem:[#allocation2 + $0x52] sm:$0xff]  ;;  %v11583_v9 = vld [vmem:[#allocation3 + $0x3ac] ss:$36 sps:$4 sm:$0xff]   ;;  %v9963_v13 = vpack.c.bf16 %v1698_v11, %v1698_v11  ;;  %v1891_v17 = vld [vmem:[#allocation2 + $0x69] sm:$0xff] }
  0xdb   : > { %1664 = vst [vmem:[#allocation3 + $0x80] sm:$0xf] %v9930_v0  ;;  %1856 = vst [vmem:[#allocation3 + $0x60] sm:$0xf] %v9961_v2  ;;  %v9932_v10 = vpack.c.bf16 %v1506_v6, %v1506_v6  ;;  %v1890_v16 = vld [vmem:[#allocation2 + $0x61] sm:$0xff]  ;;  %v9996_v19 = vpack.c.bf16 %v1891_v17, %v1891_v17  ;;  %v1508_v20 = vld [vmem:[#allocation2 + $0x6a] sm:$0xff] }
  0xdc   : > { %4023 = vmatmul.mubr.bf16.gmra.mxu1 %v11565_v36  ;;  %1857 = vst [vmem:[#allocation3 + $0x84] sm:$0xf] %v9962_v42  ;;  %2049 = vst [vmem:[#allocation3 + $0x88] sm:$0xf] %v9994_v5  ;;  %v1507_v1 = vld [vmem:[#allocation2 + $0x62] sm:$0xff]  ;;  %v9995_v18 = vpack.c.bf16 %v1890_v16, %v1890_v16  ;;  %v1700_v22 = vld [vmem:[#allocation2 + $0x78] sm:$0xff]  ;;  %v9934_v24 = vpack.c.bf16 %v1508_v20, %v1508_v20 }
  0xdd   : > { %3870 = vmatmul.mubr.bf16.gmra.mxu0 %v11568_v37  ;;  %4030 = vmatprep.mubr.bf16.mxu1 %v11569_v40  ;;  %1473 = vst [vmem:[#allocation3 + $0xa0] sm:$0xf] %v9993_v48  ;;  %1474 = vst [vmem:[#allocation3 + $0xc4] sm:$0xf] %v9994_v5  ;;  %v9933_v21 = vpack.c.bf16 %v1507_v1, %v1507_v1  ;;  %v1701_v23 = vld [vmem:[#allocation2 + $0x80] sm:$0xff]  ;;  %v9965_v25 = vpack.c.bf16 %v1700_v22, %v1700_v22  ;;  %v1703_v45 = vld [vmem:[#allocation2 + $0x98] sm:$0xff] }
  0xde   : > { %3877 = vmatprep.mubr.bf16.mxu0 %v11572_v44  ;;  %1665 = vst [vmem:[#allocation3 + $0xa4] sm:$0xf] %v9931_v8  ;;  %1666 = vst [vmem:[#allocation3 + $0xc8] sm:$0xf] %v9932_v10  ;;  %v9966_v26 = vpack.c.bf16 %v1701_v23, %v1701_v23  ;;  %v1892_v7 = vld [vmem:[#allocation2 + $0x79] sm:$0xff]  ;;  %v1893_v27 = vld [vmem:[#allocation2 + $0x81] sm:$0xff]  ;;  %v9968_v49 = vpack.c.bf16 %v1703_v45, %v1703_v45 }
  0xdf   : > { %1858 = vst [vmem:[#allocation3 + $0xa8] sm:$0xf] %v9963_v13  ;;  %1859 = vst [vmem:[#allocation3 + $0xcc] sm:$0xf] %v9964_v14  ;;  %v9997_v28 = vpack.c.bf16 %v1892_v7, %v1892_v7  ;;  %v9998_v29 = vpack.c.bf16 %v1893_v27, %v1893_v27  ;;  %v1509_v30 = vld [vmem:[#allocation2 + $0x7a] sm:$0xff]  ;;  %v1510_v31 = vld [vmem:[#allocation2 + $0x82] sm:$0xff] }
  0xe0   : > { %2050 = vst [vmem:[#allocation3 + $0xac] sm:$0xf] %v9995_v18  ;;  %2051 = vst [vmem:[#allocation3 + $0xd0] sm:$0xf] %v9996_v19  ;;  %v11579_v32 = vld [vmem:[#allocation3 + $0x368] ss:$36 sps:$4 sm:$0xff]   ;;  %v9935_v33 = vpack.c.bf16 %v1509_v30, %v1509_v30  ;;  %v9936_v34 = vpack.c.bf16 %v1510_v31, %v1510_v31 }
  0xe1   : > { %1475 = vst [vmem:[#allocation3 + $0xe8] sm:$0xf] %v9995_v18  ;;  %1476 = vst [vmem:[#allocation3 + $0x10c] sm:$0xf] %v9996_v19  ;;  %v11586_v15 = vld [vmem:[#allocation3 + $0x3a8] ss:$36 sps:$4 sm:$0xff]  }
  0xe2   : > { %1667 = vst [vmem:[#allocation3 + $0xec] sm:$0xf] %v9933_v21  ;;  %1668 = vst [vmem:[#allocation3 + $0x110] sm:$0xf] %v9934_v24  ;;  %v11587_v35 = vld [vmem:[#allocation3 + $0x3b4] ss:$36 sps:$4 sm:$0xff]  }
  0xe3   : > { %1860 = vst [vmem:[#allocation3 + $0xf0] sm:$0xf] %v9965_v25  ;;  %1861 = vst [vmem:[#allocation3 + $0x114] sm:$0xf] %v9966_v26  ;;  %v11593_v36 = vld [vmem:[#allocation3 + $0x3f4] ss:$36 sps:$4 sm:$0xff]  }
  0xe4   : > { %4031 = vmatmul.mubr.bf16.gmra.mxu1 %v11571_v55  ;;  %2052 = vst [vmem:[#allocation3 + $0xf4] sm:$0xf] %v9997_v28  ;;  %2053 = vst [vmem:[#allocation3 + $0x118] sm:$0xf] %v9998_v29  ;;  %v11589_v37 = vld [vmem:[#allocation3 + $0x3b0] ss:$36 sps:$4 sm:$0xff]  }
  0xe5   : > { %3878 = vmatmul.mubr.bf16.gmra.mxu0 %v11574_v58  ;;  %4038 = vmatprep.mubr.bf16.mxu1 %v11576_v59  ;;  %1477 = vst [vmem:[#allocation3 + $0x130] sm:$0xf] %v9997_v28  ;;  %1478 = vst [vmem:[#allocation3 + $0x154] sm:$0xf] %v9998_v29  ;;  %v11596_v39 = vld [vmem:[#allocation3 + $0x3f0] ss:$36 sps:$4 sm:$0xff]  }
  0xe6   : > { %3885 = vmatprep.mubr.bf16.mxu0 %v11583_v9  ;;  %1669 = vst [vmem:[#allocation3 + $0x134] sm:$0xf] %v9935_v33  ;;  %1670 = vst [vmem:[#allocation3 + $0x158] sm:$0xf] %v9936_v34  ;;  %v11598_v40 = vld [vmem:[#allocation3 + $0x3fc] ss:$36 sps:$4 sm:$0xff]  }
  0xe7   : > { %v11605_v43 = vld [vmem:[#allocation3 + $0x43c] ss:$36 sps:$4 sm:$0xff]   ;;  %v1895_v51 = vld [vmem:[#allocation2 + $0x99] sm:$0xff]  ;;  %1863 = vst [vmem:[#allocation3 + $0x15c] sm:$0xf] %v9968_v49  ;;  %v1898_v14 = vld [vmem:[#allocation2 + $0xc1] sm:$0xff] }
  0xe8   : > { %v1702_v44 = vld [vmem:[#allocation2 + $0x90] sm:$0xff]  ;;  %v10000_v54 = vpack.c.bf16 %v1895_v51, %v1895_v51  ;;  %v1512_v55 = vld [vmem:[#allocation2 + $0x9a] sm:$0xff]  ;;  %v1704_v57 = vld [vmem:[#allocation2 + $0xa8] sm:$0xff]  ;;  %v10003_v1 = vpack.c.bf16 %v1898_v14, %v1898_v14 }
  0xe9   : > { %v9967_v46 = vpack.c.bf16 %v1702_v44, %v1702_v44  ;;  %v1894_v50 = vld [vmem:[#allocation2 + $0x91] sm:$0xff]  ;;  %v11601_v59 = vld [vmem:[#allocation3 + $0x3f8] ss:$36 sps:$4 sm:$0xff]   ;;  %v9938_v60 = vpack.c.bf16 %v1512_v55, %v1512_v55  ;;  %v9969_v41 = vpack.c.bf16 %v1704_v57, %v1704_v57  ;;  %v1706_v8 = vld [vmem:[#allocation2 + $0xc0] sm:$0xff] }
  0xea   : > { %v1511_v52 = vld [vmem:[#allocation2 + $0x92] sm:$0xff]  ;;  %v9999_v53 = vpack.c.bf16 %v1894_v50, %v1894_v50  ;;  %v1896_v62 = vld [vmem:[#allocation2 + $0xa9] sm:$0xff]  ;;  %2055 = vst [vmem:[#allocation3 + $0x160] sm:$0xf] %v10000_v54  ;;  %1480 = vst [vmem:[#allocation3 + $0x19c] sm:$0xf] %v10000_v54  ;;  %v9971_v12 = vpack.c.bf16 %v1706_v8, %v1706_v8 }
  0xeb   : > { %v9937_v56 = vpack.c.bf16 %v1511_v52, %v1511_v52  ;;  %v1705_v58 = vld [vmem:[#allocation2 + $0xb0] sm:$0xff]  ;;  %1862 = vst [vmem:[#allocation3 + $0x138] sm:$0xf] %v9967_v46  ;;  %v11608_v2 = vld [vmem:[#allocation3 + $0x438] ss:$36 sps:$4 sm:$0xff]   ;;  %v10001_v42 = vpack.c.bf16 %v1896_v62, %v1896_v62  ;;  %v12017_v10 = vld [vmem:[#allocation2] sm:$0xff] }
  0xec   : > { %4039 = vmatmul.mubr.bf16.gmra.mxu1 %v11579_v32  ;;  %v9970_v61 = vpack.c.bf16 %v1705_v58, %v1705_v58  ;;  %v1897_v63 = vld [vmem:[#allocation2 + $0xb1] sm:$0xff]  ;;  %2054 = vst [vmem:[#allocation3 + $0x13c] sm:$0xf] %v9999_v53  ;;  %1479 = vst [vmem:[#allocation3 + $0x178] sm:$0xf] %v9999_v53  ;;  %v1707_v9 = vld [vmem:[#allocation2 + $0xc8] sm:$0xff]  ;;  %v12498_v11 = vpack.c.bf16 %v12017_v10, %v12017_v10 }
  0xed   : > { %3886 = vmatmul.mubr.bf16.gmra.mxu0 %v11586_v15  ;;  %4046 = vmatprep.mubr.bf16.mxu1 %v11587_v35  ;;  %v1513_v0 = vld [vmem:[#allocation2 + $0xaa] sm:$0xff]  ;;  %1671 = vst [vmem:[#allocation3 + $0x17c] sm:$0xf] %v9937_v56  ;;  %v10002_v3 = vpack.c.bf16 %v1897_v63, %v1897_v63  ;;  %v1514_v4 = vld [vmem:[#allocation2 + $0xb2] sm:$0xff]  ;;  %1672 = vst [vmem:[#allocation3 + $0x1a0] sm:$0xf] %v9938_v60  ;;  %v9972_v13 = vpack.c.bf16 %v1707_v9, %v1707_v9 }
  0xee   : > { %3893 = vmatprep.mubr.bf16.mxu0 %v11593_v36  ;;  %v9939_v47 = vpack.c.bf16 %v1513_v0, %v1513_v0  ;;  %v11609_v48 = vld [vmem:[#allocation3 + $0x444] ss:$36 sps:$4 sm:$0xff]   ;;  %v11615_v5 = vld [vmem:[#allocation3 + $0x14] ss:$36 sps:$4 sm:$0xff]   ;;  %1864 = vst [vmem:[#allocation3 + $0x180] sm:$0xf] %v9969_v41  ;;  %v9940_v6 = vpack.c.bf16 %v1514_v4, %v1514_v4 }
  0xef   : > { %1865 = vst [vmem:[#allocation3 + $0x1a4] sm:$0xf] %v9970_v61  ;;  %2056 = vst [vmem:[#allocation3 + $0x184] sm:$0xf] %v10001_v42  ;;  %v1899_v16 = vld [vmem:[#allocation2 + $0xc9] sm:$0xff]  ;;  %v1708_v21 = vld [vmem:[#allocation2 + $0xd8] sm:$0xff] }
  0xf0   : > { %2057 = vst [vmem:[#allocation3 + $0x1a8] sm:$0xf] %v10002_v3  ;;  %1481 = vst [vmem:[#allocation3 + $0x1c0] sm:$0xf] %v10001_v42  ;;  %v1515_v17 = vld [vmem:[#allocation2 + $0xc2] sm:$0xff]  ;;  %v10004_v18 = vpack.c.bf16 %v1899_v16, %v1899_v16  ;;  %v1516_v19 = vld [vmem:[#allocation2 + $0xca] sm:$0xff]  ;;  %v9973_v24 = vpack.c.bf16 %v1708_v21, %v1708_v21 }
  0xf1   : > { %1482 = vst [vmem:[#allocation3 + $0x1e4] sm:$0xf] %v10002_v3  ;;  %1673 = vst [vmem:[#allocation3 + $0x1c4] sm:$0xf] %v9939_v47  ;;  %v9941_v20 = vpack.c.bf16 %v1515_v17, %v1515_v17  ;;  %v1709_v22 = vld [vmem:[#allocation2 + $0xe0] sm:$0xff]  ;;  %v9942_v23 = vpack.c.bf16 %v1516_v19, %v1516_v19  ;;  %v1710_v15 = vld [vmem:[#allocation2 + $0xf0] sm:$0xff] }
  0xf2   : > { %1674 = vst [vmem:[#allocation3 + $0x1e8] sm:$0xf] %v9940_v6  ;;  %1884 = vst [vmem:[#allocation3 + $0x450] sm:$0xf] %v12498_v11  ;;  %v9974_v25 = vpack.c.bf16 %v1709_v22, %v1709_v22  ;;  %v1900_v26 = vld [vmem:[#allocation2 + $0xd9] sm:$0xff]  ;;  %v1901_v7 = vld [vmem:[#allocation2 + $0xe1] sm:$0xff]  ;;  %v9975_v34 = vpack.c.bf16 %v1710_v15, %v1710_v15 }
  0xf3   : > { %1885 = vst [vmem:[#allocation3 + $0x474] sm:$0xf] %v12498_v11  ;;  %1866 = vst [vmem:[#allocation3 + $0x1c8] sm:$0xf] %v9971_v12  ;;  %v1517_v27 = vld [vmem:[#allocation2 + $0xda] sm:$0xff]  ;;  %v10005_v28 = vpack.c.bf16 %v1900_v26, %v1900_v26  ;;  %v10006_v29 = vpack.c.bf16 %v1901_v7, %v1901_v7  ;;  %v1518_v30 = vld [vmem:[#allocation2 + $0xe2] sm:$0xff] }
  0xf4   : > { %4047 = vmatmul.mubr.bf16.gmra.mxu1 %v11589_v37  ;;  %1867 = vst [vmem:[#allocation3 + $0x1ec] sm:$0xf] %v9972_v13  ;;  %2058 = vst [vmem:[#allocation3 + $0x1cc] sm:$0xf] %v10003_v1  ;;  %v9943_v31 = vpack.c.bf16 %v1517_v27, %v1517_v27  ;;  %v9944_v32 = vpack.c.bf16 %v1518_v30, %v1518_v30  ;;  %v1711_v33 = vld [vmem:[#allocation2 + $0xf8] sm:$0xff]  ;;  %v12503_v52 = vld [vmem:[#allocation7 + $0x220] sm:$0xff]  }
  0xf5   : > { %3894 = vmatmul.mubr.bf16.gmra.mxu0 %v11596_v39  ;;  %4054 = vmatprep.mubr.bf16.mxu1 %v11598_v40  ;;  %2059 = vst [vmem:[#allocation3 + $0x1f0] sm:$0xf] %v10004_v18  ;;  %1483 = vst [vmem:[#allocation3 + $0x208] sm:$0xf] %v10003_v1  ;;  %v9976_v35 = vpack.c.bf16 %v1711_v33, %v1711_v33  ;;  %v11611_v36 = vld [vmem:[#allocation3 + $0x440] ss:$36 sps:$4 sm:$0xff]  }
  0xf6   : > { %3901 = vmatprep.mubr.bf16.mxu0 %v11605_v43  ;;  %1484 = vst [vmem:[#allocation3 + $0x22c] sm:$0xf] %v10004_v18  ;;  %1675 = vst [vmem:[#allocation3 + $0x20c] sm:$0xf] %v9941_v20  ;;  %v11618_v37 = vld [vmem:[#allocation3 + $0x10] ss:$36 sps:$4 sm:$0xff]  }
  0xf7   : > { %1676 = vst [vmem:[#allocation3 + $0x230] sm:$0xf] %v9942_v23  ;;  %1868 = vst [vmem:[#allocation3 + $0x210] sm:$0xf] %v9973_v24  ;;  %v11620_v39 = vld [vmem:[#allocation3 + $0x1c] ss:$36 sps:$4 sm:$0xff]  }
  0xf8   : > { %1869 = vst [vmem:[#allocation3 + $0x234] sm:$0xf] %v9974_v25  ;;  %2060 = vst [vmem:[#allocation3 + $0x214] sm:$0xf] %v10005_v28  ;;  %v11623_v40 = vld [vmem:[#allocation3 + $0x5c] ss:$36 sps:$4 sm:$0xff]  }
  0xf9   : > { %2061 = vst [vmem:[#allocation3 + $0x238] sm:$0xf] %v10006_v29  ;;  %1485 = vst [vmem:[#allocation3 + $0x250] sm:$0xf] %v10005_v28  ;;  %v11632_v43 = vld [vmem:[#allocation7 + $0x230] sm:$0xff]   ;;  %v11645_v46 = vld [vmem:[#allocation7 + $0x228] sm:$0xff]  }
  0xfa   : > { %1486 = vst [vmem:[#allocation3 + $0x274] sm:$0xf] %v10006_v29  ;;  %1677 = vst [vmem:[#allocation3 + $0x254] sm:$0xf] %v9943_v31  ;;  %v11622_v44 = vld [vmem:[#allocation3 + $0x18] ss:$36 sps:$4 sm:$0xff]  }
  0xfb   : > { %1678 = vst [vmem:[#allocation3 + $0x278] sm:$0xf] %v9944_v32  ;;  %1870 = vst [vmem:[#allocation3 + $0x258] sm:$0xf] %v9975_v34  ;;  %v11625_v45 = vld [vmem:[#allocation3 + $0x58] ss:$36 sps:$4 sm:$0xff]  }
  0xfc   : > { %4055 = vmatmul.mubr.bf16.gmra.mxu1 %v11601_v59  ;;  %1871 = vst [vmem:[#allocation3 + $0x27c] sm:$0xf] %v9976_v35  ;;  %v11626_v49 = vld [vmem:[#allocation3 + $0x64] ss:$36 sps:$4 sm:$0xff]   ;;  %v1712_v59 = vld [vmem:[#allocation2 + $0x108] sm:$0xff]  ;;  %v1717_v22 = vld [vmem:[#allocation2 + $0x140] sm:$0xff] }
  0xfd   : > { %3902 = vmatmul.mubr.bf16.gmra.mxu0 %v11608_v2  ;;  %4062 = vmatprep.mubr.bf16.mxu1 %v11609_v48  ;;  %v11629_v50 = vld [vmem:[#allocation3 + $0xa4] ss:$36 sps:$4 sm:$0xff]   ;;  %v9977_v41 = vpack.c.bf16 %v1712_v59, %v1712_v59  ;;  %v1904_v62 = vld [vmem:[#allocation2 + $0x109] sm:$0xff]  ;;  %v1906_v12 = vld [vmem:[#allocation2 + $0x121] sm:$0xff]  ;;  %v9982_v25 = vpack.c.bf16 %v1717_v22, %v1717_v22  ;;  %5928 = vst [vmem:[#allocation3 + $0x450] sm:$0xf] %v12498_v11 }
  0xfe   : > { %4103 = vmatprep.mubr.bf16.mxu0 %v11615_v5  ;;  %v1902_v51 = vld [vmem:[#allocation2 + $0xf1] sm:$0xff]  ;;  %v1903_v53 = vld [vmem:[#allocation2 + $0xf9] sm:$0xff]  ;;  %v10009_v2 = vpack.c.bf16 %v1904_v62, %v1904_v62  ;;  %v12505_v47 = vld [vmem:[#allocation7 + $0x218] sm:$0xff]   ;;  %v10011_v1 = vpack.c.bf16 %v1906_v12, %v1906_v12  ;;  %5929 = vst [vmem:[#allocation3 + $0x474] sm:$0xf] %v12498_v11 }
  0xff   : > { %v10007_v54 = vpack.c.bf16 %v1902_v51, %v1902_v51  ;;  %v1519_v55 = vld [vmem:[#allocation2 + $0xf2] sm:$0xff]  ;;  %v10008_v56 = vpack.c.bf16 %v1903_v53, %v1903_v53  ;;  %v1520_v57 = vld [vmem:[#allocation2 + $0xfa] sm:$0xff]  ;;  %v1521_v0 = vld [vmem:[#allocation2 + $0x10a] sm:$0xff]  ;;  %1872 = vst [vmem:[#allocation3 + $0x2a0] sm:$0xf] %v9977_v41 }
 0x100   : > { %v9945_v58 = vpack.c.bf16 %v1519_v55, %v1519_v55  ;;  %v1713_v60 = vld [vmem:[#allocation2 + $0x110] sm:$0xff]  ;;  %v9947_v4 = vpack.c.bf16 %v1521_v0, %v1521_v0  ;;  %v1714_v5 = vld [vmem:[#allocation2 + $0x120] sm:$0xff]  ;;  %v1715_v6 = vld [vmem:[#allocation2 + $0x128] sm:$0xff]  ;;  %2064 = vst [vmem:[#allocation3 + $0x2a4] sm:$0xf] %v10009_v2 }
 0x101   : > { %2062 = vst [vmem:[#allocation3 + $0x25c] sm:$0xf] %v10007_v54  ;;  %1487 = vst [vmem:[#allocation3 + $0x298] sm:$0xf] %v10007_v54  ;;  %v9978_v61 = vpack.c.bf16 %v1713_v60, %v1713_v60  ;;  %v1905_v63 = vld [vmem:[#allocation2 + $0x111] sm:$0xff]  ;;  %v9979_v9 = vpack.c.bf16 %v1714_v5, %v1714_v5  ;;  %v9980_v10 = vpack.c.bf16 %v1715_v6, %v1715_v6  ;;  %v1907_v13 = vld [vmem:[#allocation2 + $0x129] sm:$0xff] }
 0x102   : > { %2063 = vst [vmem:[#allocation3 + $0x280] sm:$0xf] %v10008_v56  ;;  %1488 = vst [vmem:[#allocation3 + $0x2bc] sm:$0xf] %v10008_v56  ;;  %v10010_v42 = vpack.c.bf16 %v1905_v63, %v1905_v63  ;;  %v1522_v3 = vld [vmem:[#allocation2 + $0x112] sm:$0xff]  ;;  %v1523_v14 = vld [vmem:[#allocation2 + $0x122] sm:$0xff]  ;;  %v10012_v18 = vpack.c.bf16 %v1907_v13, %v1907_v13 }
 0x103   : > { %1679 = vst [vmem:[#allocation3 + $0x29c] sm:$0xf] %v9945_v58  ;;  %1873 = vst [vmem:[#allocation3 + $0x2c4] sm:$0xf] %v9978_v61  ;;  %v9948_v48 = vpack.c.bf16 %v1522_v3, %v1522_v3  ;;  %v11628_v8 = vld [vmem:[#allocation3 + $0x60] ss:$36 sps:$4 sm:$0xff]   ;;  %v9949_v20 = vpack.c.bf16 %v1523_v14, %v1523_v14 }
 0x104   : > { %4063 = vmatmul.mubr.bf16.gmra.mxu1 %v11611_v36  ;;  %2065 = vst [vmem:[#allocation3 + $0x2c8] sm:$0xf] %v10010_v42  ;;  %1489 = vst [vmem:[#allocation3 + $0x2e0] sm:$0xf] %v10009_v2  ;;  %v11631_v16 = vld [vmem:[#allocation3 + $0xa0] ss:$36 sps:$4 sm:$0xff]  }
 0x105   : > { %4104 = vmatmul.mubr.bf16.vlgmr.msra.gmra.mxu0 %v11618_v37  ;;  %4264 = vmatprep.mubr.bf16.mxu1 %v11620_v39  ;;  %1490 = vst [vmem:[#allocation3 + $0x304] sm:$0xf] %v10010_v42  ;;  %1681 = vst [vmem:[#allocation3 + $0x2e4] sm:$0xf] %v9947_v4  ;;  %v11633_v17 = vld [vmem:[#allocation3 + $0xac] ss:$36 sps:$4 sm:$0xff]  }
 0x106   : > { %11289 = vmatpush3.bf16.msra.mxu0 %v12495_v38  ;;  %4111 = vmatprep.mubr.bf16.mxu0 %v11623_v40  ;;  %v9946_v38 = vpack.c.bf16 %v1520_v57, %v1520_v57  ;;  %2256 = vst [vmem:[#allocation3 + $0x2a8] sm:$0xf] %v9947_v4  ;;  %1682 = vst [vmem:[#allocation3 + $0x308] sm:$0xf] %v9948_v48  ;;  %v1524_v19 = vld [vmem:[#allocation2 + $0x12a] sm:$0xff]  ;;  %v1716_v21 = vld [vmem:[#allocation2 + $0x138] sm:$0xff] }
 0x107   : > { %11290 = vmatprep.subr.bf16.mxu0 %v11632_v43  ;;  %2257 = vst [vmem:[#allocation3 + $0x2cc] sm:$0xf] %v9948_v48  ;;  %1874 = vst [vmem:[#allocation3 + $0x2e8] sm:$0xf] %v9979_v9  ;;  %v9950_v23 = vpack.c.bf16 %v1524_v19, %v1524_v19  ;;  %v9981_v24 = vpack.c.bf16 %v1716_v21, %v1716_v21  ;;  %v1908_v26 = vld [vmem:[#allocation2 + $0x139] sm:$0xff]  ;;  %v1909_v7 = vld [vmem:[#allocation2 + $0x141] sm:$0xff] }
 0x108   : > { %1680 = vst [vmem:[#allocation3 + $0x2c0] sm:$0xf] %v9946_v38  ;;  %1875 = vst [vmem:[#allocation3 + $0x30c] sm:$0xf] %v9980_v10  ;;  %v1525_v27 = vld [vmem:[#allocation2 + $0x13a] sm:$0xff]  ;;  %v10013_v28 = vpack.c.bf16 %v1908_v26, %v1908_v26  ;;  %v10014_v29 = vpack.c.bf16 %v1909_v7, %v1909_v7  ;;  %v1526_v30 = vld [vmem:[#allocation2 + $0x142] sm:$0xff] }
 0x109   : > { %2066 = vst [vmem:[#allocation3 + $0x2ec] sm:$0xf] %v10011_v1  ;;  %2067 = vst [vmem:[#allocation3 + $0x310] sm:$0xf] %v10012_v18  ;;  %v9951_v31 = vpack.c.bf16 %v1525_v27, %v1525_v27  ;;  %v11636_v32 = vld [vmem:[#allocation3 + $0xec] ss:$36 sps:$4 sm:$0xff]   ;;  %v9952_v15 = vpack.c.bf16 %v1526_v30, %v1526_v30 }
 0x10a   : > { %11291 = vmatpush3.bf16.msra.mxu0 %v11632_v43  ;;  %1491 = vst [vmem:[#allocation3 + $0x328] sm:$0xf] %v10011_v1  ;;  %1492 = vst [vmem:[#allocation3 + $0x34c] sm:$0xf] %v10012_v18  ;;  %v1718_v33 = vld [vmem:[#allocation2 + $0x150] sm:$0xff]  ;;  %v11684_v34 = vld [vmem:[#allocation7 + $0x210] sm:$0xff]  }
 0x10b   : > { %11292 = vmatprep.subr.bf16.mxu0 %v11645_v46  ;;  %1683 = vst [vmem:[#allocation3 + $0x32c] sm:$0xf] %v9949_v20  ;;  %2258 = vst [vmem:[#allocation3 + $0x2f0] sm:$0xf] %v9949_v20  ;;  %v9983_v35 = vpack.c.bf16 %v1718_v33, %v1718_v33  ;;  %v11635_v36 = vld [vmem:[#allocation3 + $0xa8] ss:$36 sps:$4 sm:$0xff]  }
 0x10c   : > { %4265 = vmatmul.mubr.bf16.vlgmr.msra.gmra.mxu1 %v11622_v44  ;;  %1684 = vst [vmem:[#allocation3 + $0x350] sm:$0xf] %v9950_v23  ;;  %1876 = vst [vmem:[#allocation3 + $0x330] sm:$0xf] %v9981_v24  ;;  %v11697_v37 = vld [vmem:[#allocation7 + $0x208] sm:$0xff]   ;;  %v1720_v59 = vld [vmem:[#allocation2 + $0x168] sm:$0xff] }
 0x10d   : > { %4112 = vmatmul.mubr.bf16.gmra.mxu0 %v11625_v45  ;;  %4272 = vmatprep.mubr.bf16.mxu1 %v11626_v49  ;;  %1877 = vst [vmem:[#allocation3 + $0x354] sm:$0xf] %v9982_v25  ;;  %2259 = vst [vmem:[#allocation3 + $0x314] sm:$0xf] %v9950_v23  ;;  %v11638_v39 = vld [vmem:[#allocation3 + $0xe8] ss:$36 sps:$4 sm:$0xff]   ;;  %v9985_v61 = vpack.c.bf16 %v1720_v59, %v1720_v59 }
 0x10e   : > { %4119 = vmatprep.mubr.bf16.mxu0 %v11629_v50  ;;  %11293 = vmatpush3.bf16.msra.mxu0 %v11645_v46  ;;  %2068 = vst [vmem:[#allocation3 + $0x334] sm:$0xf] %v10013_v28  ;;  %2069 = vst [vmem:[#allocation3 + $0x358] sm:$0xf] %v10014_v29  ;;  %v11639_v40 = vld [vmem:[#allocation3 + $0xf4] ss:$36 sps:$4 sm:$0xff]  }
 0x10f   : > { %11294 = vmatprep.subr.bf16.mxu0 %v12503_v52  ;;  %1493 = vst [vmem:[#allocation3 + $0x370] sm:$0xf] %v10013_v28  ;;  %1494 = vst [vmem:[#allocation3 + $0x394] sm:$0xf] %v10014_v29  ;;  %v11642_v43 = vld [vmem:[#allocation3 + $0x134] ss:$36 sps:$4 sm:$0xff]  }
 0x110   : > { %1685 = vst [vmem:[#allocation3 + $0x374] sm:$0xf] %v9951_v31  ;;  %2260 = vst [vmem:[#allocation3 + $0x338] sm:$0xf] %v9951_v31  ;;  %v1719_v44 = vld [vmem:[#allocation2 + $0x158] sm:$0xff]  ;;  %v1721_v60 = vld [vmem:[#allocation2 + $0x170] sm:$0xff] }
 0x111   : > { %1686 = vst [vmem:[#allocation3 + $0x398] sm:$0xf] %v9952_v15  ;;  %2261 = vst [vmem:[#allocation3 + $0x35c] sm:$0xf] %v9952_v15  ;;  %v1910_v45 = vld [vmem:[#allocation2 + $0x151] sm:$0xff]  ;;  %v9984_v49 = vpack.c.bf16 %v1719_v44, %v1719_v44  ;;  %v1911_v50 = vld [vmem:[#allocation2 + $0x159] sm:$0xff]  ;;  %v9986_v62 = vpack.c.bf16 %v1721_v60, %v1721_v60 }
 0x112   : > { %11295 = vmatpush3.bf16.msra.mxu0 %v12503_v52  ;;  %1878 = vst [vmem:[#allocation3 + $0x378] sm:$0xf] %v9983_v35  ;;  %v11641_v46 = vld [vmem:[#allocation3 + $0xf0] ss:$36 sps:$4 sm:$0xff]   ;;  %v10015_v51 = vpack.c.bf16 %v1910_v45, %v1910_v45  ;;  %v1527_v52 = vld [vmem:[#allocation2 + $0x152] sm:$0xff]  ;;  %v10016_v56 = vpack.c.bf16 %v1911_v50, %v1911_v50  ;;  %v1912_v38 = vld [vmem:[#allocation2 + $0x169] sm:$0xff] }
 0x113   : > { %11296 = vmatprep.subr.bf16.mxu0 %v12505_v47  ;;  %v1528_v53 = vld [vmem:[#allocation2 + $0x15a] sm:$0xff]  ;;  %v11646_v55 = vld [vmem:[#allocation3 + $0x13c] ss:$36 sps:$4 sm:$0xff]   ;;  %v9953_v57 = vpack.c.bf16 %v1527_v52, %v1527_v52  ;;  %1879 = vst [vmem:[#allocation3 + $0x39c] sm:$0xf] %v9984_v49  ;;  %v10017_v0 = vpack.c.bf16 %v1912_v38, %v1912_v38  ;;  %v1531_v14 = vld [vmem:[#allocation2 + $0x182] sm:$0xff] }
 0x114   : > { %4273 = vmatmul.mubr.bf16.gmra.mxu1 %v11628_v8  ;;  %v11644_v54 = vld [vmem:[#allocation3 + $0x130] ss:$36 sps:$4 sm:$0xff]   ;;  %v9954_v58 = vpack.c.bf16 %v1528_v53, %v1528_v53  ;;  %v11649_v41 = vld [vmem:[#allocation3 + $0x17c] ss:$36 sps:$4 sm:$0xff]   ;;  %2070 = vst [vmem:[#allocation3 + $0x37c] sm:$0xf] %v10015_v51  ;;  %v9957_v1 = vpack.c.bf16 %v1531_v14, %v1531_v14 }
 0x115   : > { %4120 = vmatmul.mubr.bf16.gmra.mxu0 %v11631_v16  ;;  %4280 = vmatprep.mubr.bf16.mxu1 %v11633_v17  ;;  %1495 = vst [vmem:[#allocation3 + $0x3b8] sm:$0xf] %v10015_v51  ;;  %v1913_v63 = vld [vmem:[#allocation2 + $0x171] sm:$0xff]  ;;  %2071 = vst [vmem:[#allocation3 + $0x3a0] sm:$0xf] %v10016_v56  ;;  %v1722_v5 = vld [vmem:[#allocation2 + $0x180] sm:$0xff] }
 0x116   : > { %4127 = vmatprep.mubr.bf16.mxu0 %v11636_v32  ;;  %11297 = vmatpush3.bf16.msra.mxu0 %v12505_v47  ;;  %v1529_v2 = vld [vmem:[#allocation2 + $0x16a] sm:$0xff]  ;;  %v1530_v42 = vld [vmem:[#allocation2 + $0x172] sm:$0xff]  ;;  %1496 = vst [vmem:[#allocation3 + $0x3dc] sm:$0xf] %v10016_v56  ;;  %1687 = vst [vmem:[#allocation3 + $0x3bc] sm:$0xf] %v9953_v57  ;;  %v10018_v3 = vpack.c.bf16 %v1913_v63, %v1913_v63  ;;  %v9987_v9 = vpack.c.bf16 %v1722_v5, %v1722_v5 }
 0x117   : > { %11298 = vmatprep.subr.bf16.mxu0 %v11684_v34  ;;  %1688 = vst [vmem:[#allocation3 + $0x3e0] sm:$0xf] %v9954_v58  ;;  %v9955_v4 = vpack.c.bf16 %v1529_v2, %v1529_v2  ;;  %v9956_v47 = vpack.c.bf16 %v1530_v42, %v1530_v42  ;;  %v11710_v48 = vld [vmem:[#allocation7 + $0x200] sm:$0xff]   ;;  %2262 = vst [vmem:[#allocation3 + $0x380] sm:$0xf] %v9953_v57  ;;  %v1723_v6 = vld [vmem:[#allocation2 + $0x188] sm:$0xff] }
 0x118   : > { %2263 = vst [vmem:[#allocation3 + $0x3a4] sm:$0xf] %v9954_v58  ;;  %1880 = vst [vmem:[#allocation3 + $0x3c0] sm:$0xf] %v9985_v61  ;;  %v1914_v8 = vld [vmem:[#allocation2 + $0x181] sm:$0xff]  ;;  %v9988_v10 = vpack.c.bf16 %v1723_v6, %v1723_v6  ;;  %v1915_v12 = vld [vmem:[#allocation2 + $0x189] sm:$0xff] }
 0x119   : > { %1881 = vst [vmem:[#allocation3 + $0x3e4] sm:$0xf] %v9986_v62  ;;  %2072 = vst [vmem:[#allocation3 + $0x3c4] sm:$0xf] %v10017_v0  ;;  %v10019_v13 = vpack.c.bf16 %v1914_v8, %v1914_v8  ;;  %v1532_v16 = vld [vmem:[#allocation2 + $0x18a] sm:$0xff]  ;;  %v10020_v17 = vpack.c.bf16 %v1915_v12, %v1915_v12  ;;  %v1916_v19 = vld [vmem:[#allocation2 + $0x199] sm:$0xff] }
 0x11a   : > { %11299 = vmatpush3.bf16.msra.mxu0 %v11684_v34  ;;  %1497 = vst [vmem:[#allocation3 + $0x400] sm:$0xf] %v10017_v0  ;;  %2073 = vst [vmem:[#allocation3 + $0x3e8] sm:$0xf] %v10018_v3  ;;  %v9958_v18 = vpack.c.bf16 %v1532_v16, %v1532_v16  ;;  %v1917_v20 = vld [vmem:[#allocation2 + $0x1a1] sm:$0xff]  ;;  %v2078_v21 = vld [vmem:[#allocation2 + $0x32] sm:$0xff]  ;;  %v10021_v22 = vpack.c.bf16 %v1916_v19, %v1916_v19 }
 0x11b   : > { %11300 = vmatprep.subr.bf16.mxu0 %v11697_v37  ;;  %1498 = vst [vmem:[#allocation3 + $0x424] sm:$0xf] %v10018_v3  ;;  %1689 = vst [vmem:[#allocation3 + $0x404] sm:$0xf] %v9955_v4  ;;  %v10022_v23 = vpack.c.bf16 %v1917_v20, %v1917_v20  ;;  %v2079_v24 = vld [vmem:[#allocation2 + $0x3a] sm:$0xff]  ;;  %v10023_v25 = vpack.c.bf16 %v2078_v21, %v2078_v21  ;;  %v2080_v26 = vld [vmem:[#allocation2 + $0x4a] sm:$0xff] }
 0x11c   : > { %4281 = vmatmul.mubr.bf16.gmra.mxu1 %v11635_v36  ;;  %1690 = vst [vmem:[#allocation3 + $0x428] sm:$0xf] %v9956_v47  ;;  %2264 = vst [vmem:[#allocation3 + $0x3c8] sm:$0xf] %v9955_v4  ;;  %v2081_v7 = vld [vmem:[#allocation2 + $0x52] sm:$0xff]  ;;  %v10024_v27 = vpack.c.bf16 %v2079_v24, %v2079_v24  ;;  %v10025_v28 = vpack.c.bf16 %v2080_v26, %v2080_v26  ;;  %v2082_v30 = vld [vmem:[#allocation2 + $0x62] sm:$0xff] }
 0x11d   : > { %4128 = vmatmul.mubr.bf16.gmra.mxu0 %v11638_v39  ;;  %4288 = vmatprep.mubr.bf16.mxu1 %v11639_v40  ;;  %2265 = vst [vmem:[#allocation3 + $0x3ec] sm:$0xf] %v9956_v47  ;;  %1882 = vst [vmem:[#allocation3 + $0x408] sm:$0xf] %v9987_v9  ;;  %v10026_v29 = vpack.c.bf16 %v2081_v7, %v2081_v7  ;;  %v2083_v31 = vld [vmem:[#allocation2 + $0x6a] sm:$0xff]  ;;  %v2084_v32 = vld [vmem:[#allocation2 + $0x7a] sm:$0xff]  ;;  %v10027_v15 = vpack.c.bf16 %v2082_v30, %v2082_v30 }
 0x11e   : > { %4135 = vmatprep.mubr.bf16.mxu0 %v11642_v43  ;;  %11301 = vmatpush3.bf16.msra.mxu0 %v11697_v37  ;;  %1883 = vst [vmem:[#allocation3 + $0x42c] sm:$0xf] %v9988_v10  ;;  %2074 = vst [vmem:[#allocation3 + $0x40c] sm:$0xf] %v10019_v13  ;;  %v10028_v33 = vpack.c.bf16 %v2083_v31, %v2083_v31  ;;  %v2085_v34 = vld [vmem:[#allocation2 + $0x82] sm:$0xff]  ;;  %v10029_v35 = vpack.c.bf16 %v2084_v32, %v2084_v32  ;;  %v2086_v36 = vld [vmem:[#allocation2 + $0x92] sm:$0xff] }
 0x11f   : > { %11302 = vmatprep.subr.bf16.mxu0 %v11710_v48  ;;  %1499 = vst [vmem:[#allocation3 + $0x448] sm:$0xf] %v10019_v13  ;;  %2075 = vst [vmem:[#allocation3 + $0x430] sm:$0xf] %v10020_v17  ;;  %v11648_v37 = vld [vmem:[#allocation3 + $0x138] ss:$36 sps:$4 sm:$0xff]   ;;  %v10030_v40 = vpack.c.bf16 %v2085_v34, %v2085_v34  ;;  %v10031_v43 = vpack.c.bf16 %v2086_v36, %v2086_v36 }
 0x120   : > { %1500 = vst [vmem:[#allocation3 + $0x46c] sm:$0xf] %v10020_v17  ;;  %1691 = vst [vmem:[#allocation3 + $0x44c] sm:$0xf] %v9957_v1  ;;  %v11651_v39 = vld [vmem:[#allocation3 + $0x178] ss:$36 sps:$4 sm:$0xff]  }
 0x121   : > { %1692 = vst [vmem:[#allocation3 + $0x470] sm:$0xf] %v9958_v18  ;;  %2266 = vst [vmem:[#allocation3 + $0x410] sm:$0xf] %v9957_v1  ;;  %v11652_v44 = vld [vmem:[#allocation3 + $0x184] ss:$36 sps:$4 sm:$0xff]  }
 0x122   : > { %11303 = vmatpush3.bf16.msra.mxu0 %v11710_v48  ;;  %2267 = vst [vmem:[#allocation3 + $0x434] sm:$0xf] %v9958_v18  ;;  %2076 = vst [vmem:[#allocation3 + $0x454] sm:$0xf] %v10021_v22  ;;  %v11655_v45 = vld [vmem:[#allocation3 + $0x1c4] ss:$36 sps:$4 sm:$0xff]  }
 0x123   : > { %2077 = vst [vmem:[#allocation3 + $0x478] sm:$0xf] %v10022_v23  ;;  %2238 = vst [vmem:[#allocation3 + $0x20] sm:$0xf] %v10023_v25  ;;  %v11657_v49 = vld [vmem:[#allocation3 + $0x1c0] ss:$36 sps:$4 sm:$0xff]  }
 0x124   : > { %4289 = vmatmul.mubr.bf16.gmra.mxu1 %v11641_v46  ;;  %2239 = vst [vmem:[#allocation3 + $0x44] sm:$0xf] %v10024_v27  ;;  %2240 = vst [vmem:[#allocation3 + $0x68] sm:$0xf] %v10025_v28  ;;  %v11654_v46 = vld [vmem:[#allocation3 + $0x180] ss:$36 sps:$4 sm:$0xff]  }
 0x125   : > { %4136 = vmatmul.mubr.bf16.gmra.mxu0 %v11644_v54  ;;  %4296 = vmatprep.mubr.bf16.mxu1 %v11646_v55  ;;  %2241 = vst [vmem:[#allocation3 + $0x8c] sm:$0xf] %v10026_v29  ;;  %2242 = vst [vmem:[#allocation3 + $0xb0] sm:$0xf] %v10027_v15  ;;  %v11659_v51 = vld [vmem:[#allocation3 + $0x1cc] ss:$36 sps:$4 sm:$0xff]  }
 0x126   : > { %4143 = vmatprep.mubr.bf16.mxu0 %v11649_v41  ;;  %2243 = vst [vmem:[#allocation3 + $0xd4] sm:$0xf] %v10028_v33  ;;  %2244 = vst [vmem:[#allocation3 + $0xf8] sm:$0xf] %v10029_v35  ;;  %v11662_v52 = vld [vmem:[#allocation3 + $0x20c] ss:$36 sps:$4 sm:$0xff]  }
 0x127   : > { %2245 = vst [vmem:[#allocation3 + $0x11c] sm:$0xf] %v10030_v40  ;;  %2246 = vst [vmem:[#allocation3 + $0x140] sm:$0xf] %v10031_v43  ;;  %v2087_v53 = vld [vmem:[#allocation2 + $0x9a] sm:$0xff]  ;;  %v2088_v55 = vld [vmem:[#allocation2 + $0xaa] sm:$0xff] }
 0x128   : > { %v10032_v54 = vpack.c.bf16 %v2087_v53, %v2087_v53  ;;  %v2089_v56 = vld [vmem:[#allocation2 + $0xb2] sm:$0xff]  ;;  %v10033_v58 = vpack.c.bf16 %v2088_v55, %v2088_v55  ;;  %v2090_v60 = vld [vmem:[#allocation2 + $0xc2] sm:$0xff]  ;;  %v2091_v38 = vld [vmem:[#allocation2 + $0xca] sm:$0xff] }
 0x129   : > { %v11661_v57 = vld [vmem:[#allocation3 + $0x1c8] ss:$36 sps:$4 sm:$0xff]   ;;  %v10034_v59 = vpack.c.bf16 %v2089_v56, %v2089_v56  ;;  %v10035_v61 = vpack.c.bf16 %v2090_v60, %v2090_v60  ;;  %v10036_v11 = vpack.c.bf16 %v2091_v38, %v2091_v38  ;;  %v2093_v62 = vld [vmem:[#allocation2 + $0xe2] sm:$0xff]  ;;  %v11672_v18 = vld [vmem:[#allocation3 + $0x25c] ss:$36 sps:$4 sm:$0xff]  }
 0x12a   : > { %v12511_v50 = vld [vmem:[#allocation3 + $0x454] ss:$36 sps:$4 sm:$0xff]   ;;  %v2092_v41 = vld [vmem:[#allocation2 + $0xda] sm:$0xff]  ;;  %2247 = vst [vmem:[#allocation3 + $0x164] sm:$0xf] %v10032_v54  ;;  %v2094_v0 = vld [vmem:[#allocation2 + $0xf2] sm:$0xff]  ;;  %v10038_v3 = vpack.c.bf16 %v2093_v62, %v2093_v62 }
 0x12b   : > { %6120 = vst [vmem:[#allocation3 + $0x454] sm:$0xf] %v10021_v22  ;;  %6121 = vst [vmem:[#allocation3 + $0x478] sm:$0xf] %v10022_v23  ;;  %v10037_v63 = vpack.c.bf16 %v2092_v41, %v2092_v41  ;;  %v2095_v2 = vld [vmem:[#allocation2 + $0xfa] sm:$0xff]  ;;  %v10039_v4 = vpack.c.bf16 %v2094_v0, %v2094_v0  ;;  %v2109_v12 = vld [vmem:[#allocation2 + $0x1a2] sm:$0xff] }
 0x12c   : > { %4297 = vmatmul.mubr.bf16.gmra.mxu1 %v11648_v37  ;;  %v11664_v42 = vld [vmem:[#allocation3 + $0x208] ss:$36 sps:$4 sm:$0xff]   ;;  %2248 = vst [vmem:[#allocation3 + $0x188] sm:$0xf] %v10033_v58  ;;  %2249 = vst [vmem:[#allocation3 + $0x1ac] sm:$0xf] %v10034_v59  ;;  %v10040_v47 = vpack.c.bf16 %v2095_v2, %v2095_v2  ;;  %v10054_v17 = vpack.c.bf16 %v2109_v12, %v2109_v12 }
 0x12d   : > { %4144 = vmatmul.mubr.bf16.gmra.mxu0 %v11651_v39  ;;  %4304 = vmatprep.mubr.bf16.mxu1 %v11652_v44  ;;  %v11665_v48 = vld [vmem:[#allocation3 + $0x214] ss:$36 sps:$4 sm:$0xff]   ;;  %2250 = vst [vmem:[#allocation3 + $0x1d0] sm:$0xf] %v10035_v61  ;;  %2251 = vst [vmem:[#allocation3 + $0x1f4] sm:$0xf] %v10036_v11 }
 0x12e   : > { %4151 = vmatprep.mubr.bf16.mxu0 %v11655_v45  ;;  %2252 = vst [vmem:[#allocation3 + $0x218] sm:$0xf] %v10037_v63  ;;  %v11668_v5 = vld [vmem:[#allocation3 + $0x254] ss:$36 sps:$4 sm:$0xff]   ;;  %2253 = vst [vmem:[#allocation3 + $0x23c] sm:$0xf] %v10038_v3 }
 0x12f   : > { %2254 = vst [vmem:[#allocation3 + $0x260] sm:$0xf] %v10039_v4  ;;  %2255 = vst [vmem:[#allocation3 + $0x284] sm:$0xf] %v10040_v47  ;;  %v2108_v9 = vld [vmem:[#allocation2 + $0x19a] sm:$0xff] }
 0x130   : > { %v10053_v13 = vpack.c.bf16 %v2108_v9, %v2108_v9  ;;  %v11667_v14 = vld [vmem:[#allocation3 + $0x210] ss:$36 sps:$4 sm:$0xff]   ;;  %2269 = vst [vmem:[#allocation3 + $0x47c] sm:$0xf] %v10054_v17  ;;  %v11675_v21 = vld [vmem:[#allocation3 + $0x29c] ss:$36 sps:$4 sm:$0xff]  }
 0x131   : > { %v11670_v1 = vld [vmem:[#allocation3 + $0x250] ss:$36 sps:$4 sm:$0xff]   ;;  %v11674_v22 = vld [vmem:[#allocation3 + $0x258] ss:$36 sps:$4 sm:$0xff]   ;;  %v11678_v24 = vld [vmem:[#allocation3 + $0x2a4] ss:$36 sps:$4 sm:$0xff]  }
 0x132   : > { %2268 = vst [vmem:[#allocation3 + $0x458] sm:$0xf] %v10053_v13  ;;  %v11677_v23 = vld [vmem:[#allocation3 + $0x298] ss:$36 sps:$4 sm:$0xff]   ;;  %v12518_v25 = vld [vmem:[%s13427_s4] ss:$0 sm:$0xff] }
 0x133   : > { %v11681_v26 = vld [vmem:[#allocation3 + $0x2e4] ss:$36 sps:$4 sm:$0xff]   ;;  %v11685_v34 = vld [vmem:[#allocation3 + $0x2ec] ss:$36 sps:$4 sm:$0xff]   ;;  %v11691_v60 = vld [vmem:[#allocation3 + $0x334] ss:$36 sps:$4 sm:$0xff]  }
 0x134   : > { %4305 = vmatmul.mubr.bf16.gmra.mxu1 %v11654_v46  ;;  %v11680_v31 = vld [vmem:[#allocation3 + $0x2a0] ss:$36 sps:$4 sm:$0xff]   ;;  %v11688_v37 = vld [vmem:[#allocation3 + $0x32c] ss:$36 sps:$4 sm:$0xff]   ;;  %v11694_v61 = vld [vmem:[#allocation3 + $0x374] ss:$36 sps:$4 sm:$0xff]  }
 0x135   : > { %4152 = vmatmul.mubr.bf16.gmra.mxu0 %v11657_v49  ;;  %4312 = vmatprep.mubr.bf16.mxu1 %v11659_v51  ;;  %v11683_v33 = vld [vmem:[#allocation3 + $0x2e0] ss:$36 sps:$4 sm:$0xff]   ;;  %v11687_v56 = vld [vmem:[#allocation3 + $0x2e8] ss:$36 sps:$4 sm:$0xff]   ;;  %v11696_v12 = vld [vmem:[#allocation3 + $0x370] ss:$36 sps:$4 sm:$0xff]  }
 0x136   : > { %4159 = vmatprep.mubr.bf16.mxu0 %v11662_v52  ;;  %v11690_v59 = vld [vmem:[#allocation3 + $0x328] ss:$36 sps:$4 sm:$0xff]  }
 0x139   : > { %v12520_v7 = vld [vmem:[#allocation3 + $0x458] ss:$36 sps:$4 sm:$0xff]  }
 0x13a   : > { %6312 = vst [vmem:[#allocation3 + $0x458] sm:$0xf] %v10053_v13  ;;  %6313 = vst [vmem:[#allocation3 + $0x47c] sm:$0xf] %v10054_v17  ;;  %v11698_v13 = vld [vmem:[#allocation3 + $0x37c] ss:$36 sps:$4 sm:$0xff]  }
 0x13b   : > { %v10360_v6 = vpop.f32.mrf.mxu0  ;;  %v11701_v17 = vld [vmem:[#allocation3 + $0x3bc] ss:$36 sps:$4 sm:$0xff]  }
 0x13c   : > { %4313 = vmatmul.mubr.bf16.gmra.mxu1 %v11661_v57 }
 0x13d   : > { %4160 = vmatmul.mubr.bf16.gmra.mxu0 %v11664_v42  ;;  %4320 = vmatprep.mubr.bf16.mxu1 %v11665_v48  ;;  %v10361_v8 = vpop.f32.mrf.mxu0 }
 0x13e   : > { %4167 = vmatprep.mubr.bf16.mxu0 %v11668_v5  ;;  %v10362_v10 = vadd.f32 %v10361_v8, %v10360_v6  ;;  %v11693_v8 = vld [vmem:[#allocation3 + $0x330] ss:$36 sps:$4 sm:$0xff]  }
 0x13f   : > { %v10363_v16 = vpop.f32.mrf.mxu0 }
 0x140   : > { %v3784_v28 = vadd.f32 %v10362_v10, %v12518_v25 }
 0x141   : > { %v10364_v19 = vpop.f32.mrf.mxu0 }
 0x142   : > { %v10365_v20 = vadd.f32 %v10364_v19, %v10363_v16 }
 0x144   : > { %4321 = vmatmul.mubr.bf16.gmra.mxu1 %v11667_v14  ;;  %v3787_v40 = vadd.f32 %v10365_v20, %v12518_v25 }
 0x145   : > { %4168 = vmatmul.mubr.bf16.gmra.mxu0 %v11670_v1  ;;  %4328 = vmatprep.mubr.bf16.mxu1 %v11672_v18  ;;  %v11735_v1 = vld [vmem:[#allocation9 + $0x78] sm:$0xff]  }
 0x146   : > { %4175 = vmatprep.mubr.bf16.mxu0 %v11675_v21  ;;  %v11736_v18 = vld [vmem:[#allocation9 + $0x38] sm:$0xff]   ;;  %10816 = vmatprep.subr.bf16.mxu1 %v11735_v1 }
 0x147   : > { %10817 = vmatpush3.bf16.msra.mxu1 %v11736_v18 }
 0x14c   : > { %v10472_v27 = vpop.f32.mrf.mxu1  ;;  %4329 = vmatmul.mubr.bf16.gmra.mxu1 %v11674_v22 }
 0x14d   : > { %v10366_v29 = vpop.f32.mrf.mxu0  ;;  %4176 = vmatmul.mubr.bf16.gmra.mxu0 %v11677_v23  ;;  %4336 = vmatprep.mubr.bf16.mxu1 %v11678_v24 }
 0x14e   : > { %v10473_v30 = vpop.f32.mrf.mxu1  ;;  %4183 = vmatprep.mubr.bf16.mxu0 %v11681_v26 }
 0x14f   : > { %v10474_v32 = vadd.f32 %v10473_v30, %v10472_v27  ;;  %v10367_v15 = vpop.f32.mrf.mxu0 }
 0x150   : > { %v10475_v35 = vpop.f32.mrf.mxu1  ;;  %v10368_v36 = vadd.f32 %v10367_v15, %v10366_v29 }
 0x151   : > { %v12523_v39 = vadd.f32 %v10474_v32, %v3784_v28  ;;  %v10369_v43 = vpop.f32.mrf.mxu0  ;;  %v11700_v32 = vld [vmem:[#allocation3 + $0x378] ss:$36 sps:$4 sm:$0xff]  }
 0x152   : > { %v10476_v44 = vpop.f32.mrf.mxu1  ;;  %v3792_v53 = vadd.f32 %v10368_v36, %v12518_v25 }
 0x153   : > { %v10477_v45 = vadd.f32 %v10476_v44, %v10475_v35  ;;  %v10370_v46 = vpop.f32.mrf.mxu0  ;;  %v11704_v35 = vld [vmem:[#allocation3 + $0x3c4] ss:$36 sps:$4 sm:$0xff]  }
 0x154   : > { %v10478_v49 = vpop.f32.mrf.mxu1  ;;  %4337 = vmatmul.mubr.bf16.gmra.mxu1 %v11680_v31  ;;  %v10371_v51 = vadd.f32 %v10370_v46, %v10369_v43 }
 0x155   : > { %v12526_v52 = vadd.f32 %v10477_v45, %v3787_v40  ;;  %v10372_v54 = vpop.f32.mrf.mxu0  ;;  %4184 = vmatmul.mubr.bf16.gmra.mxu0 %v11683_v33  ;;  %4344 = vmatprep.mubr.bf16.mxu1 %v11685_v34  ;;  %v11703_v34 = vld [vmem:[#allocation3 + $0x3b8] ss:$36 sps:$4 sm:$0xff]   ;;  %v11707_v40 = vld [vmem:[#allocation3 + $0x404] ss:$36 sps:$4 sm:$0xff]  }
 0x156   : > { %v10479_v55 = vpop.f32.mrf.mxu1  ;;  %4191 = vmatprep.mubr.bf16.mxu0 %v11688_v37  ;;  %v3795_v62 = vadd.f32 %v10371_v51, %v12518_v25 }
 0x157   : > { %v10480_v57 = vadd.f32 %v10479_v55, %v10478_v49  ;;  %v10373_v58 = vpop.f32.mrf.mxu0 }
 0x158   : > { %v10481_v38 = vpop.f32.mrf.mxu1  ;;  %v10374_v41 = vadd.f32 %v10373_v58, %v10372_v54 }
 0x159   : > { %v12529_v11 = vadd.f32 %v10480_v57, %v3792_v53  ;;  %v10375_v63 = vpop.f32.mrf.mxu0 }
 0x15a   : > { %v10482_v0 = vpop.f32.mrf.mxu1  ;;  %v3800_v48 = vadd.f32 %v10374_v41, %v12518_v25  ;;  %v11709_v41 = vld [vmem:[#allocation3 + $0x400] ss:$36 sps:$4 sm:$0xff]  }
 0x15b   : > { %v10483_v2 = vadd.f32 %v10482_v0, %v10481_v38  ;;  %v10376_v42 = vpop.f32.mrf.mxu0  ;;  %v11714_v0 = vld [vmem:[#allocation3 + $0x44c] ss:$36 sps:$4 sm:$0xff]  }
 0x15c   : > { %v10484_v3 = vpop.f32.mrf.mxu1  ;;  %4345 = vmatmul.mubr.bf16.gmra.mxu1 %v11687_v56  ;;  %v10377_v4 = vadd.f32 %v10376_v42, %v10375_v63  ;;  %v11738_v42 = vld [vmem:[#allocation9 + $0x30] sm:$0xff]  }
 0x15d   : > { %v12532_v47 = vadd.f32 %v10483_v2, %v3795_v62  ;;  %v10378_v5 = vpop.f32.mrf.mxu0  ;;  %4192 = vmatmul.mubr.bf16.gmra.mxu0 %v11690_v59  ;;  %4352 = vmatprep.mubr.bf16.mxu1 %v11691_v60  ;;  %v11706_v59 = vld [vmem:[#allocation3 + $0x3c0] ss:$36 sps:$4 sm:$0xff]   ;;  %v11737_v2 = vld [vmem:[#allocation9 + $0x70] sm:$0xff]  }
 0x15e   : > { %v10485_v6 = vpop.f32.mrf.mxu1  ;;  %4199 = vmatprep.mubr.bf16.mxu0 %v11694_v61  ;;  %v3803_v20 = vadd.f32 %v10377_v4, %v12518_v25  ;;  %v11711_v61 = vld [vmem:[#allocation3 + $0x40c] ss:$36 sps:$4 sm:$0xff]   ;;  %10818 = vmatprep.subr.bf16.mxu1 %v11737_v2 }
 0x15f   : > { %v10486_v9 = vadd.f32 %v10485_v6, %v10484_v3  ;;  %v10379_v10 = vpop.f32.mrf.mxu0  ;;  %10819 = vmatpush3.bf16.msra.mxu1 %v11738_v42 }
 0x160   : > { %v10487_v14 = vpop.f32.mrf.mxu1  ;;  %v10380_v16 = vadd.f32 %v10379_v10, %v10378_v5 }
 0x161   : > { %v12535_v19 = vadd.f32 %v10486_v9, %v3800_v48  ;;  %v10381_v21 = vpop.f32.mrf.mxu0 }
 0x162   : > { %v10488_v22 = vpop.f32.mrf.mxu1  ;;  %v3808_v29 = vadd.f32 %v10380_v16, %v12518_v25 }
 0x163   : > { %v10489_v23 = vadd.f32 %v10488_v22, %v10487_v14  ;;  %v10382_v24 = vpop.f32.mrf.mxu0 }
 0x164   : > { %v10490_v26 = vpop.f32.mrf.mxu1  ;;  %4353 = vmatmul.mubr.bf16.gmra.mxu1 %v11693_v8  ;;  %v10383_v27 = vadd.f32 %v10382_v24, %v10381_v21  ;;  %v11713_v21 = vld [vmem:[#allocation3 + $0x408] ss:$36 sps:$4 sm:$0xff]  }
 0x165   : > { %v12538_v28 = vadd.f32 %v10489_v23, %v3803_v20  ;;  %v10384_v30 = vpop.f32.mrf.mxu0  ;;  %4200 = vmatmul.mubr.bf16.gmra.mxu0 %v11696_v12  ;;  %4360 = vmatprep.mubr.bf16.mxu1 %v11698_v13 }
 0x166   : > { %v10491_v31 = vpop.f32.mrf.mxu1  ;;  %4207 = vmatprep.mubr.bf16.mxu0 %v11701_v17  ;;  %v3811_v44 = vadd.f32 %v10383_v27, %v12518_v25 }
 0x167   : > { %v10492_v15 = vadd.f32 %v10491_v31, %v10490_v26  ;;  %v10385_v33 = vpop.f32.mrf.mxu0  ;;  %v11716_v26 = vld [vmem:[#allocation3 + $0x448] ss:$36 sps:$4 sm:$0xff]  }
 0x168   : > { %v10493_v36 = vpop.f32.mrf.mxu1  ;;  %v10386_v37 = vadd.f32 %v10385_v33, %v10384_v30 }
 0x169   : > { %v12541_v43 = vadd.f32 %v10492_v15, %v3808_v29  ;;  %v10387_v45 = vpop.f32.mrf.mxu0  ;;  %v11719_v29 = vld [vmem:[#allocation3 + $0x20] ss:$36 sps:$4 sm:$0xff]  }
 0x16a   : > { %v10494_v46 = vpop.f32.mrf.mxu1  ;;  %v3816_v56 = vadd.f32 %v10386_v37, %v12518_v25  ;;  %v2428_v37 = vld [vmem:[#allocation3 + $0x474] sm:$0xff] }
 0x16b   : > { %v10495_v49 = vadd.f32 %v10494_v46, %v10493_v36  ;;  %v10388_v51 = vpop.f32.mrf.mxu0  ;;  %v2423_v36 = vld [vmem:[#allocation3 + $0x450] sm:$0xff] }
 0x16c   : > { %v10496_v53 = vpop.f32.mrf.mxu1  ;;  %4361 = vmatmul.mubr.bf16.gmra.mxu1 %v11700_v32  ;;  %v10389_v54 = vadd.f32 %v10388_v51, %v10387_v45  ;;  %v9181_v51 = vcombine.low %v2423_v36, %v2428_v37  ;;  %v11724_v37 = vld [vmem:[#allocation3 + $0x188] ss:$36 sps:$4 sm:$0xff]  }
 0x16d   : > { %v12544_v55 = vadd.f32 %v10495_v49, %v3811_v44  ;;  %v10390_v57 = vpop.f32.mrf.mxu0  ;;  %4208 = vmatmul.mubr.bf16.gmra.mxu0 %v11703_v34  ;;  %4368 = vmatprep.mubr.bf16.mxu1 %v11704_v35 }
 0x16e   : > { %v10497_v58 = vpop.f32.mrf.mxu1  ;;  %4215 = vmatprep.mubr.bf16.mxu0 %v11707_v40  ;;  %v3819_v4 = vadd.f32 %v10389_v54, %v12518_v25  ;;  %v11740_v54 = vld [vmem:[#allocation9 + $0x28] sm:$0xff]  }
 0x16f   : > { %v10498_v60 = vadd.f32 %v10497_v58, %v10496_v53  ;;  %v10391_v38 = vpop.f32.mrf.mxu0  ;;  %v11739_v53 = vld [vmem:[#allocation9 + $0x68] sm:$0xff]  }
 0x170   : > { %v10499_v62 = vpop.f32.mrf.mxu1  ;;  %v10392_v63 = vadd.f32 %v10391_v38, %v10390_v57  ;;  %v11721_v38 = vld [vmem:[#allocation3 + $0xb0] ss:$36 sps:$4 sm:$0xff]   ;;  %10820 = vmatprep.subr.bf16.mxu1 %v11739_v53 }
 0x171   : > { %v12547_v3 = vadd.f32 %v10498_v60, %v3816_v56  ;;  %v10393_v48 = vpop.f32.mrf.mxu0  ;;  %10821 = vmatpush3.bf16.msra.mxu1 %v11740_v54 }
 0x172   : > { %v10500_v5 = vpop.f32.mrf.mxu1  ;;  %v3824_v13 = vadd.f32 %v10392_v63, %v12518_v25 }
 0x173   : > { %v10501_v6 = vadd.f32 %v10500_v5, %v10499_v62  ;;  %v10394_v8 = vpop.f32.mrf.mxu0 }
 0x174   : > { %v10502_v9 = vpop.f32.mrf.mxu1  ;;  %4369 = vmatmul.mubr.bf16.gmra.mxu1 %v11706_v59  ;;  %v10395_v10 = vadd.f32 %v10394_v8, %v10393_v48  ;;  %v11720_v59 = vld [vmem:[#allocation3 + $0x68] ss:$36 sps:$4 sm:$0xff]  }
 0x175   : > { %v12550_v12 = vadd.f32 %v10501_v6, %v3819_v4  ;;  %v10396_v14 = vpop.f32.mrf.mxu0  ;;  %4216 = vmatmul.mubr.bf16.gmra.mxu0 %v11709_v41  ;;  %4376 = vmatprep.mubr.bf16.mxu1 %v11711_v61 }
 0x176   : > { %v10503_v16 = vpop.f32.mrf.mxu1  ;;  %4223 = vmatprep.mubr.bf16.mxu0 %v11714_v0  ;;  %v3827_v23 = vadd.f32 %v10395_v10, %v12518_v25 }
 0x177   : > { %v10504_v17 = vadd.f32 %v10503_v16, %v10502_v9  ;;  %v10397_v1 = vpop.f32.mrf.mxu0  ;;  %v11723_v16 = vld [vmem:[#allocation3 + $0x140] ss:$36 sps:$4 sm:$0xff]  }
 0x178   : > { %v10505_v18 = vpop.f32.mrf.mxu1  ;;  %v10398_v20 = vadd.f32 %v10397_v1, %v10396_v14 }
 0x179   : > { %v12553_v22 = vadd.f32 %v10504_v17, %v3824_v13  ;;  %v10399_v24 = vpop.f32.mrf.mxu0  ;;  %v11722_v13 = vld [vmem:[#allocation3 + $0xf8] ss:$36 sps:$4 sm:$0xff]  }
 0x17a   : > { %v10506_v27 = vpop.f32.mrf.mxu1  ;;  %v3832_v34 = vadd.f32 %v10398_v20, %v12518_v25 }
 0x17b   : > { %v10507_v30 = vadd.f32 %v10506_v27, %v10505_v18  ;;  %v10400_v31 = vpop.f32.mrf.mxu0 }
 0x17c   : > { %v10508_v32 = vpop.f32.mrf.mxu1  ;;  %4377 = vmatmul.mubr.bf16.gmra.mxu1 %v11713_v21  ;;  %v10401_v15 = vadd.f32 %v10400_v31, %v10399_v24 }
 0x17d   : > { %v12556_v33 = vadd.f32 %v10507_v30, %v3827_v23  ;;  %v10402_v35 = vpop.f32.mrf.mxu0  ;;  %4224 = vmatmul.mubr.bf16.gmra.mxu0 %v11716_v26  ;;  %4384 = vmatprep.mubr.bf16.mxu1 %v12511_v50 }
 0x17e   : > { %v10509_v40 = vpop.f32.mrf.mxu1  ;;  %11304 = vmatprep.mubr.bf16.mxu0 %v11719_v29  ;;  %v3835_v57 = vadd.f32 %v10401_v15, %v12518_v25  ;;  %v11742_v15 = vld [vmem:[#allocation9 + $0x20] sm:$0xff]  }
 0x17f   : > { %v10510_v44 = vadd.f32 %v10509_v40, %v10508_v32  ;;  %v10403_v45 = vpop.f32.mrf.mxu0  ;;  %v11741_v32 = vld [vmem:[#allocation9 + $0x60] sm:$0xff]  }
 0x180   : > { %v10511_v46 = vpop.f32.mrf.mxu1  ;;  %v10404_v49 = vadd.f32 %v10403_v45, %v10402_v35  ;;  %10822 = vmatprep.subr.bf16.mxu1 %v11741_v32 }
 0x181   : > { %v12560_v56 = vadd.f32 %v10510_v44, %v3832_v34  ;;  %v10405_v58 = vpop.f32.mrf.mxu0  ;;  %v11725_v44 = vld [vmem:[#allocation3 + $0x1d0] ss:$36 sps:$4 sm:$0xff]   ;;  %10823 = vmatpush3.bf16.msra.mxu1 %v11742_v15 }
 0x182   : > { %v10512_v60 = vpop.f32.mrf.mxu1  ;;  %v3840_v0 = vadd.f32 %v10404_v49, %v12518_v25 }
 0x183   : > { %v10513_v41 = vadd.f32 %v10512_v60, %v10511_v46  ;;  %v10406_v50 = vpop.f32.mrf.mxu0 }
 0x184   : > { %v10514_v61 = vpop.f32.mrf.mxu1  ;;  %4385 = vmatmul.mubr.bf16.gmra.mxu1 %v9181_v51  ;;  %v10407_v62 = vadd.f32 %v10406_v50, %v10405_v58 }
 0x185   : > { %v12563_v63 = vadd.f32 %v10513_v41, %v3835_v57  ;;  %v10408_v2 = vpop.f32.mrf.mxu0  ;;  %11305 = vmatmul.mubr.bf16.vlgmr.msra.gmra.mxu0 %v11720_v59 }
 0x186   : > { %v10515_v42 = vpop.f32.mrf.mxu1  ;;  %11308 = vmatprep.mubr.bf16.mxu0 %v11721_v38  ;;  %v3843_v9 = vadd.f32 %v10407_v62, %v12518_v25 }
 0x187   : > { %v10516_v4 = vadd.f32 %v10515_v42, %v10514_v61  ;;  %v10409_v48 = vpop.f32.mrf.mxu0  ;;  %v11727_v42 = vld [vmem:[#allocation3 + $0x260] ss:$36 sps:$4 sm:$0xff]  }
 0x188   : > { %v10517_v5 = vpop.f32.mrf.mxu1  ;;  %v10410_v6 = vadd.f32 %v10409_v48, %v10408_v2 }
 0x189   : > { %v12566_v8 = vadd.f32 %v10516_v4, %v3840_v0  ;;  %v10411_v10 = vpop.f32.mrf.mxu0  ;;  %v11726_v0 = vld [vmem:[#allocation3 + $0x218] ss:$36 sps:$4 sm:$0xff]  }
 0x18a   : > { %v10518_v14 = vpop.f32.mrf.mxu1  ;;  %v3848_v23 = vadd.f32 %v10410_v6, %v12518_v25 }
 0x18b   : > { %v10519_v17 = vadd.f32 %v10518_v14, %v10517_v5  ;;  %v10412_v1 = vpop.f32.mrf.mxu0 }
 0x18c   : > { %v10520_v18 = vpop.f32.mrf.mxu1  ;;  %v10413_v20 = vadd.f32 %v10412_v1, %v10411_v10 }
 0x18d   : > { %v12569_v21 = vadd.f32 %v10519_v17, %v3843_v9  ;;  %v10414_v24 = vpop.f32.mrf.mxu0  ;;  %11309 = vmatmul.mubr.bf16.gmra.mxu0 %v11722_v13 }
 0x18e   : > { %v10521_v26 = vpop.f32.mrf.mxu1  ;;  %11312 = vmatprep.mubr.bf16.mxu0 %v11723_v16  ;;  %v3851_v35 = vadd.f32 %v10413_v20, %v12518_v25  ;;  %v11743_v20 = vld [vmem:[#allocation9 + $0x58] sm:$0xff]  }
 0x18f   : > { %v10522_v27 = vadd.f32 %v10521_v26, %v10520_v18  ;;  %v10415_v29 = vpop.f32.mrf.mxu0  ;;  %10824 = vmatprep.subr.bf16.mxu1 %v11743_v20 }
 0x190   : > { %v10523_v30 = vpop.f32.mrf.mxu1  ;;  %v10416_v31 = vadd.f32 %v10415_v29, %v10414_v24  ;;  %v11728_v29 = vld [vmem:[#allocation3 + $0x2a8] ss:$36 sps:$4 sm:$0xff]  }
 0x191   : > { %v12572_v34 = vadd.f32 %v10522_v27, %v3848_v23  ;;  %v10417_v36 = vpop.f32.mrf.mxu0  ;;  %v11744_v23 = vld [vmem:[#allocation9 + $0x18] sm:$0xff]  }
 0x192   : > { %v10524_v40 = vpop.f32.mrf.mxu1  ;;  %v3856_v54 = vadd.f32 %v10416_v31, %v12518_v25  ;;  %v11729_v31 = vld [vmem:[#allocation3 + $0x2f0] ss:$36 sps:$4 sm:$0xff]   ;;  %10825 = vmatpush3.bf16.msra.mxu1 %v11744_v23  ;;  %v11732_v23 = vld [vmem:[#allocation3 + $0x3c8] ss:$36 sps:$4 sm:$0xff]  }
 0x193   : > { %v10525_v45 = vadd.f32 %v10524_v40, %v10523_v30  ;;  %v10418_v46 = vpop.f32.mrf.mxu0 }
 0x194   : > { %v10526_v49 = vpop.f32.mrf.mxu1  ;;  %v10419_v51 = vadd.f32 %v10418_v46, %v10417_v36 }
 0x195   : > { %v12575_v53 = vadd.f32 %v10525_v45, %v3851_v35  ;;  %v10420_v57 = vpop.f32.mrf.mxu0  ;;  %11313 = vmatmul.mubr.bf16.gmra.mxu0 %v11724_v37 }
 0x196   : > { %v10527_v58 = vpop.f32.mrf.mxu1  ;;  %11316 = vmatprep.mubr.bf16.mxu0 %v11725_v44  ;;  %v3859_v61 = vadd.f32 %v10419_v51, %v12518_v25 }
 0x197   : > { %v10528_v59 = vadd.f32 %v10527_v58, %v10526_v49  ;;  %v10421_v60 = vpop.f32.mrf.mxu0 }
 0x198   : > { %v10529_v38 = vpop.f32.mrf.mxu1  ;;  %v10422_v41 = vadd.f32 %v10421_v60, %v10420_v57  ;;  %v11730_v60 = vld [vmem:[#allocation3 + $0x338] ss:$36 sps:$4 sm:$0xff]  }
 0x199   : > { %v12578_v50 = vadd.f32 %v10528_v59, %v3856_v54  ;;  %v10423_v62 = vpop.f32.mrf.mxu0 }
 0x19a   : > { %v10530_v2 = vpop.f32.mrf.mxu1  ;;  %v3864_v10 = vadd.f32 %v10422_v41, %v12518_v25  ;;  %v11731_v41 = vld [vmem:[#allocation3 + $0x380] ss:$36 sps:$4 sm:$0xff]  }
 0x19b   : > { %v10531_v4 = vadd.f32 %v10530_v2, %v10529_v38  ;;  %v10424_v48 = vpop.f32.mrf.mxu0 }
 0x19c   : > { %v10532_v5 = vpop.f32.mrf.mxu1  ;;  %v10425_v6 = vadd.f32 %v10424_v48, %v10423_v62 }
 0x19d   : > { %v12581_v9 = vadd.f32 %v10531_v4, %v3859_v61  ;;  %v10426_v13 = vpop.f32.mrf.mxu0  ;;  %11317 = vmatmul.mubr.bf16.gmra.mxu0 %v11726_v0 }
 0x19e   : > { %v10533_v14 = vpop.f32.mrf.mxu1  ;;  %11320 = vmatprep.mubr.bf16.mxu0 %v11727_v42  ;;  %v3867_v26 = vadd.f32 %v10425_v6, %v12518_v25 }
 0x19f   : > { %v10534_v16 = vadd.f32 %v10533_v14, %v10532_v5  ;;  %v10427_v17 = vpop.f32.mrf.mxu0 }
 0x1a0   : > { %v10535_v1 = vpop.f32.mrf.mxu1  ;;  %v10428_v18 = vadd.f32 %v10427_v17, %v10426_v13  ;;  %v11746_v17 = vld [vmem:[#allocation9 + $0x10] sm:$0xff]  }
 0x1a1   : > { %v12584_v24 = vadd.f32 %v10534_v16, %v3864_v10  ;;  %v10429_v27 = vpop.f32.mrf.mxu0  ;;  %v11745_v16 = vld [vmem:[#allocation9 + $0x50] sm:$0xff]  }
 0x1a2   : > { %v10536_v30 = vpop.f32.mrf.mxu1  ;;  %v3872_v40 = vadd.f32 %v10428_v18, %v12518_v25  ;;  %10826 = vmatprep.subr.bf16.mxu1 %v11745_v16 }
 0x1a3   : > { %v10537_v32 = vadd.f32 %v10536_v30, %v10535_v1  ;;  %v10430_v15 = vpop.f32.mrf.mxu0  ;;  %10827 = vmatpush3.bf16.msra.mxu1 %v11746_v17 }
 0x1a4   : > { %v10538_v35 = vpop.f32.mrf.mxu1  ;;  %v10431_v36 = vadd.f32 %v10430_v15, %v10429_v27  ;;  %v11733_v27 = vld [vmem:[#allocation3 + $0x410] ss:$36 sps:$4 sm:$0xff]  }
 0x1a5   : > { %v12587_v37 = vadd.f32 %v10537_v32, %v3867_v26  ;;  %v10432_v44 = vpop.f32.mrf.mxu0  ;;  %11321 = vmatmul.mubr.bf16.gmra.mxu0 %v11728_v29 }
 0x1a6   : > { %v10539_v45 = vpop.f32.mrf.mxu1  ;;  %11324 = vmatprep.mubr.bf16.mxu0 %v11729_v31  ;;  %v3875_v58 = vadd.f32 %v10431_v36, %v12518_v25 }
 0x1a7   : > { %v10540_v46 = vadd.f32 %v10539_v45, %v10538_v35  ;;  %v10433_v49 = vpop.f32.mrf.mxu0 }
 0x1a8   : > { %v10541_v51 = vpop.f32.mrf.mxu1  ;;  %v10434_v54 = vadd.f32 %v10433_v49, %v10432_v44 }
 0x1a9   : > { %v12590_v57 = vadd.f32 %v10540_v46, %v3872_v40  ;;  %v10435_v59 = vpop.f32.mrf.mxu0 }
 0x1aa   : > { %v10542_v38 = vpop.f32.mrf.mxu1  ;;  %v3880_v42 = vadd.f32 %v10434_v54, %v12518_v25 }
 0x1ab   : > { %v10543_v61 = vadd.f32 %v10542_v38, %v10541_v51  ;;  %v10436_v62 = vpop.f32.mrf.mxu0 }
 0x1ac   : > { %v10544_v0 = vpop.f32.mrf.mxu1  ;;  %v10437_v4 = vadd.f32 %v10436_v62, %v10435_v59 }
 0x1ad   : > { %v12593_v2 = vadd.f32 %v10543_v61, %v3875_v58  ;;  %v10438_v48 = vpop.f32.mrf.mxu0  ;;  %11325 = vmatmul.mubr.bf16.gmra.mxu0 %v11730_v60 }
 0x1ae   : > { %v10545_v5 = vpop.f32.mrf.mxu1  ;;  %11328 = vmatprep.mubr.bf16.mxu0 %v11731_v41  ;;  %v3883_v18 = vadd.f32 %v10437_v4, %v12518_v25 }
 0x1af   : > { %v10546_v6 = vadd.f32 %v10545_v5, %v10544_v0  ;;  %v10439_v10 = vpop.f32.mrf.mxu0 }
 0x1b0   : > { %v10547_v13 = vpop.f32.mrf.mxu1  ;;  %v10440_v14 = vadd.f32 %v10439_v10, %v10438_v48 }
 0x1b1   : > { %v12596_v1 = vadd.f32 %v10546_v6, %v3880_v42  ;;  %v10441_v20 = vpop.f32.mrf.mxu0 }
 0x1b2   : > { %v10548_v26 = vpop.f32.mrf.mxu1  ;;  %v3888_v15 = vadd.f32 %v10440_v14, %v12518_v25  ;;  %v11748_v14 = vld [vmem:[#allocation9 + $0x8] sm:$0xff]  }
 0x1b3   : > { %v10549_v29 = vadd.f32 %v10548_v26, %v10547_v13  ;;  %v10442_v30 = vpop.f32.mrf.mxu0  ;;  %v11747_v13 = vld [vmem:[#allocation9 + $0x48] sm:$0xff]  }
 0x1b4   : > { %v10550_v31 = vpop.f32.mrf.mxu1  ;;  %v10443_v35 = vadd.f32 %v10442_v30, %v10441_v20  ;;  %10828 = vmatprep.subr.bf16.mxu1 %v11747_v13 }
 0x1b5   : > { %v12599_v32 = vadd.f32 %v10549_v29, %v3883_v18  ;;  %v10444_v36 = vpop.f32.mrf.mxu0  ;;  %11329 = vmatmul.mubr.bf16.gmra.mxu0 %v11732_v23  ;;  %10829 = vmatpush3.bf16.msra.mxu1 %v11748_v14  ;;  %v11755_v14 = vld [vmem:[#allocation9] sm:$0xff]  }
 0x1b6   : > { %v10551_v40 = vpop.f32.mrf.mxu1  ;;  %11332 = vmatprep.mubr.bf16.mxu0 %v11733_v27  ;;  %v3891_v54 = vadd.f32 %v10443_v35, %v12518_v25 }
 0x1b7   : > { %v10552_v44 = vadd.f32 %v10551_v40, %v10550_v31  ;;  %v10445_v45 = vpop.f32.mrf.mxu0 }
 0x1b8   : > { %v10553_v46 = vpop.f32.mrf.mxu1  ;;  %v10446_v49 = vadd.f32 %v10445_v45, %v10444_v36  ;;  %v11750_v36 = vld [vmem:[#allocation9 + $0xb8] sm:$0xff]  }
 0x1b9   : > { %v12602_v51 = vadd.f32 %v10552_v44, %v3888_v15  ;;  %v10447_v58 = vpop.f32.mrf.mxu0  ;;  %v11749_v15 = vld [vmem:[#allocation9 + $0xf8] sm:$0xff]  }
 0x1ba   : > { %v10554_v59 = vpop.f32.mrf.mxu1  ;;  %v3896_v62 = vadd.f32 %v10446_v49, %v12518_v25  ;;  %10928 = vmatprep.subr.bf16.mxu0 %v11749_v15 }
 0x1bb   : > { %v10555_v60 = vadd.f32 %v10554_v59, %v10553_v46  ;;  %v10448_v38 = vpop.f32.mrf.mxu0  ;;  %10929 = vmatpush3.bf16.msra.mxu0 %v11750_v36  ;;  %v11751_v59 = vld [vmem:[#allocation9 + $0xf0] sm:$0xff]  }
 0x1bc   : > { %v10556_v41 = vpop.f32.mrf.mxu1  ;;  %v10449_v0 = vadd.f32 %v10448_v38, %v10447_v58  ;;  %10930 = vmatprep.subr.bf16.mxu0 %v11751_v59  ;;  %v11760_v59 = vld [vmem:[#allocation9 + $0x98] sm:$0xff]  }
 0x1bd   : > { %v12605_v61 = vadd.f32 %v10555_v60, %v3891_v54  ;;  %v10450_v42 = vpop.f32.mrf.mxu0  ;;  %11333 = vmatmul.mubr.bf16.gmra.mxu0 %v12520_v7 }
 0x1be   : > { %v10557_v4 = vpop.f32.mrf.mxu1  ;;  %v3899_v17 = vadd.f32 %v10449_v0, %v12518_v25 }
 0x1bf   : > { %v10558_v48 = vadd.f32 %v10557_v4, %v10556_v41  ;;  %v10451_v5 = vpop.f32.mrf.mxu0  ;;  %v11752_v41 = vld [vmem:[#allocation9 + $0xb0] sm:$0xff]  }
 0x1c0   : > { %v10559_v6 = vpop.f32.mrf.mxu1  ;;  %v10452_v10 = vadd.f32 %v10451_v5, %v10450_v42  ;;  %10931 = vmatpush3.bf16.msra.mxu0 %v11752_v41 }
 0x1c1   : > { %v12609_v16 = vadd.f32 %v10558_v48, %v3896_v62  ;;  %v10453_v18 = vpop.f32.mrf.mxu0 }
 0x1c2   : > { %v10560_v20 = vpop.f32.mrf.mxu1  ;;  %v3904_v7 = vadd.f32 %v10452_v10, %v12518_v25 }
 0x1c3   : > { %v10561_v23 = vadd.f32 %v10560_v20, %v10559_v6  ;;  %v10454_v26 = vpop.f32.mrf.mxu0  ;;  %v11754_v6 = vld [vmem:[#allocation9 + $0xe8] sm:$0xff]  }
 0x1c4   : > { %v10562_v27 = vpop.f32.mrf.mxu1  ;;  %v10455_v30 = vadd.f32 %v10454_v26, %v10453_v18  ;;  %10932 = vmatprep.subr.bf16.mxu0 %v11754_v6 }
 0x1c5   : > { %v12612_v29 = vadd.f32 %v10561_v23, %v3899_v17  ;;  %v10584_v31 = vpop.f32.mrf.mxu0  ;;  %v11756_v17 = vld [vmem:[#allocation9 + $0xa8] sm:$0xff]  }
 0x1c6   : > { %v10563_v35 = vpop.f32.mrf.mxu1  ;;  %v3907_v54 = vadd.f32 %v10455_v30, %v12518_v25  ;;  %v11753_v25 = vld [vmem:[#allocation9 + $0x40] sm:$0xff]   ;;  %10933 = vmatpush3.bf16.msra.mxu0 %v11756_v17 }
 0x1c7   : > { %v10564_v40 = vadd.f32 %v10563_v35, %v10562_v27  ;;  %v10585_v44 = vpop.f32.mrf.mxu0  ;;  %10830 = vmatprep.subr.bf16.mxu1 %v11753_v25 }
 0x1c8   : > { %v10565_v45 = vpop.f32.mrf.mxu1  ;;  %v10586_v46 = vadd.f32 %v10585_v44, %v10584_v31  ;;  %10831 = vmatpush3.bf16.msra.mxu1 %v11755_v14  ;;  %v11766_v14 = vld [vmem:[#allocation9 + $0xc8] sm:$0xff]  }
 0x1c9   : > { %v12615_v49 = vadd.f32 %v10564_v40, %v3904_v7  ;;  %v10587_v58 = vpop.f32.mrf.mxu0  ;;  %v11757_v7 = vld [vmem:[#allocation9 + $0xe0] sm:$0xff]  }
 0x1ca   : > { %v10566_v60 = vpop.f32.mrf.mxu1  ;;  %v4106_v38 = vadd.f32 %v10586_v46, %v12523_v39  ;;  %10934 = vmatprep.subr.bf16.mxu0 %v11757_v7  ;;  %v11759_v46 = vld [vmem:[#allocation9 + $0xd8] sm:$0xff]  }
 0x1cb   : > { %13448 = vst [vmem:[#allocation14_spill] sm:$0xff] %v12615_v49  ;;  %v10567_v62 = vadd.f32 %v10566_v60, %v10565_v45  ;;  %v10588_v0 = vpop.f32.mrf.mxu0 }
 0x1cc   : > { %v10696_v42 = vpop.f32.mrf.mxu1  ;;  %v10589_v4 = vadd.f32 %v10588_v0, %v10587_v58 }
 0x1cd   : > { %v12619_v48 = vadd.f32 %v10567_v62, %v3907_v54  ;;  %v10590_v5 = vpop.f32.mrf.mxu0 }
 0x1ce   : > { %v10697_v10 = vpop.f32.mrf.mxu1  ;;  %v4109_v13 = vadd.f32 %v10589_v4, %v12526_v52  ;;  %v11758_v52 = vld [vmem:[#allocation9 + $0xa0] sm:$0xff]  }
 0x1cf   : > { %13449 = vst [vmem:[#allocation15_spill] sm:$0xff] %v12619_v48  ;;  %v10698_v18 = vadd.f32 %v10697_v10, %v10696_v42  ;;  %v10591_v20 = vpop.f32.mrf.mxu0  ;;  %10935 = vmatpush3.bf16.msra.mxu0 %v11758_v52  ;;  %v11764_v42 = vld [vmem:[#allocation9 + $0xd0] sm:$0xff]   ;;  %v11770_v52 = vld [vmem:[#allocation9 + $0xc0] sm:$0xff]   ;;  %v11805_v48 = vld [vmem:[#allocation9 + $0x128] sm:$0xff]  }
 0x1d0   : > { %v10699_v39 = vpop.f32.mrf.mxu1  ;;  %v10592_v23 = vadd.f32 %v10591_v20, %v10590_v5  ;;  %10936 = vmatprep.subr.bf16.mxu0 %v11759_v46  ;;  %v11767_v20 = vld [vmem:[#allocation9 + $0x178] sm:$0xff]  }
 0x1d1   : > { %v10593_v26 = vpop.f32.mrf.mxu0  ;;  %v12622_v27 = vadd.f32 %v10698_v18, %v4106_v38  ;;  %v11761_v38 = vld [vmem:[#allocation3] ss:$36 sps:$4 sm:$0xff]   ;;  %11040 = vmatprep.subr.bf16.mxu1 %v11767_v20 }
 0x1d2   : > { %v10700_v30 = vpop.f32.mrf.mxu1  ;;  %v12625_v31 = vadd.f32 %v10592_v23, %v12529_v11  ;;  %v11763_v11 = vld [vmem:[#allocation3 + $0x4] ss:$36 sps:$4 sm:$0xff]   ;;  %v11769_v23 = vld [vmem:[#allocation9 + $0x138] sm:$0xff]  }
 0x1d3   : > { %v10701_v15 = vadd.f32 %v10700_v30, %v10699_v39  ;;  %v10594_v35 = vpop.f32.mrf.mxu0  ;;  %10937 = vmatpush3.bf16.msra.mxu0 %v11760_v59  ;;  %7825 = vmatprep.mubr.bf16.mxu1 %v11763_v11  ;;  %v11768_v39 = vld [vmem:[#allocation9 + $0x88] sm:$0xff]  }
 0x1d4   : > { %v12627_v36 = vpop.f32.mrf.mxu1  ;;  %v10595_v40 = vadd.f32 %v10594_v35, %v10593_v26  ;;  %7826 = vmatmul.mubr.bf16.vlgmr.msra.gmra.mxu1 %v11761_v38  ;;  %10938 = vmatprep.subr.bf16.mxu0 %v11764_v42 }
 0x1d5   : > { %v10596_v44 = vpop.f32.mrf.mxu0  ;;  %v12629_v45 = vadd.f32 %v10701_v15, %v4109_v13  ;;  %11041 = vmatpush3.bf16.msra.mxu1 %v11769_v23  ;;  %v11791_v23 = vld [vmem:[#allocation9 + $0x130] sm:$0xff]  }
 0x1d6   : > { %v12631_v54 = vpop.f32.mrf.mxu1  ;;  %v12634_v58 = vadd.f32 %v10595_v40, %v12532_v47  ;;  %v11765_v47 = vld [vmem:[#allocation9 + $0x90] sm:$0xff]  }
 0x1d7   : > { %v10597_v60 = vpop.f32.mrf.mxu0  ;;  %10939 = vmatpush3.bf16.msra.mxu0 %v11765_v47 }
 0x1d8   : > { %v12636_v41 = vpop.f32.mrf.mxu1  ;;  %v10598_v62 = vadd.f32 %v10597_v60, %v10596_v44  ;;  %10940 = vmatprep.subr.bf16.mxu0 %v11766_v14 }
 0x1d9   : > { %v10599_v0 = vpop.f32.mrf.mxu0 }
 0x1da   : > { %v12638_v4 = vpop.f32.mrf.mxu1  ;;  %v12641_v5 = vadd.f32 %v10598_v62, %v12535_v19 }
 0x1db   : > { %v10600_v6 = vpop.f32.mrf.mxu0  ;;  %10941 = vmatpush3.bf16.msra.mxu0 %v11768_v39  ;;  %v11784_v39 = vld [vmem:[#allocation9 + $0x170] sm:$0xff]  }
 0x1dc   : > { %v12643_v10 = vpop.f32.mrf.mxu1  ;;  %v10601_v13 = vadd.f32 %v10600_v6, %v10599_v0  ;;  %10942 = vmatprep.subr.bf16.mxu0 %v11770_v52  ;;  %11042 = vmatprep.subr.bf16.mxu1 %v11784_v39 }
 0x1dd   : > { %v10602_v25 = vpop.f32.mrf.mxu0  ;;  %11043 = vmatpush3.bf16.msra.mxu1 %v11791_v23 }
 0x1de   : > { %v12645_v17 = vpop.f32.mrf.mxu1  ;;  %v12648_v18 = vadd.f32 %v10601_v13, %v12538_v28  ;;  %v11771_v28 = vld [vmem:[#allocation9 + $0x80] sm:$0xff]  }
 0x1df   : > { %v10603_v26 = vpop.f32.mrf.mxu0  ;;  %10943 = vmatpush3.bf16.msra.mxu0 %v11771_v28 }
 0x1e0   : > { %v12650_v19 = vpop.f32.mrf.mxu1  ;;  %v10604_v7 = vadd.f32 %v10603_v26, %v10602_v25 }
 0x1e1   : > { %v10605_v30 = vpop.f32.mrf.mxu0 }
 0x1e2   : > { %v12652_v15 = vpop.f32.mrf.mxu1  ;;  %v12655_v35 = vadd.f32 %v10604_v7, %v12541_v43 }
 0x1e3   : > { %v10606_v40 = vpop.f32.mrf.mxu0 }
 0x1e4   : > { %v12657_v44 = vpop.f32.mrf.mxu1  ;;  %v10607_v46 = vadd.f32 %v10606_v40, %v10605_v30 }
 0x1e5   : > { %v10608_v59 = vpop.f32.mrf.mxu0 }
 0x1e6   : > { %v12659_v11 = vpop.f32.mrf.mxu1  ;;  %v12662_v60 = vadd.f32 %v10607_v46, %v12544_v55 }
 0x1e7   : > { %v10609_v38 = vpop.f32.mrf.mxu0 }
 0x1e8   : > { %v12664_v62 = vpop.f32.mrf.mxu1  ;;  %v10610_v0 = vadd.f32 %v10609_v38, %v10608_v59 }
 0x1e9   : > { %v10611_v42 = vpop.f32.mrf.mxu0 }
 0x1ea   : > { %v12666_v43 = vpop.f32.mrf.mxu1  ;;  %v12669_v47 = vadd.f32 %v10610_v0, %v12547_v3 }
 0x1eb   : > { %v10612_v6 = vpop.f32.mrf.mxu0 }
 0x1ec   : > { %v12671_v13 = vpop.f32.mrf.mxu1  ;;  %v10613_v25 = vadd.f32 %v10612_v6, %v10611_v42 }
 0x1ed   : > { %v10614_v14 = vpop.f32.mrf.mxu0 }
 0x1ee   : > { %v12673_v20 = vpop.f32.mrf.mxu1  ;;  %v12676_v55 = vadd.f32 %v10613_v25, %v12550_v12 }
 0x1ef   : > { %v10615_v26 = vpop.f32.mrf.mxu0 }
 0x1f0   : > { %13450 = vst [vmem:[#allocation16_spill] sm:$0xff] %v12676_v55  ;;  %v12678_v7 = vpop.f32.mrf.mxu1  ;;  %v10616_v30 = vadd.f32 %v10615_v26, %v10614_v14 }
 0x1f1   : > { %v10617_v52 = vpop.f32.mrf.mxu0 }
 0x1f2   : > { %v12680_v3 = vpop.f32.mrf.mxu1  ;;  %v12683_v28 = vadd.f32 %v10616_v30, %v12553_v22 }
 0x1f3   : > { %v10618_v40 = vpop.f32.mrf.mxu0 }
 0x1f4   : > { %v12685_v46 = vpop.f32.mrf.mxu1  ;;  %v10619_v59 = vadd.f32 %v10618_v40, %v10617_v52 }
 0x1f5   : > { %v10620_v12 = vpop.f32.mrf.mxu0 }
 0x1f6   : > { %v12687_v38 = vpop.f32.mrf.mxu1  ;;  %v12690_v0 = vadd.f32 %v10619_v59, %v12556_v33  ;;  %v11798_v59 = vld [vmem:[#allocation9 + $0x168] sm:$0xff]  }
 0x1f7   : > { %v10621_v42 = vpop.f32.mrf.mxu0  ;;  %11044 = vmatprep.subr.bf16.mxu1 %v11798_v59 }
 0x1f8   : > { %v12692_v6 = vpop.f32.mrf.mxu1  ;;  %v10622_v25 = vadd.f32 %v10621_v42, %v10620_v12  ;;  %11045 = vmatpush3.bf16.msra.mxu1 %v11805_v48 }
 0x1f9   : > { %v10623_v14 = vpop.f32.mrf.mxu0 }
 0x1fa   : > { %v12694_v39 = vpop.f32.mrf.mxu1  ;;  %v12697_v22 = vadd.f32 %v10622_v25, %v12560_v56 }
 0x1fb   : > { %v10624_v23 = vpop.f32.mrf.mxu0 }
 0x1fc   : > { %13451 = vst [vmem:[#allocation17_spill] sm:$0xff] %v12697_v22  ;;  %v12699_v26 = vpop.f32.mrf.mxu1  ;;  %v10625_v30 = vadd.f32 %v10624_v23, %v10623_v14 }
 0x1fd   : > { %v10626_v52 = vpop.f32.mrf.mxu0 }
 0x1fe   : > { %v12701_v40 = vpop.f32.mrf.mxu1  ;;  %v12704_v33 = vadd.f32 %v10625_v30, %v12563_v63 }
 0x1ff   : > { %13452 = vst [vmem:[#allocation18_spill] sm:$0xff] %v12701_v40  ;;  %v10627_v49 = vpop.f32.mrf.mxu0 }
 0x200   : > { %13453 = vst [vmem:[#allocation19_spill] sm:$0xff] %v12704_v33  ;;  %v12706_v12 = vpop.f32.mrf.mxu1  ;;  %v10628_v42 = vadd.f32 %v10627_v49, %v10626_v52 }
 0x201   : > { %13454 = vst [vmem:[#allocation20_spill] sm:$0xff] %v12706_v12  ;;  %v10629_v55 = vpop.f32.mrf.mxu0 }
 0x202   : > { %v12708_v56 = vpop.f32.mrf.mxu1  ;;  %v12711_v25 = vadd.f32 %v10628_v42, %v12566_v8 }
 0x203   : > { %13455 = vst [vmem:[#allocation21_spill] sm:$0xff] %v12708_v56  ;;  %v10630_v14 = vpop.f32.mrf.mxu0  ;;  %v11812_v56 = vld [vmem:[#allocation9 + $0x160] sm:$0xff]  }
 0x204   : > { %13456 = vst [vmem:[#allocation22_spill] sm:$0xff] %v12711_v25  ;;  %v12713_v23 = vpop.f32.mrf.mxu1  ;;  %v10631_v22 = vadd.f32 %v10630_v14, %v10629_v55  ;;  %v11819_v14 = vld [vmem:[#allocation9 + $0x120] sm:$0xff]   ;;  %11046 = vmatprep.subr.bf16.mxu1 %v11812_v56 }
 0x205   : > { %v10632_v63 = vpop.f32.mrf.mxu0  ;;  %11047 = vmatpush3.bf16.msra.mxu1 %v11819_v14 }
 0x206   : > { %v12715_v30 = vpop.f32.mrf.mxu1  ;;  %v12718_v33 = vadd.f32 %v10631_v22, %v12569_v21 }
 0x207   : > { %v10633_v12 = vpop.f32.mrf.mxu0 }
 0x208   : > { %13457 = vst [vmem:[#allocation23_spill] sm:$0xff] %v12718_v33  ;;  %v12720_v49 = vpop.f32.mrf.mxu1  ;;  %v10634_v52 = vadd.f32 %v10633_v12, %v10632_v63 }
 0x209   : > { %v10635_v48 = vpop.f32.mrf.mxu0 }
 0x20a   : > { %v12722_v59 = vpop.f32.mrf.mxu1  ;;  %v12725_v8 = vadd.f32 %v10634_v52, %v12572_v34 }
 0x20b   : > { %13458 = vst [vmem:[#allocation24_spill] sm:$0xff] %v12722_v59  ;;  %v10636_v42 = vpop.f32.mrf.mxu0 }
 0x20c   : > { %13459 = vst [vmem:[#allocation25_spill] sm:$0xff] %v12725_v8  ;;  %v12727_v25 = vpop.f32.mrf.mxu1  ;;  %v10637_v55 = vadd.f32 %v10636_v42, %v10635_v48 }
 0x20d   : > { %13460 = vst [vmem:[#allocation26_spill] sm:$0xff] %v12727_v25  ;;  %v10638_v40 = vpop.f32.mrf.mxu0  ;;  %v11826_v25 = vld [vmem:[#allocation9 + $0x1f8] sm:$0xff]  }
 0x20e   : > { %v12729_v21 = vpop.f32.mrf.mxu1  ;;  %v12732_v22 = vadd.f32 %v10637_v55, %v12575_v53  ;;  %11152 = vmatprep.subr.bf16.mxu0 %v11826_v25 }
 0x20f   : > { %13461 = vst [vmem:[#allocation27_spill] sm:$0xff] %v12729_v21  ;;  %v10639_v12 = vpop.f32.mrf.mxu0 }
 0x210   : > { %13462 = vst [vmem:[#allocation28_spill] sm:$0xff] %v12732_v22  ;;  %v12734_v63 = vpop.f32.mrf.mxu1  ;;  %v10640_v33 = vadd.f32 %v10639_v12, %v10638_v40 }
 0x211   : > { %13463 = vst [vmem:[#allocation29_spill] sm:$0xff] %v12734_v63  ;;  %v10641_v34 = vpop.f32.mrf.mxu0  ;;  %v11835_v63 = vld [vmem:[#allocation9 + $0x118] sm:$0xff]  }
 0x212   : > { %v12736_v52 = vpop.f32.mrf.mxu1  ;;  %v12739_v8 = vadd.f32 %v10640_v33, %v12578_v50 }
 0x213   : > { %13464 = vst [vmem:[#allocation30_spill] sm:$0xff] %v12736_v52  ;;  %v10642_v48 = vpop.f32.mrf.mxu0 }
 0x214   : > { %13465 = vst [vmem:[#allocation31_spill] sm:$0xff] %v12739_v8  ;;  %v12741_v42 = vpop.f32.mrf.mxu1  ;;  %v10643_v56 = vadd.f32 %v10642_v48, %v10641_v34  ;;  %v11828_v34 = vld [vmem:[#allocation9 + $0x158] sm:$0xff]  }
 0x215   : > { %v10644_v21 = vpop.f32.mrf.mxu0  ;;  %11048 = vmatprep.subr.bf16.mxu1 %v11828_v34 }
 0x216   : > { %v12743_v59 = vpop.f32.mrf.mxu1  ;;  %v12746_v53 = vadd.f32 %v10643_v56, %v12581_v9  ;;  %11049 = vmatpush3.bf16.msra.mxu1 %v11835_v63 }
 0x217   : > { %v10645_v55 = vpop.f32.mrf.mxu0 }
 0x218   : > { %v12748_v40 = vpop.f32.mrf.mxu1  ;;  %v10646_v14 = vadd.f32 %v10645_v55, %v10644_v21 }
 0x219   : > { %v10647_v12 = vpop.f32.mrf.mxu0 }
 0x21a   : > { %v12750_v22 = vpop.f32.mrf.mxu1  ;;  %v12753_v50 = vadd.f32 %v10646_v14, %v12584_v24 }
 0x21b   : > { %v10648_v33 = vpop.f32.mrf.mxu0 }
 0x21c   : > { %13466 = vst [vmem:[#allocation32_spill] sm:$0xff] %v12753_v50  ;;  %v12755_v48 = vpop.f32.mrf.mxu1  ;;  %v10649_v52 = vadd.f32 %v10648_v33, %v10647_v12 }
 0x21d   : > { %13467 = vst [vmem:[#allocation33_spill] sm:$0xff] %v12755_v48  ;;  %v10650_v8 = vpop.f32.mrf.mxu0 }
 0x21e   : > { %v12758_v9 = vadd.f32 %v10649_v52, %v12587_v37  ;;  %v12760_v21 = vpop.f32.mrf.mxu1 }
 0x21f   : > { %v10651_v25 = vpop.f32.mrf.mxu0 }
 0x220   : > { %13468 = vst [vmem:[#allocation34_spill] sm:$0xff] %v12758_v9  ;;  %v10652_v56 = vadd.f32 %v10651_v25, %v10650_v8  ;;  %v12765_v50 = vpop.f32.mrf.mxu1  ;;  %v11844_v25 = vld [vmem:[#allocation9 + $0x150] sm:$0xff]  }
 0x221   : > { %v10653_v55 = vpop.f32.mrf.mxu0  ;;  %13470 = vst [vmem:[#allocation36_spill] sm:$0xff] %v12765_v50  ;;  %11050 = vmatprep.subr.bf16.mxu1 %v11844_v25 }
 0x222   : > { %v12763_v24 = vadd.f32 %v10652_v56, %v12590_v57  ;;  %v12770_v37 = vpop.f32.mrf.mxu1 }
 0x223   : > { %v10654_v14 = vpop.f32.mrf.mxu0 }
 0x224   : > { %13469 = vst [vmem:[#allocation35_spill] sm:$0xff] %v12763_v24  ;;  %v10655_v48 = vadd.f32 %v10654_v14, %v10653_v55  ;;  %v12775_v57 = vpop.f32.mrf.mxu1  ;;  %v11851_v24 = vld [vmem:[#allocation9 + $0x110] sm:$0xff]  }
 0x225   : > { %v10656_v12 = vpop.f32.mrf.mxu0  ;;  %11051 = vmatpush3.bf16.msra.mxu1 %v11851_v24 }
 0x226   : > { %v12768_v33 = vadd.f32 %v10655_v48, %v12593_v2  ;;  %v12780_v48 = vpop.f32.mrf.mxu1 }
 0x227   : > { %v10657_v34 = vpop.f32.mrf.mxu0 }
 0x228   : > { %13471 = vst [vmem:[#allocation37_spill] sm:$0xff] %v12768_v33  ;;  %v10658_v63 = vadd.f32 %v10657_v34, %v10656_v12 }
 0x229   : > { %v10659_v52 = vpop.f32.mrf.mxu0 }
 0x22a   : > { %v12773_v9 = vadd.f32 %v10658_v63, %v12596_v1  ;;  %v12785_v63 = vpop.f32.mrf.mxu1 }
 0x22b   : > { %v10660_v8 = vpop.f32.mrf.mxu0 }
 0x22c   : > { %13472 = vst [vmem:[#allocation38_spill] sm:$0xff] %v12773_v9  ;;  %v10661_v56 = vadd.f32 %v10660_v8, %v10659_v52 }
 0x22d   : > { %v10662_v50 = vpop.f32.mrf.mxu0 }
 0x22e   : > { %v12778_v55 = vadd.f32 %v10661_v56, %v12599_v32  ;;  %v12790_v32 = vpop.f32.mrf.mxu1 }
 0x22f   : > { %v10663_v2 = vpop.f32.mrf.mxu0 }
 0x230   : > { %13473 = vst [vmem:[#allocation39_spill] sm:$0xff] %v12778_v55  ;;  %v10664_v14 = vadd.f32 %v10663_v2, %v10662_v50  ;;  %v11860_v2 = vld [vmem:[#allocation9 + $0x148] sm:$0xff]  }
 0x231   : > { %v10665_v12 = vpop.f32.mrf.mxu0  ;;  %11052 = vmatprep.subr.bf16.mxu1 %v11860_v2  ;;  %v10716_v2 = vadd.f32 %v12659_v11, %v12657_v44  ;;  %v11876_v11 = vld [vmem:[#allocation9 + $0x140] sm:$0xff]  }
 0x232   : > { %v12783_v1 = vadd.f32 %v10664_v14, %v12602_v51  ;;  %v12795_v51 = vpop.f32.mrf.mxu1 }
 0x233   : > { %v10666_v34 = vpop.f32.mrf.mxu0 }
 0x234   : > { %13474 = vst [vmem:[#allocation40_spill] sm:$0xff] %v12783_v1  ;;  %v10667_v9 = vadd.f32 %v10666_v34, %v10665_v12  ;;  %v11867_v1 = vld [vmem:[#allocation9 + $0x108] sm:$0xff]   ;;  %v10704_v12 = vadd.f32 %v12631_v54, %v12627_v36 }
 0x235   : > { %v10668_v52 = vpop.f32.mrf.mxu0  ;;  %11053 = vmatpush3.bf16.msra.mxu1 %v11867_v1 }
 0x236   : > { %v12788_v8 = vadd.f32 %v10667_v9, %v12605_v61  ;;  %11054 = vmatprep.subr.bf16.mxu1 %v11876_v11 }
 0x237   : > { %v10669_v25 = vpop.f32.mrf.mxu0 }
 0x238   : > { %v10670_v24 = vadd.f32 %v10669_v25, %v10668_v52  ;;  %v10707_v25 = vadd.f32 %v12638_v4, %v12636_v41  ;;  %v10710_v41 = vadd.f32 %v12645_v17, %v12643_v10  ;;  %v10713_v10 = vadd.f32 %v12652_v15, %v12650_v19 }
 0x239   : > { %v10671_v56 = vpop.f32.mrf.mxu0 }
 0x23a   : > { %v12793_v55 = vadd.f32 %v10670_v24, %v12609_v16  ;;  %v12806_v16 = vpop.f32.mrf.mxu1 }
 0x23b   : > { %v10672_v50 = vpop.f32.mrf.mxu0 }
 0x23c   : > { %13475 = vst [vmem:[#allocation41_spill] sm:$0xff] %v12793_v55  ;;  %v10673_v14 = vadd.f32 %v10672_v50, %v10671_v56  ;;  %v12814_v24 = vpop.f32.mrf.mxu1 }
 0x23d   : > { %v12797_v33 = vpop.f32.mrf.mxu0 }
 0x23e   : > { %v12800_v61 = vadd.f32 %v10673_v14, %v12612_v29  ;;  %v4275_v29 = vadd.f32 %v10704_v12, %v12625_v31  ;;  %v12819_v36 = vpop.f32.mrf.mxu1  ;;  %v4278_v14 = vadd.f32 %v10707_v25, %v12634_v58  ;;  %v10719_v12 = vadd.f32 %v12666_v43, %v12664_v62 }
 0x23f   : > { %v12802_v9 = vpop.f32.mrf.mxu0  ;;  %v4291_v58 = vadd.f32 %v10716_v2, %v12655_v35  ;;  %v4283_v62 = vadd.f32 %v10710_v41, %v12641_v5  ;;  %v10728_v35 = vadd.f32 %v12687_v38, %v12685_v46 }
 0x240   : > { %13476 = vst [vmem:[#allocation42_spill] sm:$0xff] %v12800_v61 }
 0x241   : > { %v12808_v34 = vpop.f32.mrf.mxu0 }
 0x243   : > { %v12810_v52 = vpop.f32.mrf.mxu0 }
 0x245   : > { %v11306_v56 = vpop.f32.mrf.mxu0 }
 0x246   : > { %v4436_v1 = vadd.f32 %v11306_v56, %v4275_v29  ;;  %v12827_v29 = vpop.f32.mrf.mxu1  ;;  %v11883_v56 = vld [vmem:[#allocation9 + $0x100] sm:$0xff]  }
 0x247   : > { %v4427_v50 = vpop.f32.mrf.mxu0  ;;  %11055 = vmatpush3.bf16.msra.mxu1 %v11883_v56 }
 0x248   : > { %4556 = vst [vmem:[#allocation2 + $0x31] sm:$0xff] %v4436_v1  ;;  %v4428_v54 = vadd.f32 %v4427_v50, %v12622_v27  ;;  %v10091_v61 = vpack.c.bf16 %v4436_v1, %v4436_v1  ;;  %v4294_v1 = vadd.f32 %v10719_v12, %v12662_v60  ;;  %v12839_v2 = vpop.f32.mrf.mxu1  ;;  %v4286_v60 = vadd.f32 %v10713_v10, %v12648_v18 }
 0x249   : > { %v11307_v55 = vpop.f32.mrf.mxu0 }
 0x24a   : > { %4554 = vst [vmem:[#allocation2 + $0x19] sm:$0xff] %v4428_v54  ;;  %v4439_v31 = vadd.f32 %v11307_v55, %v4278_v14  ;;  %v10089_v4 = vpack.c.bf16 %v4428_v54, %v4428_v54  ;;  %4942 = vst [vmem:[#allocation3 + $0x94] sm:$0xf] %v10091_v61 }
 0x24b   : > { %v4430_v44 = vpop.f32.mrf.mxu0 }
 0x24c   : > { %4557 = vst [vmem:[#allocation2 + $0x39] sm:$0xff] %v4439_v31  ;;  %v4431_v27 = vadd.f32 %v4430_v44, %v12629_v45  ;;  %4940 = vst [vmem:[#allocation3 + $0x4c] sm:$0xf] %v10089_v4  ;;  %v10092_v25 = vpack.c.bf16 %v4439_v31, %v4439_v31  ;;  %v10722_v45 = vadd.f32 %v12673_v20, %v12671_v13 }
 0x24d   : > { %v11310_v17 = vpop.f32.mrf.mxu0  ;;  %v10725_v13 = vadd.f32 %v12680_v3, %v12678_v7  ;;  %v10731_v20 = vadd.f32 %v12694_v39, %v12692_v6  ;;  %v4307_v3 = vadd.f32 %v10728_v35, %v12683_v28  ;;  %v12852_v28 = vadd.f32 %v12715_v30, %v12713_v23 }
 0x24e   : > { %4555 = vst [vmem:[#allocation2 + $0x21] sm:$0xff] %v4431_v27  ;;  %v4452_v55 = vadd.f32 %v11310_v17, %v4291_v58  ;;  %v10090_v43 = vpack.c.bf16 %v4431_v27, %v4431_v27  ;;  %4943 = vst [vmem:[#allocation3 + $0xb8] sm:$0xf] %v10092_v25  ;;  %v4299_v6 = vadd.f32 %v10722_v45, %v12669_v47  ;;  %v12848_v25 = vpop.f32.mrf.mxu1 }
 0x24f   : > { %v4443_v61 = vpop.f32.mrf.mxu0  ;;  %v4590_v50 = vld [vmem:[#allocation2 + $0x30] sm:$0xff] }
 0x250   : > { %v5356_v19 = vld [vmem:[#allocation2 + $0x31] sm:$0xff]  ;;  %4560 = vst [vmem:[#allocation2 + $0x61] sm:$0xff] %v4452_v55  ;;  %v4444_v54 = vadd.f32 %v4443_v61, %v4283_v62  ;;  %4941 = vst [vmem:[#allocation3 + $0x70] sm:$0xf] %v10090_v43  ;;  %v10059_v5 = vpack.c.bf16 %v4590_v50, %v4590_v50  ;;  %v10095_v14 = vpack.c.bf16 %v4452_v55, %v4452_v55  ;;  %v13477_v43 = vld [vmem:[#allocation16_spill] sm:$0xff] }
 0x251   : > { %v5738_v15 = vld [vmem:[#allocation2 + $0x30] sm:$0xff]  ;;  %v10185_v41 = vpack.c.bf16 %v5356_v19, %v5356_v19  ;;  %v11311_v46 = vpop.f32.mrf.mxu0  ;;  %v4588_v38 = vld [vmem:[#allocation2 + $0x18] sm:$0xff]  ;;  %v4310_v62 = vadd.f32 %v10731_v20, %v12690_v0  ;;  %v12856_v45 = vadd.f32 %v10725_v13, %v13477_v43 }
 0x252   : > { %v5354_v31 = vld [vmem:[#allocation2 + $0x19] sm:$0xff]  ;;  %v10247_v4 = vpack.c.bf16 %v5738_v15, %v5738_v15  ;;  %4558 = vst [vmem:[#allocation2 + $0x49] sm:$0xff] %v4444_v54  ;;  %v4455_v12 = vadd.f32 %v11311_v46, %v4294_v1  ;;  %v10057_v44 = vpack.c.bf16 %v4588_v38, %v4588_v38  ;;  %4750 = vst [vmem:[#allocation3 + $0x90] sm:$0xf] %v10059_v5 }
 0x253   : > { %5324 = vst [vmem:[#allocation3 + $0x54] sm:$0xf] %v10059_v5  ;;  %v10093_v11 = vpack.c.bf16 %v4444_v54, %v4444_v54  ;;  %4946 = vst [vmem:[#allocation3 + $0x124] sm:$0xf] %v10095_v14  ;;  %v10183_v27 = vpack.c.bf16 %v5354_v31, %v5354_v31  ;;  %v4446_v7 = vpop.f32.mrf.mxu0  ;;  %v4591_v39 = vld [vmem:[#allocation2 + $0x38] sm:$0xff]  ;;  %v12858_v31 = vpop.f32.mrf.mxu1 }
 0x254   : > { %5516 = vst [vmem:[#allocation3 + $0x58] sm:$0xf] %v10185_v41  ;;  %6090 = vst [vmem:[#allocation3 + $0x1c] sm:$0xf] %v10185_v41  ;;  %v4974_v18 = vld [vmem:[#allocation2 + $0x32] sm:$0xff]  ;;  %v4975_v58 = vld [vmem:[#allocation2 + $0x3a] sm:$0xff]  ;;  %v4447_v56 = vadd.f32 %v4446_v7, %v4286_v60  ;;  %v10060_v10 = vpack.c.bf16 %v4591_v39, %v4591_v39  ;;  %v10096_v50 = vpack.c.bf16 %v4455_v12, %v4455_v12 }
 0x255   : > { %5898 = vst [vmem:[#allocation3 + $0x18] sm:$0xf] %v10247_v4  ;;  %4561 = vst [vmem:[#allocation2 + $0x69] sm:$0xff] %v4455_v12  ;;  %v10123_v17 = vpack.c.bf16 %v4974_v18, %v4974_v18  ;;  %v10124_v55 = vpack.c.bf16 %v4975_v58, %v4975_v58  ;;  %v11314_v47 = vpop.f32.mrf.mxu0  ;;  %v4589_v35 = vld [vmem:[#allocation2 + $0x20] sm:$0xff]  ;;  %v13478_v39 = vld [vmem:[#allocation18_spill] sm:$0xff] }
 0x256   : > { %4748 = vst [vmem:[#allocation3 + $0x48] sm:$0xf] %v10057_v44  ;;  %5322 = vst [vmem:[#allocation3 + $0xc] sm:$0xf] %v10057_v44  ;;  %v4972_v61 = vld [vmem:[#allocation2 + $0x1a] sm:$0xff]  ;;  %v4973_v1 = vld [vmem:[#allocation2 + $0x22] sm:$0xff]  ;;  %v4468_v19 = vadd.f32 %v11314_v47, %v4307_v3  ;;  %v10058_v15 = vpack.c.bf16 %v4589_v35, %v4589_v35  ;;  %v10094_v41 = vpack.c.bf16 %v4447_v56, %v4447_v56 }
 0x257   : > { %4944 = vst [vmem:[#allocation3 + $0xdc] sm:$0xf] %v10093_v11  ;;  %5514 = vst [vmem:[#allocation3 + $0x10] sm:$0xf] %v10183_v27  ;;  %v10121_v54 = vpack.c.bf16 %v4972_v61, %v4972_v61  ;;  %v10122_v5 = vpack.c.bf16 %v4973_v1, %v4973_v1  ;;  %v5355_v23 = vld [vmem:[#allocation2 + $0x21] sm:$0xff]  ;;  %v4459_v0 = vpop.f32.mrf.mxu0  ;;  %v5357_v38 = vld [vmem:[#allocation2 + $0x39] sm:$0xff]  ;;  %v10734_v18 = vadd.f32 %v13478_v39, %v12699_v26 }
 0x258   : > { %4559 = vst [vmem:[#allocation2 + $0x51] sm:$0xff] %v4447_v56  ;;  %4751 = vst [vmem:[#allocation3 + $0xb4] sm:$0xf] %v10060_v10  ;;  %v5546_v30 = vld [vmem:[#allocation2 + $0x1a] sm:$0xff]  ;;  %v5547_v14 = vld [vmem:[#allocation2 + $0x22] sm:$0xff]  ;;  %v10184_v20 = vpack.c.bf16 %v5355_v23, %v5355_v23  ;;  %v4460_v4 = vadd.f32 %v4459_v0, %v4299_v6  ;;  %v10099_v44 = vpack.c.bf16 %v4468_v19, %v4468_v19 }
 0x259   : > { %5325 = vst [vmem:[#allocation3 + $0x78] sm:$0xf] %v10060_v10  ;;  %5134 = vst [vmem:[#allocation3 + $0x98] sm:$0xf] %v10123_v17  ;;  %v4594_v13 = vld [vmem:[#allocation2 + $0x60] sm:$0xff]  ;;  %v10215_v46 = vpack.c.bf16 %v5546_v30, %v5546_v30  ;;  %v10216_v60 = vpack.c.bf16 %v5547_v14, %v5547_v14  ;;  %v10186_v11 = vpack.c.bf16 %v5357_v38, %v5357_v38  ;;  %v5548_v27 = vld [vmem:[#allocation2 + $0x32] sm:$0xff]  ;;  %v11315_v58 = vpop.f32.mrf.mxu0  ;;  %v12866_v14 = vpop.f32.mrf.mxu1 }
 0x25a   : > { %5135 = vst [vmem:[#allocation3 + $0xbc] sm:$0xf] %v10124_v55  ;;  %4947 = vst [vmem:[#allocation3 + $0x148] sm:$0xf] %v10096_v50  ;;  %v10063_v12 = vpack.c.bf16 %v4594_v13, %v4594_v13  ;;  %v5549_v7 = vld [vmem:[#allocation2 + $0x3a] sm:$0xff]  ;;  %v4592_v56 = vld [vmem:[#allocation2 + $0x48] sm:$0xff]  ;;  %v10217_v6 = vpack.c.bf16 %v5548_v27, %v5548_v27  ;;  %v4471_v47 = vadd.f32 %v11315_v58, %v4310_v62 }
 0x25b   : > { %4564 = vst [vmem:[#allocation2 + $0x91] sm:$0xff] %v4468_v19  ;;  %4749 = vst [vmem:[#allocation3 + $0x6c] sm:$0xf] %v10058_v15  ;;  %v5739_v3 = vld [vmem:[#allocation2 + $0x38] sm:$0xff]  ;;  %v10218_v10 = vpack.c.bf16 %v5549_v7, %v5549_v7  ;;  %v5358_v55 = vld [vmem:[#allocation2 + $0x49] sm:$0xff]  ;;  %v10061_v43 = vpack.c.bf16 %v4592_v56, %v4592_v56  ;;  %v10097_v35 = vpack.c.bf16 %v4460_v4, %v4460_v4  ;;  %v4462_v50 = vpop.f32.mrf.mxu0 }
 0x25c   : > { %5323 = vst [vmem:[#allocation3 + $0x30] sm:$0xf] %v10058_v15  ;;  %5132 = vst [vmem:[#allocation3 + $0x50] sm:$0xf] %v10121_v54  ;;  %v10248_v17 = vpack.c.bf16 %v5739_v3, %v5739_v3  ;;  %v10187_v26 = vpack.c.bf16 %v5358_v55, %v5358_v55  ;;  %v5740_v61 = vld [vmem:[#allocation2 + $0x48] sm:$0xff]  ;;  %v13479_v19 = vld [vmem:[#allocation22_spill] sm:$0xff]  ;;  %v4463_v0 = vadd.f32 %v4462_v50, %v12856_v45 }
 0x25d   : > { %5133 = vst [vmem:[#allocation3 + $0x74] sm:$0xf] %v10122_v5  ;;  %4945 = vst [vmem:[#allocation3 + $0x100] sm:$0xf] %v10094_v41  ;;  %v5360_v1 = vld [vmem:[#allocation2 + $0x61] sm:$0xff]  ;;  %v4323_v15 = vadd.f32 %v12852_v28, %v13479_v19  ;;  %v10249_v5 = vpack.c.bf16 %v5740_v61, %v5740_v61  ;;  %v4979_v28 = vld [vmem:[#allocation2 + $0x6a] sm:$0xff]  ;;  %v10752_v56 = vadd.f32 %v12743_v59, %v12741_v42 }
 0x25e   : > { %5515 = vst [vmem:[#allocation3 + $0x34] sm:$0xf] %v10184_v20  ;;  %5706 = vst [vmem:[#allocation3 + $0x14] sm:$0xf] %v10215_v46  ;;  %v4595_v54 = vld [vmem:[#allocation2 + $0x68] sm:$0xff]  ;;  %v10189_v62 = vpack.c.bf16 %v5360_v1, %v5360_v1  ;;  %v13480_v23 = vld [vmem:[#allocation24_spill] sm:$0xff]  ;;  %v10100_v20 = vpack.c.bf16 %v4471_v47, %v4471_v47  ;;  %v10098_v39 = vpack.c.bf16 %v4463_v0, %v4463_v0 }
 0x25f   : > { %5707 = vst [vmem:[#allocation3 + $0x38] sm:$0xf] %v10216_v60  ;;  %4562 = vst [vmem:[#allocation2 + $0x79] sm:$0xff] %v4460_v4  ;;  %v10743_v30 = vadd.f32 %v13480_v23, %v12720_v49  ;;  %v10064_v41 = vpack.c.bf16 %v4595_v54, %v4595_v54  ;;  %v4978_v13 = vld [vmem:[#allocation2 + $0x62] sm:$0xff]  ;;  %v11318_v4 = vpop.f32.mrf.mxu0  ;;  %v10128_v49 = vpack.c.bf16 %v4979_v28, %v4979_v28  ;;  %v4593_v27 = vld [vmem:[#allocation2 + $0x50] sm:$0xff] }
 0x260   : > { %4754 = vst [vmem:[#allocation3 + $0x120] sm:$0xf] %v10063_v12  ;;  %5328 = vst [vmem:[#allocation3 + $0xe4] sm:$0xf] %v10063_v12  ;;  %v13481_v46 = vld [vmem:[#allocation20_spill] sm:$0xff]  ;;  %v13482_v60 = vld [vmem:[#allocation21_spill] sm:$0xff]  ;;  %v10127_v12 = vpack.c.bf16 %v4978_v13, %v4978_v13  ;;  %v4484_v45 = vadd.f32 %v11318_v4, %v4323_v15  ;;  %v10062_v55 = vpack.c.bf16 %v4593_v27, %v4593_v27 }
 0x261   : > { %4950 = vst [vmem:[#allocation3 + $0x1b4] sm:$0xf] %v10099_v44  ;;  %5517 = vst [vmem:[#allocation3 + $0x7c] sm:$0xf] %v10186_v11  ;;  %v10737_v38 = vadd.f32 %v13482_v60, %v13481_v46  ;;  %v13483_v44 = vld [vmem:[#allocation17_spill] sm:$0xff]  ;;  %v4977_v3 = vld [vmem:[#allocation2 + $0x52] sm:$0xff]  ;;  %v10755_v46 = vadd.f32 %v12750_v22, %v12748_v40 }
 0x262   : > { %6091 = vst [vmem:[#allocation3 + $0x40] sm:$0xf] %v10186_v11  ;;  %5708 = vst [vmem:[#allocation3 + $0x5c] sm:$0xf] %v10217_v6  ;;  %v4315_v11 = vadd.f32 %v10734_v18, %v13483_v44  ;;  %v4976_v7 = vld [vmem:[#allocation2 + $0x4a] sm:$0xff]  ;;  %v4475_v6 = vpop.f32.mrf.mxu0  ;;  %v11842_v18 = vld [vmem:[#allocation9 + $0x1f0] sm:$0xff]   ;;  %v10103_v15 = vpack.c.bf16 %v4484_v45, %v4484_v45 }
 0x263   : > { %5709 = vst [vmem:[#allocation3 + $0x80] sm:$0xf] %v10218_v10  ;;  %5899 = vst [vmem:[#allocation3 + $0x3c] sm:$0xf] %v10248_v17  ;;  %v11827_v58 = vld [vmem:[#allocation9 + $0x1b8] sm:$0xff]   ;;  %v13484_v61 = vld [vmem:[#allocation23_spill] sm:$0xff] }
 0x264   : > { %4565 = vst [vmem:[#allocation2 + $0x99] sm:$0xff] %v4471_v47  ;;  %4752 = vst [vmem:[#allocation3 + $0xd8] sm:$0xf] %v10061_v43  ;;  %v11772_v10 = vld [vmem:[#allocation3 + $0x48] ss:$36 sps:$4 sm:$0xff]   ;;  %v10125_v47 = vpack.c.bf16 %v4976_v7, %v4976_v7  ;;  %v4326_v1 = vadd.f32 %v10743_v30, %v13484_v61  ;;  %v11319_v59 = vpop.f32.mrf.mxu0 }
 0x265   : > { %5326 = vst [vmem:[#allocation3 + $0x9c] sm:$0xf] %v10061_v43  ;;  %4948 = vst [vmem:[#allocation3 + $0x16c] sm:$0xf] %v10097_v35  ;;  %v11774_v17 = vld [vmem:[#allocation3 + $0x4c] ss:$36 sps:$4 sm:$0xff]   ;;  %v10126_v43 = vpack.c.bf16 %v4977_v3, %v4977_v3  ;;  %v12874_v35 = vpop.f32.mrf.mxu1 }
 0x266   : > { %5518 = vst [vmem:[#allocation3 + $0xa0] sm:$0xf] %v10187_v26  ;;  %6092 = vst [vmem:[#allocation3 + $0x64] sm:$0xf] %v10187_v26  ;;  %v4476_v26 = vadd.f32 %v4475_v6, %v4315_v11  ;;  %v11775_v50 = vld [vmem:[#allocation3 + $0x8] ss:$36 sps:$4 sm:$0xff]   ;;  %7833 = vmatprep.mubr.bf16.mxu1 %v11774_v17  ;;  %v4478_v60 = vpop.f32.mrf.mxu0 }
 0x267   : > { %5900 = vst [vmem:[#allocation3 + $0x60] sm:$0xf] %v10249_v5  ;;  %5520 = vst [vmem:[#allocation3 + $0xe8] sm:$0xf] %v10189_v62  ;;  %v11777_v19 = vld [vmem:[#allocation3 + $0xc] ss:$36 sps:$4 sm:$0xff]   ;;  %7834 = vmatmul.mubr.bf16.gmra.mxu1 %v11772_v10 }
 0x268   : > { %6094 = vst [vmem:[#allocation3 + $0xac] sm:$0xf] %v10189_v62  ;;  %4563 = vst [vmem:[#allocation2 + $0x81] sm:$0xff] %v4463_v0  ;;  %v13485_v42 = vld [vmem:[#allocation19_spill] sm:$0xff]  ;;  %v11780_v5 = vld [vmem:[#allocation3 + $0x94] ss:$36 sps:$4 sm:$0xff]   ;;  %7986 = vmatprep.mubr.bf16.mxu0 %v11777_v19  ;;  %v10101_v28 = vpack.c.bf16 %v4476_v26, %v4476_v26  ;;  %v11322_v22 = vpop.f32.mrf.mxu0 }
 0x269   : > { %4755 = vst [vmem:[#allocation3 + $0x144] sm:$0xf] %v10064_v41  ;;  %5329 = vst [vmem:[#allocation3 + $0x108] sm:$0xf] %v10064_v41  ;;  %v4318_v54 = vadd.f32 %v10737_v38, %v13485_v42  ;;  %v13486_v62 = vld [vmem:[#allocation26_spill] sm:$0xff]  ;;  %v13487_v23 = vld [vmem:[#allocation27_spill] sm:$0xff]  ;;  %v4487_v41 = vadd.f32 %v11319_v59, %v4326_v1  ;;  %7987 = vmatmul.mubr.bf16.vlgmr.msra.gmra.mxu0 %v11775_v50  ;;  %7841 = vmatprep.mubr.bf16.mxu1 %v11780_v5 }
 0x26a   : > { %4951 = vst [vmem:[#allocation3 + $0x1d8] sm:$0xf] %v10100_v20  ;;  %5138 = vst [vmem:[#allocation3 + $0x128] sm:$0xf] %v10127_v12  ;;  %v10746_v0 = vadd.f32 %v13487_v23, %v13486_v62  ;;  %v11783_v30 = vld [vmem:[#allocation3 + $0x54] ss:$36 sps:$4 sm:$0xff]   ;;  %11153 = vmatpush3.bf16.msra.mxu0 %v11827_v58  ;;  %v4491_v59 = vpop.f32.mrf.mxu0 }
 0x26b   : > { %5139 = vst [vmem:[#allocation3 + $0x14c] sm:$0xf] %v10128_v49  ;;  %4568 = vst [vmem:[#allocation2 + $0xc1] sm:$0xff] %v4484_v45  ;;  %v4596_v13 = vld [vmem:[#allocation2 + $0x78] sm:$0xff]  ;;  %v11843_v20 = vld [vmem:[#allocation9 + $0x1b0] sm:$0xff]   ;;  %v12883_v45 = vpop.f32.mrf.mxu1  ;;  %v4479_v44 = vadd.f32 %v4478_v60, %v4318_v54  ;;  %7994 = vmatprep.mubr.bf16.mxu0 %v11783_v30  ;;  %11154 = vmatprep.subr.bf16.mxu0 %v11842_v18  ;;  %v4342_v30 = vadd.f32 %v10755_v46, %v12746_v53 }
 0x26c   : > { %4949 = vst [vmem:[#allocation3 + $0x190] sm:$0xf] %v10098_v39  ;;  %4753 = vst [vmem:[#allocation3 + $0xfc] sm:$0xf] %v10062_v55  ;;  %v13488_v38 = vld [vmem:[#allocation31_spill] sm:$0xff]  ;;  %v10065_v12 = vpack.c.bf16 %v4596_v13, %v4596_v13  ;;  %v4598_v49 = vld [vmem:[#allocation2 + $0x90] sm:$0xff]  ;;  %v10104_v39 = vpack.c.bf16 %v4487_v41, %v4487_v41 }
 0x26d   : > { %5327 = vst [vmem:[#allocation3 + $0xc0] sm:$0xf] %v10062_v55  ;;  %5136 = vst [vmem:[#allocation3 + $0xe0] sm:$0xf] %v10125_v47  ;;  %v4339_v4 = vadd.f32 %v10752_v56, %v13488_v38  ;;  %v4599_v11 = vld [vmem:[#allocation2 + $0x98] sm:$0xff]  ;;  %v10067_v27 = vpack.c.bf16 %v4598_v49, %v4598_v49  ;;  %v13489_v17 = vld [vmem:[#allocation29_spill] sm:$0xff]  ;;  %v10102_v58 = vpack.c.bf16 %v4479_v44, %v4479_v44  ;;  %v12890_v23 = vpop.f32.mrf.mxu1 }
 0x26e   : > { %5137 = vst [vmem:[#allocation3 + $0x104] sm:$0xf] %v10126_v43  ;;  %4566 = vst [vmem:[#allocation2 + $0xa9] sm:$0xff] %v4476_v26  ;;  %v4982_v7 = vld [vmem:[#allocation2 + $0x92] sm:$0xff]  ;;  %v4983_v3 = vld [vmem:[#allocation2 + $0x9a] sm:$0xff]  ;;  %v10068_v40 = vpack.c.bf16 %v4599_v11, %v4599_v11  ;;  %11155 = vmatpush3.bf16.msra.mxu0 %v11843_v20 }
 0x26f   : > { %4954 = vst [vmem:[#allocation3 + $0x244] sm:$0xf] %v10103_v15  ;;  %4569 = vst [vmem:[#allocation2 + $0xc9] sm:$0xff] %v4487_v41  ;;  %v10131_v6 = vpack.c.bf16 %v4982_v7, %v4982_v7  ;;  %v10132_v56 = vpack.c.bf16 %v4983_v3, %v4983_v3  ;;  %v11858_v10 = vld [vmem:[#allocation9 + $0x1e8] sm:$0xff]   ;;  %v13490_v55 = vld [vmem:[#allocation30_spill] sm:$0xff]  ;;  %v4500_v43 = vadd.f32 %v11322_v22, %v4339_v4  ;;  %v11323_v4 = vpop.f32.mrf.mxu0 }
 0x270   : > { %4952 = vst [vmem:[#allocation3 + $0x1fc] sm:$0xf] %v10101_v28  ;;  %4756 = vst [vmem:[#allocation3 + $0x168] sm:$0xf] %v10065_v12  ;;  %v10749_v47 = vadd.f32 %v13490_v55, %v13489_v17  ;;  %v13491_v26 = vld [vmem:[#allocation25_spill] sm:$0xff]  ;;  %v4597_v1 = vld [vmem:[#allocation2 + $0x80] sm:$0xff]  ;;  %v10764_v15 = vadd.f32 %v12780_v48, %v12775_v57  ;;  %11156 = vmatprep.subr.bf16.mxu0 %v11858_v10  ;;  %v4503_v49 = vadd.f32 %v11323_v4, %v4342_v30 }
 0x271   : > { %5330 = vst [vmem:[#allocation3 + $0x12c] sm:$0xf] %v10065_v12  ;;  %4567 = vst [vmem:[#allocation2 + $0xb1] sm:$0xff] %v4479_v44  ;;  %v4331_v61 = vadd.f32 %v10746_v0, %v13491_v26  ;;  %v4980_v50 = vld [vmem:[#allocation2 + $0x7a] sm:$0xff]  ;;  %v4981_v19 = vld [vmem:[#allocation2 + $0x82] sm:$0xff]  ;;  %v10066_v18 = vpack.c.bf16 %v4597_v1, %v4597_v1  ;;  %v10107_v57 = vpack.c.bf16 %v4500_v43, %v4500_v43  ;;  %v4494_v11 = vpop.f32.mrf.mxu0 }
 0x272   : > { %4758 = vst [vmem:[#allocation3 + $0x1b0] sm:$0xf] %v10067_v27  ;;  %5332 = vst [vmem:[#allocation3 + $0x174] sm:$0xf] %v10067_v27  ;;  %v10129_v42 = vpack.c.bf16 %v4980_v50, %v4980_v50  ;;  %v10130_v54 = vpack.c.bf16 %v4981_v19, %v4981_v19  ;;  %v4602_v5 = vld [vmem:[#allocation2 + $0xc0] sm:$0xff]  ;;  %v11859_v62 = vld [vmem:[#allocation9 + $0x1a8] sm:$0xff]   ;;  %v10108_v55 = vpack.c.bf16 %v4503_v49, %v4503_v49 }
 0x273   : > { %4955 = vst [vmem:[#allocation3 + $0x268] sm:$0xf] %v10104_v39  ;;  %4759 = vst [vmem:[#allocation3 + $0x1d4] sm:$0xf] %v10068_v40  ;;  %v11778_v0 = vld [vmem:[#allocation3 + $0x90] ss:$36 sps:$4 sm:$0xff]   ;;  %v4492_v41 = vadd.f32 %v4491_v59, %v4331_v61  ;;  %v10071_v13 = vpack.c.bf16 %v4602_v5, %v4602_v5  ;;  %11157 = vmatpush3.bf16.msra.mxu0 %v11859_v62 }
 0x274   : > { %5333 = vst [vmem:[#allocation3 + $0x198] sm:$0xf] %v10068_v40  ;;  %5142 = vst [vmem:[#allocation3 + $0x1b8] sm:$0xf] %v10131_v6  ;;  %v11874_v48 = vld [vmem:[#allocation9 + $0x1e0] sm:$0xff]   ;;  %v13492_v28 = vld [vmem:[#allocation33_spill] sm:$0xff]  ;;  %7842 = vmatmul.mubr.bf16.gmra.mxu1 %v11778_v0  ;;  %v12899_v40 = vpop.f32.mrf.mxu1 }
 0x275   : > { %5143 = vst [vmem:[#allocation3 + $0x1dc] sm:$0xf] %v10132_v56  ;;  %4572 = vst [vmem:[#allocation2 + $0xf1] sm:$0xff] %v4500_v43  ;;  %v10758_v60 = vadd.f32 %v12760_v21, %v13492_v28  ;;  %v11781_v38 = vld [vmem:[#allocation3 + $0x50] ss:$36 sps:$4 sm:$0xff]   ;;  %v10105_v20 = vpack.c.bf16 %v4492_v41, %v4492_v41  ;;  %v10767_v21 = vadd.f32 %v12790_v32, %v12785_v63  ;;  %v13494_v27 = vld [vmem:[#allocation35_spill] sm:$0xff]  ;;  %v11326_v32 = vpop.f32.mrf.mxu0  ;;  %11158 = vmatprep.subr.bf16.mxu0 %v11874_v48 }
 0x276   : > { %4953 = vst [vmem:[#allocation3 + $0x220] sm:$0xf] %v10102_v58  ;;  %v11787_v12 = vld [vmem:[#allocation3 + $0xdc] ss:$36 sps:$4 sm:$0xff]   ;;  %4757 = vst [vmem:[#allocation3 + $0x18c] sm:$0xf] %v10066_v18  ;;  %7995 = vmatmul.mubr.bf16.gmra.mxu0 %v11781_v38  ;;  %v4355_v7 = vadd.f32 %v10764_v15, %v13494_v27  ;;  %v10773_v27 = vadd.f32 %v12819_v36, %v12814_v24 }
 0x277   : > { %5331 = vst [vmem:[#allocation3 + $0x150] sm:$0xf] %v10066_v18  ;;  %5140 = vst [vmem:[#allocation3 + $0x170] sm:$0xf] %v10129_v42  ;;  %v13493_v44 = vld [vmem:[#allocation28_spill] sm:$0xff]  ;;  %7849 = vmatprep.mubr.bf16.mxu1 %v11787_v12  ;;  %v4600_v3 = vld [vmem:[#allocation2 + $0xa8] sm:$0xff]  ;;  %v4507_v42 = vpop.f32.mrf.mxu0 }
 0x278   : > { %5141 = vst [vmem:[#allocation3 + $0x194] sm:$0xf] %v10130_v54  ;;  %4570 = vst [vmem:[#allocation2 + $0xd9] sm:$0xff] %v4492_v41  ;;  %v4334_v53 = vadd.f32 %v10749_v47, %v13493_v44  ;;  %v11790_v46 = vld [vmem:[#allocation3 + $0x9c] ss:$36 sps:$4 sm:$0xff]   ;;  %v10069_v56 = vpack.c.bf16 %v4600_v3, %v4600_v3  ;;  %v4986_v17 = vld [vmem:[#allocation2 + $0xc2] sm:$0xff]  ;;  %v4516_v19 = vadd.f32 %v11326_v32, %v4355_v7 }
 0x279   : > { %4762 = vst [vmem:[#allocation3 + $0x240] sm:$0xf] %v10071_v13  ;;  %5336 = vst [vmem:[#allocation3 + $0x204] sm:$0xf] %v10071_v13  ;;  %v4603_v39 = vld [vmem:[#allocation2 + $0xc8] sm:$0xff]  ;;  %v11875_v22 = vld [vmem:[#allocation9 + $0x1a0] sm:$0xff]   ;;  %8002 = vmatprep.mubr.bf16.mxu0 %v11790_v46  ;;  %v10135_v50 = vpack.c.bf16 %v4986_v17, %v4986_v17  ;;  %v12907_v13 = vpop.f32.mrf.mxu1  ;;  %v11327_v4 = vpop.f32.mrf.mxu0  ;;  %v10770_v46 = vadd.f32 %v12806_v16, %v12795_v51  ;;  %v10676_v7 = vadd.f32 %v12802_v9, %v12797_v33 }
 0x27a   : > { %4958 = vst [vmem:[#allocation3 + $0x2d4] sm:$0xf] %v10107_v57  ;;  %4573 = vst [vmem:[#allocation2 + $0xf9] sm:$0xff] %v4503_v49  ;;  %v4495_v6 = vadd.f32 %v4494_v11, %v4334_v53  ;;  %v10072_v10 = vpack.c.bf16 %v4603_v39, %v4603_v39  ;;  %v13495_v47 = vld [vmem:[#allocation36_spill] sm:$0xff]  ;;  %v4601_v61 = vld [vmem:[#allocation2 + $0xb0] sm:$0xff]  ;;  %v10111_v53 = vpack.c.bf16 %v4516_v19, %v4516_v19  ;;  %11159 = vmatpush3.bf16.msra.mxu0 %v11875_v22 }
 0x27b   : > { %4956 = vst [vmem:[#allocation3 + $0x28c] sm:$0xf] %v10105_v20  ;;  %v10761_v63 = vadd.f32 %v12770_v37, %v13495_v47  ;;  %v13496_v43 = vld [vmem:[#allocation32_spill] sm:$0xff]  ;;  %v4984_v1 = vld [vmem:[#allocation2 + $0xaa] sm:$0xff]  ;;  %v10070_v58 = vpack.c.bf16 %v4601_v61, %v4601_v61  ;;  %4760 = vst [vmem:[#allocation3 + $0x1f8] sm:$0xf] %v10069_v56  ;;  %v10776_v37 = vadd.f32 %v12839_v2, %v12827_v29  ;;  %v4510_v3 = vpop.f32.mrf.mxu0 }
 0x27c   : > { %v4347_v26 = vadd.f32 %v10758_v60, %v13496_v43  ;;  %4571 = vst [vmem:[#allocation2 + $0xe1] sm:$0xff] %v4495_v6  ;;  %5334 = vst [vmem:[#allocation3 + $0x1bc] sm:$0xf] %v10069_v56  ;;  %v10133_v15 = vpack.c.bf16 %v4984_v1, %v4984_v1  ;;  %v10106_v59 = vpack.c.bf16 %v4495_v6, %v4495_v6  ;;  %v11884_v18 = vld [vmem:[#allocation9 + $0x1d8] sm:$0xff]   ;;  %v4985_v0 = vld [vmem:[#allocation2 + $0xb2] sm:$0xff]  ;;  %v10789_v56 = vpop.f32.mrf.mxu1 }
 0x27d   : > { %4763 = vst [vmem:[#allocation3 + $0x264] sm:$0xf] %v10072_v10  ;;  %5337 = vst [vmem:[#allocation3 + $0x228] sm:$0xf] %v10072_v10  ;;  %v13497_v54 = vld [vmem:[#allocation37_spill] sm:$0xff]  ;;  %v4606_v41 = vld [vmem:[#allocation2 + $0xf0] sm:$0xff]  ;;  %v10134_v48 = vpack.c.bf16 %v4985_v0, %v4985_v0  ;;  %11160 = vmatprep.subr.bf16.mxu0 %v11884_v18  ;;  %v10779_v6 = vadd.f32 %v12858_v31, %v12848_v25  ;;  %v11330_v47 = vpop.f32.mrf.mxu0  ;;  %v10679_v25 = vadd.f32 %v12810_v52, %v12808_v34 }
 0x27e   : > { %4959 = vst [vmem:[#allocation3 + $0x2f8] sm:$0xf] %v10108_v55  ;;  %v4358_v5 = vadd.f32 %v10767_v21, %v13497_v54  ;;  %v4987_v62 = vld [vmem:[#allocation2 + $0xca] sm:$0xff]  ;;  %5146 = vst [vmem:[#allocation3 + $0x248] sm:$0xf] %v10135_v50  ;;  %v4508_v28 = vadd.f32 %v4507_v42, %v4347_v26  ;;  %v10075_v29 = vpack.c.bf16 %v4606_v41, %v4606_v41  ;;  %v11892_v2 = vld [vmem:[#allocation9 + $0x1d0] sm:$0xff]   ;;  %v10790_v34 = vpop.f32.mrf.mxu1 }
 0x27f   : > { %v11891_v30 = vld [vmem:[#allocation9 + $0x198] sm:$0xff]   ;;  %4576 = vst [vmem:[#allocation2 + $0x121] sm:$0xff] %v4516_v19  ;;  %4761 = vst [vmem:[#allocation3 + $0x21c] sm:$0xf] %v10070_v58  ;;  %v10136_v60 = vpack.c.bf16 %v4987_v62, %v4987_v62  ;;  %v13498_v12 = vld [vmem:[#allocation34_spill] sm:$0xff]  ;;  %v10782_v55 = vadd.f32 %v12874_v35, %v12866_v14  ;;  %v4374_v42 = vadd.f32 %v10779_v6, %v12788_v8 }
 0x280   : > { %v11785_v57 = vld [vmem:[#allocation3 + $0xd8] ss:$36 sps:$4 sm:$0xff]   ;;  %5335 = vst [vmem:[#allocation3 + $0x1e0] sm:$0xf] %v10070_v58  ;;  %5144 = vst [vmem:[#allocation3 + $0x200] sm:$0xf] %v10133_v15  ;;  %v4350_v49 = vadd.f32 %v10761_v63, %v13498_v12  ;;  %v4519_v20 = vadd.f32 %v11327_v4, %v4358_v5  ;;  %v10109_v11 = vpack.c.bf16 %v4508_v28, %v4508_v28  ;;  %11161 = vmatpush3.bf16.msra.mxu0 %v11891_v30  ;;  %v4523_v15 = vpop.f32.mrf.mxu0 }
 0x281   : > { %4957 = vst [vmem:[#allocation3 + $0x2b0] sm:$0xf] %v10106_v59  ;;  %v11788_v38 = vld [vmem:[#allocation3 + $0x98] ss:$36 sps:$4 sm:$0xff]   ;;  %v11794_v44 = vld [vmem:[#allocation3 + $0x124] ss:$36 sps:$4 sm:$0xff]   ;;  %7850 = vmatmul.mubr.bf16.gmra.mxu1 %v11785_v57  ;;  %11162 = vmatprep.subr.bf16.mxu0 %v11892_v2  ;;  %v10788_v58 = vadd.f32 %v12907_v13, %v12899_v40  ;;  %v10791_v8 = vadd.f32 %v10790_v34, %v10789_v56 }
 0x282   : > { %4574 = vst [vmem:[#allocation2 + $0x109] sm:$0xff] %v4508_v28  ;;  %v11797_v21 = vld [vmem:[#allocation3 + $0xe4] ss:$36 sps:$4 sm:$0xff]   ;;  %5145 = vst [vmem:[#allocation3 + $0x224] sm:$0xf] %v10134_v48  ;;  %8003 = vmatmul.mubr.bf16.gmra.mxu0 %v11788_v38  ;;  %7857 = vmatprep.mubr.bf16.mxu1 %v11794_v44  ;;  %v13499_v51 = vld [vmem:[#allocation40_spill] sm:$0xff]  ;;  %v4511_v10 = vadd.f32 %v4510_v3, %v4350_v49  ;;  %v10112_v9 = vpack.c.bf16 %v4519_v20, %v4519_v20  ;;  %v11331_v5 = vpop.f32.mrf.mxu0 }
 0x283   : > { %5147 = vst [vmem:[#allocation3 + $0x26c] sm:$0xf] %v10136_v60  ;;  %4766 = vst [vmem:[#allocation3 + $0x2d0] sm:$0xf] %v10075_v29  ;;  %v4371_v16 = vadd.f32 %v10776_v37, %v13499_v51  ;;  %v4604_v39 = vld [vmem:[#allocation2 + $0xd8] sm:$0xff]  ;;  %v11893_v22 = vld [vmem:[#allocation9 + $0x190] sm:$0xff]   ;;  %8010 = vmatprep.mubr.bf16.mxu0 %v11797_v21  ;;  %v4535_v28 = vadd.f32 %v11331_v5, %v4374_v42  ;;  %v10785_v56 = vadd.f32 %v12890_v23, %v12883_v45 }
 0x284   : > { %5340 = vst [vmem:[#allocation3 + $0x294] sm:$0xf] %v10075_v29  ;;  %4962 = vst [vmem:[#allocation3 + $0x364] sm:$0xf] %v10111_v53  ;;  %v10073_v17 = vpack.c.bf16 %v4604_v39, %v4604_v39  ;;  %v4607_v24 = vld [vmem:[#allocation2 + $0xf8] sm:$0xff]  ;;  %v13500_v26 = vld [vmem:[#allocation38_spill] sm:$0xff]  ;;  %v10110_v50 = vpack.c.bf16 %v4511_v10, %v4511_v10  ;;  %11163 = vmatpush3.bf16.msra.mxu0 %v11893_v22  ;;  %v4526_v2 = vpop.f32.mrf.mxu0 }
 0x285   : > { %4577 = vst [vmem:[#allocation2 + $0x129] sm:$0xff] %v4519_v20  ;;  %4960 = vst [vmem:[#allocation3 + $0x31c] sm:$0xf] %v10109_v11  ;;  %v4990_v36 = vld [vmem:[#allocation2 + $0xf2] sm:$0xff]  ;;  %v4991_v33 = vld [vmem:[#allocation2 + $0xfa] sm:$0xff]  ;;  %v10076_v63 = vpack.c.bf16 %v4607_v24, %v4607_v24  ;;  %v4532_v31 = vadd.f32 %v11330_v47, %v4371_v16  ;;  %v4363_v61 = vadd.f32 %v10770_v46, %v13500_v26 }
 0x286   : > { %v10139_v32 = vpack.c.bf16 %v4990_v36, %v4990_v36  ;;  %v10140_v43 = vpack.c.bf16 %v4991_v33, %v4991_v33  ;;  %4575 = vst [vmem:[#allocation2 + $0x111] sm:$0xff] %v4511_v10  ;;  %v4605_v1 = vld [vmem:[#allocation2 + $0xe0] sm:$0xff]  ;;  %4764 = vst [vmem:[#allocation3 + $0x288] sm:$0xf] %v10073_v17  ;;  %v11894_v19 = vld [vmem:[#allocation9 + $0x1c8] sm:$0xff]   ;;  %v11334_v3 = vpop.f32.mrf.mxu0  ;;  %v10116_v6 = vpack.c.bf16 %v4535_v28, %v4535_v28 }
 0x287   : > { %5338 = vst [vmem:[#allocation3 + $0x24c] sm:$0xf] %v10073_v17  ;;  %4963 = vst [vmem:[#allocation3 + $0x388] sm:$0xf] %v10112_v9  ;;  %v13501_v14 = vld [vmem:[#allocation14_spill] sm:$0xff]  ;;  %v10074_v59 = vpack.c.bf16 %v4605_v1, %v4605_v1  ;;  %v4524_v37 = vadd.f32 %v4523_v15, %v4363_v61  ;;  %v10115_v54 = vpack.c.bf16 %v4532_v31, %v4532_v31  ;;  %v13502_v0 = vld [vmem:[#allocation39_spill] sm:$0xff]  ;;  %11164 = vmatprep.subr.bf16.mxu0 %v11894_v19 }
 0x288   : > { %v4226_v35 = vadd.f32 %v10676_v7, %v13501_v14  ;;  %4767 = vst [vmem:[#allocation3 + $0x2f4] sm:$0xf] %v10076_v63  ;;  %5341 = vst [vmem:[#allocation3 + $0x2b8] sm:$0xf] %v10076_v63  ;;  %v11792_v52 = vld [vmem:[#allocation3 + $0x120] ss:$36 sps:$4 sm:$0xff]   ;;  %v4366_v62 = vadd.f32 %v10773_v27, %v13502_v0  ;;  %v4539_v36 = vpop.f32.mrf.mxu0 }
 0x289   : > { %5150 = vst [vmem:[#allocation3 + $0x2d8] sm:$0xf] %v10139_v32  ;;  %5151 = vst [vmem:[#allocation3 + $0x2fc] sm:$0xf] %v10140_v43  ;;  %v11795_v18 = vld [vmem:[#allocation3 + $0xe0] ss:$36 sps:$4 sm:$0xff]   ;;  %7858 = vmatmul.mubr.bf16.gmra.mxu1 %v11792_v52  ;;  %v10113_v29 = vpack.c.bf16 %v4524_v37, %v4524_v37 }
 0x28a   : > { %4580 = vst [vmem:[#allocation2 + $0x151] sm:$0xff] %v4532_v31  ;;  %4961 = vst [vmem:[#allocation3 + $0x340] sm:$0xf] %v10110_v50  ;;  %v11801_v41 = vld [vmem:[#allocation3 + $0x16c] ss:$36 sps:$4 sm:$0xff]   ;;  %v13503_v40 = vld [vmem:[#allocation41_spill] sm:$0xff]  ;;  %8011 = vmatmul.mubr.bf16.gmra.mxu0 %v11795_v18  ;;  %v4387_v38 = vadd.f32 %v10788_v58, %v4226_v35  ;;  %v4527_v53 = vadd.f32 %v4526_v2, %v4366_v62  ;;  %v11335_v31 = vpop.f32.mrf.mxu0 }
 0x28b   : > { %v4379_v30 = vadd.f32 %v10782_v55, %v13503_v40  ;;  %4765 = vst [vmem:[#allocation3 + $0x2ac] sm:$0xf] %v10074_v59  ;;  %5339 = vst [vmem:[#allocation3 + $0x270] sm:$0xf] %v10074_v59  ;;  %v13504_v13 = vld [vmem:[#allocation15_spill] sm:$0xff]  ;;  %7865 = vmatprep.mubr.bf16.mxu1 %v11801_v41  ;;  %v4989_v4 = vld [vmem:[#allocation2 + $0xe2] sm:$0xff] }
 0x28c   : > { %v4229_v57 = vadd.f32 %v10679_v25, %v13504_v13  ;;  %4578 = vst [vmem:[#allocation2 + $0x139] sm:$0xff] %v4524_v37  ;;  %v11804_v48 = vld [vmem:[#allocation3 + $0x12c] ss:$36 sps:$4 sm:$0xff]   ;;  %4966 = vst [vmem:[#allocation3 + $0x3f4] sm:$0xf] %v10115_v54  ;;  %v4608_v49 = vld [vmem:[#allocation2 + $0x108] sm:$0xff]  ;;  %v10138_v46 = vpack.c.bf16 %v4989_v4, %v4989_v4  ;;  %v4548_v10 = vadd.f32 %v11334_v3, %v4387_v38  ;;  %v4542_v58 = vpop.f32.mrf.mxu0 }
 0x28d   : > { %v4988_v60 = vld [vmem:[#allocation2 + $0xda] sm:$0xff]  ;;  %4581 = vst [vmem:[#allocation2 + $0x159] sm:$0xff] %v4535_v28  ;;  %8018 = vmatprep.mubr.bf16.mxu0 %v11804_v48  ;;  %v10077_v20 = vpack.c.bf16 %v4608_v49, %v4608_v49  ;;  %v4611_v21 = vld [vmem:[#allocation2 + $0x128] sm:$0xff]  ;;  %4964 = vst [vmem:[#allocation3 + $0x3ac] sm:$0xf] %v10113_v29  ;;  %v10114_v24 = vpack.c.bf16 %v4527_v53, %v4527_v53  ;;  %v4540_v23 = vadd.f32 %v4539_v36, %v4379_v30 }
 0x28e   : > { %v10137_v12 = vpack.c.bf16 %v4988_v60, %v4988_v60  ;;  %v4610_v44 = vld [vmem:[#allocation2 + $0x120] sm:$0xff]  ;;  %v4995_v7 = vld [vmem:[#allocation2 + $0x12a] sm:$0xff]  ;;  %v10080_v16 = vpack.c.bf16 %v4611_v21, %v4611_v21  ;;  %4579 = vst [vmem:[#allocation2 + $0x141] sm:$0xff] %v4527_v53  ;;  %5149 = vst [vmem:[#allocation3 + $0x2b4] sm:$0xf] %v10138_v46  ;;  %v4390_v33 = vadd.f32 %v10791_v8, %v4229_v57 }
 0x28f   : > { %v10079_v11 = vpack.c.bf16 %v4610_v44, %v4610_v44  ;;  %v4994_v27 = vld [vmem:[#allocation2 + $0x122] sm:$0xff]  ;;  %v4609_v51 = vld [vmem:[#allocation2 + $0x110] sm:$0xff]  ;;  %v10144_v22 = vpack.c.bf16 %v4995_v7, %v4995_v7  ;;  %4768 = vst [vmem:[#allocation3 + $0x318] sm:$0xf] %v10077_v20  ;;  %5342 = vst [vmem:[#allocation3 + $0x2dc] sm:$0xf] %v10077_v20  ;;  %v10117_v35 = vpack.c.bf16 %v4540_v23, %v4540_v23 }
 0x290   : > { %5148 = vst [vmem:[#allocation3 + $0x290] sm:$0xf] %v10137_v12  ;;  %v10143_v39 = vpack.c.bf16 %v4994_v27, %v4994_v27  ;;  %v10078_v17 = vpack.c.bf16 %v4609_v51, %v4609_v51  ;;  %4771 = vst [vmem:[#allocation3 + $0x384] sm:$0xf] %v10080_v16  ;;  %v4992_v9 = vld [vmem:[#allocation2 + $0x10a] sm:$0xff]  ;;  %v4993_v55 = vld [vmem:[#allocation2 + $0x112] sm:$0xff]  ;;  %v4551_v61 = vadd.f32 %v11335_v31, %v4390_v33 }
 0x291   : > { %4770 = vst [vmem:[#allocation3 + $0x360] sm:$0xf] %v10079_v11  ;;  %5344 = vst [vmem:[#allocation3 + $0x324] sm:$0xf] %v10079_v11  ;;  %v4614_v47 = vld [vmem:[#allocation2 + $0x150] sm:$0xff]  ;;  %v10141_v63 = vpack.c.bf16 %v4992_v9, %v4992_v9  ;;  %v10142_v32 = vpack.c.bf16 %v4993_v55, %v4993_v55  ;;  %v11895_v5 = vld [vmem:[#allocation9 + $0x238] sm:$0xff]  }
 0x292   : > { %5345 = vst [vmem:[#allocation3 + $0x348] sm:$0xf] %v10080_v16  ;;  %5154 = vst [vmem:[#allocation3 + $0x368] sm:$0xf] %v10143_v39  ;;  %v11799_v45 = vld [vmem:[#allocation3 + $0x168] ss:$36 sps:$4 sm:$0xff]   ;;  %v10083_v43 = vpack.c.bf16 %v4614_v47, %v4614_v47  ;;  %11336 = vmatprep.subr.bf16.mxu1 %v11895_v5 }
 0x293   : > { %5155 = vst [vmem:[#allocation3 + $0x38c] sm:$0xf] %v10144_v22  ;;  %4967 = vst [vmem:[#allocation3 + $0x418] sm:$0xf] %v10116_v6  ;;  %v11802_v25 = vld [vmem:[#allocation3 + $0x128] ss:$36 sps:$4 sm:$0xff]   ;;  %7866 = vmatmul.mubr.bf16.gmra.mxu1 %v11799_v45 }
 0x294   : > { %4584 = vst [vmem:[#allocation2 + $0x181] sm:$0xff] %v4548_v10  ;;  %4769 = vst [vmem:[#allocation3 + $0x33c] sm:$0xf] %v10078_v17  ;;  %v11808_v26 = vld [vmem:[#allocation3 + $0x1b4] ss:$36 sps:$4 sm:$0xff]   ;;  %v13505_v1 = vld [vmem:[#allocation42_spill] sm:$0xff]  ;;  %8019 = vmatmul.mubr.bf16.gmra.mxu0 %v11802_v25 }
 0x295   : > { %5343 = vst [vmem:[#allocation3 + $0x300] sm:$0xf] %v10078_v17  ;;  %4965 = vst [vmem:[#allocation3 + $0x3d0] sm:$0xf] %v10114_v24  ;;  %v4382_v50 = vadd.f32 %v10785_v56, %v13505_v1  ;;  %v11811_v19 = vld [vmem:[#allocation3 + $0x174] ss:$36 sps:$4 sm:$0xff]   ;;  %7873 = vmatprep.mubr.bf16.mxu1 %v11808_v26 }
 0x296   : > { %4582 = vst [vmem:[#allocation2 + $0x169] sm:$0xff] %v4540_v23  ;;  %5152 = vst [vmem:[#allocation3 + $0x320] sm:$0xf] %v10141_v63  ;;  %v4612_v14 = vld [vmem:[#allocation2 + $0x138] sm:$0xff]  ;;  %8026 = vmatprep.mubr.bf16.mxu0 %v11811_v19  ;;  %v11806_v62 = vld [vmem:[#allocation3 + $0x1b0] ss:$36 sps:$4 sm:$0xff]  }
 0x297   : > { %5153 = vst [vmem:[#allocation3 + $0x344] sm:$0xf] %v10142_v32  ;;  %4774 = vst [vmem:[#allocation3 + $0x3f0] sm:$0xf] %v10083_v43  ;;  %v10081_v15 = vpack.c.bf16 %v4612_v14, %v4612_v14  ;;  %v4615_v59 = vld [vmem:[#allocation2 + $0x158] sm:$0xff]  ;;  %v4543_v18 = vadd.f32 %v4542_v58, %v4382_v50  ;;  %v4613_v13 = vld [vmem:[#allocation2 + $0x140] sm:$0xff]  ;;  %v10832_v32 = vpop.f32.mrf.mxu1 }
 0x298   : > { %5348 = vst [vmem:[#allocation3 + $0x3b4] sm:$0xf] %v10083_v43  ;;  %v4998_v34 = vld [vmem:[#allocation2 + $0x152] sm:$0xff]  ;;  %v4999_v52 = vld [vmem:[#allocation2 + $0x15a] sm:$0xff]  ;;  %4585 = vst [vmem:[#allocation2 + $0x189] sm:$0xff] %v4551_v61  ;;  %v10084_v37 = vpack.c.bf16 %v4615_v59, %v4615_v59  ;;  %v10082_v57 = vpack.c.bf16 %v4613_v13, %v4613_v13 }
 0x299   : > { %4968 = vst [vmem:[#allocation3 + $0x43c] sm:$0xf] %v10117_v35  ;;  %v10147_v42 = vpack.c.bf16 %v4998_v34, %v4998_v34  ;;  %v10148_v54 = vpack.c.bf16 %v4999_v52, %v4999_v52  ;;  %4772 = vst [vmem:[#allocation3 + $0x3a8] sm:$0xf] %v10081_v15  ;;  %v10118_v0 = vpack.c.bf16 %v4543_v18, %v4543_v18  ;;  %v11809_v41 = vld [vmem:[#allocation3 + $0x170] ss:$36 sps:$4 sm:$0xff]   ;;  %v10833_v25 = vpop.f32.mrf.mxu1 }
 0x29a   : > { %5346 = vst [vmem:[#allocation3 + $0x36c] sm:$0xf] %v10081_v15  ;;  %4583 = vst [vmem:[#allocation2 + $0x171] sm:$0xff] %v4543_v18  ;;  %v11815_v40 = vld [vmem:[#allocation3 + $0x1fc] ss:$36 sps:$4 sm:$0xff]   ;;  %v4996_v28 = vld [vmem:[#allocation2 + $0x13a] sm:$0xff]  ;;  %v12934_v31 = vadd.f32 %v10833_v25, %v10832_v32 }
 0x29b   : > { %4775 = vst [vmem:[#allocation3 + $0x414] sm:$0xf] %v10084_v37  ;;  %5349 = vst [vmem:[#allocation3 + $0x3d8] sm:$0xf] %v10084_v37  ;;  %7874 = vmatmul.mubr.bf16.gmra.mxu1 %v11806_v62  ;;  %v11818_v30 = vld [vmem:[#allocation3 + $0x1bc] ss:$36 sps:$4 sm:$0xff]   ;;  %v10145_v48 = vpack.c.bf16 %v4996_v28, %v4996_v28 }
 0x29c   : > { %5158 = vst [vmem:[#allocation3 + $0x3f8] sm:$0xf] %v10147_v42  ;;  %5159 = vst [vmem:[#allocation3 + $0x41c] sm:$0xf] %v10148_v54  ;;  %8027 = vmatmul.mubr.bf16.gmra.mxu0 %v11809_v41  ;;  %7881 = vmatprep.mubr.bf16.mxu1 %v11815_v40  ;;  %v4997_v60 = vld [vmem:[#allocation2 + $0x142] sm:$0xff]  ;;  %v11899_v51 = vld [vmem:[#allocation9 + $0x188] sm:$0xff]  }
 0x29d   : > { %4969 = vst [vmem:[#allocation3 + $0x460] sm:$0xf] %v10118_v0  ;;  %8034 = vmatprep.mubr.bf16.mxu0 %v11818_v30  ;;  %4773 = vst [vmem:[#allocation3 + $0x3cc] sm:$0xf] %v10082_v57  ;;  %v4616_v29 = vld [vmem:[#allocation2 + $0x168] sm:$0xff]  ;;  %v10146_v38 = vpack.c.bf16 %v4997_v60, %v4997_v60  ;;  %v5192_v53 = vld [vmem:[#allocation2 + $0x180] sm:$0xff]  ;;  %11165 = vmatpush3.bf16.msra.mxu0 %v11899_v51 }
 0x29e   : > { %5347 = vst [vmem:[#allocation3 + $0x390] sm:$0xf] %v10082_v57  ;;  %v11822_v2 = vld [vmem:[#allocation3 + $0x244] ss:$36 sps:$4 sm:$0xff]   ;;  %5156 = vst [vmem:[#allocation3 + $0x3b0] sm:$0xf] %v10145_v48  ;;  %v10085_v4 = vpack.c.bf16 %v4616_v29, %v4616_v29  ;;  %v10181_v27 = vpack.c.bf16 %v5192_v53, %v5192_v53 }
 0x29f   : > { %v11813_v46 = vld [vmem:[#allocation3 + $0x1f8] ss:$36 sps:$4 sm:$0xff]   ;;  %5157 = vst [vmem:[#allocation3 + $0x3d4] sm:$0xf] %v10146_v38  ;;  %v11825_v16 = vld [vmem:[#allocation3 + $0x204] ss:$36 sps:$4 sm:$0xff]  }
 0x2a0   : > { %v5193_v11 = vld [vmem:[#allocation2 + $0x188] sm:$0xff]  ;;  %4776 = vst [vmem:[#allocation3 + $0x438] sm:$0xf] %v10085_v4  ;;  %5350 = vst [vmem:[#allocation3 + $0x3fc] sm:$0xf] %v10085_v4  ;;  %v11903_v39 = vld [vmem:[#allocation9 + $0x1c0] sm:$0xff]  }
 0x2a1   : > { %v4617_v8 = vld [vmem:[#allocation2 + $0x170] sm:$0xff]  ;;  %v11816_v7 = vld [vmem:[#allocation3 + $0x1b8] ss:$36 sps:$4 sm:$0xff]   ;;  %v10182_v3 = vpack.c.bf16 %v5193_v11, %v5193_v11  ;;  %5352 = vst [vmem:[#allocation3 + $0x444] sm:$0xf] %v10181_v27  ;;  %11166 = vmatprep.subr.bf16.mxu0 %v11903_v39  ;;  %v5742_v58 = vld [vmem:[#allocation2 + $0x60] sm:$0xff] }
 0x2a2   : > { %v10086_v12 = vpack.c.bf16 %v4617_v8, %v4617_v8  ;;  %v5000_v49 = vld [vmem:[#allocation2 + $0x16a] sm:$0xff]  ;;  %v5001_v44 = vld [vmem:[#allocation2 + $0x172] sm:$0xff]  ;;  %v11831_v63 = vld [vmem:[#allocation3 + $0x28c] ss:$36 sps:$4 sm:$0xff]   ;;  %v10251_v34 = vpack.c.bf16 %v5742_v58, %v5742_v58 }
 0x2a3   : > { %v10149_v20 = vpack.c.bf16 %v5000_v49, %v5000_v49  ;;  %v10150_v21 = vpack.c.bf16 %v5001_v44, %v5001_v44  ;;  %7882 = vmatmul.mubr.bf16.gmra.mxu1 %v11813_v46  ;;  %5353 = vst [vmem:[#allocation3 + $0x468] sm:$0xf] %v10182_v3  ;;  %v11904_v22 = vld [vmem:[#allocation9 + $0x180] sm:$0xff]   ;;  %v11834_v43 = vld [vmem:[#allocation3 + $0x24c] ss:$36 sps:$4 sm:$0xff]   ;;  %v5743_v15 = vld [vmem:[#allocation2 + $0x68] sm:$0xff] }
 0x2a4   : > { %4777 = vst [vmem:[#allocation3 + $0x45c] sm:$0xf] %v10086_v12  ;;  %5351 = vst [vmem:[#allocation3 + $0x420] sm:$0xf] %v10086_v12  ;;  %8035 = vmatmul.mubr.bf16.gmra.mxu0 %v11816_v7  ;;  %7889 = vmatprep.mubr.bf16.mxu1 %v11822_v2  ;;  %v5359_v6 = vld [vmem:[#allocation2 + $0x51] sm:$0xff]  ;;  %v5361_v55 = vld [vmem:[#allocation2 + $0x69] sm:$0xff]  ;;  %v10252_v52 = vpack.c.bf16 %v5743_v15, %v5743_v15 }
 0x2a5   : > { %5160 = vst [vmem:[#allocation3 + $0x440] sm:$0xf] %v10149_v20  ;;  %5161 = vst [vmem:[#allocation3 + $0x464] sm:$0xf] %v10150_v21  ;;  %v5550_v56 = vld [vmem:[#allocation2 + $0x4a] sm:$0xff]  ;;  %8042 = vmatprep.mubr.bf16.mxu0 %v11825_v16  ;;  %v10188_v10 = vpack.c.bf16 %v5359_v6, %v5359_v6  ;;  %v5551_v17 = vld [vmem:[#allocation2 + $0x52] sm:$0xff]  ;;  %11167 = vmatpush3.bf16.msra.mxu0 %v11904_v22  ;;  %v10190_v23 = vpack.c.bf16 %v5361_v55, %v5361_v55 }
 0x2a6   : > { %v10219_v24 = vpack.c.bf16 %v5550_v56, %v5550_v56  ;;  %v5741_v36 = vld [vmem:[#allocation2 + $0x50] sm:$0xff]  ;;  %v10220_v33 = vpack.c.bf16 %v5551_v17, %v5551_v17  ;;  %v5552_v26 = vld [vmem:[#allocation2 + $0x62] sm:$0xff]  ;;  %v11829_v19 = vld [vmem:[#allocation3 + $0x288] ss:$36 sps:$4 sm:$0xff]   ;;  %5902 = vst [vmem:[#allocation3 + $0xa8] sm:$0xf] %v10251_v34 }
 0x2a7   : > { %v10250_v9 = vpack.c.bf16 %v5741_v36, %v5741_v36  ;;  %5519 = vst [vmem:[#allocation3 + $0xc4] sm:$0xf] %v10188_v10  ;;  %6093 = vst [vmem:[#allocation3 + $0x88] sm:$0xf] %v10188_v10  ;;  %v11820_v47 = vld [vmem:[#allocation3 + $0x240] ss:$36 sps:$4 sm:$0xff]   ;;  %v10221_v1 = vpack.c.bf16 %v5552_v26, %v5552_v26 }
 0x2a8   : > { %5710 = vst [vmem:[#allocation3 + $0xa4] sm:$0xf] %v10219_v24  ;;  %5711 = vst [vmem:[#allocation3 + $0xc8] sm:$0xf] %v10220_v33  ;;  %v11823_v45 = vld [vmem:[#allocation3 + $0x200] ss:$36 sps:$4 sm:$0xff]  }
 0x2a9   : > { %5901 = vst [vmem:[#allocation3 + $0x84] sm:$0xf] %v10250_v9  ;;  %5521 = vst [vmem:[#allocation3 + $0x10c] sm:$0xf] %v10190_v23  ;;  %v5553_v61 = vld [vmem:[#allocation2 + $0x6a] sm:$0xff]  ;;  %v5362_v59 = vld [vmem:[#allocation2 + $0x79] sm:$0xff] }
 0x2aa   : > { %6095 = vst [vmem:[#allocation3 + $0xd0] sm:$0xf] %v10190_v23  ;;  %v10222_v50 = vpack.c.bf16 %v5553_v61, %v5553_v61  ;;  %v11832_v14 = vld [vmem:[#allocation3 + $0x248] ss:$36 sps:$4 sm:$0xff]   ;;  %v11838_v35 = vld [vmem:[#allocation3 + $0x2d4] ss:$36 sps:$4 sm:$0xff]   ;;  %v10191_v37 = vpack.c.bf16 %v5362_v59, %v5362_v59 }
 0x2ab   : > { %7890 = vmatmul.mubr.bf16.gmra.mxu1 %v11820_v47  ;;  %5712 = vst [vmem:[#allocation3 + $0xec] sm:$0xf] %v10221_v1  ;;  %v5363_v18 = vld [vmem:[#allocation2 + $0x81] sm:$0xff]  ;;  %v5744_v40 = vld [vmem:[#allocation2 + $0x78] sm:$0xff]  ;;  %5903 = vst [vmem:[#allocation3 + $0xcc] sm:$0xf] %v10252_v52 }
 0x2ac   : > { %8043 = vmatmul.mubr.bf16.gmra.mxu0 %v11823_v45  ;;  %7897 = vmatprep.mubr.bf16.mxu1 %v11831_v63  ;;  %5713 = vst [vmem:[#allocation3 + $0x110] sm:$0xf] %v10222_v50  ;;  %v5554_v42 = vld [vmem:[#allocation2 + $0x7a] sm:$0xff]  ;;  %v5555_v54 = vld [vmem:[#allocation2 + $0x82] sm:$0xff]  ;;  %v10192_v0 = vpack.c.bf16 %v5363_v18, %v5363_v18  ;;  %5522 = vst [vmem:[#allocation3 + $0x130] sm:$0xf] %v10191_v37  ;;  %v10253_v13 = vpack.c.bf16 %v5744_v40, %v5744_v40 }
 0x2ad   : > { %8050 = vmatprep.mubr.bf16.mxu0 %v11834_v43  ;;  %v11841_v5 = vld [vmem:[#allocation3 + $0x294] ss:$36 sps:$4 sm:$0xff]   ;;  %v10223_v62 = vpack.c.bf16 %v5554_v42, %v5554_v42  ;;  %v10224_v41 = vpack.c.bf16 %v5555_v54, %v5555_v54  ;;  %6096 = vst [vmem:[#allocation3 + $0xf4] sm:$0xf] %v10191_v37  ;;  %v5364_v28 = vld [vmem:[#allocation2 + $0x91] sm:$0xff]  ;;  %v5365_v48 = vld [vmem:[#allocation2 + $0x99] sm:$0xff] }
 0x2ae   : > { %v5745_v30 = vld [vmem:[#allocation2 + $0x80] sm:$0xff]  ;;  %v5556_v60 = vld [vmem:[#allocation2 + $0x92] sm:$0xff]  ;;  %5523 = vst [vmem:[#allocation3 + $0x154] sm:$0xf] %v10192_v0  ;;  %6097 = vst [vmem:[#allocation3 + $0x118] sm:$0xf] %v10192_v0  ;;  %v10193_v29 = vpack.c.bf16 %v5364_v28, %v5364_v28  ;;  %v10194_v8 = vpack.c.bf16 %v5365_v48, %v5365_v48 }
 0x2af   : > { %v10254_v57 = vpack.c.bf16 %v5745_v30, %v5745_v30  ;;  %5714 = vst [vmem:[#allocation3 + $0x134] sm:$0xf] %v10223_v62  ;;  %5715 = vst [vmem:[#allocation3 + $0x158] sm:$0xf] %v10224_v41  ;;  %v5557_v2 = vld [vmem:[#allocation2 + $0x9a] sm:$0xff]  ;;  %v10225_v38 = vpack.c.bf16 %v5556_v60, %v5556_v60  ;;  %v5746_v4 = vld [vmem:[#allocation2 + $0x90] sm:$0xff] }
 0x2b0   : > { %v5747_v12 = vld [vmem:[#allocation2 + $0x98] sm:$0xff]  ;;  %5904 = vst [vmem:[#allocation3 + $0xf0] sm:$0xf] %v10253_v13  ;;  %v10226_v49 = vpack.c.bf16 %v5557_v2, %v5557_v2  ;;  %v10255_v44 = vpack.c.bf16 %v5746_v4, %v5746_v4  ;;  %v5366_v46 = vld [vmem:[#allocation2 + $0xa9] sm:$0xff]  ;;  %5524 = vst [vmem:[#allocation3 + $0x178] sm:$0xf] %v10193_v29 }
 0x2b1   : > { %5905 = vst [vmem:[#allocation3 + $0x114] sm:$0xf] %v10254_v57  ;;  %v10256_v53 = vpack.c.bf16 %v5747_v12, %v5747_v12  ;;  %v5367_v20 = vld [vmem:[#allocation2 + $0xb1] sm:$0xff]  ;;  %5525 = vst [vmem:[#allocation3 + $0x19c] sm:$0xf] %v10194_v8  ;;  %v10195_v11 = vpack.c.bf16 %v5366_v46, %v5366_v46  ;;  %v5748_v51 = vld [vmem:[#allocation2 + $0xa8] sm:$0xff] }
 0x2b2   : > { %v5558_v21 = vld [vmem:[#allocation2 + $0xaa] sm:$0xff]  ;;  %5716 = vst [vmem:[#allocation3 + $0x17c] sm:$0xf] %v10225_v38  ;;  %6098 = vst [vmem:[#allocation3 + $0x13c] sm:$0xf] %v10193_v29  ;;  %v10196_v27 = vpack.c.bf16 %v5367_v20, %v5367_v20  ;;  %v5559_v7 = vld [vmem:[#allocation2 + $0xb2] sm:$0xff]  ;;  %v10257_v6 = vpack.c.bf16 %v5748_v51, %v5748_v51 }
 0x2b3   : > { %7898 = vmatmul.mubr.bf16.gmra.mxu1 %v11829_v19  ;;  %6099 = vst [vmem:[#allocation3 + $0x160] sm:$0xf] %v10194_v8  ;;  %v10227_v3 = vpack.c.bf16 %v5558_v21, %v5558_v21  ;;  %v5749_v16 = vld [vmem:[#allocation2 + $0xb0] sm:$0xff]  ;;  %v11836_v39 = vld [vmem:[#allocation3 + $0x2d0] ss:$36 sps:$4 sm:$0xff]   ;;  %v10228_v22 = vpack.c.bf16 %v5559_v7, %v5559_v7  ;;  %v5751_v1 = vld [vmem:[#allocation2 + $0xc8] sm:$0xff] }
 0x2b4   : > { %8051 = vmatmul.mubr.bf16.gmra.mxu0 %v11832_v14  ;;  %7905 = vmatprep.mubr.bf16.mxu1 %v11838_v35  ;;  %5717 = vst [vmem:[#allocation3 + $0x1a0] sm:$0xf] %v10226_v49  ;;  %5906 = vst [vmem:[#allocation3 + $0x138] sm:$0xf] %v10255_v44  ;;  %v10258_v56 = vpack.c.bf16 %v5749_v16, %v5749_v16  ;;  %v11839_v10 = vld [vmem:[#allocation3 + $0x290] ss:$36 sps:$4 sm:$0xff]   ;;  %v10260_v58 = vpack.c.bf16 %v5751_v1, %v5751_v1 }
 0x2b5   : > { %8058 = vmatprep.mubr.bf16.mxu0 %v11841_v5  ;;  %5907 = vst [vmem:[#allocation3 + $0x15c] sm:$0xf] %v10256_v53  ;;  %v11847_v17 = vld [vmem:[#allocation3 + $0x31c] ss:$36 sps:$4 sm:$0xff]   ;;  %5526 = vst [vmem:[#allocation3 + $0x1c0] sm:$0xf] %v10195_v11 }
 0x2b6   : > { %5527 = vst [vmem:[#allocation3 + $0x1e4] sm:$0xf] %v10196_v27  ;;  %5718 = vst [vmem:[#allocation3 + $0x1c4] sm:$0xf] %v10227_v3  ;;  %v5368_v24 = vld [vmem:[#allocation2 + $0xc1] sm:$0xff]  ;;  %v5369_v36 = vld [vmem:[#allocation2 + $0xc9] sm:$0xff] }
 0x2b7   : > { %6100 = vst [vmem:[#allocation3 + $0x184] sm:$0xf] %v10195_v11  ;;  %6101 = vst [vmem:[#allocation3 + $0x1a8] sm:$0xf] %v10196_v27  ;;  %v10197_v33 = vpack.c.bf16 %v5368_v24, %v5368_v24  ;;  %v5560_v9 = vld [vmem:[#allocation2 + $0xc2] sm:$0xff]  ;;  %v5561_v55 = vld [vmem:[#allocation2 + $0xca] sm:$0xff]  ;;  %v10198_v45 = vpack.c.bf16 %v5369_v36, %v5369_v36 }
 0x2b8   : > { %5719 = vst [vmem:[#allocation3 + $0x1e8] sm:$0xf] %v10228_v22  ;;  %5908 = vst [vmem:[#allocation3 + $0x180] sm:$0xf] %v10257_v6  ;;  %v11850_v47 = vld [vmem:[#allocation3 + $0x2dc] ss:$36 sps:$4 sm:$0xff]   ;;  %v10229_v23 = vpack.c.bf16 %v5560_v9, %v5560_v9  ;;  %v10230_v63 = vpack.c.bf16 %v5561_v55, %v5561_v55 }
 0x2b9   : > { %5909 = vst [vmem:[#allocation3 + $0x1a4] sm:$0xf] %v10258_v56  ;;  %5528 = vst [vmem:[#allocation3 + $0x208] sm:$0xf] %v10197_v33  ;;  %v11845_v32 = vld [vmem:[#allocation3 + $0x318] ss:$36 sps:$4 sm:$0xff]  }
 0x2ba   : > { %6102 = vst [vmem:[#allocation3 + $0x1cc] sm:$0xf] %v10197_v33  ;;  %5529 = vst [vmem:[#allocation3 + $0x22c] sm:$0xf] %v10198_v45  ;;  %v11848_v43 = vld [vmem:[#allocation3 + $0x2d8] ss:$36 sps:$4 sm:$0xff]  }
 0x2bb   : > { %7906 = vmatmul.mubr.bf16.gmra.mxu1 %v11836_v39  ;;  %5720 = vst [vmem:[#allocation3 + $0x20c] sm:$0xf] %v10229_v23  ;;  %5721 = vst [vmem:[#allocation3 + $0x230] sm:$0xf] %v10230_v63  ;;  %v11854_v25 = vld [vmem:[#allocation3 + $0x364] ss:$36 sps:$4 sm:$0xff]  }
 0x2bc   : > { %8059 = vmatmul.mubr.bf16.gmra.mxu0 %v11839_v10  ;;  %7913 = vmatprep.mubr.bf16.mxu1 %v11847_v17  ;;  %6103 = vst [vmem:[#allocation3 + $0x1f0] sm:$0xf] %v10198_v45  ;;  %v11857_v26 = vld [vmem:[#allocation3 + $0x324] ss:$36 sps:$4 sm:$0xff]   ;;  %v5750_v61 = vld [vmem:[#allocation2 + $0xc0] sm:$0xff]  ;;  %v5374_v49 = vld [vmem:[#allocation2 + $0x109] sm:$0xff] }
 0x2bd   : > { %8066 = vmatprep.mubr.bf16.mxu0 %v11850_v47  ;;  %v10259_v50 = vpack.c.bf16 %v5750_v61, %v5750_v61  ;;  %v5370_v19 = vld [vmem:[#allocation2 + $0xd9] sm:$0xff]  ;;  %v5371_v14 = vld [vmem:[#allocation2 + $0xe1] sm:$0xff]  ;;  %v11852_v35 = vld [vmem:[#allocation3 + $0x360] ss:$36 sps:$4 sm:$0xff]   ;;  %5911 = vst [vmem:[#allocation3 + $0x1ec] sm:$0xf] %v10260_v58  ;;  %v10203_v46 = vpack.c.bf16 %v5374_v49, %v5374_v49 }
 0x2be   : > { %v10199_v15 = vpack.c.bf16 %v5370_v19, %v5370_v19  ;;  %v10200_v59 = vpack.c.bf16 %v5371_v14, %v5371_v14  ;;  %v5562_v34 = vld [vmem:[#allocation2 + $0xda] sm:$0xff]  ;;  %v5563_v52 = vld [vmem:[#allocation2 + $0xe2] sm:$0xff]  ;;  %v11855_v37 = vld [vmem:[#allocation3 + $0x320] ss:$36 sps:$4 sm:$0xff]  }
 0x2bf   : > { %v5752_v18 = vld [vmem:[#allocation2 + $0xd8] sm:$0xff]  ;;  %5910 = vst [vmem:[#allocation3 + $0x1c8] sm:$0xf] %v10259_v50  ;;  %v10231_v54 = vpack.c.bf16 %v5562_v34, %v5562_v34  ;;  %v10232_v5 = vpack.c.bf16 %v5563_v52, %v5563_v52  ;;  %v5753_v0 = vld [vmem:[#allocation2 + $0xe0] sm:$0xff]  ;;  %v5754_v8 = vld [vmem:[#allocation2 + $0xf0] sm:$0xff] }
 0x2c0   : > { %v11863_v42 = vld [vmem:[#allocation3 + $0x3ac] ss:$36 sps:$4 sm:$0xff]   ;;  %v10261_v62 = vpack.c.bf16 %v5752_v18, %v5752_v18  ;;  %5530 = vst [vmem:[#allocation3 + $0x250] sm:$0xf] %v10199_v15  ;;  %5531 = vst [vmem:[#allocation3 + $0x274] sm:$0xf] %v10200_v59  ;;  %v10262_v40 = vpack.c.bf16 %v5753_v0, %v5753_v0  ;;  %v10263_v4 = vpack.c.bf16 %v5754_v8, %v5754_v8 }
 0x2c1   : > { %v11866_v41 = vld [vmem:[#allocation3 + $0x36c] ss:$36 sps:$4 sm:$0xff]   ;;  %6104 = vst [vmem:[#allocation3 + $0x214] sm:$0xf] %v10199_v15  ;;  %6105 = vst [vmem:[#allocation3 + $0x238] sm:$0xf] %v10200_v59 }
 0x2c2   : > { %v5372_v30 = vld [vmem:[#allocation2 + $0xf1] sm:$0xff]  ;;  %v5373_v13 = vld [vmem:[#allocation2 + $0xf9] sm:$0xff]  ;;  %5722 = vst [vmem:[#allocation3 + $0x254] sm:$0xf] %v10231_v54  ;;  %5723 = vst [vmem:[#allocation3 + $0x278] sm:$0xf] %v10232_v5 }
 0x2c3   : > { %7914 = vmatmul.mubr.bf16.gmra.mxu1 %v11845_v32  ;;  %v5564_v57 = vld [vmem:[#allocation2 + $0xf2] sm:$0xff]  ;;  %5912 = vst [vmem:[#allocation3 + $0x210] sm:$0xf] %v10261_v62  ;;  %v10201_v28 = vpack.c.bf16 %v5372_v30, %v5372_v30  ;;  %v10202_v48 = vpack.c.bf16 %v5373_v13, %v5373_v13  ;;  %v5565_v60 = vld [vmem:[#allocation2 + $0xfa] sm:$0xff]  ;;  %5913 = vst [vmem:[#allocation3 + $0x234] sm:$0xf] %v10262_v40 }
 0x2c4   : > { %8067 = vmatmul.mubr.bf16.gmra.mxu0 %v11848_v43  ;;  %7921 = vmatprep.mubr.bf16.mxu1 %v11854_v25  ;;  %v10233_v29 = vpack.c.bf16 %v5564_v57, %v5564_v57  ;;  %v5755_v2 = vld [vmem:[#allocation2 + $0xf8] sm:$0xff]  ;;  %v10234_v38 = vpack.c.bf16 %v5565_v60, %v5565_v60  ;;  %v5566_v53 = vld [vmem:[#allocation2 + $0x10a] sm:$0xff]  ;;  %5914 = vst [vmem:[#allocation3 + $0x258] sm:$0xf] %v10263_v4  ;;  %v5376_v39 = vld [vmem:[#allocation2 + $0x121] sm:$0xff] }
 0x2c5   : > { %8074 = vmatprep.mubr.bf16.mxu0 %v11857_v26  ;;  %v10264_v12 = vpack.c.bf16 %v5755_v2, %v5755_v2  ;;  %v5375_v44 = vld [vmem:[#allocation2 + $0x111] sm:$0xff]  ;;  %5532 = vst [vmem:[#allocation3 + $0x298] sm:$0xf] %v10201_v28  ;;  %5533 = vst [vmem:[#allocation3 + $0x2bc] sm:$0xf] %v10202_v48  ;;  %v10235_v11 = vpack.c.bf16 %v5566_v53, %v5566_v53  ;;  %v5756_v27 = vld [vmem:[#allocation2 + $0x108] sm:$0xff]  ;;  %v10205_v6 = vpack.c.bf16 %v5376_v39, %v5376_v39 }
 0x2c6   : > { %5724 = vst [vmem:[#allocation3 + $0x29c] sm:$0xf] %v10233_v29  ;;  %6106 = vst [vmem:[#allocation3 + $0x25c] sm:$0xf] %v10201_v28  ;;  %v10204_v20 = vpack.c.bf16 %v5375_v44, %v5375_v44  ;;  %v5567_v21 = vld [vmem:[#allocation2 + $0x112] sm:$0xff]  ;;  %v10265_v51 = vpack.c.bf16 %v5756_v27, %v5756_v27  ;;  %v5377_v22 = vld [vmem:[#allocation2 + $0x129] sm:$0xff] }
 0x2c7   : > { %6107 = vst [vmem:[#allocation3 + $0x280] sm:$0xf] %v10202_v48  ;;  %v5757_v7 = vld [vmem:[#allocation2 + $0x110] sm:$0xff]  ;;  %6298 = vst [vmem:[#allocation3 + $0x260] sm:$0xf] %v10233_v29  ;;  %v10236_v3 = vpack.c.bf16 %v5567_v21, %v5567_v21  ;;  %v10206_v56 = vpack.c.bf16 %v5377_v22, %v5377_v22  ;;  %v5568_v10 = vld [vmem:[#allocation2 + $0x122] sm:$0xff] }
 0x2c8   : > { %5725 = vst [vmem:[#allocation3 + $0x2c0] sm:$0xf] %v10234_v38  ;;  %5915 = vst [vmem:[#allocation3 + $0x27c] sm:$0xf] %v10264_v12  ;;  %v10266_v16 = vpack.c.bf16 %v5757_v7, %v5757_v7  ;;  %v5569_v17 = vld [vmem:[#allocation2 + $0x12a] sm:$0xff]  ;;  %v5758_v24 = vld [vmem:[#allocation2 + $0x120] sm:$0xff]  ;;  %v10237_v36 = vpack.c.bf16 %v5568_v10, %v5568_v10 }
 0x2c9   : > { %6299 = vst [vmem:[#allocation3 + $0x284] sm:$0xf] %v10234_v38  ;;  %5534 = vst [vmem:[#allocation3 + $0x2e0] sm:$0xf] %v10203_v46  ;;  %v10238_v33 = vpack.c.bf16 %v5569_v17, %v5569_v17  ;;  %v5759_v9 = vld [vmem:[#allocation2 + $0x128] sm:$0xff]  ;;  %v10267_v55 = vpack.c.bf16 %v5758_v24, %v5758_v24  ;;  %v5378_v47 = vld [vmem:[#allocation2 + $0x139] sm:$0xff] }
 0x2ca   : > { %5535 = vst [vmem:[#allocation3 + $0x304] sm:$0xf] %v10204_v20  ;;  %5726 = vst [vmem:[#allocation3 + $0x2e4] sm:$0xf] %v10235_v11  ;;  %v11870_v45 = vld [vmem:[#allocation3 + $0x3f4] ss:$36 sps:$4 sm:$0xff]   ;;  %v10268_v23 = vpack.c.bf16 %v5759_v9, %v5759_v9  ;;  %v10207_v63 = vpack.c.bf16 %v5378_v47, %v5378_v47 }
 0x2cb   : > { %7922 = vmatmul.mubr.bf16.gmra.mxu1 %v11852_v35  ;;  %6108 = vst [vmem:[#allocation3 + $0x2a4] sm:$0xf] %v10203_v46  ;;  %6109 = vst [vmem:[#allocation3 + $0x2c8] sm:$0xf] %v10204_v20  ;;  %v11861_v32 = vld [vmem:[#allocation3 + $0x3a8] ss:$36 sps:$4 sm:$0xff]  }
 0x2cc   : > { %8075 = vmatmul.mubr.bf16.gmra.mxu0 %v11855_v37  ;;  %7929 = vmatprep.mubr.bf16.mxu1 %v11863_v42  ;;  %6300 = vst [vmem:[#allocation3 + $0x2a8] sm:$0xf] %v10235_v11  ;;  %5727 = vst [vmem:[#allocation3 + $0x308] sm:$0xf] %v10236_v3  ;;  %v11864_v43 = vld [vmem:[#allocation3 + $0x368] ss:$36 sps:$4 sm:$0xff]  }
 0x2cd   : > { %8082 = vmatprep.mubr.bf16.mxu0 %v11866_v41  ;;  %5916 = vst [vmem:[#allocation3 + $0x2a0] sm:$0xf] %v10265_v51  ;;  %5917 = vst [vmem:[#allocation3 + $0x2c4] sm:$0xf] %v10266_v16  ;;  %v11873_v25 = vld [vmem:[#allocation3 + $0x3b4] ss:$36 sps:$4 sm:$0xff]  }
 0x2ce   : > { %6301 = vst [vmem:[#allocation3 + $0x2cc] sm:$0xf] %v10236_v3  ;;  %5536 = vst [vmem:[#allocation3 + $0x328] sm:$0xf] %v10205_v6  ;;  %v11868_v26 = vld [vmem:[#allocation3 + $0x3f0] ss:$36 sps:$4 sm:$0xff]  }
 0x2cf   : > { %5537 = vst [vmem:[#allocation3 + $0x34c] sm:$0xf] %v10206_v56  ;;  %6110 = vst [vmem:[#allocation3 + $0x2ec] sm:$0xf] %v10205_v6  ;;  %v11871_v61 = vld [vmem:[#allocation3 + $0x3b0] ss:$36 sps:$4 sm:$0xff]  }
 0x2d0   : > { %6111 = vst [vmem:[#allocation3 + $0x310] sm:$0xf] %v10206_v56  ;;  %5728 = vst [vmem:[#allocation3 + $0x32c] sm:$0xf] %v10237_v36  ;;  %v11879_v1 = vld [vmem:[#allocation3 + $0x43c] ss:$36 sps:$4 sm:$0xff]  }
 0x2d1   : > { %5729 = vst [vmem:[#allocation3 + $0x350] sm:$0xf] %v10238_v33  ;;  %5918 = vst [vmem:[#allocation3 + $0x2e8] sm:$0xf] %v10267_v55  ;;  %v11882_v50 = vld [vmem:[#allocation3 + $0x3fc] ss:$36 sps:$4 sm:$0xff]  }
 0x2d2   : > { %6302 = vst [vmem:[#allocation3 + $0x2f0] sm:$0xf] %v10237_v36  ;;  %6303 = vst [vmem:[#allocation3 + $0x314] sm:$0xf] %v10238_v33  ;;  %v5379_v19 = vld [vmem:[#allocation2 + $0x141] sm:$0xff]  ;;  %v5760_v15 = vld [vmem:[#allocation2 + $0x138] sm:$0xff] }
 0x2d3   : > { %5919 = vst [vmem:[#allocation3 + $0x30c] sm:$0xf] %v10268_v23  ;;  %5538 = vst [vmem:[#allocation3 + $0x370] sm:$0xf] %v10207_v63  ;;  %7930 = vmatmul.mubr.bf16.gmra.mxu1 %v11861_v32  ;;  %v10208_v14 = vpack.c.bf16 %v5379_v19, %v5379_v19  ;;  %v5570_v35 = vld [vmem:[#allocation2 + $0x13a] sm:$0xff]  ;;  %v5571_v58 = vld [vmem:[#allocation2 + $0x142] sm:$0xff]  ;;  %v10269_v18 = vpack.c.bf16 %v5760_v15, %v5760_v15 }
 0x2d4   : > { %6112 = vst [vmem:[#allocation3 + $0x334] sm:$0xf] %v10207_v63  ;;  %8083 = vmatmul.mubr.bf16.gmra.mxu0 %v11864_v43  ;;  %7937 = vmatprep.mubr.bf16.mxu1 %v11870_v45  ;;  %v10239_v59 = vpack.c.bf16 %v5570_v35, %v5570_v35  ;;  %v10240_v34 = vpack.c.bf16 %v5571_v58, %v5571_v58  ;;  %v5761_v52 = vld [vmem:[#allocation2 + $0x140] sm:$0xff]  ;;  %v5380_v37 = vld [vmem:[#allocation2 + $0x151] sm:$0xff]  ;;  %v11877_v41 = vld [vmem:[#allocation3 + $0x438] ss:$36 sps:$4 sm:$0xff]  }
 0x2d5   : > { %8090 = vmatprep.mubr.bf16.mxu0 %v11873_v25  ;;  %5539 = vst [vmem:[#allocation3 + $0x394] sm:$0xf] %v10208_v14  ;;  %v10270_v42 = vpack.c.bf16 %v5761_v52, %v5761_v52  ;;  %6113 = vst [vmem:[#allocation3 + $0x358] sm:$0xf] %v10208_v14  ;;  %v5381_v54 = vld [vmem:[#allocation2 + $0x159] sm:$0xff]  ;;  %v10209_v5 = vpack.c.bf16 %v5380_v37, %v5380_v37  ;;  %v5762_v57 = vld [vmem:[#allocation2 + $0x150] sm:$0xff] }
 0x2d6   : > { %v5572_v0 = vld [vmem:[#allocation2 + $0x152] sm:$0xff]  ;;  %v5573_v62 = vld [vmem:[#allocation2 + $0x15a] sm:$0xff]  ;;  %5730 = vst [vmem:[#allocation3 + $0x374] sm:$0xf] %v10239_v59  ;;  %5731 = vst [vmem:[#allocation3 + $0x398] sm:$0xf] %v10240_v34  ;;  %v10210_v40 = vpack.c.bf16 %v5381_v54, %v5381_v54  ;;  %v10271_v8 = vpack.c.bf16 %v5762_v57, %v5762_v57 }
 0x2d7   : > { %5920 = vst [vmem:[#allocation3 + $0x330] sm:$0xf] %v10269_v18  ;;  %v10241_v30 = vpack.c.bf16 %v5572_v0, %v5572_v0  ;;  %v10242_v13 = vpack.c.bf16 %v5573_v62, %v5573_v62  ;;  %v5763_v28 = vld [vmem:[#allocation2 + $0x158] sm:$0xff]  ;;  %v5382_v48 = vld [vmem:[#allocation2 + $0x169] sm:$0xff]  ;;  %6304 = vst [vmem:[#allocation3 + $0x338] sm:$0xf] %v10239_v59 }
 0x2d8   : > { %6305 = vst [vmem:[#allocation3 + $0x35c] sm:$0xf] %v10240_v34  ;;  %v11880_v60 = vld [vmem:[#allocation3 + $0x3f8] ss:$36 sps:$4 sm:$0xff]   ;;  %5921 = vst [vmem:[#allocation3 + $0x354] sm:$0xf] %v10270_v42  ;;  %v10272_v2 = vpack.c.bf16 %v5763_v28, %v5763_v28  ;;  %v10211_v4 = vpack.c.bf16 %v5382_v48, %v5382_v48 }
 0x2d9   : > { %v11890_v29 = vld [vmem:[#allocation3 + $0x14] ss:$36 sps:$4 sm:$0xff]   ;;  %5540 = vst [vmem:[#allocation3 + $0x3b8] sm:$0xf] %v10209_v5  ;;  %6114 = vst [vmem:[#allocation3 + $0x37c] sm:$0xf] %v10209_v5 }
 0x2da   : > { %v5383_v38 = vld [vmem:[#allocation2 + $0x171] sm:$0xff]  ;;  %5541 = vst [vmem:[#allocation3 + $0x3dc] sm:$0xf] %v10210_v40  ;;  %5732 = vst [vmem:[#allocation3 + $0x3bc] sm:$0xf] %v10241_v30  ;;  %v5764_v21 = vld [vmem:[#allocation2 + $0x168] sm:$0xff] }
 0x2db   : > { %7938 = vmatmul.mubr.bf16.gmra.mxu1 %v11868_v26  ;;  %v5574_v12 = vld [vmem:[#allocation2 + $0x16a] sm:$0xff]  ;;  %v5575_v49 = vld [vmem:[#allocation2 + $0x172] sm:$0xff]  ;;  %5733 = vst [vmem:[#allocation3 + $0x3e0] sm:$0xf] %v10242_v13  ;;  %6115 = vst [vmem:[#allocation3 + $0x3a0] sm:$0xf] %v10210_v40  ;;  %v10212_v53 = vpack.c.bf16 %v5383_v38, %v5383_v38  ;;  %v10273_v27 = vpack.c.bf16 %v5764_v21, %v5764_v21 }
 0x2dc   : > { %8091 = vmatmul.mubr.bf16.gmra.mxu0 %v11871_v61  ;;  %7945 = vmatprep.mubr.bf16.mxu1 %v11879_v1  ;;  %v11887_v44 = vld [vmem:[#allocation3 + $0x444] ss:$36 sps:$4 sm:$0xff]   ;;  %v10243_v46 = vpack.c.bf16 %v5574_v12, %v5574_v12  ;;  %v10244_v20 = vpack.c.bf16 %v5575_v49, %v5575_v49  ;;  %6306 = vst [vmem:[#allocation3 + $0x380] sm:$0xf] %v10241_v30  ;;  %6307 = vst [vmem:[#allocation3 + $0x3a4] sm:$0xf] %v10242_v13 }
 0x2dd   : > { %8098 = vmatprep.mubr.bf16.mxu0 %v11882_v50  ;;  %v5765_v11 = vld [vmem:[#allocation2 + $0x170] sm:$0xff]  ;;  %5922 = vst [vmem:[#allocation3 + $0x378] sm:$0xf] %v10271_v8  ;;  %5923 = vst [vmem:[#allocation3 + $0x39c] sm:$0xf] %v10272_v2  ;;  %v5384_v3 = vld [vmem:[#allocation2 + $0x181] sm:$0xff] }
 0x2de   : > { %5542 = vst [vmem:[#allocation3 + $0x400] sm:$0xf] %v10211_v4  ;;  %v10274_v7 = vpack.c.bf16 %v5765_v11, %v5765_v11  ;;  %6116 = vst [vmem:[#allocation3 + $0x3c4] sm:$0xf] %v10211_v4  ;;  %v5385_v51 = vld [vmem:[#allocation2 + $0x189] sm:$0xff]  ;;  %v10213_v39 = vpack.c.bf16 %v5384_v3, %v5384_v3  ;;  %v5766_v10 = vld [vmem:[#allocation2 + $0x180] sm:$0xff] }
 0x2df   : > { %v5576_v16 = vld [vmem:[#allocation2 + $0x182] sm:$0xff]  ;;  %5543 = vst [vmem:[#allocation3 + $0x424] sm:$0xf] %v10212_v53  ;;  %5734 = vst [vmem:[#allocation3 + $0x404] sm:$0xf] %v10243_v46  ;;  %v10214_v22 = vpack.c.bf16 %v5385_v51, %v5385_v51  ;;  %v5577_v6 = vld [vmem:[#allocation2 + $0x18a] sm:$0xff]  ;;  %v10275_v36 = vpack.c.bf16 %v5766_v10, %v5766_v10 }
 0x2e0   : > { %5735 = vst [vmem:[#allocation3 + $0x428] sm:$0xf] %v10244_v20  ;;  %6117 = vst [vmem:[#allocation3 + $0x3e8] sm:$0xf] %v10212_v53  ;;  %v10245_v56 = vpack.c.bf16 %v5576_v16, %v5576_v16  ;;  %v5767_v17 = vld [vmem:[#allocation2 + $0x188] sm:$0xff]  ;;  %v10246_v24 = vpack.c.bf16 %v5577_v6, %v5577_v6  ;;  %v6122_v9 = vld [vmem:[#allocation2 + $0x32] sm:$0xff] }
 0x2e1   : > { %6308 = vst [vmem:[#allocation3 + $0x3c8] sm:$0xf] %v10243_v46  ;;  %6309 = vst [vmem:[#allocation3 + $0x3ec] sm:$0xf] %v10244_v20  ;;  %v10276_v33 = vpack.c.bf16 %v5767_v17, %v5767_v17  ;;  %v6123_v55 = vld [vmem:[#allocation2 + $0x3a] sm:$0xff]  ;;  %v6124_v47 = vld [vmem:[#allocation2 + $0x4a] sm:$0xff]  ;;  %v10311_v45 = vpack.c.bf16 %v6122_v9, %v6122_v9 }
 0x2e2   : > { %5924 = vst [vmem:[#allocation3 + $0x3c0] sm:$0xf] %v10273_v27  ;;  %5925 = vst [vmem:[#allocation3 + $0x3e4] sm:$0xf] %v10274_v7  ;;  %v10312_v23 = vpack.c.bf16 %v6123_v55, %v6123_v55  ;;  %v6125_v63 = vld [vmem:[#allocation2 + $0x52] sm:$0xff]  ;;  %v10313_v32 = vpack.c.bf16 %v6124_v47, %v6124_v47  ;;  %v6126_v43 = vld [vmem:[#allocation2 + $0x62] sm:$0xff] }
 0x2e3   : > { %7946 = vmatmul.mubr.bf16.gmra.mxu1 %v11877_v41  ;;  %5544 = vst [vmem:[#allocation3 + $0x448] sm:$0xf] %v10213_v39  ;;  %5545 = vst [vmem:[#allocation3 + $0x46c] sm:$0xf] %v10214_v22  ;;  %v6127_v25 = vld [vmem:[#allocation2 + $0x6a] sm:$0xff]  ;;  %v10314_v26 = vpack.c.bf16 %v6125_v63, %v6125_v63  ;;  %v10315_v61 = vpack.c.bf16 %v6126_v43, %v6126_v43  ;;  %v11911_v14 = vld [vmem:[#allocation9 + $0x230] sm:$0xff]  }
 0x2e4   : > { %8099 = vmatmul.mubr.bf16.gmra.mxu0 %v11880_v60  ;;  %8147 = vmatprep.mubr.bf16.mxu1 %v11890_v29  ;;  %5736 = vst [vmem:[#allocation3 + $0x44c] sm:$0xf] %v10245_v56  ;;  %6118 = vst [vmem:[#allocation3 + $0x40c] sm:$0xf] %v10213_v39  ;;  %v10316_v1 = vpack.c.bf16 %v6127_v25, %v6127_v25  ;;  %v11888_v50 = vld [vmem:[#allocation3 + $0x10] ss:$36 sps:$4 sm:$0xff]  }
 0x2e5   : > { %8106 = vmatprep.mubr.bf16.mxu0 %v11887_v44  ;;  %6119 = vst [vmem:[#allocation3 + $0x430] sm:$0xf] %v10214_v22  ;;  %6310 = vst [vmem:[#allocation3 + $0x410] sm:$0xf] %v10245_v56  ;;  %v11898_v19 = vld [vmem:[#allocation3 + $0x5c] ss:$36 sps:$4 sm:$0xff]  }
 0x2e6   : > { %5737 = vst [vmem:[#allocation3 + $0x470] sm:$0xf] %v10246_v24  ;;  %5926 = vst [vmem:[#allocation3 + $0x408] sm:$0xf] %v10275_v36  ;;  %v11885_v35 = vld [vmem:[#allocation3 + $0x440] ss:$36 sps:$4 sm:$0xff]  }
 0x2e7   : > { %5927 = vst [vmem:[#allocation3 + $0x42c] sm:$0xf] %v10276_v33  ;;  %6311 = vst [vmem:[#allocation3 + $0x434] sm:$0xf] %v10246_v24  ;;  %v11902_v58 = vld [vmem:[#allocation3 + $0x1c] ss:$36 sps:$4 sm:$0xff]  }
 0x2e8   : > { %6282 = vst [vmem:[#allocation3 + $0x20] sm:$0xf] %v10311_v45  ;;  %6283 = vst [vmem:[#allocation3 + $0x44] sm:$0xf] %v10312_v23  ;;  %v12018_v15 = vld [vmem:[#allocation9 + $0x238] sm:$0xff]   ;;  %v11924_v59 = vld [vmem:[#allocation9 + $0x228] sm:$0xff]  }
 0x2e9   : > { %6284 = vst [vmem:[#allocation3 + $0x68] sm:$0xf] %v10313_v32  ;;  %6285 = vst [vmem:[#allocation3 + $0x8c] sm:$0xf] %v10314_v26  ;;  %v11896_v34 = vld [vmem:[#allocation3 + $0x58] ss:$36 sps:$4 sm:$0xff]  }
 0x2ea   : > { %6286 = vst [vmem:[#allocation3 + $0xb0] sm:$0xf] %v10315_v61  ;;  %6287 = vst [vmem:[#allocation3 + $0xd4] sm:$0xf] %v10316_v1  ;;  %v11900_v52 = vld [vmem:[#allocation3 + $0x18] ss:$36 sps:$4 sm:$0xff]  }
 0x2eb   : > { %8148 = vmatmul.mubr.bf16.vlgmr.msra.gmra.mxu1 %v11888_v50  ;;  %v11907_v18 = vld [vmem:[#allocation3 + $0xa4] ss:$36 sps:$4 sm:$0xff]   ;;  %v11950_v54 = vld [vmem:[#allocation9 + $0x218] sm:$0xff]   ;;  %v11914_v21 = vld [vmem:[#allocation3 + $0xec] ss:$36 sps:$4 sm:$0xff]  }
 0x2ec   : > { %8107 = vmatmul.mubr.bf16.gmra.mxu0 %v11885_v35  ;;  %8155 = vmatprep.mubr.bf16.mxu1 %v11898_v19  ;;  %v11937_v37 = vld [vmem:[#allocation9 + $0x220] sm:$0xff]   ;;  %v6128_v5 = vld [vmem:[#allocation2 + $0x7a] sm:$0xff]  ;;  %v6129_v0 = vld [vmem:[#allocation2 + $0x82] sm:$0xff]  ;;  %v10835_v19 = vpop.f32.mrf.mxu1 }
 0x2ed   : > { %8308 = vmatprep.mubr.bf16.mxu0 %v11902_v58  ;;  %11337 = vmatpush3.bf16.msra.mxu1 %v12018_v15  ;;  %v11910_v42 = vld [vmem:[#allocation3 + $0x64] ss:$36 sps:$4 sm:$0xff]   ;;  %v10317_v62 = vpack.c.bf16 %v6128_v5, %v6128_v5  ;;  %v10318_v41 = vpack.c.bf16 %v6129_v0, %v6129_v0  ;;  %v6132_v13 = vld [vmem:[#allocation2 + $0xaa] sm:$0xff]  ;;  %v6134_v29 = vld [vmem:[#allocation2 + $0xc2] sm:$0xff] }
 0x2ee   : > { %11338 = vmatprep.subr.bf16.mxu1 %v11911_v14  ;;  %v6130_v40 = vld [vmem:[#allocation2 + $0x92] sm:$0xff]  ;;  %v6131_v30 = vld [vmem:[#allocation2 + $0x9a] sm:$0xff]  ;;  %v10321_v60 = vpack.c.bf16 %v6132_v13, %v6132_v13  ;;  %v6135_v8 = vld [vmem:[#allocation2 + $0xca] sm:$0xff]  ;;  %v10323_v4 = vpack.c.bf16 %v6134_v29, %v6134_v29 }
 0x2ef   : > { %v10319_v57 = vpack.c.bf16 %v6130_v40, %v6130_v40  ;;  %v10320_v28 = vpack.c.bf16 %v6131_v30, %v6131_v30  ;;  %v6133_v48 = vld [vmem:[#allocation2 + $0xb2] sm:$0xff]  ;;  %6288 = vst [vmem:[#allocation3 + $0xf8] sm:$0xf] %v10317_v62  ;;  %6289 = vst [vmem:[#allocation3 + $0x11c] sm:$0xf] %v10318_v41  ;;  %v10324_v12 = vpack.c.bf16 %v6135_v8, %v6135_v8  ;;  %v6136_v49 = vld [vmem:[#allocation2 + $0xda] sm:$0xff] }
 0x2f0   : > { %v11905_v2 = vld [vmem:[#allocation3 + $0xa0] ss:$36 sps:$4 sm:$0xff]   ;;  %v10322_v38 = vpack.c.bf16 %v6133_v48, %v6133_v48  ;;  %v6137_v44 = vld [vmem:[#allocation2 + $0xe2] sm:$0xff]  ;;  %6292 = vst [vmem:[#allocation3 + $0x188] sm:$0xf] %v10321_v60  ;;  %v10325_v46 = vpack.c.bf16 %v6136_v49, %v6136_v49  ;;  %v11976_v7 = vld [vmem:[#allocation9 + $0x208] sm:$0xff]  }
 0x2f1   : > { %11339 = vmatpush3.bf16.msra.mxu1 %v11911_v14  ;;  %v11908_v53 = vld [vmem:[#allocation3 + $0x60] ss:$36 sps:$4 sm:$0xff]   ;;  %6290 = vst [vmem:[#allocation3 + $0x140] sm:$0xf] %v10319_v57  ;;  %6291 = vst [vmem:[#allocation3 + $0x164] sm:$0xf] %v10320_v28  ;;  %v10326_v20 = vpack.c.bf16 %v6137_v44, %v6137_v44  ;;  %v10836_v14 = vpop.f32.mrf.mxu1 }
 0x2f2   : > { %11340 = vmatprep.subr.bf16.mxu1 %v11924_v59  ;;  %6293 = vst [vmem:[#allocation3 + $0x1ac] sm:$0xf] %v10322_v38  ;;  %6294 = vst [vmem:[#allocation3 + $0x1d0] sm:$0xf] %v10323_v4  ;;  %v11963_v11 = vld [vmem:[#allocation9 + $0x210] sm:$0xff]   ;;  %v11989_v39 = vld [vmem:[#allocation9 + $0x200] sm:$0xff]   ;;  %v10837_v0 = vadd.f32 %v10836_v14, %v10835_v19 }
 0x2f3   : > { %8156 = vmatmul.mubr.bf16.gmra.mxu1 %v11896_v34  ;;  %6295 = vst [vmem:[#allocation3 + $0x1f4] sm:$0xf] %v10324_v12  ;;  %6296 = vst [vmem:[#allocation3 + $0x218] sm:$0xf] %v10325_v46  ;;  %v11917_v27 = vld [vmem:[#allocation3 + $0xac] ss:$36 sps:$4 sm:$0xff]  }
 0x2f4   : > { %8309 = vmatmul.mubr.bf16.vlgmr.msra.gmra.mxu0 %v11900_v52  ;;  %8163 = vmatprep.mubr.bf16.mxu1 %v11907_v18  ;;  %6297 = vst [vmem:[#allocation3 + $0x23c] sm:$0xf] %v10326_v20  ;;  %v11912_v3 = vld [vmem:[#allocation3 + $0xe8] ss:$36 sps:$4 sm:$0xff]   ;;  %v11920_v16 = vld [vmem:[#allocation3 + $0x134] ss:$36 sps:$4 sm:$0xff]  }
 0x2f5   : > { %8316 = vmatprep.mubr.bf16.mxu0 %v11910_v42  ;;  %11341 = vmatpush3.bf16.msra.mxu1 %v11924_v59  ;;  %v11915_v51 = vld [vmem:[#allocation3 + $0xa8] ss:$36 sps:$4 sm:$0xff]   ;;  %v11923_v22 = vld [vmem:[#allocation3 + $0xf4] ss:$36 sps:$4 sm:$0xff]   ;;  %v11927_v10 = vld [vmem:[#allocation3 + $0x17c] ss:$36 sps:$4 sm:$0xff]  }
 0x2f6   : > { %11342 = vmatprep.subr.bf16.mxu1 %v11937_v37  ;;  %v11918_v6 = vld [vmem:[#allocation3 + $0x130] ss:$36 sps:$4 sm:$0xff]   ;;  %v11930_v17 = vld [vmem:[#allocation3 + $0x13c] ss:$36 sps:$4 sm:$0xff]   ;;  %v11933_v33 = vld [vmem:[#allocation3 + $0x1c4] ss:$36 sps:$4 sm:$0xff]  }
 0x2f7   : > { %v11921_v56 = vld [vmem:[#allocation3 + $0xf0] ss:$36 sps:$4 sm:$0xff]   ;;  %v11925_v24 = vld [vmem:[#allocation3 + $0x178] ss:$36 sps:$4 sm:$0xff]   ;;  %v11936_v9 = vld [vmem:[#allocation3 + $0x184] ss:$36 sps:$4 sm:$0xff]  }
 0x2f8   : > { %v11928_v36 = vld [vmem:[#allocation3 + $0x138] ss:$36 sps:$4 sm:$0xff]   ;;  %v11931_v55 = vld [vmem:[#allocation3 + $0x1c0] ss:$36 sps:$4 sm:$0xff]   ;;  %v11940_v45 = vld [vmem:[#allocation3 + $0x20c] ss:$36 sps:$4 sm:$0xff]  }
 0x2f9   : > { %11343 = vmatpush3.bf16.msra.mxu1 %v11937_v37  ;;  %v11934_v47 = vld [vmem:[#allocation3 + $0x180] ss:$36 sps:$4 sm:$0xff]   ;;  %v11943_v23 = vld [vmem:[#allocation3 + $0x1cc] ss:$36 sps:$4 sm:$0xff]   ;;  %v11946_v43 = vld [vmem:[#allocation3 + $0x254] ss:$36 sps:$4 sm:$0xff]  }
 0x2fa   : > { %11344 = vmatprep.subr.bf16.mxu1 %v11950_v54  ;;  %v11938_v63 = vld [vmem:[#allocation3 + $0x208] ss:$36 sps:$4 sm:$0xff]   ;;  %v11949_v25 = vld [vmem:[#allocation3 + $0x214] ss:$36 sps:$4 sm:$0xff]   ;;  %v11953_v1 = vld [vmem:[#allocation3 + $0x29c] ss:$36 sps:$4 sm:$0xff]  }
 0x2fb   : > { %8164 = vmatmul.mubr.bf16.gmra.mxu1 %v11905_v2  ;;  %v11941_v32 = vld [vmem:[#allocation3 + $0x1c8] ss:$36 sps:$4 sm:$0xff]   ;;  %v11944_v26 = vld [vmem:[#allocation3 + $0x250] ss:$36 sps:$4 sm:$0xff]   ;;  %v11956_v50 = vld [vmem:[#allocation3 + $0x25c] ss:$36 sps:$4 sm:$0xff]  }
 0x2fc   : > { %8317 = vmatmul.mubr.bf16.gmra.mxu0 %v11908_v53  ;;  %8171 = vmatprep.mubr.bf16.mxu1 %v11914_v21  ;;  %v11947_v61 = vld [vmem:[#allocation3 + $0x210] ss:$36 sps:$4 sm:$0xff]   ;;  %v11951_v35 = vld [vmem:[#allocation3 + $0x298] ss:$36 sps:$4 sm:$0xff]   ;;  %v11959_v15 = vld [vmem:[#allocation3 + $0x2e4] ss:$36 sps:$4 sm:$0xff]  }
 0x2fd   : > { %8324 = vmatprep.mubr.bf16.mxu0 %v11917_v27  ;;  %11345 = vmatpush3.bf16.msra.mxu1 %v11950_v54  ;;  %v11954_v58 = vld [vmem:[#allocation3 + $0x258] ss:$36 sps:$4 sm:$0xff]   ;;  %v11962_v34 = vld [vmem:[#allocation3 + $0x2a4] ss:$36 sps:$4 sm:$0xff]   ;;  %v12939_v52 = vld [vmem:[%s13429_s6] ss:$0 sm:$0xff] }
 0x2fe   : > { %11346 = vmatprep.subr.bf16.mxu1 %v11963_v11  ;;  %v7828_v5 = vadd.f32 %v12934_v31, %v12939_v52  ;;  %v11957_v30 = vld [vmem:[#allocation3 + $0x2e0] ss:$36 sps:$4 sm:$0xff]   ;;  %v11966_v29 = vld [vmem:[#allocation3 + $0x32c] ss:$36 sps:$4 sm:$0xff]   ;;  %v7831_v8 = vadd.f32 %v10837_v0, %v12939_v52 }
 0x2ff   : > { %v11960_v28 = vld [vmem:[#allocation3 + $0x2a0] ss:$36 sps:$4 sm:$0xff]   ;;  %v11969_v4 = vld [vmem:[#allocation3 + $0x2ec] ss:$36 sps:$4 sm:$0xff]  }
 0x300   : > { %v11964_v27 = vld [vmem:[#allocation3 + $0x328] ss:$36 sps:$4 sm:$0xff]  }
 0x301   : > { %11347 = vmatpush3.bf16.msra.mxu1 %v11963_v11 }
 0x302   : > { %11348 = vmatprep.subr.bf16.mxu1 %v11976_v7 }
 0x303   : > { %8172 = vmatmul.mubr.bf16.gmra.mxu1 %v11912_v3 }
 0x304   : > { %8325 = vmatmul.mubr.bf16.gmra.mxu0 %v11915_v51  ;;  %8179 = vmatprep.mubr.bf16.mxu1 %v11920_v16  ;;  %v11967_v51 = vld [vmem:[#allocation3 + $0x2e8] ss:$36 sps:$4 sm:$0xff]  }
 0x305   : > { %8332 = vmatprep.mubr.bf16.mxu0 %v11923_v22  ;;  %11349 = vmatpush3.bf16.msra.mxu1 %v11976_v7  ;;  %v11972_v22 = vld [vmem:[#allocation3 + $0x374] ss:$36 sps:$4 sm:$0xff]  }
 0x306   : > { %11350 = vmatprep.subr.bf16.mxu1 %v11989_v39 }
 0x309   : > { %11351 = vmatpush3.bf16.msra.mxu1 %v11989_v39 }
 0x30b   : > { %8180 = vmatmul.mubr.bf16.gmra.mxu1 %v11918_v6 }
 0x30c   : > { %8333 = vmatmul.mubr.bf16.gmra.mxu0 %v11921_v56  ;;  %8187 = vmatprep.mubr.bf16.mxu1 %v11927_v10 }
 0x30d   : > { %8340 = vmatprep.mubr.bf16.mxu0 %v11930_v17  ;;  %v11975_v17 = vld [vmem:[#allocation3 + $0x334] ss:$36 sps:$4 sm:$0xff]  }
 0x313   : > { %8188 = vmatmul.mubr.bf16.gmra.mxu1 %v11925_v24 }
 0x314   : > { %8341 = vmatmul.mubr.bf16.gmra.mxu0 %v11928_v36  ;;  %8195 = vmatprep.mubr.bf16.mxu1 %v11933_v33 }
 0x315   : > { %8348 = vmatprep.mubr.bf16.mxu0 %v11936_v9 }
 0x31b   : > { %8196 = vmatmul.mubr.bf16.gmra.mxu1 %v11931_v55 }
 0x31c   : > { %8349 = vmatmul.mubr.bf16.gmra.mxu0 %v11934_v47  ;;  %8203 = vmatprep.mubr.bf16.mxu1 %v11940_v45 }
 0x31d   : > { %8356 = vmatprep.mubr.bf16.mxu0 %v11943_v23 }
 0x323   : > { %8204 = vmatmul.mubr.bf16.gmra.mxu1 %v11938_v63 }
 0x324   : > { %8357 = vmatmul.mubr.bf16.gmra.mxu0 %v11941_v32  ;;  %8211 = vmatprep.mubr.bf16.mxu1 %v11946_v43  ;;  %v11970_v32 = vld [vmem:[#allocation3 + $0x370] ss:$36 sps:$4 sm:$0xff]  }
 0x325   : > { %8364 = vmatprep.mubr.bf16.mxu0 %v11949_v25 }
 0x327   : > { %v10838_v59 = vpop.f32.mrf.mxu1 }
 0x329   : > { %v10944_v18 = vpop.f32.mrf.mxu0  ;;  %v10839_v37 = vpop.f32.mrf.mxu1 }
 0x32a   : > { %v10840_v42 = vadd.f32 %v10839_v37, %v10838_v59 }
 0x32b   : > { %8212 = vmatmul.mubr.bf16.gmra.mxu1 %v11944_v26  ;;  %v10945_v54 = vpop.f32.mrf.mxu0  ;;  %v10841_v41 = vpop.f32.mrf.mxu1  ;;  %v11973_v26 = vld [vmem:[#allocation3 + $0x330] ss:$36 sps:$4 sm:$0xff]  }
 0x32c   : > { %8365 = vmatmul.mubr.bf16.gmra.mxu0 %v11947_v61  ;;  %8219 = vmatprep.mubr.bf16.mxu1 %v11953_v1  ;;  %v10946_v62 = vadd.f32 %v10945_v54, %v10944_v18  ;;  %v7836_v46 = vadd.f32 %v10840_v42, %v12939_v52 }
 0x32d   : > { %8372 = vmatprep.mubr.bf16.mxu0 %v11956_v50  ;;  %v10947_v40 = vpop.f32.mrf.mxu0  ;;  %v10842_v57 = vpop.f32.mrf.mxu1  ;;  %v11979_v50 = vld [vmem:[#allocation3 + $0x3bc] ss:$36 sps:$4 sm:$0xff]  }
 0x32e   : > { %v12943_v13 = vadd.f32 %v10946_v62, %v7828_v5  ;;  %v10843_v48 = vadd.f32 %v10842_v57, %v10841_v41  ;;  %v11977_v62 = vld [vmem:[#allocation3 + $0x3b8] ss:$36 sps:$4 sm:$0xff]  }
 0x32f   : > { %v10948_v60 = vpop.f32.mrf.mxu0 }
 0x330   : > { %v10949_v2 = vadd.f32 %v10948_v60, %v10947_v40  ;;  %v7839_v6 = vadd.f32 %v10843_v48, %v12939_v52  ;;  %v11985_v48 = vld [vmem:[#allocation3 + $0x404] ss:$36 sps:$4 sm:$0xff]  }
 0x332   : > { %v12946_v31 = vadd.f32 %v10949_v2, %v7831_v8  ;;  %v11988_v2 = vld [vmem:[#allocation3 + $0x3c4] ss:$36 sps:$4 sm:$0xff]  }
 0x333   : > { %8220 = vmatmul.mubr.bf16.gmra.mxu1 %v11951_v35 }
 0x334   : > { %8373 = vmatmul.mubr.bf16.gmra.mxu0 %v11954_v58  ;;  %8227 = vmatprep.mubr.bf16.mxu1 %v11959_v15  ;;  %v10844_v38 = vpop.f32.mrf.mxu1  ;;  %v11982_v58 = vld [vmem:[#allocation3 + $0x37c] ss:$36 sps:$4 sm:$0xff]  }
 0x335   : > { %8380 = vmatprep.mubr.bf16.mxu0 %v11962_v34 }
 0x336   : > { %v10950_v12 = vpop.f32.mrf.mxu0  ;;  %v10845_v49 = vpop.f32.mrf.mxu1 }
 0x337   : > { %v10846_v44 = vadd.f32 %v10845_v49, %v10844_v38 }
 0x338   : > { %v10951_v53 = vpop.f32.mrf.mxu0  ;;  %v10847_v21 = vpop.f32.mrf.mxu1 }
 0x339   : > { %v10952_v20 = vadd.f32 %v10951_v53, %v10950_v12  ;;  %v7844_v47 = vadd.f32 %v10846_v44, %v12939_v52 }
 0x33a   : > { %v10953_v11 = vpop.f32.mrf.mxu0  ;;  %v10848_v3 = vpop.f32.mrf.mxu1 }
 0x33b   : > { %8228 = vmatmul.mubr.bf16.gmra.mxu1 %v11957_v30  ;;  %v12949_v7 = vadd.f32 %v10952_v20, %v7836_v46  ;;  %v10849_v16 = vadd.f32 %v10848_v3, %v10847_v21  ;;  %v11980_v30 = vld [vmem:[#allocation3 + $0x378] ss:$36 sps:$4 sm:$0xff]  }
 0x33c   : > { %8381 = vmatmul.mubr.bf16.gmra.mxu0 %v11960_v28  ;;  %8235 = vmatprep.mubr.bf16.mxu1 %v11966_v29  ;;  %v10954_v39 = vpop.f32.mrf.mxu0 }
 0x33d   : > { %8388 = vmatprep.mubr.bf16.mxu0 %v11969_v4  ;;  %v10955_v56 = vadd.f32 %v10954_v39, %v10953_v11  ;;  %v7847_v19 = vadd.f32 %v10849_v16, %v12939_v52  ;;  %v11983_v11 = vld [vmem:[#allocation3 + $0x400] ss:$36 sps:$4 sm:$0xff]  }
 0x33f   : > { %v12952_v36 = vadd.f32 %v10955_v56, %v7839_v6 }
 0x341   : > { %v10850_v10 = vpop.f32.mrf.mxu1 }
 0x342   : > { %v10956_v24 = vpop.f32.mrf.mxu0 }
 0x343   : > { %8236 = vmatmul.mubr.bf16.gmra.mxu1 %v11964_v27  ;;  %v10851_v33 = vpop.f32.mrf.mxu1 }
 0x344   : > { %8389 = vmatmul.mubr.bf16.gmra.mxu0 %v11967_v51  ;;  %8243 = vmatprep.mubr.bf16.mxu1 %v11972_v22  ;;  %v10852_v9 = vadd.f32 %v10851_v33, %v10850_v10  ;;  %v10957_v55 = vpop.f32.mrf.mxu0  ;;  %v11986_v51 = vld [vmem:[#allocation3 + $0x3c0] ss:$36 sps:$4 sm:$0xff]   ;;  %v11992_v22 = vld [vmem:[#allocation3 + $0x44c] ss:$36 sps:$4 sm:$0xff]  }
 0x345   : > { %8396 = vmatprep.mubr.bf16.mxu0 %v11975_v17  ;;  %v10958_v45 = vadd.f32 %v10957_v55, %v10956_v24  ;;  %v10853_v23 = vpop.f32.mrf.mxu1  ;;  %v11995_v17 = vld [vmem:[#allocation3 + $0x40c] ss:$36 sps:$4 sm:$0xff]  }
 0x346   : > { %v10959_v63 = vpop.f32.mrf.mxu0  ;;  %v7852_v42 = vadd.f32 %v10852_v9, %v12939_v52 }
 0x347   : > { %v12955_v43 = vadd.f32 %v10958_v45, %v7844_v47  ;;  %v10854_v25 = vpop.f32.mrf.mxu1 }
 0x348   : > { %v10855_v61 = vadd.f32 %v10854_v25, %v10853_v23  ;;  %v10960_v1 = vpop.f32.mrf.mxu0  ;;  %v11990_v25 = vld [vmem:[#allocation3 + $0x448] ss:$36 sps:$4 sm:$0xff]  }
 0x349   : > { %v10961_v14 = vadd.f32 %v10960_v1, %v10959_v63  ;;  %v10856_v35 = vpop.f32.mrf.mxu1  ;;  %v11999_v1 = vld [vmem:[#allocation3 + $0x454] ss:$36 sps:$4 sm:$0xff]  }
 0x34a   : > { %v10962_v15 = vpop.f32.mrf.mxu0  ;;  %v7855_v60 = vadd.f32 %v10855_v61, %v12939_v52 }
 0x34b   : > { %8244 = vmatmul.mubr.bf16.gmra.mxu1 %v11970_v32  ;;  %v12958_v59 = vadd.f32 %v10961_v14, %v7847_v19  ;;  %v10857_v34 = vpop.f32.mrf.mxu1 }
 0x34c   : > { %8397 = vmatmul.mubr.bf16.gmra.mxu0 %v11973_v26  ;;  %8251 = vmatprep.mubr.bf16.mxu1 %v11979_v50  ;;  %v10858_v18 = vadd.f32 %v10857_v34, %v10856_v35  ;;  %v10963_v37 = vpop.f32.mrf.mxu0  ;;  %v11993_v50 = vld [vmem:[#allocation3 + $0x408] ss:$36 sps:$4 sm:$0xff]   ;;  %v11996_v35 = vld [vmem:[#allocation3 + $0x20] ss:$36 sps:$4 sm:$0xff]  }
 0x34d   : > { %8404 = vmatprep.mubr.bf16.mxu0 %v11982_v58  ;;  %v10964_v54 = vadd.f32 %v10963_v37, %v10962_v15  ;;  %v10859_v5 = vpop.f32.mrf.mxu1 }
 0x34e   : > { %v10965_v0 = vpop.f32.mrf.mxu0  ;;  %v7860_v53 = vadd.f32 %v10858_v18, %v12939_v52 }
 0x34f   : > { %v12961_v41 = vadd.f32 %v10964_v54, %v7852_v42  ;;  %v10860_v40 = vpop.f32.mrf.mxu1 }
 0x350   : > { %v10861_v57 = vadd.f32 %v10860_v40, %v10859_v5  ;;  %v10966_v28 = vpop.f32.mrf.mxu0 }
 0x351   : > { %v10967_v29 = vadd.f32 %v10966_v28, %v10965_v0 }
 0x352   : > { %v7863_v6 = vadd.f32 %v10861_v57, %v12939_v52  ;;  %v11997_v57 = vld [vmem:[#allocation3 + $0x450] ss:$36 sps:$4 sm:$0xff]  }
 0x353   : > { %v10862_v8 = vpop.f32.mrf.mxu1  ;;  %8252 = vmatmul.mubr.bf16.gmra.mxu1 %v11977_v62  ;;  %v12964_v4 = vadd.f32 %v10967_v29, %v7855_v60  ;;  %v12000_v60 = vld [vmem:[#allocation3 + $0x68] ss:$36 sps:$4 sm:$0xff]  }
 0x354   : > { %v10968_v38 = vpop.f32.mrf.mxu0  ;;  %8405 = vmatmul.mubr.bf16.gmra.mxu0 %v11980_v30  ;;  %8259 = vmatprep.mubr.bf16.mxu1 %v11985_v48 }
 0x355   : > { %8412 = vmatprep.mubr.bf16.mxu0 %v11988_v2  ;;  %v10863_v12 = vpop.f32.mrf.mxu1  ;;  %v12001_v2 = vld [vmem:[#allocation3 + $0xb0] ss:$36 sps:$4 sm:$0xff]  }
 0x356   : > { %v10864_v49 = vadd.f32 %v10863_v12, %v10862_v8  ;;  %v10969_v44 = vpop.f32.mrf.mxu0 }
 0x357   : > { %v10970_v46 = vadd.f32 %v10969_v44, %v10968_v38  ;;  %v10865_v20 = vpop.f32.mrf.mxu1 }
 0x358   : > { %v10971_v21 = vpop.f32.mrf.mxu0  ;;  %v7868_v45 = vadd.f32 %v10864_v49, %v12939_v52 }
 0x359   : > { %v12967_v27 = vadd.f32 %v10970_v46, %v7860_v53  ;;  %v10866_v3 = vpop.f32.mrf.mxu1 }
 0x35a   : > { %v10867_v16 = vadd.f32 %v10866_v3, %v10865_v20  ;;  %v10972_v39 = vpop.f32.mrf.mxu0 }
 0x35b   : > { %v10973_v56 = vadd.f32 %v10972_v39, %v10971_v21  ;;  %v10868_v10 = vpop.f32.mrf.mxu1  ;;  %8260 = vmatmul.mubr.bf16.gmra.mxu1 %v11983_v11 }
 0x35c   : > { %v10974_v24 = vpop.f32.mrf.mxu0  ;;  %8413 = vmatmul.mubr.bf16.gmra.mxu0 %v11986_v51  ;;  %8267 = vmatprep.mubr.bf16.mxu1 %v11992_v22  ;;  %v7871_v58 = vadd.f32 %v10867_v16, %v12939_v52 }
 0x35d   : > { %v12970_v33 = vadd.f32 %v10973_v56, %v7863_v6  ;;  %8420 = vmatprep.mubr.bf16.mxu0 %v11995_v17  ;;  %v10869_v9 = vpop.f32.mrf.mxu1  ;;  %v12002_v6 = vld [vmem:[#allocation3 + $0xf8] ss:$36 sps:$4 sm:$0xff]   ;;  %v12003_v17 = vld [vmem:[#allocation3 + $0x140] ss:$36 sps:$4 sm:$0xff]  }
 0x35e   : > { %v10870_v55 = vadd.f32 %v10869_v9, %v10868_v10  ;;  %v10975_v47 = vpop.f32.mrf.mxu0 }
 0x35f   : > { %v10976_v23 = vadd.f32 %v10975_v47, %v10974_v24  ;;  %v10871_v63 = vpop.f32.mrf.mxu1 }
 0x360   : > { %v10977_v32 = vpop.f32.mrf.mxu0  ;;  %v7876_v0 = vadd.f32 %v10870_v55, %v12939_v52 }
 0x361   : > { %v12973_v26 = vadd.f32 %v10976_v23, %v7868_v45  ;;  %v10872_v61 = vpop.f32.mrf.mxu1 }
 0x362   : > { %v10873_v19 = vadd.f32 %v10872_v61, %v10871_v63  ;;  %v10978_v14 = vpop.f32.mrf.mxu0 }
 0x363   : > { %v10979_v15 = vadd.f32 %v10978_v14, %v10977_v32  ;;  %v10874_v34 = vpop.f32.mrf.mxu1  ;;  %8268 = vmatmul.mubr.bf16.gmra.mxu1 %v11990_v25 }
 0x364   : > { %v10980_v18 = vpop.f32.mrf.mxu0  ;;  %8421 = vmatmul.mubr.bf16.gmra.mxu0 %v11993_v50  ;;  %11352 = vmatprep.mubr.bf16.mxu1 %v11996_v35  ;;  %v7879_v38 = vadd.f32 %v10873_v19, %v12939_v52  ;;  %v12004_v35 = vld [vmem:[#allocation3 + $0x188] ss:$36 sps:$4 sm:$0xff]  }
 0x365   : > { %v12976_v37 = vadd.f32 %v10979_v15, %v7871_v58  ;;  %v10875_v42 = vpop.f32.mrf.mxu1  ;;  %8428 = vmatprep.mubr.bf16.mxu0 %v11999_v1 }
 0x366   : > { %v10876_v54 = vadd.f32 %v10875_v42, %v10874_v34  ;;  %v10981_v5 = vpop.f32.mrf.mxu0  ;;  %v12005_v34 = vld [vmem:[#allocation3 + $0x1d0] ss:$36 sps:$4 sm:$0xff]  }
 0x367   : > { %v10982_v62 = vadd.f32 %v10981_v5, %v10980_v18  ;;  %v10877_v40 = vpop.f32.mrf.mxu1 }
 0x368   : > { %v10983_v30 = vpop.f32.mrf.mxu0  ;;  %v7884_v11 = vadd.f32 %v10876_v54, %v12939_v52 }
 0x369   : > { %v12979_v28 = vadd.f32 %v10982_v62, %v7876_v0  ;;  %v10878_v48 = vpop.f32.mrf.mxu1 }
 0x36a   : > { %v10879_v29 = vadd.f32 %v10878_v48, %v10877_v40  ;;  %v10984_v8 = vpop.f32.mrf.mxu0 }
 0x36b   : > { %v10985_v12 = vadd.f32 %v10984_v8, %v10983_v30  ;;  %v10880_v49 = vpop.f32.mrf.mxu1  ;;  %11353 = vmatmul.mubr.bf16.vlgmr.msra.gmra.mxu1 %v12000_v60 }
 0x36c   : > { %v10986_v44 = vpop.f32.mrf.mxu0  ;;  %8429 = vmatmul.mubr.bf16.gmra.mxu0 %v11997_v57  ;;  %11356 = vmatprep.mubr.bf16.mxu1 %v12001_v2  ;;  %v7887_v24 = vadd.f32 %v10879_v29, %v12939_v52 }
 0x36d   : > { %v12982_v53 = vadd.f32 %v10985_v12, %v7879_v38  ;;  %v10881_v46 = vpop.f32.mrf.mxu1  ;;  %v12006_v38 = vld [vmem:[#allocation3 + $0x218] ss:$36 sps:$4 sm:$0xff]  }
 0x36e   : > { %v10882_v20 = vadd.f32 %v10881_v46, %v10880_v49  ;;  %v10987_v21 = vpop.f32.mrf.mxu0 }
 0x36f   : > { %v10988_v3 = vadd.f32 %v10987_v21, %v10986_v44  ;;  %v10883_v51 = vpop.f32.mrf.mxu1  ;;  %v12007_v44 = vld [vmem:[#allocation3 + $0x260] ss:$36 sps:$4 sm:$0xff]  }
 0x370   : > { %v10989_v16 = vpop.f32.mrf.mxu0  ;;  %v7892_v25 = vadd.f32 %v10882_v20, %v12939_v52 }
 0x371   : > { %v12985_v39 = vadd.f32 %v10988_v3, %v7884_v11  ;;  %v10884_v22 = vpop.f32.mrf.mxu1 }
 0x372   : > { %v10885_v56 = vadd.f32 %v10884_v22, %v10883_v51  ;;  %v10990_v10 = vpop.f32.mrf.mxu0 }
 0x373   : > { %v10991_v9 = vadd.f32 %v10990_v10, %v10989_v16  ;;  %v10886_v55 = vpop.f32.mrf.mxu1  ;;  %11357 = vmatmul.mubr.bf16.gmra.mxu1 %v12002_v6 }
 0x374   : > { %v10992_v47 = vpop.f32.mrf.mxu0  ;;  %11360 = vmatprep.mubr.bf16.mxu1 %v12003_v17  ;;  %v7895_v18 = vadd.f32 %v10885_v56, %v12939_v52 }
 0x375   : > { %v12988_v45 = vadd.f32 %v10991_v9, %v7887_v24  ;;  %v10887_v23 = vpop.f32.mrf.mxu1 }
 0x376   : > { %v10888_v63 = vadd.f32 %v10887_v23, %v10886_v55  ;;  %v10993_v32 = vpop.f32.mrf.mxu0  ;;  %v12008_v55 = vld [vmem:[#allocation3 + $0x2a8] ss:$36 sps:$4 sm:$0xff]  }
 0x377   : > { %v10994_v61 = vadd.f32 %v10993_v32, %v10992_v47  ;;  %v10889_v1 = vpop.f32.mrf.mxu1 }
 0x378   : > { %v10995_v50 = vpop.f32.mrf.mxu0  ;;  %v7900_v57 = vadd.f32 %v10888_v63, %v12939_v52  ;;  %v12009_v63 = vld [vmem:[#allocation3 + $0x2f0] ss:$36 sps:$4 sm:$0xff]  }
 0x379   : > { %v12991_v19 = vadd.f32 %v10994_v61, %v7892_v25  ;;  %v10890_v14 = vpop.f32.mrf.mxu1 }
 0x37a   : > { %v10891_v58 = vadd.f32 %v10890_v14, %v10889_v1  ;;  %v10996_v15 = vpop.f32.mrf.mxu0 }
 0x37b   : > { %v10997_v42 = vadd.f32 %v10996_v15, %v10995_v50  ;;  %v10892_v54 = vpop.f32.mrf.mxu1  ;;  %11361 = vmatmul.mubr.bf16.gmra.mxu1 %v12004_v35 }
 0x37c   : > { %v10998_v5 = vpop.f32.mrf.mxu0  ;;  %11364 = vmatprep.mubr.bf16.mxu1 %v12005_v34  ;;  %v7903_v46 = vadd.f32 %v10891_v58, %v12939_v52 }
 0x37d   : > { %v12994_v0 = vadd.f32 %v10997_v42, %v7895_v18  ;;  %v10893_v62 = vpop.f32.mrf.mxu1 }
 0x37e   : > { %v10894_v40 = vadd.f32 %v10893_v62, %v10892_v54  ;;  %v10999_v30 = vpop.f32.mrf.mxu0  ;;  %v12010_v62 = vld [vmem:[#allocation3 + $0x338] ss:$36 sps:$4 sm:$0xff]  }
 0x37f   : > { %v11000_v48 = vadd.f32 %v10999_v30, %v10998_v5  ;;  %v10895_v60 = vpop.f32.mrf.mxu1 }
 0x380   : > { %v11001_v29 = vpop.f32.mrf.mxu0  ;;  %v7908_v6 = vadd.f32 %v10894_v40, %v12939_v52 }
 0x381   : > { %v12997_v8 = vadd.f32 %v11000_v48, %v7900_v57  ;;  %v10896_v2 = vpop.f32.mrf.mxu1  ;;  %v12011_v57 = vld [vmem:[#allocation3 + $0x380] ss:$36 sps:$4 sm:$0xff]  }
 0x382   : > { %v10897_v12 = vadd.f32 %v10896_v2, %v10895_v60  ;;  %v11002_v49 = vpop.f32.mrf.mxu0 }
 0x383   : > { %v11003_v20 = vadd.f32 %v11002_v49, %v11001_v29  ;;  %v10898_v21 = vpop.f32.mrf.mxu1  ;;  %11365 = vmatmul.mubr.bf16.gmra.mxu1 %v12006_v38 }
 0x384   : > { %v11004_v11 = vpop.f32.mrf.mxu0  ;;  %11368 = vmatprep.mubr.bf16.mxu1 %v12007_v44  ;;  %v7911_v32 = vadd.f32 %v10897_v12, %v12939_v52 }
 0x385   : > { %v13000_v3 = vadd.f32 %v11003_v20, %v7903_v46  ;;  %v10899_v51 = vpop.f32.mrf.mxu1 }
 0x386   : > { %v10900_v16 = vadd.f32 %v10899_v51, %v10898_v21  ;;  %v11005_v22 = vpop.f32.mrf.mxu0 }
 0x387   : > { %v11006_v56 = vadd.f32 %v11005_v22, %v11004_v11  ;;  %v10901_v10 = vpop.f32.mrf.mxu1  ;;  %v12012_v22 = vld [vmem:[#allocation3 + $0x3c8] ss:$36 sps:$4 sm:$0xff]  }
 0x388   : > { %v11007_v17 = vpop.f32.mrf.mxu0  ;;  %v7916_v15 = vadd.f32 %v10900_v16, %v12939_v52 }
 0x389   : > { %v13003_v24 = vadd.f32 %v11006_v56, %v7908_v6  ;;  %v10902_v9 = vpop.f32.mrf.mxu1 }
 0x38a   : > { %v10903_v47 = vadd.f32 %v10902_v9, %v10901_v10  ;;  %v11008_v23 = vpop.f32.mrf.mxu0  ;;  %v12013_v10 = vld [vmem:[#allocation3 + $0x410] ss:$36 sps:$4 sm:$0xff]  }
 0x38b   : > { %v11009_v25 = vadd.f32 %v11008_v23, %v11007_v17  ;;  %v10904_v61 = vpop.f32.mrf.mxu1  ;;  %11369 = vmatmul.mubr.bf16.gmra.mxu1 %v12008_v55 }
 0x38c   : > { %v11010_v1 = vpop.f32.mrf.mxu0  ;;  %11372 = vmatprep.mubr.bf16.mxu1 %v12009_v63  ;;  %v7919_v48 = vadd.f32 %v10903_v47, %v12939_v52 }
 0x38d   : > { %v13006_v50 = vadd.f32 %v11009_v25, %v7911_v32  ;;  %v10905_v14 = vpop.f32.mrf.mxu1 }
 0x38e   : > { %v10906_v35 = vadd.f32 %v10905_v14, %v10904_v61  ;;  %v11011_v58 = vpop.f32.mrf.mxu0 }
 0x38f   : > { %v11012_v34 = vadd.f32 %v11011_v58, %v11010_v1  ;;  %v10907_v18 = vpop.f32.mrf.mxu1 }
 0x390   : > { %v11013_v42 = vpop.f32.mrf.mxu0  ;;  %v7924_v46 = vadd.f32 %v10906_v35, %v12939_v52  ;;  %v12014_v35 = vld [vmem:[#allocation3 + $0x458] ss:$36 sps:$4 sm:$0xff]  }
 0x391   : > { %v13009_v54 = vadd.f32 %v11012_v34, %v7916_v15  ;;  %v10908_v5 = vpop.f32.mrf.mxu1 }
 0x392   : > { %v10909_v40 = vadd.f32 %v10908_v5, %v10907_v18  ;;  %v11014_v30 = vpop.f32.mrf.mxu0 }
 0x393   : > { %v11015_v60 = vadd.f32 %v11014_v30, %v11013_v42  ;;  %v10910_v29 = vpop.f32.mrf.mxu1  ;;  %11373 = vmatmul.mubr.bf16.gmra.mxu1 %v12010_v62 }
 0x394   : > { %v11016_v2 = vpop.f32.mrf.mxu0  ;;  %11376 = vmatprep.mubr.bf16.mxu1 %v12011_v57  ;;  %v7927_v17 = vadd.f32 %v10909_v40, %v12939_v52 }
 0x395   : > { %v13012_v38 = vadd.f32 %v11015_v60, %v7919_v48  ;;  %v10911_v12 = vpop.f32.mrf.mxu1 }
 0x396   : > { %v10912_v49 = vadd.f32 %v10911_v12, %v10910_v29  ;;  %v11017_v44 = vpop.f32.mrf.mxu0 }
 0x397   : > { %v11018_v20 = vadd.f32 %v11017_v44, %v11016_v2  ;;  %v10913_v21 = vpop.f32.mrf.mxu1 }
 0x398   : > { %v11019_v11 = vpop.f32.mrf.mxu0  ;;  %v7932_v61 = vadd.f32 %v10912_v49, %v12939_v52 }
 0x399   : > { %v13015_v51 = vadd.f32 %v11018_v20, %v7924_v46  ;;  %v10914_v16 = vpop.f32.mrf.mxu1 }
 0x39a   : > { %v10915_v6 = vadd.f32 %v10914_v16, %v10913_v21  ;;  %v11020_v56 = vpop.f32.mrf.mxu0 }
 0x39b   : > { %v11021_v9 = vadd.f32 %v11020_v56, %v11019_v11  ;;  %v10916_v55 = vpop.f32.mrf.mxu1  ;;  %11377 = vmatmul.mubr.bf16.gmra.mxu1 %v12012_v22 }
 0x39c   : > { %v11022_v47 = vpop.f32.mrf.mxu0  ;;  %11380 = vmatprep.mubr.bf16.mxu1 %v12013_v10  ;;  %v7935_v5 = vadd.f32 %v10915_v6, %v12939_v52 }
 0x39d   : > { %v13018_v23 = vadd.f32 %v11021_v9, %v7927_v17  ;;  %v10917_v63 = vpop.f32.mrf.mxu1 }
 0x39e   : > { %v10918_v32 = vadd.f32 %v10917_v63, %v10916_v55  ;;  %v11023_v25 = vpop.f32.mrf.mxu0 }
 0x39f   : > { %v11024_v1 = vadd.f32 %v11023_v25, %v11022_v47  ;;  %v10919_v14 = vpop.f32.mrf.mxu1 }
 0x3a0   : > { %v11025_v58 = vpop.f32.mrf.mxu0  ;;  %v7940_v2 = vadd.f32 %v10918_v32, %v12939_v52 }
 0x3a1   : > { %v13021_v15 = vadd.f32 %v11024_v1, %v7932_v61  ;;  %v10920_v34 = vpop.f32.mrf.mxu1 }
 0x3a2   : > { %v10921_v18 = vadd.f32 %v10920_v34, %v10919_v14  ;;  %v11026_v42 = vpop.f32.mrf.mxu0 }
 0x3a3   : > { %v11027_v62 = vadd.f32 %v11026_v42, %v11025_v58  ;;  %v10922_v40 = vpop.f32.mrf.mxu1  ;;  %11381 = vmatmul.mubr.bf16.gmra.mxu1 %v12014_v35 }
 0x3a4   : > { %v11028_v30 = vpop.f32.mrf.mxu0  ;;  %v7943_v16 = vadd.f32 %v10921_v18, %v12939_v52 }
 0x3a5   : > { %v13024_v57 = vadd.f32 %v11027_v62, %v7935_v5  ;;  %v10923_v48 = vpop.f32.mrf.mxu1 }
 0x3a6   : > { %v10924_v60 = vadd.f32 %v10923_v48, %v10922_v40  ;;  %v11029_v29 = vpop.f32.mrf.mxu0 }
 0x3a7   : > { %v11030_v12 = vadd.f32 %v11029_v29, %v11028_v30  ;;  %v10925_v49 = vpop.f32.mrf.mxu1 }
 0x3a8   : > { %v11031_v44 = vpop.f32.mrf.mxu0  ;;  %v7948_v47 = vadd.f32 %v10924_v60, %v12939_v52 }
 0x3a9   : > { %v13027_v46 = vadd.f32 %v11030_v12, %v7940_v2  ;;  %v10926_v20 = vpop.f32.mrf.mxu1 }
 0x3aa   : > { %v10927_v21 = vadd.f32 %v10926_v20, %v10925_v49  ;;  %v11032_v11 = vpop.f32.mrf.mxu0 }
 0x3ab   : > { %v11033_v22 = vadd.f32 %v11032_v11, %v11031_v44  ;;  %v11056_v6 = vpop.f32.mrf.mxu1 }
 0x3ac   : > { %v11034_v56 = vpop.f32.mrf.mxu0  ;;  %v7951_v34 = vadd.f32 %v10927_v21, %v12939_v52 }
 0x3ad   : > { %v13030_v10 = vadd.f32 %v11033_v22, %v7943_v16  ;;  %v11057_v17 = vpop.f32.mrf.mxu1 }
 0x3ae   : > { %v11035_v9 = vpop.f32.mrf.mxu0  ;;  %v11058_v55 = vadd.f32 %v11057_v17, %v11056_v6 }
 0x3af   : > { %v11036_v63 = vadd.f32 %v11035_v9, %v11034_v56  ;;  %v11059_v32 = vpop.f32.mrf.mxu1 }
 0x3b0   : > { %v8150_v25 = vadd.f32 %v11058_v55, %v12943_v13  ;;  %v11037_v61 = vpop.f32.mrf.mxu0 }
 0x3b1   : > { %v13034_v1 = vadd.f32 %v11036_v63, %v7948_v47  ;;  %v11060_v14 = vpop.f32.mrf.mxu1 }
 0x3b2   : > { %v11038_v35 = vpop.f32.mrf.mxu0  ;;  %v11061_v58 = vadd.f32 %v11060_v14, %v11059_v32 }
 0x3b3   : > { %13506 = vst [vmem:[#allocation16_spill] sm:$0xff] %v13034_v1  ;;  %v11039_v18 = vadd.f32 %v11038_v35, %v11037_v61  ;;  %v11062_v42 = vpop.f32.mrf.mxu1 }
 0x3b4   : > { %v8153_v5 = vadd.f32 %v11061_v58, %v12946_v31  ;;  %v11168_v62 = vpop.f32.mrf.mxu0 }
 0x3b5   : > { %v13038_v40 = vadd.f32 %v11039_v18, %v7951_v34  ;;  %v11063_v30 = vpop.f32.mrf.mxu1 }
 0x3b6   : > { %v11064_v48 = vadd.f32 %v11063_v30, %v11062_v42  ;;  %v11169_v60 = vpop.f32.mrf.mxu0 }
 0x3b7   : > { %13507 = vst [vmem:[#allocation18_spill] sm:$0xff] %v13038_v40  ;;  %v11170_v29 = vadd.f32 %v11169_v60, %v11168_v62  ;;  %v11065_v13 = vpop.f32.mrf.mxu1 }
 0x3b8   : > { %v13041_v2 = vadd.f32 %v11064_v48, %v12949_v7  ;;  %v11171_v12 = vpop.f32.mrf.mxu0 }
 0x3b9   : > { %v11066_v49 = vpop.f32.mrf.mxu1  ;;  %v13043_v44 = vadd.f32 %v11170_v29, %v8150_v25 }
 0x3ba   : > { %v11067_v52 = vadd.f32 %v11066_v49, %v11065_v13  ;;  %v11172_v20 = vpop.f32.mrf.mxu0 }
 0x3bb   : > { %v11173_v21 = vadd.f32 %v11172_v20, %v11171_v12  ;;  %v11068_v11 = vpop.f32.mrf.mxu1 }
 0x3bc   : > { %v13046_v31 = vadd.f32 %v11067_v52, %v12952_v36  ;;  %v13048_v16 = vpop.f32.mrf.mxu0 }
 0x3bd   : > { %v11069_v22 = vpop.f32.mrf.mxu1  ;;  %v13050_v6 = vadd.f32 %v11173_v21, %v8153_v5 }
 0x3be   : > { %v11070_v56 = vadd.f32 %v11069_v22, %v11068_v11  ;;  %v13052_v17 = vpop.f32.mrf.mxu0 }
 0x3bf   : > { %v11071_v7 = vpop.f32.mrf.mxu1 }
 0x3c0   : > { %v13055_v9 = vadd.f32 %v11070_v56, %v12955_v43  ;;  %v13057_v55 = vpop.f32.mrf.mxu0 }
 0x3c1   : > { %v11072_v47 = vpop.f32.mrf.mxu1 }
 0x3c2   : > { %v11073_v63 = vadd.f32 %v11072_v47, %v11071_v7  ;;  %v13059_v32 = vpop.f32.mrf.mxu0 }
 0x3c3   : > { %v11074_v36 = vpop.f32.mrf.mxu1 }
 0x3c4   : > { %v13062_v25 = vadd.f32 %v11073_v63, %v12958_v59  ;;  %v13064_v61 = vpop.f32.mrf.mxu0 }
 0x3c5   : > { %v11075_v14 = vpop.f32.mrf.mxu1 }
 0x3c6   : > { %v11076_v35 = vadd.f32 %v11075_v14, %v11074_v36  ;;  %v13066_v58 = vpop.f32.mrf.mxu0 }
 0x3c7   : > { %v11077_v34 = vpop.f32.mrf.mxu1 }
 0x3c8   : > { %v13069_v43 = vadd.f32 %v11076_v35, %v12961_v41  ;;  %v13071_v18 = vpop.f32.mrf.mxu0 }
 0x3c9   : > { %v11078_v42 = vpop.f32.mrf.mxu1 }
 0x3ca   : > { %v11079_v5 = vadd.f32 %v11078_v42, %v11077_v34  ;;  %v13073_v62 = vpop.f32.mrf.mxu0 }
 0x3cb   : > { %v11080_v30 = vpop.f32.mrf.mxu1 }
 0x3cc   : > { %v13076_v59 = vadd.f32 %v11079_v5, %v12964_v4  ;;  %v13078_v48 = vpop.f32.mrf.mxu0 }
 0x3cd   : > { %v11081_v60 = vpop.f32.mrf.mxu1 }
 0x3ce   : > { %v11082_v29 = vadd.f32 %v11081_v60, %v11080_v30  ;;  %v13080_v13 = vpop.f32.mrf.mxu0 }
 0x3cf   : > { %v11083_v12 = vpop.f32.mrf.mxu1 }
 0x3d0   : > { %v13083_v41 = vadd.f32 %v11082_v29, %v12967_v27  ;;  %v13085_v49 = vpop.f32.mrf.mxu0 }
 0x3d1   : > { %v11084_v52 = vpop.f32.mrf.mxu1 }
 0x3d2   : > { %v11085_v20 = vadd.f32 %v11084_v52, %v11083_v12  ;;  %v13087_v21 = vpop.f32.mrf.mxu0 }
 0x3d3   : > { %v11086_v11 = vpop.f32.mrf.mxu1 }
 0x3d4   : > { %v13090_v4 = vadd.f32 %v11085_v20, %v12970_v33  ;;  %v13092_v22 = vpop.f32.mrf.mxu0 }
 0x3d5   : > { %v11087_v56 = vpop.f32.mrf.mxu1 }
 0x3d6   : > { %v11088_v7 = vadd.f32 %v11087_v56, %v11086_v11  ;;  %v13094_v47 = vpop.f32.mrf.mxu0 }
 0x3d7   : > { %v11089_v63 = vpop.f32.mrf.mxu1 }
 0x3d8   : > { %v13097_v27 = vadd.f32 %v11088_v7, %v12973_v26  ;;  %v13099_v36 = vpop.f32.mrf.mxu0 }
 0x3d9   : > { %v11090_v14 = vpop.f32.mrf.mxu1 }
 0x3da   : > { %v11091_v35 = vadd.f32 %v11090_v14, %v11089_v63  ;;  %v13101_v34 = vpop.f32.mrf.mxu0 }
 0x3db   : > { %v11092_v42 = vpop.f32.mrf.mxu1 }
 0x3dc   : > { %v13104_v33 = vadd.f32 %v11091_v35, %v12976_v37  ;;  %v13106_v5 = vpop.f32.mrf.mxu0 }
 0x3dd   : > { %v11093_v30 = vpop.f32.mrf.mxu1 }
 0x3de   : > { %v11094_v60 = vadd.f32 %v11093_v30, %v11092_v42  ;;  %v13108_v29 = vpop.f32.mrf.mxu0 }
 0x3df   : > { %v11095_v12 = vpop.f32.mrf.mxu1 }
 0x3e0   : > { %v13111_v26 = vadd.f32 %v11094_v60, %v12979_v28  ;;  %v13113_v52 = vpop.f32.mrf.mxu0 }
 0x3e1   : > { %v11096_v20 = vpop.f32.mrf.mxu1 }
 0x3e2   : > { %13508 = vst [vmem:[#allocation22_spill] sm:$0xff] %v13111_v26  ;;  %v11097_v11 = vadd.f32 %v11096_v20, %v11095_v12  ;;  %v13115_v56 = vpop.f32.mrf.mxu0 }
 0x3e3   : > { %v11098_v7 = vpop.f32.mrf.mxu1 }
 0x3e4   : > { %v13118_v37 = vadd.f32 %v11097_v11, %v12982_v53  ;;  %v13120_v63 = vpop.f32.mrf.mxu0 }
 0x3e5   : > { %v11099_v14 = vpop.f32.mrf.mxu1 }
 0x3e6   : > { %13509 = vst [vmem:[#allocation24_spill] sm:$0xff] %v13118_v37  ;;  %v11100_v35 = vadd.f32 %v11099_v14, %v11098_v7  ;;  %v13122_v42 = vpop.f32.mrf.mxu0 }
 0x3e7   : > { %v11101_v30 = vpop.f32.mrf.mxu1 }
 0x3e8   : > { %v13125_v28 = vadd.f32 %v11100_v35, %v12985_v39  ;;  %v13127_v60 = vpop.f32.mrf.mxu0 }
 0x3e9   : > { %13511 = vst [vmem:[#allocation21_spill] sm:$0xff] %v13127_v60  ;;  %v11102_v40 = vpop.f32.mrf.mxu1 }
 0x3ea   : > { %13510 = vst [vmem:[#allocation20_spill] sm:$0xff] %v13125_v28  ;;  %v11103_v12 = vadd.f32 %v11102_v40, %v11101_v30  ;;  %v13129_v20 = vpop.f32.mrf.mxu0 }
 0x3eb   : > { %13512 = vst [vmem:[#allocation17_spill] sm:$0xff] %v13129_v20  ;;  %v11104_v1 = vpop.f32.mrf.mxu1 }
 0x3ec   : > { %v13132_v53 = vadd.f32 %v11103_v12, %v12988_v45  ;;  %v13134_v11 = vpop.f32.mrf.mxu0 }
 0x3ed   : > { %v11105_v37 = vpop.f32.mrf.mxu1 }
 0x3ee   : > { %13513 = vst [vmem:[#allocation23_spill] sm:$0xff] %v13132_v53  ;;  %v11106_v7 = vadd.f32 %v11105_v37, %v11104_v1  ;;  %v13136_v14 = vpop.f32.mrf.mxu0 }
 0x3ef   : > { %v11107_v26 = vpop.f32.mrf.mxu1 }
 0x3f0   : > { %v13139_v39 = vadd.f32 %v11106_v7, %v12991_v19  ;;  %v13141_v35 = vpop.f32.mrf.mxu0 }
 0x3f1   : > { %v11108_v60 = vpop.f32.mrf.mxu1 }
 0x3f2   : > { %13514 = vst [vmem:[#allocation19_spill] sm:$0xff] %v13139_v39  ;;  %v11109_v40 = vadd.f32 %v11108_v60, %v11107_v26  ;;  %v13143_v30 = vpop.f32.mrf.mxu0 }
 0x3f3   : > { %13515 = vst [vmem:[#allocation26_spill] sm:$0xff] %v13143_v30  ;;  %v11110_v20 = vpop.f32.mrf.mxu1 }
 0x3f4   : > { %v13146_v45 = vadd.f32 %v11109_v40, %v12994_v0  ;;  %v13148_v12 = vpop.f32.mrf.mxu0 }
 0x3f5   : > { %v11111_v53 = vpop.f32.mrf.mxu1 }
 0x3f6   : > { %13516 = vst [vmem:[#allocation27_spill] sm:$0xff] %v13146_v45  ;;  %v11112_v1 = vadd.f32 %v11111_v53, %v11110_v20  ;;  %v13150_v37 = vpop.f32.mrf.mxu0 }
 0x3f7   : > { %13517 = vst [vmem:[#allocation31_spill] sm:$0xff] %v13150_v37  ;;  %v11113_v28 = vpop.f32.mrf.mxu1 }
 0x3f8   : > { %v13153_v19 = vadd.f32 %v11112_v1, %v12997_v8  ;;  %v13155_v7 = vpop.f32.mrf.mxu0 }
 0x3f9   : > { %13519 = vst [vmem:[#allocation30_spill] sm:$0xff] %v13155_v7  ;;  %v11114_v39 = vpop.f32.mrf.mxu1 }
 0x3fa   : > { %13518 = vst [vmem:[#allocation29_spill] sm:$0xff] %v13153_v19  ;;  %v11115_v26 = vadd.f32 %v11114_v39, %v11113_v28  ;;  %v13157_v60 = vpop.f32.mrf.mxu0 }
 0x3fb   : > { %13520 = vst [vmem:[#allocation25_spill] sm:$0xff] %v13157_v60  ;;  %v11116_v30 = vpop.f32.mrf.mxu1 }
 0x3fc   : > { %v13160_v0 = vadd.f32 %v11115_v26, %v13000_v3  ;;  %v13162_v40 = vpop.f32.mrf.mxu0 }
 0x3fd   : > { %v11117_v45 = vpop.f32.mrf.mxu1 }
 0x3fe   : > { %13521 = vst [vmem:[#allocation33_spill] sm:$0xff] %v13160_v0  ;;  %v11118_v20 = vadd.f32 %v11117_v45, %v11116_v30  ;;  %v13164_v53 = vpop.f32.mrf.mxu0 }
 0x3ff   : > { %v11119_v37 = vpop.f32.mrf.mxu1 }
 0x400   : > { %v13167_v8 = vadd.f32 %v11118_v20, %v13003_v24  ;;  %v13169_v1 = vpop.f32.mrf.mxu0 }
 0x401   : > { %13523 = vst [vmem:[#allocation35_spill] sm:$0xff] %v13169_v1  ;;  %v11120_v7 = vpop.f32.mrf.mxu1 }
 0x402   : > { %13522 = vst [vmem:[#allocation28_spill] sm:$0xff] %v13167_v8  ;;  %v11121_v28 = vadd.f32 %v11120_v7, %v11119_v37  ;;  %v13171_v39 = vpop.f32.mrf.mxu0 }
 0x403   : > { %v11122_v60 = vpop.f32.mrf.mxu1 }
 0x404   : > { %v13174_v3 = vadd.f32 %v11121_v28, %v13006_v50  ;;  %v13176_v26 = vpop.f32.mrf.mxu0 }
 0x405   : > { %13525 = vst [vmem:[#allocation32_spill] sm:$0xff] %v13176_v26  ;;  %v11123_v0 = vpop.f32.mrf.mxu1 }
 0x406   : > { %13524 = vst [vmem:[#allocation36_spill] sm:$0xff] %v13174_v3  ;;  %v11124_v30 = vadd.f32 %v11123_v0, %v11122_v60  ;;  %v13178_v45 = vpop.f32.mrf.mxu0 }
 0x407   : > { %13526 = vst [vmem:[#allocation37_spill] sm:$0xff] %v13178_v45  ;;  %v11125_v19 = vpop.f32.mrf.mxu1 }
 0x408   : > { %v13181_v24 = vadd.f32 %v11124_v30, %v13009_v54  ;;  %v13183_v1 = vpop.f32.mrf.mxu0 }
 0x409   : > { %v11126_v20 = vpop.f32.mrf.mxu1  ;;  %13527 = vst [vmem:[#allocation34_spill] sm:$0xff] %v13183_v1 }
 0x40a   : > { %v11127_v8 = vadd.f32 %v11126_v20, %v11125_v19  ;;  %v13188_v3 = vpop.f32.mrf.mxu0 }
 0x40b   : > { %v11128_v37 = vpop.f32.mrf.mxu1 }
 0x40c   : > { %v13186_v7 = vadd.f32 %v11127_v8, %v13012_v38  ;;  %v13193_v54 = vpop.f32.mrf.mxu0 }
 0x40d   : > { %v11129_v50 = vpop.f32.mrf.mxu1 }
 0x40e   : > { %13528 = vst [vmem:[#allocation40_spill] sm:$0xff] %v13186_v7  ;;  %v11130_v28 = vadd.f32 %v11129_v50, %v11128_v37  ;;  %v13198_v38 = vpop.f32.mrf.mxu0 }
 0x40f   : > { %v11131_v26 = vpop.f32.mrf.mxu1 }
 0x410   : > { %v13191_v60 = vadd.f32 %v11130_v28, %v13015_v51  ;;  %v13203_v51 = vpop.f32.mrf.mxu0 }
 0x411   : > { %v11132_v0 = vpop.f32.mrf.mxu1 }
 0x412   : > { %13529 = vst [vmem:[#allocation38_spill] sm:$0xff] %v13191_v60  ;;  %v11133_v45 = vadd.f32 %v11132_v0, %v11131_v26 }
 0x413   : > { %v11134_v30 = vpop.f32.mrf.mxu1 }
 0x414   : > { %v13196_v19 = vadd.f32 %v11133_v45, %v13018_v23  ;;  %v13208_v23 = vpop.f32.mrf.mxu0 }
 0x415   : > { %v11135_v20 = vpop.f32.mrf.mxu1 }
 0x416   : > { %13530 = vst [vmem:[#allocation14_spill] sm:$0xff] %v13196_v19  ;;  %v11136_v1 = vadd.f32 %v11135_v20, %v11134_v30 }
 0x417   : > { %v11137_v8 = vpop.f32.mrf.mxu1 }
 0x418   : > { %v13201_v37 = vadd.f32 %v11136_v1, %v13021_v15  ;;  %v13213_v15 = vpop.f32.mrf.mxu0 }
 0x419   : > { %v11138_v50 = vpop.f32.mrf.mxu1 }
 0x41a   : > { %v11139_v7 = vadd.f32 %v11138_v50, %v11137_v8  ;;  %v13224_v50 = vpop.f32.mrf.mxu0 }
 0x41b   : > { %v11140_v28 = vpop.f32.mrf.mxu1 }
 0x41c   : > { %v13206_v26 = vadd.f32 %v11139_v7, %v13024_v57  ;;  %v11176_v7 = vadd.f32 %v13052_v17, %v13048_v16 }
 0x41d   : > { %v11141_v0 = vpop.f32.mrf.mxu1 }
 0x41e   : > { %v11142_v60 = vadd.f32 %v11141_v0, %v11140_v28  ;;  %v8319_v0 = vadd.f32 %v11176_v7, %v13041_v2  ;;  %v11191_v7 = vadd.f32 %v13087_v21, %v13085_v49  ;;  %v11200_v49 = vadd.f32 %v13108_v29, %v13106_v5 }
 0x41f   : > { %v11143_v45 = vpop.f32.mrf.mxu1  ;;  %v11203_v5 = vadd.f32 %v13115_v56, %v13113_v52  ;;  %v11212_v52 = vadd.f32 %v13136_v14, %v13134_v11 }
 0x420   : > { %v13211_v30 = vadd.f32 %v11142_v60, %v13027_v46  ;;  %v11179_v60 = vadd.f32 %v13059_v32, %v13057_v55  ;;  %v11182_v32 = vadd.f32 %v13066_v58, %v13064_v61 }
 0x421   : > { %v11144_v20 = vpop.f32.mrf.mxu1 }
 0x422   : > { %v11145_v19 = vadd.f32 %v11144_v20, %v11143_v45  ;;  %v13233_v45 = vpop.f32.mrf.mxu0  ;;  %v8322_v2 = vadd.f32 %v11179_v60, %v13046_v31  ;;  %v8327_v58 = vadd.f32 %v11182_v32, %v13055_v9 }
 0x423   : > { %v13215_v1 = vpop.f32.mrf.mxu1 }
 0x424   : > { %v13218_v8 = vadd.f32 %v11145_v19, %v13030_v10  ;;  %v13244_v17 = vpop.f32.mrf.mxu0 }
 0x425   : > { %v13220_v57 = vpop.f32.mrf.mxu1 }
 0x426   : > { %13531 = vst [vmem:[#allocation39_spill] sm:$0xff] %v13218_v8  ;;  %v11188_v8 = vadd.f32 %v13080_v13, %v13078_v48  ;;  %v13254_v31 = vpop.f32.mrf.mxu0 }
 0x427   : > { %v13226_v28 = vpop.f32.mrf.mxu1 }
 0x428   : > { %v13264_v21 = vpop.f32.mrf.mxu0 }
 0x429   : > { %v13228_v46 = vpop.f32.mrf.mxu1 }
 0x42b   : > { %v11354_v10 = vpop.f32.mrf.mxu1 }
 0x42c   : > { %v8480_v19 = vadd.f32 %v11354_v10, %v8319_v0  ;;  %v11185_v10 = vadd.f32 %v13073_v62, %v13071_v18  ;;  %v11194_v18 = vadd.f32 %v13094_v47, %v13092_v22  ;;  %v11197_v22 = vadd.f32 %v13101_v34, %v13099_v36 }
 0x42d   : > { %v8471_v20 = vpop.f32.mrf.mxu1  ;;  %v11206_v36 = vadd.f32 %v13122_v42, %v13120_v63 }
 0x42e   : > { %8600 = vst [vmem:[%s13239_s17 + $0x10] sm:$0xff] %v8480_v19  ;;  %v8472_v16 = vadd.f32 %v8471_v20, %v13043_v44  ;;  %v8335_v44 = vadd.f32 %v11188_v8, %v13069_v43  ;;  %v8338_v43 = vadd.f32 %v11191_v7, %v13076_v59  ;;  %v8330_v9 = vadd.f32 %v11185_v10, %v13062_v25  ;;  %v13532_v7 = vld [vmem:[#allocation26_spill] sm:$0xff]  ;;  %v13534_v10 = vld [vmem:[#allocation21_spill] sm:$0xff] }
 0x42f   : > { %v11355_v55 = vpop.f32.mrf.mxu1  ;;  %v8351_v59 = vadd.f32 %v11200_v49, %v13097_v27  ;;  %v8343_v25 = vadd.f32 %v11194_v18, %v13083_v41  ;;  %v8354_v27 = vadd.f32 %v11203_v5, %v13104_v33  ;;  %v8346_v41 = vadd.f32 %v11197_v22, %v13090_v4  ;;  %v13539_v5 = vld [vmem:[#allocation24_spill] sm:$0xff]  ;;  %v13541_v22 = vld [vmem:[#allocation29_spill] sm:$0xff] }
 0x430   : > { %8598 = vst [vmem:[%s13239_s17] sm:$0xff] %v8472_v16  ;;  %v8483_v48 = vadd.f32 %v11355_v55, %v8322_v2  ;;  %v13274_v16 = vpop.f32.mrf.mxu0  ;;  %v11215_v11 = vadd.f32 %v13532_v7, %v13141_v35  ;;  %v11224_v35 = vadd.f32 %v13164_v53, %v13162_v40 }
 0x431   : > { %v8474_v13 = vpop.f32.mrf.mxu1 }
 0x432   : > { %8601 = vst [vmem:[%s13239_s17 + $0x18] sm:$0xff] %v8483_v48  ;;  %v8475_v0 = vadd.f32 %v8474_v13, %v13050_v6  ;;  %v13284_v32 = vpop.f32.mrf.mxu0 }
 0x433   : > { %v11358_v60 = vpop.f32.mrf.mxu1 }
 0x434   : > { %8599 = vst [vmem:[%s13239_s17 + $0x8] sm:$0xff] %v8475_v0  ;;  %v8496_v61 = vadd.f32 %v11358_v60, %v8335_v44  ;;  %v13533_v0 = vld [vmem:[#allocation20_spill] sm:$0xff]  ;;  %v13294_v44 = vpop.f32.mrf.mxu0 }
 0x435   : > { %v8487_v19 = vpop.f32.mrf.mxu1  ;;  %v8367_v33 = vadd.f32 %v11212_v52, %v13533_v0  ;;  %v13542_v52 = vld [vmem:[#allocation30_spill] sm:$0xff]  ;;  %v13546_v0 = vld [vmem:[#allocation32_spill] sm:$0xff] }
 0x436   : > { %8604 = vst [vmem:[%s13239_s17 + $0x30] sm:$0xff] %v8496_v61  ;;  %v8488_v6 = vadd.f32 %v8487_v19, %v8327_v58  ;;  %v13535_v61 = vld [vmem:[#allocation17_spill] sm:$0xff]  ;;  %v13536_v58 = vld [vmem:[#allocation22_spill] sm:$0xff] }
 0x437   : > { %v11359_v8 = vpop.f32.mrf.mxu1  ;;  %v11209_v63 = vadd.f32 %v13535_v61, %v13534_v10  ;;  %v8359_v4 = vadd.f32 %v11206_v36, %v13536_v58  ;;  %v13548_v61 = vld [vmem:[#allocation27_spill] sm:$0xff]  ;;  %v11239_v58 = vadd.f32 %v13208_v23, %v13203_v51  ;;  %v13551_v23 = vld [vmem:[#allocation40_spill] sm:$0xff] }
 0x438   : > { %8602 = vst [vmem:[%s13239_s17 + $0x20] sm:$0xff] %v8488_v6  ;;  %v8499_v62 = vadd.f32 %v11359_v8, %v8338_v43  ;;  %v13537_v6 = vld [vmem:[#allocation23_spill] sm:$0xff]  ;;  %v13304_v8 = vpop.f32.mrf.mxu0 }
 0x439   : > { %v8490_v20 = vpop.f32.mrf.mxu1  ;;  %v8370_v43 = vadd.f32 %v11215_v11, %v13537_v6 }
 0x43a   : > { %8605 = vst [vmem:[%s13239_s17 + $0x38] sm:$0xff] %v8499_v62  ;;  %v8491_v29 = vadd.f32 %v8490_v20, %v8330_v9  ;;  %v13538_v62 = vld [vmem:[#allocation31_spill] sm:$0xff] }
 0x43b   : > { %v11362_v2 = vpop.f32.mrf.mxu1  ;;  %v11218_v9 = vadd.f32 %v13538_v62, %v13148_v12 }
 0x43c   : > { %8603 = vst [vmem:[%s13239_s17 + $0x28] sm:$0xff] %v8491_v29  ;;  %v8512_v47 = vadd.f32 %v11362_v2, %v8351_v59  ;;  %v8362_v29 = vadd.f32 %v11209_v63, %v13539_v5  ;;  %v13540_v2 = vld [vmem:[#allocation35_spill] sm:$0xff] }
 0x43d   : > { %v8503_v55 = vpop.f32.mrf.mxu1  ;;  %v11227_v40 = vadd.f32 %v13171_v39, %v13540_v2  ;;  %v11236_v39 = vadd.f32 %v13198_v38, %v13193_v54 }
 0x43e   : > { %8608 = vst [vmem:[%s13239_s17 + $0x50] sm:$0xff] %v8512_v47  ;;  %v8504_v56 = vadd.f32 %v8503_v55, %v8343_v25  ;;  %v8383_v47 = vadd.f32 %v11224_v35, %v13541_v22  ;;  %v13314_v25 = vpop.f32.mrf.mxu0  ;;  %v13549_v35 = vld [vmem:[#allocation34_spill] sm:$0xff]  ;;  %v11245_v22 = vadd.f32 %v13244_v17, %v13233_v45 }
 0x43f   : > { %v11363_v48 = vpop.f32.mrf.mxu1  ;;  %v8399_v38 = vadd.f32 %v11236_v39, %v13181_v24  ;;  %v13554_v17 = vld [vmem:[#allocation14_spill] sm:$0xff] }
 0x440   : > { %8606 = vst [vmem:[%s13239_s17 + $0x40] sm:$0xff] %v8504_v56  ;;  %v8515_v34 = vadd.f32 %v11363_v48, %v8354_v27  ;;  %v13543_v56 = vld [vmem:[#allocation25_spill] sm:$0xff]  ;;  %v13544_v48 = vld [vmem:[#allocation19_spill] sm:$0xff]  ;;  %v11256_v11 = vpop.f32.mrf.mxu0 }
 0x441   : > { %v8506_v13 = vpop.f32.mrf.mxu1  ;;  %v11221_v12 = vadd.f32 %v13543_v56, %v13542_v52  ;;  %v8375_v36 = vadd.f32 %v11218_v9, %v13544_v48  ;;  %v11248_v9 = vadd.f32 %v13264_v21, %v13254_v31  ;;  %v13553_v52 = vld [vmem:[#allocation38_spill] sm:$0xff]  ;;  %v8410_v48 = vadd.f32 %v11245_v22, %v13554_v17 }
 0x442   : > { %8609 = vst [vmem:[%s13239_s17 + $0x58] sm:$0xff] %v8515_v34  ;;  %v8507_v14 = vadd.f32 %v8506_v13, %v8346_v41  ;;  %v13545_v13 = vld [vmem:[#allocation33_spill] sm:$0xff] }
 0x443   : > { %v11366_v60 = vpop.f32.mrf.mxu1  ;;  %v8386_v7 = vadd.f32 %v11227_v40, %v13545_v13  ;;  %v8378_v63 = vadd.f32 %v11221_v12, %v13548_v61  ;;  %v8415_v21 = vadd.f32 %v11248_v9, %v13201_v37 }
 0x444   : > { %8607 = vst [vmem:[%s13239_s17 + $0x48] sm:$0xff] %v8507_v14  ;;  %v8528_v42 = vadd.f32 %v11366_v60, %v8367_v33  ;;  %v13547_v33 = vld [vmem:[#allocation37_spill] sm:$0xff] }
 0x445   : > { %v8519_v19 = vpop.f32.mrf.mxu1  ;;  %v11230_v60 = vadd.f32 %v13547_v33, %v13546_v0  ;;  %v13556_v0 = vld [vmem:[#allocation18_spill] sm:$0xff] }
 0x446   : > { %8612 = vst [vmem:[%s13239_s17 + $0x70] sm:$0xff] %v8528_v42  ;;  %v8520_v49 = vadd.f32 %v8519_v19, %v8359_v4  ;;  %v11258_v4 = vpop.f32.mrf.mxu0 }
 0x447   : > { %v11367_v18 = vpop.f32.mrf.mxu1 }
 0x448   : > { %8610 = vst [vmem:[%s13239_s17 + $0x60] sm:$0xff] %v8520_v49  ;;  %v8531_v20 = vadd.f32 %v11367_v18, %v8370_v43  ;;  %v11233_v49 = vadd.f32 %v13188_v3, %v13549_v35  ;;  %v13550_v43 = vld [vmem:[#allocation28_spill] sm:$0xff]  ;;  %v11259_v24 = vpop.f32.mrf.mxu0 }
 0x449   : > { %v8522_v59 = vpop.f32.mrf.mxu1  ;;  %v8391_v18 = vadd.f32 %v11230_v60, %v13550_v43  ;;  %v11257_v60 = vadd.f32 %v11256_v11, %v13314_v25 }
 0x44a   : > { %8613 = vst [vmem:[%s13239_s17 + $0x78] sm:$0xff] %v8531_v20  ;;  %v8523_v53 = vadd.f32 %v8522_v59, %v8362_v29  ;;  %v8402_v20 = vadd.f32 %v11239_v58, %v13551_v23  ;;  %v11242_v29 = vadd.f32 %v13224_v50, %v13213_v15  ;;  %v13552_v59 = vld [vmem:[#allocation36_spill] sm:$0xff]  ;;  %v11148_v15 = vadd.f32 %v13220_v57, %v13215_v1 }
 0x44b   : > { %v11370_v55 = vpop.f32.mrf.mxu1  ;;  %v8394_v2 = vadd.f32 %v11233_v49, %v13552_v59  ;;  %v11254_v1 = vadd.f32 %v13304_v8, %v13294_v44  ;;  %v11151_v57 = vadd.f32 %v13228_v46, %v13226_v28 }
 0x44c   : > { %8611 = vst [vmem:[%s13239_s17 + $0x68] sm:$0xff] %v8523_v53  ;;  %v8544_v27 = vadd.f32 %v11370_v55, %v8383_v47  ;;  %v11251_v53 = vadd.f32 %v13284_v32, %v13274_v16  ;;  %v11261_v47 = vpop.f32.mrf.mxu0  ;;  %v8407_v56 = vadd.f32 %v11242_v29, %v13553_v52  ;;  %v11260_v16 = vadd.f32 %v11259_v24, %v11258_v4 }
 0x44d   : > { %v8535_v34 = vpop.f32.mrf.mxu1  ;;  %v8273_v33 = vadd.f32 %v11151_v57, %v13556_v0  ;;  %v8423_v28 = vadd.f32 %v11254_v1, %v13211_v30 }
 0x44e   : > { %8616 = vst [vmem:[%s13239_s17 + $0x90] sm:$0xff] %v8544_v27  ;;  %v8536_v41 = vadd.f32 %v8535_v34, %v8375_v36  ;;  %v8418_v37 = vadd.f32 %v11251_v53, %v13206_v26  ;;  %v11262_v27 = vpop.f32.mrf.mxu0  ;;  %v13555_v36 = vld [vmem:[#allocation16_spill] sm:$0xff] }
 0x44f   : > { %v11371_v14 = vpop.f32.mrf.mxu1  ;;  %v8270_v34 = vadd.f32 %v11148_v15, %v13555_v36  ;;  %v11263_v26 = vadd.f32 %v11262_v27, %v11261_v47 }
 0x450   : > { %8614 = vst [vmem:[%s13239_s17 + $0x80] sm:$0xff] %v8536_v41  ;;  %v8547_v10 = vadd.f32 %v11371_v14, %v8386_v7 }
 0x451   : > { %v8538_v42 = vpop.f32.mrf.mxu1  ;;  %v8431_v7 = vadd.f32 %v11260_v16, %v8270_v34 }
 0x452   : > { %8617 = vst [vmem:[%s13239_s17 + $0x98] sm:$0xff] %v8547_v10  ;;  %v8539_v54 = vadd.f32 %v8538_v42, %v8378_v63  ;;  %v8434_v10 = vadd.f32 %v11263_v26, %v8273_v33  ;;  %v13557_v42 = vld [vmem:[#allocation39_spill] sm:$0xff] }
 0x453   : > { %v11374_v19 = vpop.f32.mrf.mxu1  ;;  %v8426_v58 = vadd.f32 %v11257_v60, %v13557_v42 }
 0x454   : > { %8615 = vst [vmem:[%s13239_s17 + $0x88] sm:$0xff] %v8539_v54  ;;  %v8560_v6 = vadd.f32 %v11374_v19, %v8399_v38 }
 0x455   : > { %v8551_v62 = vpop.f32.mrf.mxu1 }
 0x456   : > { %8620 = vst [vmem:[%s13239_s17 + $0xb0] sm:$0xff] %v8560_v6  ;;  %v8552_v51 = vadd.f32 %v8551_v62, %v8391_v18 }
 0x457   : > { %v11375_v5 = vpop.f32.mrf.mxu1 }
 0x458   : > { %8618 = vst [vmem:[%s13239_s17 + $0xa0] sm:$0xff] %v8552_v51  ;;  %v8563_v3 = vadd.f32 %v11375_v5, %v8402_v20 }
 0x459   : > { %v8554_v40 = vpop.f32.mrf.mxu1 }
 0x45a   : > { %8621 = vst [vmem:[%s13239_s17 + $0xb8] sm:$0xff] %v8563_v3  ;;  %v8555_v31 = vadd.f32 %v8554_v40, %v8394_v2 }
 0x45b   : > { %v11378_v55 = vpop.f32.mrf.mxu1 }
 0x45c   : > { %8619 = vst [vmem:[%s13239_s17 + $0xa8] sm:$0xff] %v8555_v31  ;;  %v8576_v50 = vadd.f32 %v11378_v55, %v8415_v21 }
 0x45d   : > { %v8567_v12 = vpop.f32.mrf.mxu1 }
 0x45e   : > { %8624 = vst [vmem:[%s13239_s17 + $0xd0] sm:$0xff] %v8576_v50  ;;  %v8568_v32 = vadd.f32 %v8567_v12, %v8407_v56 }
 0x45f   : > { %v11379_v45 = vpop.f32.mrf.mxu1 }
 0x460   : > { %8622 = vst [vmem:[%s13239_s17 + $0xc0] sm:$0xff] %v8568_v32  ;;  %v8579_v39 = vadd.f32 %v11379_v45, %v8418_v37 }
 0x461   : > { %v8570_v41 = vpop.f32.mrf.mxu1 }
 0x462   : > { %8625 = vst [vmem:[%s13239_s17 + $0xd8] sm:$0xff] %v8579_v39  ;;  %v8571_v13 = vadd.f32 %v8570_v41, %v8410_v48 }
 0x463   : > { %v11382_v14 = vpop.f32.mrf.mxu1 }
 0x464   : > { %8623 = vst [vmem:[%s13239_s17 + $0xc8] sm:$0xff] %v8571_v13  ;;  %v8592_v44 = vadd.f32 %v11382_v14, %v8431_v7 }
 0x465   : > { %v8583_v46 = vpop.f32.mrf.mxu1 }
 0x466   : > { %8628 = vst [vmem:[%s13239_s17 + $0xf0] sm:$0xff] %v8592_v44  ;;  %v8584_v8 = vadd.f32 %v8583_v46, %v8423_v28 }
 0x467   : > { %v11383_v61 = vpop.f32.mrf.mxu1 }
 0x468   : > { %8626 = vst [vmem:[%s13239_s17 + $0xe0] sm:$0xff] %v8584_v8  ;;  %v8595_v63 = vadd.f32 %v11383_v61, %v8434_v10 }
 0x469   : > { %v8586_v25 = vpop.f32.mrf.mxu1 }
 0x46a   : > { %8629 = vst [vmem:[%s13239_s17 + $0xf8] sm:$0xff] %v8595_v63  ;;  %v8587_v30 = vadd.f32 %v8586_v25, %v8426_v58 }
 0x46c   : > { %8627 = vst [vmem:[%s13239_s17 + $0xe8] sm:$0xff] %v8587_v30 }
 0x46d   : > { %12112 = shalt.err (!%p12109_p9)
}
 0x46e   : > { %s12113_s10 = scalar_lea.hbm %s13376_s20, 4096  ;;  %s12117_s16 = scalar_lea.hbm %s13430_s7, 8192 }
 0x46f   : > { %p12114_p13 = scmp.ne.s32.totalorder %s13376_s20, %s12113_s10  ;;  %p12118_p4 = scmp.lt.s32.totalorder %s13376_s20, %s13430_s7 }
 0x470   : > { %p12119_p8 = scmp.lt.s32.totalorder %s12117_s16, %s12113_s10 }
 0x471   : > { %p12115_p5 = pnand %p12114_p13, %p13558_p10 }
 0x472   : > { %p12120_p3 = por %p12119_p8, %p12118_p4 }
 0x473   : > { %p12116_p0 = pneg %p12115_p5 }
 0x475   : > { %p12121_p11 = pnand %p12120_p3, %p12116_p0 }
 0x477   : > { %12124 = shalt.err (!%p12121_p11)
}
 0x478   : > { %s12179_s9 = smov 128   ;;  %s12180_s18 = smov 8  }
 0x479   : > { %11394 = dma.vmem_to_hbm [thread:$0]  (%p13558_p10), %s13378_s30, 4096, %s13376_s20, %s8631_s28, %s12179_s9, %s12179_s9, %s12180_s18  }
 0x47a PF: > { %s8659_s21 = sand.u32 1, %s12155_s24   ;;  %p13559_p1 = scmp.ne.s32.totalorder %s13437_s8, 0 }
 0x47b   : > { %p13560_p2 = scmp.ge.s32.totalorder %s12167_s27, 2  ;;  %s8660_s22 = scalar_lea.sflag [#allocation6], %s8659_s21 }
 0x47d   : > { %p11408_p6 = pnand %p13560_p2, %p13559_p1 }
 0x47f   : > { %p11409_p12 = pneg %p11408_p6 }
 0x481   : > { %12150 = dma.done.wait (%p11409_p12), %s8660_s22, 4096  }
 0x482   : > { %12152 = vsyncadd (%p11409_p12), %s8660_s22, 4294963200  ;;  %p21_p7 = scmp.ge.s32.totalorder %s12293_s23, 4   ;;  %s13561_s24 = smov %s12159_s25 }
 0x483   : > { %s13562_s25 = smov %s12163_s26  ;;  %s13563_s26 = smov %s12309_s12 }
 0x484   : > { %s13564_s27 = smov %s12293_s23  ;;  %23 = sbr.rel (!%p21_p7) target bundleno = 8 (0x8), region = 104 }
 0x489   :  { %8665 = vsyncpa [#allocation5], 1 }
 0x48a   :  { %8667 = vsyncpa [#allocation5 + $0x1], 1 }
 0x48b   :  { %8668 = vsyncpa [#allocation8], 1 }
 0x48c   :  { %8669 = vsyncpa [#allocation6], 1 }
 0x48d   :  { %8671 = vsyncpa [#allocation6 + $0x1], 1 }

</bundles_post_ra>
